<compile_context>
chip_gen: v7x
topology: tpu7x:2x2x1
jax: 0.10.0
libtpu: 0.0.40
codegen_flags: <defaults>
</compile_context>

<pallas_src>
import functools
import math

import jax
import jax.numpy as jnp
import numpy as np
from jax.experimental import pallas as pl
from jax.experimental.pallas import tpu as pltpu

MASK_EPS = 1e-6   # Masklayer esp
LN_EPS = 1e-5     # nn.LayerNorm default eps
POOL_EPS = 1e-6   # denominator eps in pooling
NEG_BIG = -1e30   # cross-sample score suppression (exp -> exact 0 in f32)
LANES = 128
SUBLANES = 8


def _layernorm(h, g, b):
    mu = jnp.mean(h, axis=-1, keepdims=True)
    var = jnp.mean((h - mu) ** 2, axis=-1, keepdims=True)
    return (h - mu) * jax.lax.rsqrt(var + LN_EPS) * g + b


def _bf16(a):
    return a.astype(jnp.bfloat16)


# ----------------------------- Pallas kernel --------------------------------
def mlp_self_kernel(x_ref, w_ref, diag_ref, pool_ref, hmask_ref, out_ref, *,
                    offsets, tb, seq, hidden, num_heads):
    def p(name):
        off, r, c = offsets[name]
        return w_ref[off:off + r, 0:c]          # static view -> single VMEM load

    def p_pad(name):                            # full 128-lane (zero-padded) view
        off, r, _ = offsets[name]
        return w_ref[off:off + r, :]

    H = hidden
    S = seq
    TBS = tb * S

    x = x_ref[...].astype(jnp.float32)                                  # [TBS, num_i]

    # ---- Masklayer: (|x|.sum(dim=1) > esp).float() -------------------------
    mask = (jnp.sum(jnp.abs(x), axis=1, keepdims=True) > MASK_EPS)
    mask = mask.astype(jnp.float32)                                     # [TBS, 1]

    # ---- mask_encoder: nn.Embedding(2, H) on 0/1 indices == row select -----
    emb = p("mask_emb")                                                 # [2, H]
    mask_feat = mask * emb[1:2, :] + (1.0 - mask) * emb[0:1, :]         # [TBS, H]

    # ---- obj_encoder: Linear -> LayerNorm -> ReLU ---------------------------
    obj = jnp.dot(_bf16(x), _bf16(p("obj_w")),
                  preferred_element_type=jnp.float32) + p("obj_b")
    obj = jnp.maximum(_layernorm(obj, p("obj_ln_g"), p("obj_ln_b")), 0.0)
    combined = obj + mask_feat                                          # f32 [TBS, H]

    # ---- MultiheadAttention (fused QKV; q scale folded into weights) -------
    qkv = jnp.dot(_bf16(combined), _bf16(p("qkv_w")),
                  preferred_element_type=jnp.float32) + p("qkv_b")
    q = qkv[:, 0:H]
    k = qkv[:, H:2 * H]
    v = qkv[:, 2 * H:3 * H]

    hmask = hmask_ref[...]                                              # [nh, H] 0/1
    # Stack per-head (lane-masked) queries along sublanes: one NT matmul gives
    # every head's score block, one softmax chain covers all heads.
    q_stack = jnp.concatenate(
        [q * hmask[h:h + 1, :] for h in range(num_heads)], axis=0)      # [nh*TBS, H]

    scores = jax.lax.dot_general(
        _bf16(q_stack), _bf16(k), (((1,), (1,)), ((), ())),
        preferred_element_type=jnp.float32)                             # [nh*TBS, TBS]

    # PyTorch float attn_mask is ADDITIVE: scores[i, j] += mask[j] within a
    # sample; cross-sample pairs inside the block get -1e30 (precomputed
    # diag_ref).  Broadcast over heads via a layout-neutral leading reshape.
    add_mask = diag_ref[...] + jnp.transpose(mask)                      # [TBS, TBS]
    scores = (scores.reshape(num_heads, TBS, TBS) + add_mask[None]
              ).reshape(num_heads * TBS, TBS)
    scores = scores - jnp.max(scores, axis=-1, keepdims=True)
    pvals = jnp.exp(scores)                                             # un-normalized
    row_sum = jnp.sum(pvals, axis=-1, keepdims=True)                    # [nh*TBS, 1]

    o_stack = jnp.dot(_bf16(pvals), _bf16(v),
                      preferred_element_type=jnp.float32)               # [nh*TBS, H]

    # Collapse heads onto their (disjoint) lanes; normalize AFTER PV so the
    # softmax divide is a small [TBS,H] EUP reciprocal instead of a
    # [nh*TBS,TBS] VPU divide.
    hm0 = hmask[0:1, :]
    attn_acc = o_stack[0:TBS, :] * hm0
    denom = row_sum[0:TBS, :] * hm0
    for h in range(1, num_heads):
        hm = hmask[h:h + 1, :]
        attn_acc = attn_acc + o_stack[h * TBS:(h + 1) * TBS, :] * hm
        denom = denom + row_sum[h * TBS:(h + 1) * TBS, :] * hm
    attn_acc = attn_acc * pl.reciprocal(denom, approx=True)

    attn = jnp.dot(_bf16(attn_acc), _bf16(p("out_w")),
                   preferred_element_type=jnp.float32) + p("out_b")

    # ---- residual + norm1 ---------------------------------------------------
    gf = _layernorm(combined + attn, p("n1_g"), p("n1_b"))              # [TBS, H]

    # ---- global_mlp ---------------------------------------------------------
    h1 = jnp.dot(_bf16(gf), _bf16(p("g1_w")),
                 preferred_element_type=jnp.float32) + p("g1_b")
    h1 = jnp.maximum(_layernorm(h1, p("g1_ln_g"), p("g1_ln_b")), 0.0)   # [TBS, 2H]
    h2 = jnp.dot(_bf16(h1), _bf16(p("g2_w")),
                 preferred_element_type=jnp.float32) + p("g2_b")
    h2 = jnp.maximum(_layernorm(h2, p("g2_ln_g"), p("g2_ln_b")), 0.0)   # [TBS, 4H]

    # ---- masked per-sample pooling via a (precomputed) pooling matmul -------
    pool = pool_ref[...]                                                # [TB, TBS]
    pooled = jnp.dot(pool, h2 * mask, preferred_element_type=jnp.float32)  # [TB, 4H]
    cnt = jnp.dot(pool, mask, preferred_element_type=jnp.float32) + POOL_EPS
    pooled = pooled / cnt

    # ---- regressor (tiny [TB, ...] matmuls; f32 operands are fine) ----------
    r1 = jnp.dot(pooled, p("r1_w"), preferred_element_type=jnp.float32) + p("r1_b")
    r1 = jnp.maximum(_layernorm(r1, p("r1_ln_g"), p("r1_ln_b")), 0.0)
    r2 = jnp.dot(r1, p("r2_w"), preferred_element_type=jnp.float32) + p("r2_b")
    r2 = jnp.maximum(_layernorm(r2, p("r2_ln_g"), p("r2_ln_b")), 0.0)
    # Full 128-lane padded r3 views -> lane-dense output store.
    out = jnp.dot(r2, p_pad("r3_w"), preferred_element_type=jnp.float32) + p_pad("r3_b")
    out_ref[...] = out.astype(out_ref.dtype)                            # [TB, 128]


# --------------------------- parameter packing -------------------------------
_MATRIX_NAMES = ["mask_emb", "obj_w", "qkv_w", "out_w",
                 "g1_w", "g2_w", "r1_w", "r2_w", "r3_w"]
_VECTOR_NAMES = ["obj_b", "obj_ln_g", "obj_ln_b", "qkv_b", "out_b",
                 "n1_g", "n1_b",
                 "g1_b", "g1_ln_g", "g1_ln_b",
                 "g2_b", "g2_ln_g", "g2_ln_b",
                 "r1_b", "r1_ln_g", "r1_ln_b",
                 "r2_b", "r2_ln_g", "r2_ln_b",
                 "r3_b"]


def pack_params(params, num_heads):
    """Pack every parameter into one (8,128)-aligned f32 buffer (done once).

    The 1/sqrt(head_dim) attention scale is folded into the q columns of the
    fused QKV weight/bias here, so the kernel never multiplies by it.
    """
    H = params["obj_w"].shape[1]
    head_dim = H // num_heads
    scale = 1.0 / math.sqrt(float(head_dim))

    tensors = dict(params)
    tensors["qkv_w"] = jnp.concatenate(
        [params["q_w"] * scale, params["k_w"], params["v_w"]], axis=1)  # [H, 3H]
    tensors["qkv_b"] = jnp.concatenate(
        [params["q_b"] * scale, params["k_b"], params["v_b"]], axis=1)  # [1, 3H]

    offsets = {}
    blocks = []
    row = 0
    for name in _MATRIX_NAMES + _VECTOR_NAMES:
        arr = jnp.asarray(tensors[name], jnp.float32)
        r, c = arr.shape
        assert c <= LANES, f"{name} wider than {LANES} lanes"
        r_pad = ((r + SUBLANES - 1) // SUBLANES) * SUBLANES
        block = jnp.zeros((r_pad, LANES), jnp.float32).at[:r, :c].set(arr)
        offsets[name] = (row, r, c)
        blocks.append(block)
        row += r_pad
    packed = jnp.concatenate(blocks, axis=0)                            # [R, 128]
    return packed, offsets


def make_constants(tb, seq, hidden, num_heads):
    """Constant index structures, built once on the host (not per grid step)."""
    tbs = tb * seq
    head_dim = hidden // num_heads
    samp = np.arange(tbs) // seq
    # 0 within a sample, -1e30 across samples (additive score bias).
    diag_bias = np.where(samp[:, None] == samp[None, :], 0.0, NEG_BIG).astype(np.float32)
    # Pooling matrix: row b sums the S rows of sample b.
    pool = (np.arange(tb)[:, None] == samp[None, :]).astype(np.float32)
    # Per-head lane masks.
    hmask = np.zeros((num_heads, hidden), np.float32)
    for h in range(num_heads):
        hmask[h, h * head_dim:(h + 1) * head_dim] = 1.0
    return jnp.asarray(diag_bias), jnp.asarray(pool), jnp.asarray(hmask)


# ------------------------------- wrapper -------------------------------------
def mlp_self_forward_batched(x_batch, packed, offsets, consts, *,
                             hidden, num_heads, num_o, tb=24):
    B, S, num_i = x_batch.shape
    assert hidden % num_heads == 0
    tbs = tb * S
    assert tbs % SUBLANES == 0, "tb*S must be a multiple of 8 (sublane constraint)"

    nb = pl.cdiv(B, tb)
    b_pad = nb * tb
    diag_bias, pool, hmask = consts

    x_flat = x_batch.reshape(B * S, num_i).astype(jnp.float32)
    pad_rows = b_pad * S - B * S
    if pad_rows:
        x_flat = jnp.pad(x_flat, ((0, pad_rows), (0, 0)))

    R = packed.shape[0]
    H = hidden
    kernel = functools.partial(mlp_self_kernel, offsets=offsets, tb=tb, seq=S,
                               hidden=hidden, num_heads=num_heads)

    flops_per_block = 2 * (
        tbs * num_i * H                          # obj encoder
        + tbs * H * 3 * H                        # fused QKV
        + 2 * num_heads * tbs * tbs * H          # attention (QK^T and PV)
        + tbs * H * H                            # out proj
        + tbs * H * 2 * H                        # g1
        + tbs * 2 * H * 4 * H                    # g2
        + tb * tbs * 4 * H                       # pooling matmul
        + tb * 4 * H * 2 * H                     # r1
        + tb * 2 * H * H                         # r2
        + tb * H * LANES)                        # r3 (lane-padded)
    cost = pl.CostEstimate(
        flops=nb * flops_per_block,
        transcendentals=nb * (num_heads * tbs * tbs + tbs * H + 4 * tbs + 2 * tb),
        bytes_accessed=4 * (x_flat.size + packed.size + diag_bias.size
                            + pool.size + hmask.size + b_pad * LANES))

    out = pl.pallas_call(
        kernel,
        out_shape=jax.ShapeDtypeStruct((b_pad, LANES), jnp.float32),
        grid=(nb,),
        in_specs=[
            pl.BlockSpec((tbs, num_i), lambda i: (i, 0)),       # batch tile of inputs
            pl.BlockSpec((R, LANES), lambda i: (0, 0)),         # packed weights (resident)
            pl.BlockSpec((tbs, tbs), lambda i: (0, 0)),         # block-diag bias (resident)
            pl.BlockSpec((tb, tbs), lambda i: (0, 0)),          # pooling matrix (resident)
            pl.BlockSpec((num_heads, hidden), lambda i: (0, 0)),  # head lane masks
        ],
        out_specs=pl.BlockSpec((tb, LANES), lambda i: (i, 0)),  # lane-dense output
        compiler_params=pltpu.CompilerParams(
            dimension_semantics=("parallel",)),                 # shard blocks across TCs
        cost_estimate=cost,
    )(x_flat, packed, diag_bias, pool, hmask)
    return out[:B, :num_o]                                      # [B, num_o]


# --------------------------- plain-JAX reference -----------------------------
def reference_forward(x, params, num_heads):
    H = params["obj_w"].shape[1]
    hd = H // num_heads
    S = x.shape[0]
    mask = (jnp.sum(jnp.abs(x), axis=1) > MASK_EPS).astype(jnp.float32)     # [S]
    mask_feat = params["mask_emb"][mask.astype(jnp.int32)]                  # [S, H]
    obj = x @ params["obj_w"] + params["obj_b"]
    obj = jax.nn.relu(_layernorm(obj, params["obj_ln_g"], params["obj_ln_b"]))
    combined = obj + mask_feat
    q = combined @ params["q_w"] + params["q_b"]
    k = combined @ params["k_w"] + params["k_b"]
    v = combined @ params["v_w"] + params["v_b"]
    qh = q.reshape(S, num_heads, hd).transpose(1, 0, 2) * (hd ** -0.5)
    kh = k.reshape(S, num_heads, hd).transpose(1, 0, 2)
    vh = v.reshape(S, num_heads, hd).transpose(1, 0, 2)
    scores = jnp.einsum("hqd,hkd->hqk", qh, kh) + mask[None, None, :]
    p = jax.nn.softmax(scores, axis=-1)
    o = jnp.einsum("hqk,hkd->hqd", p, vh).transpose(1, 0, 2).reshape(S, H)
    attn = o @ params["out_w"] + params["out_b"]
    gf = _layernorm(combined + attn, params["n1_g"], params["n1_b"])
    h1 = jax.nn.relu(_layernorm(gf @ params["g1_w"] + params["g1_b"],
                                params["g1_ln_g"], params["g1_ln_b"]))
    h2 = jax.nn.relu(_layernorm(h1 @ params["g2_w"] + params["g2_b"],
                                params["g2_ln_g"], params["g2_ln_b"]))
    weighted = h2 * mask[:, None]
    pooled = jnp.sum(weighted, axis=0) / (jnp.sum(mask[:, None]) + POOL_EPS)
    r1 = jax.nn.relu(_layernorm(pooled[None, :] @ params["r1_w"] + params["r1_b"],
                                params["r1_ln_g"], params["r1_ln_b"]))
    r2 = jax.nn.relu(_layernorm(r1 @ params["r2_w"] + params["r2_b"],
                                params["r2_ln_g"], params["r2_ln_b"]))
    out = r2 @ params["r3_w"] + params["r3_b"]
    return out[0]


# --------------------------- parameter init ----------------------------------
def init_params(key, num_i, num_h, num_o):
    H = num_h
    keys = iter(jax.random.split(key, 64))

    def w(shape, scale=0.2):
        return jax.random.normal(next(keys), shape, jnp.float32) * scale

    def ln(n):
        g = 1.0 + 0.1 * jax.random.normal(next(keys), (1, n), jnp.float32)
        b = 0.05 * jax.random.normal(next(keys), (1, n), jnp.float32)
        return g, b

    p = {}
    p["mask_emb"] = w((2, H))
    p["obj_w"], p["obj_b"] = w((num_i, H)), w((1, H), 0.05)
    p["obj_ln_g"], p["obj_ln_b"] = ln(H)
    p["q_w"], p["k_w"], p["v_w"] = w((H, H)), w((H, H)), w((H, H))
    p["q_b"], p["k_b"], p["v_b"] = w((1, H), 0.05), w((1, H), 0.05), w((1, H), 0.05)
    p["out_w"], p["out_b"] = w((H, H)), w((1, H), 0.05)
    p["n1_g"], p["n1_b"] = ln(H)
    p["g1_w"], p["g1_b"] = w((H, 2 * H)), w((1, 2 * H), 0.05)
    p["g1_ln_g"], p["g1_ln_b"] = ln(2 * H)
    p["g2_w"], p["g2_b"] = w((2 * H, 4 * H)), w((1, 4 * H), 0.05)
    p["g2_ln_g"], p["g2_ln_b"] = ln(4 * H)
    p["r1_w"], p["r1_b"] = w((4 * H, 2 * H)), w((1, 2 * H), 0.05)
    p["r1_ln_g"], p["r1_ln_b"] = ln(2 * H)
    p["r2_w"], p["r2_b"] = w((2 * H, H)), w((1, H), 0.05)
    p["r2_ln_g"], p["r2_ln_b"] = ln(H)
    p["r3_w"], p["r3_b"] = w((H, num_o)), w((1, num_o), 0.05)
    return p


if __name__ == "__main__":
    # Module hyper-params implied by the forward (seq length must be 7 because
    # attn_mask is built with .repeat(7, 1)); file name suggests num_i=9, num_o=3.
    S, num_i, num_h, num_o, num_heads = 7, 9, 32, 3, 4
    # tb*S must be a multiple of 8; tb=24 -> TBS=168 and nb=2 blocks for B=37,
    # giving an even one-block-per-TensorCore split on v7x.
    B, TB = 37, 24

    key = jax.random.PRNGKey(0)
    k_x, k_m, k_p = jax.random.split(key, 3)
    x = jax.random.normal(k_x, (B, S, num_i), jnp.float32)
    # zero out ~30% of objects so the mask has both 0s and 1s
    drop = jax.random.bernoulli(k_m, 0.3, (B, S))
    x = jnp.where(drop[:, :, None], 0.0, x)

    params = init_params(k_p, num_i, num_h, num_o)
    packed, offsets = pack_params(params, num_heads)   # one-time pack (q scale folded in)
    consts = make_constants(TB, S, num_h, num_heads)   # one-time constant tables

    y = mlp_self_forward_batched(x, packed, offsets, consts, hidden=num_h,
                                 num_heads=num_heads, num_o=num_o, tb=TB)
    y = jax.block_until_ready(y)

    # Reference in full f32 precision, scoped (no global config side effect).
    with jax.default_matmul_precision("highest"):
        y_ref = jax.vmap(lambda xs: reference_forward(xs, params, num_heads))(x)
        y_ref = jax.block_until_ready(y_ref)

    # Kernel uses bf16 MXU operands (f32 accumulation) vs an f32 "highest"
    # reference; ~0.5-1% relative drift over the 9 matmul+LayerNorm stages.
    np.testing.assert_allclose(np.asarray(y), np.asarray(y_ref), rtol=2e-2, atol=2e-2)
    assert y.shape == (B, num_o)

    print("KERNEL_OK")
</pallas_src>

<mosaic_0001>
module attributes {stable_mosaic.version = 11 : i64} {
  func.func @mlp_self_kernel(%arg0: i32, %arg1: memref<168x9xf32, #tpu.memory_space<vmem>>, %arg2: memref<568x128xf32, #tpu.memory_space<vmem>>, %arg3: memref<168x168xf32, #tpu.memory_space<vmem>>, %arg4: memref<24x168xf32, #tpu.memory_space<vmem>>, %arg5: memref<4x32xf32, #tpu.memory_space<vmem>>, %arg6: memref<24x128xf32, #tpu.memory_space<vmem>>) attributes {dimension_semantics = [#tpu.dimension_semantics<parallel>], iteration_bounds = array<i64: 2>, scalar_prefetch = 0 : i64, scratch_operands = 0 : i64, tpu.core_type = #tpu.core_type<tc>, window_params = [{transform_indices = @transform_0, window_bounds = array<i64: 168, 9>}, {pipeline_mode = #tpu.pipeline_mode<synchronous>, transform_indices = @transform_1, window_bounds = array<i64: 568, 128>}, {pipeline_mode = #tpu.pipeline_mode<synchronous>, transform_indices = @transform_2, window_bounds = array<i64: 168, 168>}, {pipeline_mode = #tpu.pipeline_mode<synchronous>, transform_indices = @transform_3, window_bounds = array<i64: 24, 168>}, {pipeline_mode = #tpu.pipeline_mode<synchronous>, transform_indices = @transform_4, window_bounds = array<i64: 4, 32>}, {transform_indices = @transform_5, window_bounds = array<i64: 24, 128>}]} {
    %c0 = arith.constant 0 : index
    %c0_0 = arith.constant 0 : index
    %0 = vector.load %arg1[%c0, %c0_0] : memref<168x9xf32, #tpu.memory_space<vmem>>, vector<168x9xf32>
    %1 = math.absf %0 : vector<168x9xf32>
    %cst = arith.constant dense<0.000000e+00> : vector<168xf32>
    %2 = vector.multi_reduction <add>, %1, %cst [1] : vector<168x9xf32> to vector<168xf32>
    %3 = vector.shape_cast %2 : vector<168xf32> to vector<168x1xf32>
    %cst_1 = arith.constant 9.99999997E-7 : f32
    %4 = vector.broadcast %cst_1 : f32 to vector<168x1xf32>
    %5 = arith.cmpf ogt, %3, %4 : vector<168x1xf32>
    %6 = arith.extui %5 : vector<168x1xi1> to vector<168x1xi32>
    %7 = arith.sitofp %6 : vector<168x1xi32> to vector<168x1xf32>
    %c0_2 = arith.constant 0 : index
    %c0_3 = arith.constant 0 : index
    %8 = vector.load %arg2[%c0_2, %c0_3] : memref<568x128xf32, #tpu.memory_space<vmem>>, vector<2x32xf32>
    %9 = vector.extract_strided_slice %8 {offsets = [1, 0], sizes = [1, 32], strides = [1, 1]} : vector<2x32xf32> to vector<1x32xf32>
    %10 = vector.broadcast %7 : vector<168x1xf32> to vector<168x32xf32>
    %11 = vector.broadcast %9 : vector<1x32xf32> to vector<168x32xf32>
    %12 = arith.mulf %10, %11 : vector<168x32xf32>
    %cst_4 = arith.constant 1.000000e+00 : f32
    %13 = vector.broadcast %cst_4 : f32 to vector<168x1xf32>
    %14 = arith.subf %13, %7 : vector<168x1xf32>
    %15 = vector.extract_strided_slice %8 {offsets = [0, 0], sizes = [1, 32], strides = [1, 1]} : vector<2x32xf32> to vector<1x32xf32>
    %16 = vector.broadcast %14 : vector<168x1xf32> to vector<168x32xf32>
    %17 = vector.broadcast %15 : vector<1x32xf32> to vector<168x32xf32>
    %18 = arith.mulf %16, %17 : vector<168x32xf32>
    %19 = arith.addf %12, %18 : vector<168x32xf32>
    %20 = arith.truncf %0 : vector<168x9xf32> to vector<168x9xbf16>
    %c8 = arith.constant 8 : index
    %c0_5 = arith.constant 0 : index
    %21 = vector.load %arg2[%c8, %c0_5] : memref<568x128xf32, #tpu.memory_space<vmem>>, vector<9x32xf32>
    %22 = arith.truncf %21 : vector<9x32xf32> to vector<9x32xbf16>
    %cst_6 = arith.constant dense<0.000000e+00> : vector<168x32xf32>
    %23 = tpu.matmul %20, %22, %cst_6 {dimension_numbers = #tpu.dot_dimension_numbers<[1], [0], [0], [1], [0, 0, 1, 1], [], []>} : vector<168x9xbf16>, vector<9x32xbf16>, vector<168x32xf32> -> vector<168x32xf32>
    %c408 = arith.constant 408 : index
    %c0_7 = arith.constant 0 : index
    %24 = vector.load %arg2[%c408, %c0_7] : memref<568x128xf32, #tpu.memory_space<vmem>>, vector<1x32xf32>
    %25 = vector.broadcast %24 : vector<1x32xf32> to vector<168x32xf32>
    %26 = arith.addf %23, %25 : vector<168x32xf32>
    %c416 = arith.constant 416 : index
    %c0_8 = arith.constant 0 : index
    %27 = vector.load %arg2[%c416, %c0_8] : memref<568x128xf32, #tpu.memory_space<vmem>>, vector<1x32xf32>
    %c424 = arith.constant 424 : index
    %c0_9 = arith.constant 0 : index
    %28 = vector.load %arg2[%c424, %c0_9] : memref<568x128xf32, #tpu.memory_space<vmem>>, vector<1x32xf32>
    %cst_10 = arith.constant dense<0.000000e+00> : vector<168xf32>
    %29 = vector.multi_reduction <add>, %26, %cst_10 [1] : vector<168x32xf32> to vector<168xf32>
    %30 = vector.shape_cast %29 : vector<168xf32> to vector<168x1xf32>
    %cst_11 = arith.constant 3.200000e+01 : f32
    %31 = vector.broadcast %cst_11 : f32 to vector<168x1xf32>
    %32 = arith.divf %30, %31 : vector<168x1xf32>
    %33 = vector.broadcast %32 : vector<168x1xf32> to vector<168x32xf32>
    %34 = arith.subf %26, %33 : vector<168x32xf32>
    %35 = arith.mulf %34, %34 : vector<168x32xf32>
    %cst_12 = arith.constant dense<0.000000e+00> : vector<168xf32>
    %36 = vector.multi_reduction <add>, %35, %cst_12 [1] : vector<168x32xf32> to vector<168xf32>
    %37 = vector.shape_cast %36 : vector<168xf32> to vector<168x1xf32>
    %cst_13 = arith.constant 3.200000e+01 : f32
    %38 = vector.broadcast %cst_13 : f32 to vector<168x1xf32>
    %39 = arith.divf %37, %38 : vector<168x1xf32>
    %40 = vector.broadcast %32 : vector<168x1xf32> to vector<168x32xf32>
    %41 = arith.subf %26, %40 : vector<168x32xf32>
    %cst_14 = arith.constant 9.99999974E-6 : f32
    %42 = vector.broadcast %cst_14 : f32 to vector<168x1xf32>
    %43 = arith.addf %39, %42 : vector<168x1xf32>
    %44 = math.rsqrt %43 : vector<168x1xf32>
    %45 = vector.broadcast %44 : vector<168x1xf32> to vector<168x32xf32>
    %46 = arith.mulf %41, %45 : vector<168x32xf32>
    %47 = vector.broadcast %27 : vector<1x32xf32> to vector<168x32xf32>
    %48 = arith.mulf %46, %47 : vector<168x32xf32>
    %49 = vector.broadcast %28 : vector<1x32xf32> to vector<168x32xf32>
    %50 = arith.addf %48, %49 : vector<168x32xf32>
    %cst_15 = arith.constant 0.000000e+00 : f32
    %51 = vector.broadcast %cst_15 : f32 to vector<168x32xf32>
    %52 = arith.maximumf %50, %51 : vector<168x32xf32>
    %53 = arith.addf %52, %19 : vector<168x32xf32>
    %54 = arith.truncf %53 : vector<168x32xf32> to vector<168x32xbf16>
    %c24 = arith.constant 24 : index
    %c0_16 = arith.constant 0 : index
    %55 = vector.load %arg2[%c24, %c0_16] : memref<568x128xf32, #tpu.memory_space<vmem>>, vector<32x96xf32>
    %56 = arith.truncf %55 : vector<32x96xf32> to vector<32x96xbf16>
    %cst_17 = arith.constant dense<0.000000e+00> : vector<168x96xf32>
    %57 = tpu.matmul %54, %56, %cst_17 {dimension_numbers = #tpu.dot_dimension_numbers<[1], [0], [0], [1], [0, 0, 1, 1], [], []>} : vector<168x32xbf16>, vector<32x96xbf16>, vector<168x96xf32> -> vector<168x96xf32>
    %c432 = arith.constant 432 : index
    %c0_18 = arith.constant 0 : index
    %58 = vector.load %arg2[%c432, %c0_18] : memref<568x128xf32, #tpu.memory_space<vmem>>, vector<1x96xf32>
    %59 = vector.broadcast %58 : vector<1x96xf32> to vector<168x96xf32>
    %60 = arith.addf %57, %59 : vector<168x96xf32>
    %61 = vector.extract_strided_slice %60 {offsets = [0, 0], sizes = [168, 32], strides = [1, 1]} : vector<168x96xf32> to vector<168x32xf32>
    %62 = vector.extract_strided_slice %60 {offsets = [0, 32], sizes = [168, 32], strides = [1, 1]} : vector<168x96xf32> to vector<168x32xf32>
    %63 = vector.extract_strided_slice %60 {offsets = [0, 64], sizes = [168, 32], strides = [1, 1]} : vector<168x96xf32> to vector<168x32xf32>
    %c0_19 = arith.constant 0 : index
    %c0_20 = arith.constant 0 : index
    %64 = vector.load %arg5[%c0_19, %c0_20] : memref<4x32xf32, #tpu.memory_space<vmem>>, vector<4x32xf32>
    %65 = vector.extract_strided_slice %64 {offsets = [0, 0], sizes = [1, 32], strides = [1, 1]} : vector<4x32xf32> to vector<1x32xf32>
    %66 = vector.broadcast %65 : vector<1x32xf32> to vector<168x32xf32>
    %67 = arith.mulf %61, %66 : vector<168x32xf32>
    %68 = vector.extract_strided_slice %64 {offsets = [1, 0], sizes = [1, 32], strides = [1, 1]} : vector<4x32xf32> to vector<1x32xf32>
    %69 = vector.broadcast %68 : vector<1x32xf32> to vector<168x32xf32>
    %70 = arith.mulf %61, %69 : vector<168x32xf32>
    %71 = vector.extract_strided_slice %64 {offsets = [2, 0], sizes = [1, 32], strides = [1, 1]} : vector<4x32xf32> to vector<1x32xf32>
    %72 = vector.broadcast %71 : vector<1x32xf32> to vector<168x32xf32>
    %73 = arith.mulf %61, %72 : vector<168x32xf32>
    %74 = vector.extract_strided_slice %64 {offsets = [3, 0], sizes = [1, 32], strides = [1, 1]} : vector<4x32xf32> to vector<1x32xf32>
    %75 = vector.broadcast %74 : vector<1x32xf32> to vector<168x32xf32>
    %76 = arith.mulf %61, %75 : vector<168x32xf32>
    %77 = tpu.concatenate %67, %70, %73, %76 in 0 : vector<168x32xf32>, vector<168x32xf32>, vector<168x32xf32>, vector<168x32xf32> -> vector<672x32xf32>
    %78 = arith.truncf %77 : vector<672x32xf32> to vector<672x32xbf16>
    %79 = arith.truncf %62 : vector<168x32xf32> to vector<168x32xbf16>
    %cst_21 = arith.constant dense<0.000000e+00> : vector<672x168xf32>
    %80 = tpu.matmul %78, %79, %cst_21 {dimension_numbers = #tpu.dot_dimension_numbers<[1], [1], [0], [0], [0, 0, 1, 0], [], []>} : vector<672x32xbf16>, vector<168x32xbf16>, vector<672x168xf32> -> vector<672x168xf32>
    %c0_22 = arith.constant 0 : index
    %c0_23 = arith.constant 0 : index
    %81 = vector.load %arg3[%c0_22, %c0_23] : memref<168x168xf32, #tpu.memory_space<vmem>>, vector<168x168xf32>
    %82 = tpu.transpose %7, [1, 0] : vector<168x1xf32> -> vector<1x168xf32>
    %83 = vector.broadcast %82 : vector<1x168xf32> to vector<168x168xf32>
    %84 = arith.addf %81, %83 : vector<168x168xf32>
    %85 = vector.shape_cast %80 : vector<672x168xf32> to vector<4x168x168xf32>
    %86 = vector.shape_cast %84 : vector<168x168xf32> to vector<1x168x168xf32>
    %87 = vector.broadcast %86 : vector<1x168x168xf32> to vector<4x168x168xf32>
    %88 = arith.addf %85, %87 : vector<4x168x168xf32>
    %89 = vector.shape_cast %88 : vector<4x168x168xf32> to vector<672x168xf32>
    %cst_24 = arith.constant dense<0xFF800000> : vector<672xf32>
    %90 = vector.multi_reduction <maximumf>, %89, %cst_24 [1] : vector<672x168xf32> to vector<672xf32>
    %91 = vector.shape_cast %90 : vector<672xf32> to vector<672x1xf32>
    %92 = vector.broadcast %91 : vector<672x1xf32> to vector<672x168xf32>
    %93 = arith.subf %89, %92 : vector<672x168xf32>
    %94 = math.exp %93 : vector<672x168xf32>
    %cst_25 = arith.constant dense<0.000000e+00> : vector<672xf32>
    %95 = vector.multi_reduction <add>, %94, %cst_25 [1] : vector<672x168xf32> to vector<672xf32>
    %96 = vector.shape_cast %95 : vector<672xf32> to vector<672x1xf32>
    %97 = arith.truncf %94 : vector<672x168xf32> to vector<672x168xbf16>
    %98 = arith.truncf %63 : vector<168x32xf32> to vector<168x32xbf16>
    %cst_26 = arith.constant dense<0.000000e+00> : vector<672x32xf32>
    %99 = tpu.matmul %97, %98, %cst_26 {dimension_numbers = #tpu.dot_dimension_numbers<[1], [0], [0], [1], [0, 0, 1, 1], [], []>} : vector<672x168xbf16>, vector<168x32xbf16>, vector<672x32xf32> -> vector<672x32xf32>
    %100 = vector.extract_strided_slice %64 {offsets = [0, 0], sizes = [1, 32], strides = [1, 1]} : vector<4x32xf32> to vector<1x32xf32>
    %101 = vector.extract_strided_slice %99 {offsets = [0, 0], sizes = [168, 32], strides = [1, 1]} : vector<672x32xf32> to vector<168x32xf32>
    %102 = vector.broadcast %100 : vector<1x32xf32> to vector<168x32xf32>
    %103 = arith.mulf %101, %102 : vector<168x32xf32>
    %104 = vector.extract_strided_slice %96 {offsets = [0, 0], sizes = [168, 1], strides = [1, 1]} : vector<672x1xf32> to vector<168x1xf32>
    %105 = vector.broadcast %104 : vector<168x1xf32> to vector<168x32xf32>
    %106 = vector.broadcast %100 : vector<1x32xf32> to vector<168x32xf32>
    %107 = arith.mulf %105, %106 : vector<168x32xf32>
    %108 = vector.extract_strided_slice %64 {offsets = [1, 0], sizes = [1, 32], strides = [1, 1]} : vector<4x32xf32> to vector<1x32xf32>
    %109 = vector.extract_strided_slice %99 {offsets = [168, 0], sizes = [168, 32], strides = [1, 1]} : vector<672x32xf32> to vector<168x32xf32>
    %110 = vector.broadcast %108 : vector<1x32xf32> to vector<168x32xf32>
    %111 = arith.mulf %109, %110 : vector<168x32xf32>
    %112 = arith.addf %103, %111 : vector<168x32xf32>
    %113 = vector.extract_strided_slice %96 {offsets = [168, 0], sizes = [168, 1], strides = [1, 1]} : vector<672x1xf32> to vector<168x1xf32>
    %114 = vector.broadcast %113 : vector<168x1xf32> to vector<168x32xf32>
    %115 = vector.broadcast %108 : vector<1x32xf32> to vector<168x32xf32>
    %116 = arith.mulf %114, %115 : vector<168x32xf32>
    %117 = arith.addf %107, %116 : vector<168x32xf32>
    %118 = vector.extract_strided_slice %64 {offsets = [2, 0], sizes = [1, 32], strides = [1, 1]} : vector<4x32xf32> to vector<1x32xf32>
    %119 = vector.extract_strided_slice %99 {offsets = [336, 0], sizes = [168, 32], strides = [1, 1]} : vector<672x32xf32> to vector<168x32xf32>
    %120 = vector.broadcast %118 : vector<1x32xf32> to vector<168x32xf32>
    %121 = arith.mulf %119, %120 : vector<168x32xf32>
    %122 = arith.addf %112, %121 : vector<168x32xf32>
    %123 = vector.extract_strided_slice %96 {offsets = [336, 0], sizes = [168, 1], strides = [1, 1]} : vector<672x1xf32> to vector<168x1xf32>
    %124 = vector.broadcast %123 : vector<168x1xf32> to vector<168x32xf32>
    %125 = vector.broadcast %118 : vector<1x32xf32> to vector<168x32xf32>
    %126 = arith.mulf %124, %125 : vector<168x32xf32>
    %127 = arith.addf %117, %126 : vector<168x32xf32>
    %128 = vector.extract_strided_slice %64 {offsets = [3, 0], sizes = [1, 32], strides = [1, 1]} : vector<4x32xf32> to vector<1x32xf32>
    %129 = vector.extract_strided_slice %99 {offsets = [504, 0], sizes = [168, 32], strides = [1, 1]} : vector<672x32xf32> to vector<168x32xf32>
    %130 = vector.broadcast %128 : vector<1x32xf32> to vector<168x32xf32>
    %131 = arith.mulf %129, %130 : vector<168x32xf32>
    %132 = arith.addf %122, %131 : vector<168x32xf32>
    %133 = vector.extract_strided_slice %96 {offsets = [504, 0], sizes = [168, 1], strides = [1, 1]} : vector<672x1xf32> to vector<168x1xf32>
    %134 = vector.broadcast %133 : vector<168x1xf32> to vector<168x32xf32>
    %135 = vector.broadcast %128 : vector<1x32xf32> to vector<168x32xf32>
    %136 = arith.mulf %134, %135 : vector<168x32xf32>
    %137 = arith.addf %127, %136 : vector<168x32xf32>
    %138 = tpu.reciprocal %137 {approx = true} : vector<168x32xf32> -> vector<168x32xf32>
    %139 = arith.mulf %132, %138 : vector<168x32xf32>
    %140 = arith.truncf %139 : vector<168x32xf32> to vector<168x32xbf16>
    %c56 = arith.constant 56 : index
    %c0_27 = arith.constant 0 : index
    %141 = vector.load %arg2[%c56, %c0_27] : memref<568x128xf32, #tpu.memory_space<vmem>>, vector<32x32xf32>
    %142 = arith.truncf %141 : vector<32x32xf32> to vector<32x32xbf16>
    %cst_28 = arith.constant dense<0.000000e+00> : vector<168x32xf32>
    %143 = tpu.matmul %140, %142, %cst_28 {dimension_numbers = #tpu.dot_dimension_numbers<[1], [0], [0], [1], [0, 0, 1, 1], [], []>} : vector<168x32xbf16>, vector<32x32xbf16>, vector<168x32xf32> -> vector<168x32xf32>
    %c440 = arith.constant 440 : index
    %c0_29 = arith.constant 0 : index
    %144 = vector.load %arg2[%c440, %c0_29] : memref<568x128xf32, #tpu.memory_space<vmem>>, vector<1x32xf32>
    %145 = vector.broadcast %144 : vector<1x32xf32> to vector<168x32xf32>
    %146 = arith.addf %143, %145 : vector<168x32xf32>
    %147 = arith.addf %53, %146 : vector<168x32xf32>
    %c448 = arith.constant 448 : index
    %c0_30 = arith.constant 0 : index
    %148 = vector.load %arg2[%c448, %c0_30] : memref<568x128xf32, #tpu.memory_space<vmem>>, vector<1x32xf32>
    %c456 = arith.constant 456 : index
    %c0_31 = arith.constant 0 : index
    %149 = vector.load %arg2[%c456, %c0_31] : memref<568x128xf32, #tpu.memory_space<vmem>>, vector<1x32xf32>
    %cst_32 = arith.constant dense<0.000000e+00> : vector<168xf32>
    %150 = vector.multi_reduction <add>, %147, %cst_32 [1] : vector<168x32xf32> to vector<168xf32>
    %151 = vector.shape_cast %150 : vector<168xf32> to vector<168x1xf32>
    %cst_33 = arith.constant 3.200000e+01 : f32
    %152 = vector.broadcast %cst_33 : f32 to vector<168x1xf32>
    %153 = arith.divf %151, %152 : vector<168x1xf32>
    %154 = vector.broadcast %153 : vector<168x1xf32> to vector<168x32xf32>
    %155 = arith.subf %147, %154 : vector<168x32xf32>
    %156 = arith.mulf %155, %155 : vector<168x32xf32>
    %cst_34 = arith.constant dense<0.000000e+00> : vector<168xf32>
    %157 = vector.multi_reduction <add>, %156, %cst_34 [1] : vector<168x32xf32> to vector<168xf32>
    %158 = vector.shape_cast %157 : vector<168xf32> to vector<168x1xf32>
    %cst_35 = arith.constant 3.200000e+01 : f32
    %159 = vector.broadcast %cst_35 : f32 to vector<168x1xf32>
    %160 = arith.divf %158, %159 : vector<168x1xf32>
    %161 = vector.broadcast %153 : vector<168x1xf32> to vector<168x32xf32>
    %162 = arith.subf %147, %161 : vector<168x32xf32>
    %cst_36 = arith.constant 9.99999974E-6 : f32
    %163 = vector.broadcast %cst_36 : f32 to vector<168x1xf32>
    %164 = arith.addf %160, %163 : vector<168x1xf32>
    %165 = math.rsqrt %164 : vector<168x1xf32>
    %166 = vector.broadcast %165 : vector<168x1xf32> to vector<168x32xf32>
    %167 = arith.mulf %162, %166 : vector<168x32xf32>
    %168 = vector.broadcast %148 : vector<1x32xf32> to vector<168x32xf32>
    %169 = arith.mulf %167, %168 : vector<168x32xf32>
    %170 = vector.broadcast %149 : vector<1x32xf32> to vector<168x32xf32>
    %171 = arith.addf %169, %170 : vector<168x32xf32>
    %172 = arith.truncf %171 : vector<168x32xf32> to vector<168x32xbf16>
    %c88 = arith.constant 88 : index
    %c0_37 = arith.constant 0 : index
    %173 = vector.load %arg2[%c88, %c0_37] : memref<568x128xf32, #tpu.memory_space<vmem>>, vector<32x64xf32>
    %174 = arith.truncf %173 : vector<32x64xf32> to vector<32x64xbf16>
    %cst_38 = arith.constant dense<0.000000e+00> : vector<168x64xf32>
    %175 = tpu.matmul %172, %174, %cst_38 {dimension_numbers = #tpu.dot_dimension_numbers<[1], [0], [0], [1], [0, 0, 1, 1], [], []>} : vector<168x32xbf16>, vector<32x64xbf16>, vector<168x64xf32> -> vector<168x64xf32>
    %c464 = arith.constant 464 : index
    %c0_39 = arith.constant 0 : index
    %176 = vector.load %arg2[%c464, %c0_39] : memref<568x128xf32, #tpu.memory_space<vmem>>, vector<1x64xf32>
    %177 = vector.broadcast %176 : vector<1x64xf32> to vector<168x64xf32>
    %178 = arith.addf %175, %177 : vector<168x64xf32>
    %c472 = arith.constant 472 : index
    %c0_40 = arith.constant 0 : index
    %179 = vector.load %arg2[%c472, %c0_40] : memref<568x128xf32, #tpu.memory_space<vmem>>, vector<1x64xf32>
    %c480 = arith.constant 480 : index
    %c0_41 = arith.constant 0 : index
    %180 = vector.load %arg2[%c480, %c0_41] : memref<568x128xf32, #tpu.memory_space<vmem>>, vector<1x64xf32>
    %cst_42 = arith.constant dense<0.000000e+00> : vector<168xf32>
    %181 = vector.multi_reduction <add>, %178, %cst_42 [1] : vector<168x64xf32> to vector<168xf32>
    %182 = vector.shape_cast %181 : vector<168xf32> to vector<168x1xf32>
    %cst_43 = arith.constant 6.400000e+01 : f32
    %183 = vector.broadcast %cst_43 : f32 to vector<168x1xf32>
    %184 = arith.divf %182, %183 : vector<168x1xf32>
    %185 = vector.broadcast %184 : vector<168x1xf32> to vector<168x64xf32>
    %186 = arith.subf %178, %185 : vector<168x64xf32>
    %187 = arith.mulf %186, %186 : vector<168x64xf32>
    %cst_44 = arith.constant dense<0.000000e+00> : vector<168xf32>
    %188 = vector.multi_reduction <add>, %187, %cst_44 [1] : vector<168x64xf32> to vector<168xf32>
    %189 = vector.shape_cast %188 : vector<168xf32> to vector<168x1xf32>
    %cst_45 = arith.constant 6.400000e+01 : f32
    %190 = vector.broadcast %cst_45 : f32 to vector<168x1xf32>
    %191 = arith.divf %189, %190 : vector<168x1xf32>
    %192 = vector.broadcast %184 : vector<168x1xf32> to vector<168x64xf32>
    %193 = arith.subf %178, %192 : vector<168x64xf32>
    %cst_46 = arith.constant 9.99999974E-6 : f32
    %194 = vector.broadcast %cst_46 : f32 to vector<168x1xf32>
    %195 = arith.addf %191, %194 : vector<168x1xf32>
    %196 = math.rsqrt %195 : vector<168x1xf32>
    %197 = vector.broadcast %196 : vector<168x1xf32> to vector<168x64xf32>
    %198 = arith.mulf %193, %197 : vector<168x64xf32>
    %199 = vector.broadcast %179 : vector<1x64xf32> to vector<168x64xf32>
    %200 = arith.mulf %198, %199 : vector<168x64xf32>
    %201 = vector.broadcast %180 : vector<1x64xf32> to vector<168x64xf32>
    %202 = arith.addf %200, %201 : vector<168x64xf32>
    %cst_47 = arith.constant 0.000000e+00 : f32
    %203 = vector.broadcast %cst_47 : f32 to vector<168x64xf32>
    %204 = arith.maximumf %202, %203 : vector<168x64xf32>
    %205 = arith.truncf %204 : vector<168x64xf32> to vector<168x64xbf16>
    %c120 = arith.constant 120 : index
    %c0_48 = arith.constant 0 : index
    %206 = vector.load %arg2[%c120, %c0_48] : memref<568x128xf32, #tpu.memory_space<vmem>>, vector<64x128xf32>
    %207 = arith.truncf %206 : vector<64x128xf32> to vector<64x128xbf16>
    %cst_49 = arith.constant dense<0.000000e+00> : vector<168x128xf32>
    %208 = tpu.matmul %205, %207, %cst_49 {dimension_numbers = #tpu.dot_dimension_numbers<[1], [0], [0], [1], [0, 0, 1, 1], [], []>} : vector<168x64xbf16>, vector<64x128xbf16>, vector<168x128xf32> -> vector<168x128xf32>
    %c488 = arith.constant 488 : index
    %c0_50 = arith.constant 0 : index
    %209 = vector.load %arg2[%c488, %c0_50] : memref<568x128xf32, #tpu.memory_space<vmem>>, vector<1x128xf32>
    %210 = vector.broadcast %209 : vector<1x128xf32> to vector<168x128xf32>
    %211 = arith.addf %208, %210 : vector<168x128xf32>
    %c496 = arith.constant 496 : index
    %c0_51 = arith.constant 0 : index
    %212 = vector.load %arg2[%c496, %c0_51] : memref<568x128xf32, #tpu.memory_space<vmem>>, vector<1x128xf32>
    %c504 = arith.constant 504 : index
    %c0_52 = arith.constant 0 : index
    %213 = vector.load %arg2[%c504, %c0_52] : memref<568x128xf32, #tpu.memory_space<vmem>>, vector<1x128xf32>
    %cst_53 = arith.constant dense<0.000000e+00> : vector<168xf32>
    %214 = vector.multi_reduction <add>, %211, %cst_53 [1] : vector<168x128xf32> to vector<168xf32>
    %215 = vector.shape_cast %214 : vector<168xf32> to vector<168x1xf32>
    %cst_54 = arith.constant 1.280000e+02 : f32
    %216 = vector.broadcast %cst_54 : f32 to vector<168x1xf32>
    %217 = arith.divf %215, %216 : vector<168x1xf32>
    %218 = vector.broadcast %217 : vector<168x1xf32> to vector<168x128xf32>
    %219 = arith.subf %211, %218 : vector<168x128xf32>
    %220 = arith.mulf %219, %219 : vector<168x128xf32>
    %cst_55 = arith.constant dense<0.000000e+00> : vector<168xf32>
    %221 = vector.multi_reduction <add>, %220, %cst_55 [1] : vector<168x128xf32> to vector<168xf32>
    %222 = vector.shape_cast %221 : vector<168xf32> to vector<168x1xf32>
    %cst_56 = arith.constant 1.280000e+02 : f32
    %223 = vector.broadcast %cst_56 : f32 to vector<168x1xf32>
    %224 = arith.divf %222, %223 : vector<168x1xf32>
    %225 = vector.broadcast %217 : vector<168x1xf32> to vector<168x128xf32>
    %226 = arith.subf %211, %225 : vector<168x128xf32>
    %cst_57 = arith.constant 9.99999974E-6 : f32
    %227 = vector.broadcast %cst_57 : f32 to vector<168x1xf32>
    %228 = arith.addf %224, %227 : vector<168x1xf32>
    %229 = math.rsqrt %228 : vector<168x1xf32>
    %230 = vector.broadcast %229 : vector<168x1xf32> to vector<168x128xf32>
    %231 = arith.mulf %226, %230 : vector<168x128xf32>
    %232 = vector.broadcast %212 : vector<1x128xf32> to vector<168x128xf32>
    %233 = arith.mulf %231, %232 : vector<168x128xf32>
    %234 = vector.broadcast %213 : vector<1x128xf32> to vector<168x128xf32>
    %235 = arith.addf %233, %234 : vector<168x128xf32>
    %cst_58 = arith.constant 0.000000e+00 : f32
    %236 = vector.broadcast %cst_58 : f32 to vector<168x128xf32>
    %237 = arith.maximumf %235, %236 : vector<168x128xf32>
    %c0_59 = arith.constant 0 : index
    %c0_60 = arith.constant 0 : index
    %238 = vector.load %arg4[%c0_59, %c0_60] : memref<24x168xf32, #tpu.memory_space<vmem>>, vector<24x168xf32>
    %239 = vector.broadcast %7 : vector<168x1xf32> to vector<168x128xf32>
    %240 = arith.mulf %237, %239 : vector<168x128xf32>
    %cst_61 = arith.constant dense<0.000000e+00> : vector<24x128xf32>
    %241 = tpu.matmul %238, %240, %cst_61 {dimension_numbers = #tpu.dot_dimension_numbers<[1], [0], [0], [1], [0, 0, 1, 1], [], []>} : vector<24x168xf32>, vector<168x128xf32>, vector<24x128xf32> -> vector<24x128xf32>
    %cst_62 = arith.constant dense<0.000000e+00> : vector<24x1xf32>
    %242 = tpu.matmul %238, %7, %cst_62 {dimension_numbers = #tpu.dot_dimension_numbers<[1], [0], [0], [1], [0, 0, 1, 1], [], []>} : vector<24x168xf32>, vector<168x1xf32>, vector<24x1xf32> -> vector<24x1xf32>
    %cst_63 = arith.constant 9.99999997E-7 : f32
    %243 = vector.broadcast %cst_63 : f32 to vector<24x1xf32>
    %244 = arith.addf %242, %243 : vector<24x1xf32>
    %245 = vector.broadcast %244 : vector<24x1xf32> to vector<24x128xf32>
    %246 = arith.divf %241, %245 : vector<24x128xf32>
    %c184 = arith.constant 184 : index
    %c0_64 = arith.constant 0 : index
    %247 = vector.load %arg2[%c184, %c0_64] : memref<568x128xf32, #tpu.memory_space<vmem>>, vector<128x64xf32>
    %cst_65 = arith.constant dense<0.000000e+00> : vector<24x64xf32>
    %248 = tpu.matmul %246, %247, %cst_65 {dimension_numbers = #tpu.dot_dimension_numbers<[1], [0], [0], [1], [0, 0, 1, 1], [], []>} : vector<24x128xf32>, vector<128x64xf32>, vector<24x64xf32> -> vector<24x64xf32>
    %c512 = arith.constant 512 : index
    %c0_66 = arith.constant 0 : index
    %249 = vector.load %arg2[%c512, %c0_66] : memref<568x128xf32, #tpu.memory_space<vmem>>, vector<1x64xf32>
    %250 = vector.broadcast %249 : vector<1x64xf32> to vector<24x64xf32>
    %251 = arith.addf %248, %250 : vector<24x64xf32>
    %c520 = arith.constant 520 : index
    %c0_67 = arith.constant 0 : index
    %252 = vector.load %arg2[%c520, %c0_67] : memref<568x128xf32, #tpu.memory_space<vmem>>, vector<1x64xf32>
    %c528 = arith.constant 528 : index
    %c0_68 = arith.constant 0 : index
    %253 = vector.load %arg2[%c528, %c0_68] : memref<568x128xf32, #tpu.memory_space<vmem>>, vector<1x64xf32>
    %cst_69 = arith.constant dense<0.000000e+00> : vector<24xf32>
    %254 = vector.multi_reduction <add>, %251, %cst_69 [1] : vector<24x64xf32> to vector<24xf32>
    %255 = vector.shape_cast %254 : vector<24xf32> to vector<24x1xf32>
    %cst_70 = arith.constant 6.400000e+01 : f32
    %256 = vector.broadcast %cst_70 : f32 to vector<24x1xf32>
    %257 = arith.divf %255, %256 : vector<24x1xf32>
    %258 = vector.broadcast %257 : vector<24x1xf32> to vector<24x64xf32>
    %259 = arith.subf %251, %258 : vector<24x64xf32>
    %260 = arith.mulf %259, %259 : vector<24x64xf32>
    %cst_71 = arith.constant dense<0.000000e+00> : vector<24xf32>
    %261 = vector.multi_reduction <add>, %260, %cst_71 [1] : vector<24x64xf32> to vector<24xf32>
    %262 = vector.shape_cast %261 : vector<24xf32> to vector<24x1xf32>
    %cst_72 = arith.constant 6.400000e+01 : f32
    %263 = vector.broadcast %cst_72 : f32 to vector<24x1xf32>
    %264 = arith.divf %262, %263 : vector<24x1xf32>
    %265 = vector.broadcast %257 : vector<24x1xf32> to vector<24x64xf32>
    %266 = arith.subf %251, %265 : vector<24x64xf32>
    %cst_73 = arith.constant 9.99999974E-6 : f32
    %267 = vector.broadcast %cst_73 : f32 to vector<24x1xf32>
    %268 = arith.addf %264, %267 : vector<24x1xf32>
    %269 = math.rsqrt %268 : vector<24x1xf32>
    %270 = vector.broadcast %269 : vector<24x1xf32> to vector<24x64xf32>
    %271 = arith.mulf %266, %270 : vector<24x64xf32>
    %272 = vector.broadcast %252 : vector<1x64xf32> to vector<24x64xf32>
    %273 = arith.mulf %271, %272 : vector<24x64xf32>
    %274 = vector.broadcast %253 : vector<1x64xf32> to vector<24x64xf32>
    %275 = arith.addf %273, %274 : vector<24x64xf32>
    %cst_74 = arith.constant 0.000000e+00 : f32
    %276 = vector.broadcast %cst_74 : f32 to vector<24x64xf32>
    %277 = arith.maximumf %275, %276 : vector<24x64xf32>
    %c312 = arith.constant 312 : index
    %c0_75 = arith.constant 0 : index
    %278 = vector.load %arg2[%c312, %c0_75] : memref<568x128xf32, #tpu.memory_space<vmem>>, vector<64x32xf32>
    %cst_76 = arith.constant dense<0.000000e+00> : vector<24x32xf32>
    %279 = tpu.matmul %277, %278, %cst_76 {dimension_numbers = #tpu.dot_dimension_numbers<[1], [0], [0], [1], [0, 0, 1, 1], [], []>} : vector<24x64xf32>, vector<64x32xf32>, vector<24x32xf32> -> vector<24x32xf32>
    %c536 = arith.constant 536 : index
    %c0_77 = arith.constant 0 : index
    %280 = vector.load %arg2[%c536, %c0_77] : memref<568x128xf32, #tpu.memory_space<vmem>>, vector<1x32xf32>
    %281 = vector.broadcast %280 : vector<1x32xf32> to vector<24x32xf32>
    %282 = arith.addf %279, %281 : vector<24x32xf32>
    %c544 = arith.constant 544 : index
    %c0_78 = arith.constant 0 : index
    %283 = vector.load %arg2[%c544, %c0_78] : memref<568x128xf32, #tpu.memory_space<vmem>>, vector<1x32xf32>
    %c552 = arith.constant 552 : index
    %c0_79 = arith.constant 0 : index
    %284 = vector.load %arg2[%c552, %c0_79] : memref<568x128xf32, #tpu.memory_space<vmem>>, vector<1x32xf32>
    %cst_80 = arith.constant dense<0.000000e+00> : vector<24xf32>
    %285 = vector.multi_reduction <add>, %282, %cst_80 [1] : vector<24x32xf32> to vector<24xf32>
    %286 = vector.shape_cast %285 : vector<24xf32> to vector<24x1xf32>
    %cst_81 = arith.constant 3.200000e+01 : f32
    %287 = vector.broadcast %cst_81 : f32 to vector<24x1xf32>
    %288 = arith.divf %286, %287 : vector<24x1xf32>
    %289 = vector.broadcast %288 : vector<24x1xf32> to vector<24x32xf32>
    %290 = arith.subf %282, %289 : vector<24x32xf32>
    %291 = arith.mulf %290, %290 : vector<24x32xf32>
    %cst_82 = arith.constant dense<0.000000e+00> : vector<24xf32>
    %292 = vector.multi_reduction <add>, %291, %cst_82 [1] : vector<24x32xf32> to vector<24xf32>
    %293 = vector.shape_cast %292 : vector<24xf32> to vector<24x1xf32>
    %cst_83 = arith.constant 3.200000e+01 : f32
    %294 = vector.broadcast %cst_83 : f32 to vector<24x1xf32>
    %295 = arith.divf %293, %294 : vector<24x1xf32>
    %296 = vector.broadcast %288 : vector<24x1xf32> to vector<24x32xf32>
    %297 = arith.subf %282, %296 : vector<24x32xf32>
    %cst_84 = arith.constant 9.99999974E-6 : f32
    %298 = vector.broadcast %cst_84 : f32 to vector<24x1xf32>
    %299 = arith.addf %295, %298 : vector<24x1xf32>
    %300 = math.rsqrt %299 : vector<24x1xf32>
    %301 = vector.broadcast %300 : vector<24x1xf32> to vector<24x32xf32>
    %302 = arith.mulf %297, %301 : vector<24x32xf32>
    %303 = vector.broadcast %283 : vector<1x32xf32> to vector<24x32xf32>
    %304 = arith.mulf %302, %303 : vector<24x32xf32>
    %305 = vector.broadcast %284 : vector<1x32xf32> to vector<24x32xf32>
    %306 = arith.addf %304, %305 : vector<24x32xf32>
    %cst_85 = arith.constant 0.000000e+00 : f32
    %307 = vector.broadcast %cst_85 : f32 to vector<24x32xf32>
    %308 = arith.maximumf %306, %307 : vector<24x32xf32>
    %c376 = arith.constant 376 : index
    %c0_86 = arith.constant 0 : index
    %309 = vector.load %arg2[%c376, %c0_86] : memref<568x128xf32, #tpu.memory_space<vmem>>, vector<32x128xf32>
    %cst_87 = arith.constant dense<0.000000e+00> : vector<24x128xf32>
    %310 = tpu.matmul %308, %309, %cst_87 {dimension_numbers = #tpu.dot_dimension_numbers<[1], [0], [0], [1], [0, 0, 1, 1], [], []>} : vector<24x32xf32>, vector<32x128xf32>, vector<24x128xf32> -> vector<24x128xf32>
    %c560 = arith.constant 560 : index
    %c0_88 = arith.constant 0 : index
    %311 = vector.load %arg2[%c560, %c0_88] : memref<568x128xf32, #tpu.memory_space<vmem>>, vector<1x128xf32>
    %312 = vector.broadcast %311 : vector<1x128xf32> to vector<24x128xf32>
    %313 = arith.addf %310, %312 : vector<24x128xf32>
    %c0_89 = arith.constant 0 : index
    %c0_90 = arith.constant 0 : index
    %314 = vector.load %arg6[%c0_89, %c0_90] : memref<24x128xf32, #tpu.memory_space<vmem>>, vector<24x128xf32>
    tpu.vector_store %arg6[%c0_89, %c0_90], %313 {strides = array<i32>} : memref<24x128xf32, #tpu.memory_space<vmem>>, vector<24x128xf32>,
    return
  }
  func.func @transform_0(%arg0: i32) -> (i32, i32) {
    %c0_i32 = arith.constant 0 : i32
    %c0_i32_0 = arith.constant 0 : i32
    return %arg0, %c0_i32 : i32, i32
  }
  func.func @transform_1(%arg0: i32) -> (i32, i32) {
    %c0_i32 = arith.constant 0 : i32
    %c0_i32_0 = arith.constant 0 : i32
    %c0_i32_1 = arith.constant 0 : i32
    return %c0_i32, %c0_i32_0 : i32, i32
  }
  func.func @transform_2(%arg0: i32) -> (i32, i32) {
    %c0_i32 = arith.constant 0 : i32
    %c0_i32_0 = arith.constant 0 : i32
    %c0_i32_1 = arith.constant 0 : i32
    return %c0_i32, %c0_i32_0 : i32, i32
  }
  func.func @transform_3(%arg0: i32) -> (i32, i32) {
    %c0_i32 = arith.constant 0 : i32
    %c0_i32_0 = arith.constant 0 : i32
    %c0_i32_1 = arith.constant 0 : i32
    return %c0_i32, %c0_i32_0 : i32, i32
  }
  func.func @transform_4(%arg0: i32) -> (i32, i32) {
    %c0_i32 = arith.constant 0 : i32
    %c0_i32_0 = arith.constant 0 : i32
    %c0_i32_1 = arith.constant 0 : i32
    return %c0_i32, %c0_i32_0 : i32, i32
  }
  func.func @transform_5(%arg0: i32) -> (i32, i32) {
    %c0_i32 = arith.constant 0 : i32
    %c0_i32_0 = arith.constant 0 : i32
    return %arg0, %c0_i32 : i32, i32
  }
}

</mosaic_0001>

<bundles_post_ra>
// kernel: tpu_custom_call.1
= control target key start
LH: loop header
LB: loop body
LE: loop exit
PB: predicated region body
PF: predicated region fallthrough
CT: control target
= control target key end

     0   :  { %10 = vsyncpa [#allocation3], 0  ;;  %s13779_s0 = inlined_call_operand.vmem [shape: f32[336,9], index: 0, kind: input, shape index: {}]   ;;  %s13780_s1 = inlined_call_operand.hbm [shape: f32[568,128], index: 1, kind: input, shape index: {}]   ;;  %s13781_s2 = inlined_call_operand.vmem [shape: f32[168,168], index: 2, kind: input, shape index: {}]   ;;  %s13782_s3 = inlined_call_operand.vmem [shape: f32[24,168], index: 3, kind: input, shape index: {}]   ;;  %s13783_s4 = inlined_call_operand.vmem [shape: f32[4,32], index: 4, kind: input, shape index: {}]   ;;  %s13784_s5 = inlined_call_operand.hbm [shape: f32[48,128], index: 5, kind: output, shape index: {}]  }
   0x1   :  { %11 = vsyncpa [#allocation4], 0 }
   0x2   :  { %13 = vsyncpa [#allocation4 + $0x1], 0  ;;  %s8257_s18 = smov 0   ;;  %s8259_s19 = smov 0  }
   0x3   :  { %s8261_s20 = smov 0   ;;  %s8263_s21 = smov 0  }
   0x4 LB: > { %s8278_s22 = sadd.s32 4294967295, %s8210_s21   ;;  %s6732_s23 = sadd.s32 4294967294, %s8210_s21   ;;  %s8210_s21 = sphi %s8263_s21, %s14935_s21   ;;  %s8206_s20 = sphi %s8261_s20, %s14934_s20   ;;  %s8202_s19 = sphi %s8259_s19, %s14933_s19   ;;  %s8198_s18 = sphi %s8257_s18, %s14932_s18  }
   0x5   : > { %s8282_s24 = sadd.s32 1, %s8210_s21   ;;  %s136_s25 = sadd.s32 1, %s8206_s20 }
   0x6   : > { %s133_s26 = ssub.s32 %s8210_s21, %s8282_s24  ;;  %p146_p0 = scmp.ne.s32.totalorder %s8206_s20, %s8202_s19 }
   0x7   : > { %p134_p1 = scmp.eq.s32.totalorder %s133_s26, 0  ;;  %p147_p2 = scmp.eq.s32.totalorder %s8278_s22, 1 }
   0x8   : > { %p152_p3 = scmp.ne.s32.totalorder %s8202_s19, %s8198_s18  ;;  %p153_p4 = scmp.eq.s32.totalorder %s6732_s23, 1 }
   0x9   : > { %s8293_s27 = scalar_select %p134_p1, %s8206_s20, %s136_s25  }
   0xa   : > { %p8295_p5 = por %p147_p2, %p146_p0  ;;  %p8299_p6 = por %p153_p4, %p152_p3 }
   0xb   : > { %p6733_p7 = scmp.ge.s32.totalorder %s8210_s21, 1  ;;  %p160_p8 = scmp.lt.s32.totalorder %s8210_s21, 3 }
   0xc   : > { %s14123_s28 = scalar_select %p8295_p5, 1, 0 }
   0xd   : > { %s14124_s29 = scalar_select %p8299_p6, 1, 0 }
   0xe   : > { %p13785_p9 = scmp.eq.s32.totalorder %s8278_s22, 0  ;;  %p8306_p10 = pnand %p6733_p7, %p160_p8 }
   0xf   : > { %s8212_s6 = smov [#allocation2]   ;;  %s8116_s11 = scalar_lea.hbm %s13780_s1, 9088 }
  0x10   : > { %s14125_s30 = scalar_select %p8306_p10, 1, 0 }
  0x11   : > { %s172_s7 = sshll.u32 %s8212_s6, 4  ;;  %p7493_p11 = pneg %p8306_p10  ;;  %s173_s7 = int_to_ptr.vmem [resolvable:$true] %s172_s7 }
  0x12   : > { %p8117_p13 = scmp.ne.s32.totalorder %s13780_s1, %s8116_s11  ;;  %p8123_p3 = scmp.lt.u32.totalorder %s8116_s11, %s13780_s1 }
  0x13   : > { %p8314_p12 = pnand %p13785_p9, %p7493_p11 }
  0x15   : > { %p8118_p0 = pneg %p8314_p12 }
  0x17   : > { %p8119_p1 = pnand %p8118_p0, %p8117_p13 }
  0x19   : > { %p8120_p2 = pneg %p8119_p1 }
  0x1b   : > { %p8125_p4 = pnand %p8123_p3, %p8120_p2 }
  0x1d   : > { %8128 = shalt.err (!%p8125_p4)
}
  0x1e   : > { %s8129_s16 = scalar_lea.vmem %s173_s7, 9088  ;;  %p8137_p9 = scmp.lt.s32.totalorder %s173_s7, %s173_s7 }
  0x1f   : > { %p8130_p7 = scmp.ne.s32.totalorder %s173_s7, %s8129_s16  ;;  %p8138_p6 = scmp.lt.s32.totalorder %s8129_s16, %s8129_s16 }
  0x21   : > { %p8132_p8 = pnand %p8130_p7, %p8118_p0  ;;  %p8139_p5 = por %p8138_p6, %p8137_p9 }
  0x23   : > { %p8133_p11 = pneg %p8132_p8 }
  0x25   : > { %p8140_p10 = pnand %p8139_p5, %p8133_p11 }
  0x27   : > { %8143 = shalt.err (!%p8140_p10)
}
  0x28   : > { %s8213_s17 = smov 128   ;;  %s8214_s23 = smov 8  }
  0x29   : > { %7496 = dma.hbm_to_vmem [thread:$0]  (!%p8314_p12), %s13780_s1, 9088, %s173_s7, [#allocation3], %s8213_s17, %s8213_s17, %s8214_s23  }
  0x2a   : > { %p14127_p13 = scmp.ne.s32.totalorder %s14125_s30, 0 }
  0x2c   : > { %206 = sbr.rel (%p14127_p13) target bundleno = 5432 (0x1538), region = 40 }
  0x33   : > { %p14128_p1 = scmp.eq.s32.totalorder %s8278_s22, 0 }
  0x35   : > { %8189 = dma.done.wait (%p14128_p1), [#allocation3], 9088   ;;  %p14129_p0 = pmov %p14128_p1 }
  0x36   : > { %v13788_v0 = vmov 0.0   ;;  %vm556_vm0 = vcmask 1043456   ;;  %s234_s6 = smul.u32 21, %s8278_s22  ;;  %vm8216_vm1 = vmmov 0   ;;  %vm557_vm2 = vcmask 1044480   ;;  %v515_v3 = vld [vmem:[#allocation2 + $0x8] sm:$0xff] }
  0x37   : > { %8191 = vsyncadd (%p14129_p0), [#allocation3], 4294958208  ;;  %7059 = vmatprep.subr.bf16.mxu0 %v13788_v0  ;;  %7105 = vmatprep.subr.bf16.mxu1 %v13788_v0  ;;  %v8217_v1 = vmov 65535   ;;  %v516_v4 = vld [vmem:[#allocation2 + $0x10] sm:$0x1]  ;;  %vm284_vm3 = vcmask 72704  }
  0x38   : > { %7061 = vmatprep.mubr.msk.bf16.mxu0 %vm8216_vm1, %v13788_v0  ;;  %7109 = vmatprep.mubr.msk.bf16.mxu1 %vm8216_vm1, %v13788_v0  ;;  %p235_p5 = scmp.lt.s32.totalorder %s234_s6, 41  ;;  %v558_v2 = vsel %vm556_vm0, 4294967295, %v8217_v1  ;;  %v517_v6 = vpack.c.bf16 %v516_v4, %v515_v3  ;;  %v8469_v40 = vld [vmem:[#allocation2 + $0x198] ss:$0 sm:$0xff]  ;;  %vm685_vm4 = vcmask 261120   ;;  %s8219_s12 = smov 96  }
  0x39   : > { %v559_v5 = vsel %vm557_vm2, %v558_v2, 0  ;;  %s8220_s13 = smov 64   ;;  %s6955_s25 = smul.u32 384, %s8278_s22 }
  0x3a   : > { %s14937_s6 = smov (!%p235_p5, %s234_s6), 41  ;;  %v561_v9 = vand.u32 %v559_v5, %v517_v6  ;;  %p14930_p9 = scmp.ne.s32.totalorder %s14123_s28, 0 }
  0x3b   : > { %s6738_s30 = sshll.u32 %s14937_s6, 3  ;;  %s8224_s22 = smov [#allocation5]  }
  0x3c   : > { %s8351_s9 = scalar_lea.vmem %s13779_s0, %s6738_s30  ;;  %7060 = vmatpush3.bf16.msra.mxu0 %v561_v9  ;;  %s13736_s30 = scalar_lea.hbm %s13784_s5, %s6955_s25 }
  0x3d   : > { %v8354_v7 = vld [vmem:[%s8351_s9] sm:$0xff]  ;;  %v8357_v8 = vld [vmem:[%s8351_s9 + $0x8] sm:$0xff]  ;;  %v8365_v11 = vld [vmem:[%s8351_s9 + $0x10] sm:$0xff] }
  0x3e   : > { %v504_v10 = vpack.c.bf16 %v8357_v8, %v8354_v7  ;;  %v8368_v12 = vld [vmem:[%s8351_s9 + $0x18] sm:$0xff]  ;;  %v8376_v14 = vld [vmem:[%s8351_s9 + $0x20] sm:$0xff]  ;;  %v8379_v15 = vld [vmem:[%s8351_s9 + $0x28] sm:$0xff] }
  0x3f   : > { %v505_v13 = vpack.c.bf16 %v8368_v12, %v8365_v11  ;;  %v506_v16 = vpack.c.bf16 %v8379_v15, %v8376_v14  ;;  %v8387_v17 = vld [vmem:[%s8351_s9 + $0x30] sm:$0xff]  ;;  %v8390_v18 = vld [vmem:[%s8351_s9 + $0x38] sm:$0xff]  ;;  %v8398_v20 = vld [vmem:[%s8351_s9 + $0x40] sm:$0xff] }
  0x40   : > { %7062 = vmatmul.mubr.msk.bf16.vlgmr.msra.gmra.mrb[0].mxu0 %vm284_vm3, %v504_v10  ;;  %v507_v19 = vpack.c.bf16 %v8390_v18, %v8387_v17  ;;  %v8401_v21 = vld [vmem:[%s8351_s9 + $0x48] sm:$0xff]  ;;  %v8409_v23 = vld [vmem:[%s8351_s9 + $0x50] sm:$0xff]  ;;  %v8412_v24 = vld [vmem:[%s8351_s9 + $0x58] sm:$0xff] }
  0x41   : > { %7065 = vmatprep.mubr.msk.bf16.mxu0 %vm8216_vm1, %v13788_v0  ;;  %v508_v22 = vpack.c.bf16 %v8401_v21, %v8398_v20  ;;  %v509_v25 = vpack.c.bf16 %v8412_v24, %v8409_v23  ;;  %v8420_v26 = vld [vmem:[%s8351_s9 + $0x60] sm:$0xff]  ;;  %v8423_v27 = vld [vmem:[%s8351_s9 + $0x68] sm:$0xff]  ;;  %v8431_v29 = vld [vmem:[%s8351_s9 + $0x70] sm:$0xff] }
  0x42   : > { %v510_v28 = vpack.c.bf16 %v8423_v27, %v8420_v26  ;;  %v8434_v30 = vld [vmem:[%s8351_s9 + $0x78] sm:$0xff]  ;;  %v8442_v32 = vld [vmem:[%s8351_s9 + $0x80] sm:$0xff]  ;;  %v8445_v33 = vld [vmem:[%s8351_s9 + $0x88] sm:$0xff] }
  0x43   : > { %v511_v31 = vpack.c.bf16 %v8434_v30, %v8431_v29  ;;  %v512_v34 = vpack.c.bf16 %v8445_v33, %v8442_v32  ;;  %v8453_v35 = vld [vmem:[%s8351_s9 + $0x90] sm:$0xff]  ;;  %v8456_v36 = vld [vmem:[%s8351_s9 + $0x98] sm:$0xff]  ;;  %v8464_v38 = vld [vmem:[%s8351_s9 + $0xa0] sm:$0xff]  ;;  %s8148_s9 = sshll.u32 %s8224_s22, 4  ;;  %s8149_s9 = int_to_ptr.vmem [resolvable:$false] %s8148_s9 }
  0x44   : > { %v513_v37 = vpack.c.bf16 %v8456_v36, %v8453_v35  ;;  %v514_v39 = vpack.c.bf16 %v8464_v38, %v8464_v38  ;;  %s8150_s10 = scalar_lea.vmem %s8149_s9, 768 }
  0x48   : > { %7066 = vmatmul.mubr.msk.bf16.gmra.mrb[4].mxu0 %vm284_vm3, %v505_v13 }
  0x49   : > { %7069 = vmatprep.mubr.msk.bf16.mxu0 %vm8216_vm1, %v13788_v0 }
  0x50   : > { %7070 = vmatmul.mubr.msk.bf16.gmra.mrb[8].mxu0 %vm284_vm3, %v506_v16 }
  0x51   : > { %7073 = vmatprep.mubr.msk.bf16.mxu0 %vm8216_vm1, %v13788_v0 }
  0x58   : > { %7074 = vmatmul.mubr.msk.bf16.gmra.mrb[12].mxu0 %vm284_vm3, %v507_v19 }
  0x59   : > { %7077 = vmatprep.mubr.msk.bf16.mxu0 %vm8216_vm1, %v13788_v0 }
  0x60   : > { %7078 = vmatmul.mubr.msk.bf16.gmra.mrb[16].mxu0 %vm284_vm3, %v508_v22 }
  0x61   : > { %7081 = vmatprep.mubr.msk.bf16.mxu0 %vm8216_vm1, %v13788_v0 }
  0x68   : > { %7082 = vmatmul.mubr.msk.bf16.gmra.mrb[20].mxu0 %vm284_vm3, %v509_v25 }
  0x69   : > { %7085 = vmatprep.mubr.msk.bf16.mxu0 %vm8216_vm1, %v13788_v0 }
  0x70   : > { %7086 = vmatmul.mubr.msk.bf16.gmra.mrb[24].mxu0 %vm284_vm3, %v510_v28 }
  0x71   : > { %7089 = vmatprep.mubr.msk.bf16.mxu0 %vm8216_vm1, %v13788_v0 }
  0x78   : > { %7090 = vmatmul.mubr.msk.bf16.gmra.mrb[28].mxu0 %vm284_vm3, %v511_v31 }
  0x79   : > { %7093 = vmatprep.mubr.msk.bf16.mxu0 %vm8216_vm1, %v13788_v0 }
  0x80   : > { %7094 = vmatmul.mubr.msk.bf16.gmra.mrb[32].mxu0 %vm284_vm3, %v512_v34 }
  0x81   : > { %7097 = vmatprep.mubr.msk.bf16.mxu0 %vm8216_vm1, %v13788_v0 }
  0x88   : > { %7098 = vmatmul.mubr.msk.bf16.gmra.mrb[36].mxu0 %vm284_vm3, %v513_v37 }
  0x89   : > { %7101 = vmatprep.mubr.msk.bf16.mxu0 %vm8216_vm1, %v13788_v0 }
  0x90   : > { %7102 = vmatmul.mubr.msk.bf16.gmra.mrb[40].mxu0 %vm284_vm3, %v514_v39 }
 0x113   : > { %v597_v41 = vpop.f32.mrb[0].mxu0 }
 0x114   : > { %v7063_v42 = vpop.f32.mrb[1].mxu0  ;;  %v8472_v43 = vadd.f32 %v8469_v40, %v597_v41 }
 0x115   : > { %v600_v44 = vpop.f32.mrb[2].mxu0 }
 0x116   : > { %v7064_v45 = vpop.f32.mrb[3].mxu0  ;;  %v686_v46 = vsel %vm685_vm4, %v8472_v43, 0.0  ;;  %v8477_v47 = vadd.f32 %v8469_v40, %v600_v44 }
 0x117   : > { %687 = vadd.xlane.f32.xlu0 %v686_v46 }
 0x118   : > { %v689_v48 = vsel %vm685_vm4, %v8477_v47, 0.0 }
 0x11b   : > { %690 = vadd.xlane.f32.xlu0 %v689_v48  ;;  %v605_v49 = vpop.f32.mrb[4].mxu0 }
 0x11c   : > { %v7067_v50 = vpop.f32.mrb[5].mxu0  ;;  %v8482_v51 = vadd.f32 %v8469_v40, %v605_v49 }
 0x11d   : > { %v608_v52 = vpop.f32.mrb[6].mxu0 }
 0x11e   : > { %v692_v53 = vsel %vm685_vm4, %v8482_v51, 0.0  ;;  %v7068_v54 = vpop.f32.mrb[7].mxu0  ;;  %v8487_v55 = vadd.f32 %v8469_v40, %v608_v52 }
 0x11f   : > { %693 = vadd.xlane.f32.xlu1 %v692_v53 }
 0x120   : > { %v695_v56 = vsel %vm685_vm4, %v8487_v55, 0.0 }
 0x123   : > { %696 = vadd.xlane.f32.xlu1 %v695_v56  ;;  %v613_v57 = vpop.f32.mrb[8].mxu0 }
 0x124   : > { %v7071_v58 = vpop.f32.mrb[9].mxu0  ;;  %v8492_v59 = vadd.f32 %v8469_v40, %v613_v57 }
 0x125   : > { %v616_v60 = vpop.f32.mrb[10].mxu0 }
 0x126   : > { %v698_v61 = vsel %vm685_vm4, %v8492_v59, 0.0  ;;  %v8497_v62 = vadd.f32 %v8469_v40, %v616_v60  ;;  %v7072_v63 = vpop.f32.mrb[11].mxu0 }
 0x127   : > { %699 = vadd.xlane.f32.xlu0 %v698_v61 }
 0x128   : > { %v701_v1 = vsel %vm685_vm4, %v8497_v62, 0.0 }
 0x129   : > { %702 = vadd.xlane.f32.xlu1 %v701_v1 }
 0x12b   : > { %v621_v2 = vpop.f32.mrb[12].mxu0 }
 0x12c   : > { %v7075_v3 = vpop.f32.mrb[13].mxu0  ;;  %v8502_v4 = vadd.f32 %v8469_v40, %v621_v2 }
 0x12d   : > { %v624_v5 = vpop.f32.mrb[14].mxu0 }
 0x12e   : > { %v704_v6 = vsel %vm685_vm4, %v8502_v4, 0.0  ;;  %v8507_v9 = vadd.f32 %v8469_v40, %v624_v5  ;;  %v7076_v10 = vpop.f32.mrb[15].mxu0 }
 0x12f   : > { %705 = vadd.xlane.f32.xlu0 %v704_v6 }
 0x130   : > { %v707_v13 = vsel %vm685_vm4, %v8507_v9, 0.0 }
 0x131   : > { %708 = vadd.xlane.f32.xlu1 %v707_v13 }
 0x133   : > { %v629_v16 = vpop.f32.mrb[16].mxu0 }
 0x134   : > { %v7079_v19 = vpop.f32.mrb[17].mxu0  ;;  %v8512_v22 = vadd.f32 %v8469_v40, %v629_v16 }
 0x135   : > { %v632_v25 = vpop.f32.mrb[18].mxu0 }
 0x136   : > { %v710_v28 = vsel %vm685_vm4, %v8512_v22, 0.0  ;;  %v8517_v31 = vadd.f32 %v8469_v40, %v632_v25  ;;  %v7080_v34 = vpop.f32.mrb[19].mxu0 }
 0x137   : > { %711 = vadd.xlane.f32.xlu0 %v710_v28 }
 0x138   : > { %v713_v37 = vsel %vm685_vm4, %v8517_v31, 0.0 }
 0x139   : > { %714 = vadd.xlane.f32.xlu1 %v713_v37 }
 0x13b   : > { %v637_v39 = vpop.f32.mrb[20].mxu0 }
 0x13c   : > { %v7083_v41 = vpop.f32.mrb[21].mxu0  ;;  %v8522_v42 = vadd.f32 %v8469_v40, %v637_v39 }
 0x13d   : > { %v640_v44 = vpop.f32.mrb[22].mxu0 }
 0x13e   : > { %v716_v45 = vsel %vm685_vm4, %v8522_v42, 0.0  ;;  %v8527_v46 = vadd.f32 %v8469_v40, %v640_v44  ;;  %v7084_v48 = vpop.f32.mrb[23].mxu0 }
 0x13f   : > { %717 = vadd.xlane.f32.xlu0 %v716_v45 }
 0x140   : > { %v719_v49 = vsel %vm685_vm4, %v8527_v46, 0.0 }
 0x141   : > { %720 = vadd.xlane.f32.xlu1 %v719_v49 }
 0x143   : > { %v645_v50 = vpop.f32.mrb[24].mxu0 }
 0x144   : > { %v7087_v52 = vpop.f32.mrb[25].mxu0  ;;  %v8532_v53 = vadd.f32 %v8469_v40, %v645_v50 }
 0x145   : > { %v648_v54 = vpop.f32.mrb[26].mxu0 }
 0x146   : > { %v722_v56 = vsel %vm685_vm4, %v8532_v53, 0.0  ;;  %v8537_v57 = vadd.f32 %v8469_v40, %v648_v54  ;;  %v7088_v58 = vpop.f32.mrb[27].mxu0 }
 0x147   : > { %723 = vadd.xlane.f32.xlu0 %v722_v56 }
 0x148   : > { %v725_v60 = vsel %vm685_vm4, %v8537_v57, 0.0 }
 0x149   : > { %726 = vadd.xlane.f32.xlu1 %v725_v60 }
 0x14b   : > { %v653_v61 = vpop.f32.mrb[28].mxu0 }
 0x14c   : > { %v7091_v63 = vpop.f32.mrb[29].mxu0  ;;  %v8542_v1 = vadd.f32 %v8469_v40, %v653_v61 }
 0x14d   : > { %v656_v2 = vpop.f32.mrb[30].mxu0 }
 0x14e   : > { %v728_v3 = vsel %vm685_vm4, %v8542_v1, 0.0  ;;  %v8547_v5 = vadd.f32 %v8469_v40, %v656_v2  ;;  %v7092_v6 = vpop.f32.mrb[31].mxu0 }
 0x14f   : > { %729 = vadd.xlane.f32.xlu0 %v728_v3 }
 0x150   : > { %v731_v10 = vsel %vm685_vm4, %v8547_v5, 0.0 }
 0x151   : > { %732 = vadd.xlane.f32.xlu1 %v731_v10 }
 0x153   : > { %v661_v13 = vpop.f32.mrb[32].mxu0 }
 0x154   : > { %v7095_v16 = vpop.f32.mrb[33].mxu0  ;;  %v8552_v19 = vadd.f32 %v8469_v40, %v661_v13 }
 0x155   : > { %v664_v25 = vpop.f32.mrb[34].mxu0 }
 0x156   : > { %v734_v28 = vsel %vm685_vm4, %v8552_v19, 0.0  ;;  %v8557_v34 = vadd.f32 %v8469_v40, %v664_v25  ;;  %v7096_v37 = vpop.f32.mrb[35].mxu0 }
 0x157   : > { %735 = vadd.xlane.f32.xlu0 %v734_v28 }
 0x158   : > { %v737_v39 = vsel %vm685_vm4, %v8557_v34, 0.0 }
 0x159   : > { %738 = vadd.xlane.f32.xlu1 %v737_v39 }
 0x15b   : > { %v669_v41 = vpop.f32.mrb[36].mxu0 }
 0x15c   : > { %v7099_v44 = vpop.f32.mrb[37].mxu0  ;;  %v8562_v45 = vadd.f32 %v8469_v40, %v669_v41 }
 0x15d   : > { %v672_v48 = vpop.f32.mrb[38].mxu0 }
 0x15e   : > { %v740_v49 = vsel %vm685_vm4, %v8562_v45, 0.0  ;;  %v8567_v50 = vadd.f32 %v8469_v40, %v672_v48  ;;  %v7100_v52 = vpop.f32.mrb[39].mxu0 }
 0x15f   : > { %741 = vadd.xlane.f32.xlu0 %v740_v49  ;;  %v263_v52 = vand.u32 2147483647, %v8354_v7 }
 0x160   : > { %v743_v54 = vsel %vm685_vm4, %v8567_v50, 0.0 }
 0x161   : > { %744 = vadd.xlane.f32.xlu1 %v743_v54 }
 0x163   : > { %v677_v56 = vpop.f32.mrb[40].mxu0 }
 0x164   : > { %v7103_v58 = vpop.f32.mrb[41].mxu0  ;;  %v8577_v16 = vadd.f32 %v8469_v40, %v677_v56 }
 0x165   : > { %v680_v60 = vpop.f32.mrb[42].mxu0 }
 0x166   : > { %v7104_v61 = vpop.f32.mrb[43].mxu0  ;;  %v746_v41 = vsel %vm685_vm4, %v8577_v16, 0.0 }
 0x167   : > { %v285_v61 = vsel %vm284_vm3, %v263_v52, 0.0 }
 0x1a4   : > { %v688_v63 = vpop.xlane.xlu0 %687 }
 0x1a5   : > { %v750_v2 = vmul.f32 0.03125, %v688_v63  ;;  %v264_v63 = vand.u32 2147483647, %v8357_v8 }
 0x1a7   : > { %v8572_v3 = vsub.f32 %v8472_v43, %v750_v2 }
 0x1a8   : > { %v691_v6 = vpop.xlane.xlu0 %690 }
 0x1a9   : > { %v751_v10 = vmul.f32 0.03125, %v691_v6  ;;  %v792_v13 = vmul.f32 %v8572_v3, %v8572_v3 }
 0x1ab   : > { %v8580_v25 = vsub.f32 %v8477_v47, %v751_v10  ;;  %v813_v28 = vsel %vm685_vm4, %v792_v13, 0.0  ;;  %v288_v13 = vsel %vm284_vm3, %v264_v63, 0.0 }
 0x1ac   : > { %v694_v37 = vpop.xlane.xlu1 %693  ;;  %814 = vadd.xlane.f32.xlu0 %v813_v28 }
 0x1ad   : > { %v752_v39 = vmul.f32 0.03125, %v694_v37  ;;  %v793_v43 = vmul.f32 %v8580_v25, %v8580_v25  ;;  %v265_v37 = vand.u32 2147483647, %v8365_v11 }
 0x1af   : > { %v8588_v44 = vsub.f32 %v8482_v51, %v752_v39  ;;  %v816_v40 = vsel %vm685_vm4, %v793_v43, 0.0 }
 0x1b0   : > { %v697_v48 = vpop.xlane.xlu1 %696  ;;  %817 = vadd.xlane.f32.xlu1 %v816_v40  ;;  %747 = vadd.xlane.f32.xlu0 %v746_v41  ;;  %v291_v41 = vsel %vm284_vm3, %v265_v37, 0.0  ;;  %v269_v37 = vand.u32 2147483647, %v8387_v17 }
 0x1b1   : > { %v753_v47 = vmul.f32 0.03125, %v697_v48  ;;  %v794_v49 = vmul.f32 %v8588_v44, %v8588_v44 }
 0x1b3   : > { %v8595_v54 = vsub.f32 %v8487_v55, %v753_v47  ;;  %v819_v56 = vsel %vm685_vm4, %v794_v49, 0.0 }
 0x1b4   : > { %v700_v58 = vpop.xlane.xlu0 %699  ;;  %820 = vadd.xlane.f32.xlu1 %v819_v56 }
 0x1b5   : > { %v754_v51 = vmul.f32 0.03125, %v700_v58  ;;  %v795_v60 = vmul.f32 %v8595_v54, %v8595_v54  ;;  %v267_v58 = vand.u32 2147483647, %v8376_v14 }
 0x1b6   : > { %v703_v2 = vpop.xlane.xlu1 %702 }
 0x1b7   : > { %v8603_v6 = vsub.f32 %v8492_v59, %v754_v51  ;;  %v755_v7 = vmul.f32 0.03125, %v703_v2  ;;  %v822_v55 = vsel %vm685_vm4, %v795_v60, 0.0 }
 0x1b8   : > { %823 = vadd.xlane.f32.xlu0 %v822_v55  ;;  %286 = vadd.xlane.f32.xlu1 %v285_v61  ;;  %v297_v61 = vsel %vm284_vm3, %v267_v58, 0.0  ;;  %v271_v58 = vand.u32 2147483647, %v8398_v20 }
 0x1b9   : > { %v8607_v10 = vsub.f32 %v8497_v62, %v755_v7  ;;  %v796_v28 = vmul.f32 %v8603_v6, %v8603_v6  ;;  %v266_v62 = vand.u32 2147483647, %v8368_v12 }
 0x1bb   : > { %v825_v8 = vsel %vm685_vm4, %v796_v28, 0.0  ;;  %v797_v59 = vmul.f32 %v8607_v10, %v8607_v10  ;;  %v294_v52 = vsel %vm284_vm3, %v266_v62, 0.0 }
 0x1bc   : > { %v706_v39 = vpop.xlane.xlu0 %705  ;;  %289 = vadd.xlane.f32.xlu0 %v288_v13  ;;  %826 = vadd.xlane.f32.xlu1 %v825_v8 }
 0x1bd   : > { %v756_v43 = vmul.f32 0.03125, %v706_v39  ;;  %v828_v11 = vsel %vm685_vm4, %v797_v59, 0.0  ;;  %v303_v39 = vsel %vm284_vm3, %v269_v37, 0.0 }
 0x1be   : > { %v709_v40 = vpop.xlane.xlu1 %708 }
 0x1bf   : > { %v8619_v48 = vsub.f32 %v8502_v4, %v756_v43  ;;  %v757_v47 = vmul.f32 0.03125, %v709_v40  ;;  %v1063_v40 = vld [vmem:[#allocation2 + $0x18] sm:$0xff] }
 0x1c0   : > { %829 = vadd.xlane.f32.xlu0 %v828_v11  ;;  %292 = vadd.xlane.f32.xlu1 %v291_v41 }
 0x1c1   : > { %v8623_v49 = vsub.f32 %v8507_v9, %v757_v47  ;;  %v798_v56 = vmul.f32 %v8619_v48, %v8619_v48  ;;  %v268_v9 = vand.u32 2147483647, %v8379_v15  ;;  %v1064_v47 = vld [vmem:[#allocation2 + $0x20] sm:$0xff] }
 0x1c2   : > { %v1067_v11 = vpack.c.bf16 %v1064_v47, %v1063_v40 }
 0x1c3   : > { %v831_v12 = vsel %vm685_vm4, %v798_v56, 0.0  ;;  %v799_v4 = vmul.f32 %v8623_v49, %v8623_v49  ;;  %v300_v13 = vsel %vm284_vm3, %v268_v9, 0.0  ;;  %v309_v9 = vsel %vm284_vm3, %v271_v58, 0.0 }
 0x1c4   : > { %v712_v51 = vpop.xlane.xlu0 %711  ;;  %295 = vadd.xlane.f32.xlu0 %v294_v52  ;;  %832 = vadd.xlane.f32.xlu1 %v831_v12 }
 0x1c5   : > { %v758_v60 = vmul.f32 0.03125, %v712_v51  ;;  %v834_v14 = vsel %vm685_vm4, %v799_v4, 0.0  ;;  %7106 = vmatpush3.bf16.msra.mxu1 %v1067_v11  ;;  %v1065_v4 = vld [vmem:[#allocation2 + $0x28] sm:$0xff]  ;;  %v1066_v51 = vld [vmem:[#allocation2 + $0x30] sm:$0xff] }
 0x1c6   : > { %v715_v63 = vpop.xlane.xlu1 %714  ;;  %7107 = vmatprep.subr.bf16.mxu1 %v13788_v0 }
 0x1c7   : > { %v8635_v2 = vsub.f32 %v8512_v22, %v758_v60  ;;  %v759_v7 = vmul.f32 0.03125, %v715_v63  ;;  %v272_v63 = vand.u32 2147483647, %v8401_v21  ;;  %v273_v21 = vand.u32 2147483647, %v8409_v23 }
 0x1c8   : > { %835 = vadd.xlane.f32.xlu0 %v834_v14  ;;  %298 = vadd.xlane.f32.xlu1 %v297_v61 }
 0x1c9   : > { %v8639_v55 = vsub.f32 %v8517_v31, %v759_v7  ;;  %v800_v28 = vmul.f32 %v8635_v2, %v8635_v2  ;;  %v270_v31 = vand.u32 2147483647, %v8390_v18  ;;  %v312_v37 = vsel %vm284_vm3, %v272_v63, 0.0 }
 0x1cb   : > { %v837_v15 = vsel %vm685_vm4, %v800_v28, 0.0  ;;  %v801_v22 = vmul.f32 %v8639_v55, %v8639_v55  ;;  %v306_v56 = vsel %vm284_vm3, %v270_v31, 0.0  ;;  %v274_v31 = vand.u32 2147483647, %v8412_v24 }
 0x1cc   : > { %v718_v8 = vpop.xlane.xlu0 %717  ;;  %301 = vadd.xlane.f32.xlu0 %v300_v13  ;;  %838 = vadd.xlane.f32.xlu1 %v837_v15  ;;  %v275_v24 = vand.u32 2147483647, %v8420_v26 }
 0x1cd   : > { %v760_v59 = vmul.f32 0.03125, %v718_v8  ;;  %v840_v17 = vsel %vm685_vm4, %v801_v22, 0.0  ;;  %v318_v11 = vsel %vm284_vm3, %v274_v31, 0.0 }
 0x1ce   : > { %v721_v43 = vpop.xlane.xlu1 %720 }
 0x1cf   : > { %v8651_v41 = vsub.f32 %v8522_v42, %v760_v59  ;;  %v761_v62 = vmul.f32 0.03125, %v721_v43  ;;  %v412_v59 = vlaneseq }
 0x1d0   : > { %841 = vadd.xlane.f32.xlu0 %v840_v17  ;;  %304 = vadd.xlane.f32.xlu1 %v303_v39 }
 0x1d1   : > { %v8655_v52 = vsub.f32 %v8527_v46, %v761_v62  ;;  %v802_v18 = vmul.f32 %v8651_v41, %v8651_v41  ;;  %v1068_v46 = vpack.c.bf16 %v1066_v51, %v1065_v4  ;;  %v8687_v40 = vshrl.u32 %v412_v59, 7  ;;  %v8705_v51 = vld [vmem:[%s13783_s4] sm:$0xf] }
 0x1d2   : > { %v321_v4 = vsel %vm284_vm3, %v275_v24, 0.0  ;;  %v280_v24 = vand.u32 2147483647, %v8445_v33 }
 0x1d3   : > { %v843_v42 = vsel %vm685_vm4, %v802_v18, 0.0  ;;  %v803_v12 = vmul.f32 %v8655_v52, %v8655_v52  ;;  %7108 = vmatpush3.bf16.msra.mxu1 %v1068_v46  ;;  %v1280_v26 = vsub.s32 2, %v8687_v40 }
 0x1d4   : > { %v724_v60 = vpop.xlane.xlu0 %723  ;;  %307 = vadd.xlane.f32.xlu0 %v306_v56  ;;  %844 = vadd.xlane.f32.xlu1 %v843_v42  ;;  %v276_v42 = vand.u32 2147483647, %v8423_v27 }
 0x1d5   : > { %v762_v61 = vmul.f32 0.03125, %v724_v60  ;;  %v846_v13 = vsel %vm685_vm4, %v803_v12, 0.0  ;;  %v1305_v60 = vsub.s32 3, %v8687_v40 }
 0x1d6   : > { %v727_v20 = vpop.xlane.xlu1 %726 }
 0x1d7   : > { %v8668_v7 = vsub.f32 %v8532_v53, %v762_v61  ;;  %v763_v14 = vmul.f32 0.03125, %v727_v20  ;;  %v8719_v20 = vrot.slane %v8705_v51, %v1280_v26 }
 0x1d8   : > { %847 = vadd.xlane.f32.xlu0 %v846_v13  ;;  %310 = vadd.xlane.f32.xlu1 %v309_v9 }
 0x1d9   : > { %v8672_v28 = vsub.f32 %v8537_v57, %v763_v14  ;;  %v804_v15 = vmul.f32 %v8668_v7, %v8668_v7  ;;  %v315_v57 = vsel %vm284_vm3, %v273_v21, 0.0  ;;  %14131 = vst [vmem:[#allocation9_spill] sm:$0xff] %v8719_v20  ;;  %v8722_v14 = vrot.slane %v8705_v51, %v1305_v60 }
 0x1db   : > { %v849_v22 = vsel %vm685_vm4, %v804_v15, 0.0  ;;  %v805_v53 = vmul.f32 %v8672_v28, %v8672_v28  ;;  %14132 = vst [vmem:[#allocation10_spill] sm:$0xff] %v8722_v14 }
 0x1dc   : > { %v730_v8 = vpop.xlane.xlu0 %729  ;;  %313 = vadd.xlane.f32.xlu0 %v312_v37  ;;  %850 = vadd.xlane.f32.xlu1 %v849_v22  ;;  %v324_v37 = vsel %vm284_vm3, %v276_v42, 0.0 }
 0x1dd   : > { %v764_v39 = vmul.f32 0.03125, %v730_v8  ;;  %v852_v23 = vsel %vm685_vm4, %v805_v53, 0.0 }
 0x1de   : > { %v733_v43 = vpop.xlane.xlu1 %732 }
 0x1df   : > { %v8684_v62 = vsub.f32 %v8542_v1, %v764_v39  ;;  %v765_v17 = vmul.f32 0.03125, %v733_v43 }
 0x1e0   : > { %853 = vadd.xlane.f32.xlu0 %v852_v23  ;;  %316 = vadd.xlane.f32.xlu1 %v315_v57 }
 0x1e1   : > { %v8690_v47 = vsub.f32 %v8547_v5, %v765_v17  ;;  %v806_v56 = vmul.f32 %v8684_v62, %v8684_v62  ;;  %v414_v5 = vsub.s32 1, %v8687_v40 }
 0x1e3   : > { %v855_v1 = vsel %vm685_vm4, %v806_v56, 0.0  ;;  %v807_v18 = vmul.f32 %v8690_v47, %v8690_v47  ;;  %v8713_v27 = vrot.slane %v8705_v51, %v414_v5 }
 0x1e4   : > { %v736_v58 = vpop.xlane.xlu0 %735  ;;  %319 = vadd.xlane.f32.xlu0 %v318_v11  ;;  %856 = vadd.xlane.f32.xlu1 %v855_v1  ;;  %v279_v11 = vand.u32 2147483647, %v8442_v32  ;;  %v336_v1 = vsel %vm284_vm3, %v280_v24, 0.0 }
 0x1e5   : > { %v766_v12 = vmul.f32 0.03125, %v736_v58  ;;  %v858_v61 = vsel %vm685_vm4, %v807_v18, 0.0  ;;  %14130 = vst [vmem:[#allocation8_spill] sm:$0xff] %v8713_v27  ;;  %v281_v18 = vand.u32 2147483647, %v8453_v35 }
 0x1e6   : > { %v739_v46 = vpop.xlane.xlu1 %738  ;;  %v333_v56 = vsel %vm284_vm3, %v279_v11, 0.0  ;;  %v283_v58 = vand.u32 2147483647, %v8464_v38 }
 0x1e7   : > { %v8716_v9 = vsub.f32 %v8552_v19, %v766_v12  ;;  %v767_v63 = vmul.f32 0.03125, %v739_v46  ;;  %v277_v19 = vand.u32 2147483647, %v8431_v29  ;;  %v339_v32 = vsel %vm284_vm3, %v281_v18, 0.0 }
 0x1e8   : > { %859 = vadd.xlane.f32.xlu0 %v858_v61  ;;  %322 = vadd.xlane.f32.xlu1 %v321_v4  ;;  %v345_v42 = vsel %vm284_vm3, %v283_v58, 0.0 }
 0x1e9   : > { %v8725_v13 = vsub.f32 %v8557_v34, %v767_v63  ;;  %v808_v15 = vmul.f32 %v8716_v9, %v8716_v9  ;;  %v327_v59 = vsel %vm284_vm3, %v277_v19, 0.0  ;;  %v278_v34 = vand.u32 2147483647, %v8434_v30 }
 0x1ea   : > { %v282_v19 = vand.u32 2147483647, %v8456_v36 }
 0x1eb   : > { %v861_v21 = vsel %vm685_vm4, %v808_v15, 0.0  ;;  %v809_v22 = vmul.f32 %v8725_v13, %v8725_v13  ;;  %v330_v17 = vsel %vm284_vm3, %v278_v34, 0.0 }
 0x1ec   : > { %v742_v53 = vpop.xlane.xlu0 %741  ;;  %325 = vadd.xlane.f32.xlu0 %v324_v37  ;;  %862 = vadd.xlane.f32.xlu1 %v861_v21 }
 0x1ed   : > { %v768_v8 = vmul.f32 0.03125, %v742_v53  ;;  %v864_v29 = vsel %vm685_vm4, %v809_v22, 0.0  ;;  %v8766_v53 = vsub.s32 0, %v8687_v40 }
 0x1ee   : > { %v745_v39 = vpop.xlane.xlu1 %744 }
 0x1ef   : > { %v8737_v57 = vsub.f32 %v8562_v45, %v768_v8  ;;  %v769_v31 = vmul.f32 0.03125, %v745_v39  ;;  %14133 = vst [vmem:[#allocation11_spill] sm:$0xff] %v8766_v53  ;;  %v342_v39 = vsel %vm284_vm3, %v282_v19, 0.0 }
 0x1f0   : > { %865 = vadd.xlane.f32.xlu0 %v864_v29  ;;  %328 = vadd.xlane.f32.xlu1 %v327_v59  ;;  %v411_v59 = vld [vmem:[#allocation2] sm:$0x3] }
 0x1f1   : > { %v8741_v43 = vsub.f32 %v8567_v50, %v769_v31  ;;  %v810_v23 = vmul.f32 %v8737_v57, %v8737_v57 }
 0x1f3   : > { %v867_v30 = vsel %vm685_vm4, %v810_v23, 0.0  ;;  %v811_v45 = vmul.f32 %v8741_v43, %v8741_v43  ;;  %v8778_v23 = vrot.slane %v411_v59, %v8766_v53 }
 0x1f4   : > { %331 = vadd.xlane.f32.xlu0 %v330_v17  ;;  %868 = vadd.xlane.f32.xlu1 %v867_v30  ;;  %v8775_v17 = vrot.slane %v411_v59, %v414_v5  ;;  %v8781_v30 = vld [vmem:[#allocation2 + $0x1a0] ss:$0 sm:$0xff]  ;;  %v14136_v5 = vmov 0 }
 0x1f5   : > { %v870_v50 = vsel %vm685_vm4, %v811_v45, 0.0 }
 0x1f8   : > { %871 = vadd.xlane.f32.xlu0 %v870_v50  ;;  %334 = vadd.xlane.f32.xlu1 %v333_v56 }
 0x1fc   : > { %337 = vadd.xlane.f32.xlu0 %v336_v1  ;;  %v8784_v1 = vld [vmem:[#allocation2 + $0x1a8] ss:$0 sm:$0xff] }
 0x200   : > { %340 = vadd.xlane.f32.xlu0 %v339_v32 }
 0x204   : > { %346 = vadd.xlane.f32.xlu0 %v345_v42 }
 0x239   : > { %v815_v12 = vpop.xlane.xlu0 %814 }
 0x23a   : > { %v876_v4 = vmul.f32 0.03125, %v815_v12 }
 0x23c   : > { %v897_v33 = vadd.f32 1e-05, %v876_v4 }
 0x23d   : > { %v818_v26 = vpop.xlane.xlu1 %817  ;;  %v748_v60 = vpop.xlane.xlu0 %747 }
 0x23e   : > { %7552 = vrsqrt.f32 %v897_v33  ;;  %v877_v46 = vmul.f32 0.03125, %v818_v26  ;;  %v770_v61 = vmul.f32 0.03125, %v748_v60 }
 0x240   : > { %v898_v63 = vadd.f32 1e-05, %v877_v46  ;;  %v8759_v35 = vsub.f32 %v8577_v16, %v770_v61 }
 0x241   : > { %v821_v37 = vpop.xlane.xlu1 %820 }
 0x242   : > { %7554 = vrsqrt.f32 %v898_v63  ;;  %v878_v15 = vmul.f32 0.03125, %v821_v37  ;;  %v812_v38 = vmul.f32 %v8759_v35, %v8759_v35 }
 0x244   : > { %v899_v21 = vadd.f32 1e-05, %v878_v15  ;;  %v873_v22 = vsel %vm685_vm4, %v812_v38, 0.0 }
 0x245   : > { %v824_v8 = vpop.xlane.xlu0 %823  ;;  %874 = vadd.xlane.f32.xlu1 %v873_v22  ;;  %v287_v34 = vpop.xlane.xlu1 %286 }
 0x246   : > { %7556 = vrsqrt.f32 %v899_v21  ;;  %v879_v16 = vmul.f32 0.03125, %v824_v8  ;;  %vm348_vm5 = vcmp.gt.f32.partialorder %v287_v34, 1e-06 }
 0x247   : > { %v8771_v31 = vsel %vm348_vm5, 1.0, %v13788_v0 }
 0x248   : > { %14134 = vst [vmem:[#allocation12_spill] sm:$0xff] %v8771_v31  ;;  %v7553_v36 = vpop.eup %7552  ;;  %v900_v29 = vadd.f32 1e-05, %v879_v16  ;;  %v437_v11 = vsub.f32 1.0, %v8771_v31 }
 0x249   : > { %v939_v45 = vmul.f32 %v7553_v36, %v8572_v3  ;;  %v290_v56 = vpop.xlane.xlu0 %289  ;;  %343 = vadd.xlane.f32.xlu1 %v342_v39  ;;  %v827_v24 = vpop.xlane.xlu1 %826  ;;  %v416_v3 = vmul.f32 %v8771_v31, %v8775_v17 }
 0x24a   : > { %7558 = vrsqrt.f32 %v900_v29  ;;  %vm349_vm6 = vcmp.gt.f32.partialorder %v290_v56, 1e-06  ;;  %v880_v50 = vmul.f32 0.03125, %v827_v24  ;;  %v462_v58 = vmul.f32 %v8778_v23, %v437_v11 }
 0x24b   : > { %v8787_v40 = vsel %vm349_vm6, 1.0, %v13788_v0  ;;  %vm8790_vm7 = vmpackc.low %vm349_vm6, %vm348_vm5  ;;  %v964_v18 = vmul.f32 %v8781_v30, %v939_v45  ;;  %v14141_v45 = vmov 0 }
 0x24c   : > { %14135 = vst [vmem:[#allocation13_spill] sm:$0xff] %v8787_v40  ;;  %v14137_v5 = vsel %vm8790_vm7, 4294967295, %v14136_v5  ;;  %v7555_v32 = vpop.eup %7554  ;;  %v438_v42 = vsub.f32 1.0, %v8787_v40  ;;  %v901_v12 = vadd.f32 1e-05, %v880_v50  ;;  %v417_v33 = vmul.f32 %v8787_v40, %v8775_v17 }
 0x24d   : > { %14138 = vst [vmem:[#allocation14_spill] sm:$0xff] %v14137_v5  ;;  %v940_v4 = vmul.f32 %v7555_v32, %v8580_v25  ;;  %v830_v26 = vpop.xlane.xlu0 %829  ;;  %v293_v60 = vpop.xlane.xlu1 %292  ;;  %v989_v46 = vadd.f32 %v8784_v1, %v964_v18  ;;  %v483_v25 = vadd.f32 %v462_v58, %v416_v3 }
 0x24e   : > { %v463_v61 = vmul.f32 %v8778_v23, %v438_v42  ;;  %7560 = vrsqrt.f32 %v901_v12  ;;  %v881_v63 = vmul.f32 0.03125, %v830_v26  ;;  %vm350_vm8 = vcmp.gt.f32.partialorder %v293_v60, 1e-06 }
 0x24f   : > { %v8806_v37 = vsel %vm350_vm8, 1.0, %v13788_v0  ;;  %v965_v15 = vmul.f32 %v8781_v30, %v940_v4  ;;  %v1010_v22 = vmax.f32 %v989_v46, 0.0 }
 0x250   : > { %14139 = vst [vmem:[#allocation15_spill] sm:$0xff] %v8806_v37  ;;  %v7557_v38 = vpop.eup %7556  ;;  %v902_v19 = vadd.f32 1e-05, %v881_v63  ;;  %v439_v21 = vsub.f32 1.0, %v8806_v37  ;;  %v484_v59 = vadd.f32 %v463_v61, %v417_v33  ;;  %v418_v29 = vmul.f32 %v8806_v37, %v8775_v17 }
 0x251   : > { %v941_v8 = vmul.f32 %v7557_v38, %v8588_v44  ;;  %v296_v34 = vpop.xlane.xlu0 %295  ;;  %v833_v16 = vpop.xlane.xlu1 %832  ;;  %v990_v39 = vadd.f32 %v8784_v1, %v965_v15  ;;  %v8825_v3 = vadd.f32 %v1010_v22, %v483_v25 }
 0x252   : > { %7562 = vrsqrt.f32 %v902_v19  ;;  %vm351_vm9 = vcmp.gt.f32.partialorder %v296_v34, 1e-06  ;;  %v882_v36 = vmul.f32 0.03125, %v833_v16  ;;  %v464_v50 = vmul.f32 %v8778_v23, %v439_v21 }
 0x253   : > { %v8815_v11 = vsel %vm351_vm9, 1.0, %v13788_v0  ;;  %vm8818_vm10 = vmpackc.low %vm351_vm9, %vm350_vm8  ;;  %v1011_v44 = vmax.f32 %v990_v39, 0.0  ;;  %v966_v56 = vmul.f32 %v8781_v30, %v941_v8  ;;  %14144 = vst [vmem:[#allocation18_spill] sm:$0xff] %v8825_v3 }
 0x254   : > { %14140 = vst [vmem:[#allocation16_spill] sm:$0xff] %v8815_v11  ;;  %v14142_v45 = vsel %vm8818_vm10, 4294967295, %v14141_v45  ;;  %v7559_v24 = vpop.eup %7558  ;;  %v440_v18 = vsub.f32 1.0, %v8815_v11  ;;  %v903_v32 = vadd.f32 1e-05, %v882_v36  ;;  %v419_v42 = vmul.f32 %v8815_v11, %v8775_v17 }
 0x255   : > { %14143 = vst [vmem:[#allocation17_spill] sm:$0xff] %v14142_v45  ;;  %v942_v58 = vmul.f32 %v7559_v24, %v8595_v54  ;;  %v836_v12 = vpop.xlane.xlu0 %835  ;;  %v299_v4 = vpop.xlane.xlu1 %298  ;;  %v8830_v33 = vadd.f32 %v1011_v44, %v484_v59  ;;  %v991_v26 = vadd.f32 %v8784_v1, %v966_v56  ;;  %v485_v38 = vadd.f32 %v464_v50, %v418_v29 }
 0x256   : > { %v465_v60 = vmul.f32 %v8778_v23, %v440_v18  ;;  %7564 = vrsqrt.f32 %v903_v32  ;;  %v883_v46 = vmul.f32 0.03125, %v836_v12  ;;  %vm352_vm11 = vcmp.gt.f32.partialorder %v299_v4, 1e-06 }
 0x257   : > { %14145 = vst [vmem:[#allocation19_spill] sm:$0xff] %v8830_v33  ;;  %v8836_v61 = vsel %vm352_vm11, 1.0, %v13788_v0  ;;  %v1052_v54 = vpack.c.bf16 %v8830_v33, %v8825_v3  ;;  %v967_v63 = vmul.f32 %v8781_v30, %v942_v58  ;;  %v1012_v21 = vmax.f32 %v991_v26, 0.0 }
 0x258   : > { %14146 = vst [vmem:[#allocation20_spill] sm:$0xff] %v8836_v61  ;;  %v7561_v15 = vpop.eup %7560  ;;  %v904_v25 = vadd.f32 1e-05, %v883_v46  ;;  %v441_v19 = vsub.f32 1.0, %v8836_v61  ;;  %v486_v8 = vadd.f32 %v465_v60, %v419_v42  ;;  %v420_v36 = vmul.f32 %v8836_v61, %v8775_v17 }
 0x259   : > { %v943_v22 = vmul.f32 %v7561_v15, %v8603_v6  ;;  %v302_v59 = vpop.xlane.xlu0 %301  ;;  %7110 = vmatmul.mubr.msk.bf16.vlgmr.msra.gmra.mrb[0].mxu1 %vm685_vm4, %v1052_v54  ;;  %v839_v34 = vpop.xlane.xlu1 %838  ;;  %v992_v16 = vadd.f32 %v8784_v1, %v967_v63  ;;  %v14148_v6 = vmov 0  ;;  %v8860_v58 = vadd.f32 %v1012_v21, %v485_v38 }
 0x25a   : > { %7566 = vrsqrt.f32 %v904_v25  ;;  %vm353_vm12 = vcmp.gt.f32.partialorder %v302_v59, 1e-06  ;;  %v884_v39 = vmul.f32 0.03125, %v839_v34  ;;  %7113 = vmatprep.mubr.msk.bf16.mxu1 %vm8216_vm1, %v13788_v0  ;;  %v466_v50 = vmul.f32 %v8778_v23, %v441_v19 }
 0x25b   : > { %v8850_v29 = vsel %vm353_vm12, 1.0, %v13788_v0  ;;  %vm8853_vm13 = vmpackc.low %vm353_vm12, %vm352_vm11  ;;  %v1013_v44 = vmax.f32 %v992_v16, 0.0  ;;  %v968_v56 = vmul.f32 %v8781_v30, %v943_v22  ;;  %14151 = vst [vmem:[#allocation23_spill] sm:$0xff] %v8860_v58 }
 0x25c   : > { %14147 = vst [vmem:[#allocation21_spill] sm:$0xff] %v8850_v29  ;;  %v14149_v6 = vsel %vm8853_vm13, 4294967295, %v14148_v6  ;;  %v7563_v24 = vpop.eup %7562  ;;  %v442_v18 = vsub.f32 1.0, %v8850_v29  ;;  %v905_v32 = vadd.f32 1e-05, %v884_v39  ;;  %v421_v12 = vmul.f32 %v8850_v29, %v8775_v17 }
 0x25d   : > { %14150 = vst [vmem:[#allocation22_spill] sm:$0xff] %v14149_v6  ;;  %v944_v42 = vmul.f32 %v7563_v24, %v8607_v10  ;;  %v842_v4 = vpop.xlane.xlu0 %841  ;;  %v305_v26 = vpop.xlane.xlu1 %304  ;;  %v8865_v60 = vadd.f32 %v1013_v44, %v486_v8  ;;  %v993_v46 = vadd.f32 %v8784_v1, %v968_v56  ;;  %v487_v19 = vadd.f32 %v466_v50, %v420_v36 }
 0x25e   : > { %v467_v54 = vmul.f32 %v8778_v23, %v442_v18  ;;  %7568 = vrsqrt.f32 %v905_v32  ;;  %v885_v63 = vmul.f32 0.03125, %v842_v4  ;;  %vm354_vm14 = vcmp.gt.f32.partialorder %v305_v26, 1e-06 }
 0x25f   : > { %14152 = vst [vmem:[#allocation24_spill] sm:$0xff] %v8865_v60  ;;  %v8871_v15 = vsel %vm354_vm14, 1.0, %v13788_v0  ;;  %v1053_v10 = vpack.c.bf16 %v8865_v60, %v8860_v58  ;;  %v969_v38 = vmul.f32 %v8781_v30, %v944_v42  ;;  %v1014_v8 = vmax.f32 %v993_v46, 0.0 }
 0x260   : > { %14153 = vst [vmem:[#allocation25_spill] sm:$0xff] %v8871_v15  ;;  %v7565_v25 = vpop.eup %7564  ;;  %v906_v21 = vadd.f32 1e-05, %v885_v63  ;;  %v443_v22 = vsub.f32 1.0, %v8871_v15  ;;  %v488_v34 = vadd.f32 %v467_v54, %v421_v12  ;;  %v422_v36 = vmul.f32 %v8871_v15, %v8775_v17 }
 0x261   : > { %v945_v59 = vmul.f32 %v7565_v25, %v8619_v48  ;;  %v308_v16 = vpop.xlane.xlu0 %307  ;;  %7114 = vmatmul.mubr.msk.bf16.gmra.mrb[4].mxu1 %vm685_vm4, %v1053_v10  ;;  %v845_v39 = vpop.xlane.xlu1 %844  ;;  %v994_v44 = vadd.f32 %v8784_v1, %v969_v38  ;;  %v14155_v48 = vmov 0  ;;  %v8895_v46 = vadd.f32 %v1014_v8, %v487_v19 }
 0x262   : > { %7570 = vrsqrt.f32 %v906_v21  ;;  %vm355_vm15 = vcmp.gt.f32.partialorder %v308_v16, 1e-06  ;;  %v886_v56 = vmul.f32 0.03125, %v845_v39  ;;  %7117 = vmatprep.mubr.msk.bf16.mxu1 %vm8216_vm1, %v13788_v0  ;;  %v468_v42 = vmul.f32 %v8778_v23, %v443_v22 }
 0x263   : > { %v8885_v24 = vsel %vm355_vm15, 1.0, %v13788_v0  ;;  %vm8888_vm2 = vmpackc.low %vm355_vm15, %vm354_vm14  ;;  %v1015_v50 = vmax.f32 %v994_v44, 0.0  ;;  %v970_v18 = vmul.f32 %v8781_v30, %v945_v59  ;;  %14158 = vst [vmem:[#allocation28_spill] sm:$0xff] %v8895_v46 }
 0x264   : > { %14154 = vst [vmem:[#allocation26_spill] sm:$0xff] %v8885_v24  ;;  %v14156_v48 = vsel %vm8888_vm2, 4294967295, %v14155_v48  ;;  %v7567_v32 = vpop.eup %7566  ;;  %v444_v12 = vsub.f32 1.0, %v8885_v24  ;;  %v907_v4 = vadd.f32 1e-05, %v886_v56  ;;  %v423_v26 = vmul.f32 %v8885_v24, %v8775_v17 }
 0x265   : > { %14157 = vst [vmem:[#allocation27_spill] sm:$0xff] %v14156_v48  ;;  %v946_v54 = vmul.f32 %v7567_v32, %v8623_v49  ;;  %v848_v63 = vpop.xlane.xlu0 %847  ;;  %v311_v10 = vpop.xlane.xlu1 %310  ;;  %v8900_v38 = vadd.f32 %v1015_v50, %v488_v34  ;;  %v995_v25 = vadd.f32 %v8784_v1, %v970_v18  ;;  %v489_v16 = vadd.f32 %v468_v42, %v422_v36 }
 0x266   : > { %v469_v21 = vmul.f32 %v8778_v23, %v444_v12  ;;  %7572 = vrsqrt.f32 %v907_v4  ;;  %v887_v22 = vmul.f32 0.03125, %v848_v63  ;;  %vm356_vm3 = vcmp.gt.f32.partialorder %v311_v10, 1e-06 }
 0x267   : > { %14159 = vst [vmem:[#allocation29_spill] sm:$0xff] %v8900_v38  ;;  %v8906_v19 = vsel %vm356_vm3, 1.0, %v13788_v0  ;;  %v1054_v49 = vpack.c.bf16 %v8900_v38, %v8895_v46  ;;  %v971_v8 = vmul.f32 %v8781_v30, %v946_v54  ;;  %v1016_v44 = vmax.f32 %v995_v25, 0.0 }
 0x268   : > { %14160 = vst [vmem:[#allocation30_spill] sm:$0xff] %v8906_v19  ;;  %v7569_v59 = vpop.eup %7568  ;;  %v908_v34 = vadd.f32 1e-05, %v887_v22  ;;  %v445_v39 = vsub.f32 1.0, %v8906_v19  ;;  %v490_v50 = vadd.f32 %v469_v21, %v423_v26  ;;  %v424_v36 = vmul.f32 %v8906_v19, %v8775_v17 }
 0x269   : > { %v947_v56 = vmul.f32 %v7569_v59, %v8635_v2  ;;  %v314_v18 = vpop.xlane.xlu0 %313  ;;  %7118 = vmatmul.mubr.msk.bf16.gmra.mrb[8].mxu1 %vm685_vm4, %v1054_v49  ;;  %v851_v32 = vpop.xlane.xlu1 %850  ;;  %v996_v12 = vadd.f32 %v8784_v1, %v971_v8  ;;  %v14162_v2 = vmov 0  ;;  %v8930_v49 = vadd.f32 %v1016_v44, %v489_v16 }
 0x26a   : > { %7574 = vrsqrt.f32 %v908_v34  ;;  %vm357_vm5 = vcmp.gt.f32.partialorder %v314_v18, 1e-06  ;;  %v888_v4 = vmul.f32 0.03125, %v851_v32  ;;  %7121 = vmatprep.mubr.msk.bf16.mxu1 %vm8216_vm1, %v13788_v0  ;;  %v470_v25 = vmul.f32 %v8778_v23, %v445_v39 }
 0x26b   : > { %v8920_v42 = vsel %vm357_vm5, 1.0, %v13788_v0  ;;  %vm8923_vm6 = vmpackc.low %vm357_vm5, %vm356_vm3  ;;  %v1017_v54 = vmax.f32 %v996_v12, 0.0  ;;  %v972_v26 = vmul.f32 %v8781_v30, %v947_v56  ;;  %14165 = vst [vmem:[#allocation33_spill] sm:$0xff] %v8930_v49  ;;  %v14168_v48 = vmov 0.0  }
 0x26c   : > { %14161 = vst [vmem:[#allocation31_spill] sm:$0xff] %v8920_v42  ;;  %v14163_v2 = vsel %vm8923_vm6, 4294967295, %v14162_v2  ;;  %v7571_v63 = vpop.eup %7570  ;;  %v446_v21 = vsub.f32 1.0, %v8920_v42  ;;  %v909_v22 = vadd.f32 1e-05, %v888_v4  ;;  %v425_v10 = vmul.f32 %v8920_v42, %v8775_v17 }
 0x26d   : > { %14164 = vst [vmem:[#allocation32_spill] sm:$0xff] %v14163_v2  ;;  %v948_v8 = vmul.f32 %v7571_v63, %v8639_v55  ;;  %v854_v59 = vpop.xlane.xlu0 %853  ;;  %v317_v34 = vpop.xlane.xlu1 %316  ;;  %v8935_v18 = vadd.f32 %v1017_v54, %v490_v50  ;;  %v997_v32 = vadd.f32 %v8784_v1, %v972_v26  ;;  %v491_v4 = vadd.f32 %v470_v25, %v424_v36 }
 0x26e   : > { %v471_v56 = vmul.f32 %v8778_v23, %v446_v21  ;;  %7576 = vrsqrt.f32 %v909_v22  ;;  %v889_v39 = vmul.f32 0.03125, %v854_v59  ;;  %vm358_vm8 = vcmp.gt.f32.partialorder %v317_v34, 1e-06 }
 0x26f   : > { %14166 = vst [vmem:[#allocation34_spill] sm:$0xff] %v8935_v18  ;;  %v8941_v16 = vsel %vm358_vm8, 1.0, %v13788_v0  ;;  %v1055_v55 = vpack.c.bf16 %v8935_v18, %v8930_v49  ;;  %v973_v44 = vmul.f32 %v8781_v30, %v948_v8  ;;  %v1018_v26 = vmax.f32 %v997_v32, 0.0 }
 0x270   : > { %14167 = vst [vmem:[#allocation35_spill] sm:$0xff] %v8941_v16  ;;  %v7573_v12 = vpop.eup %7572  ;;  %v910_v50 = vadd.f32 1e-05, %v889_v39  ;;  %v447_v54 = vsub.f32 1.0, %v8941_v16  ;;  %v492_v21 = vadd.f32 %v471_v56, %v425_v10  ;;  %v426_v36 = vmul.f32 %v8941_v16, %v8775_v17 }
 0x271   : > { %v949_v63 = vmul.f32 %v7573_v12, %v8651_v41  ;;  %v320_v22 = vpop.xlane.xlu0 %319  ;;  %7122 = vmatmul.mubr.msk.bf16.gmra.mrb[12].mxu1 %vm685_vm4, %v1055_v55  ;;  %v857_v59 = vpop.xlane.xlu1 %856  ;;  %v998_v0 = vadd.f32 %v8784_v1, %v973_v44  ;;  %v14170_v41 = vmov 0  ;;  %v8965_v44 = vadd.f32 %v1018_v26, %v491_v4 }
 0x272   : > { %7578 = vrsqrt.f32 %v910_v50  ;;  %vm359_vm9 = vcmp.gt.f32.partialorder %v320_v22, 1e-06  ;;  %v890_v2 = vmul.f32 0.03125, %v857_v59  ;;  %7125 = vmatprep.mubr.msk.bf16.mxu1 %vm8216_vm1, %v14168_v48  ;;  %v472_v56 = vmul.f32 %v8778_v23, %v447_v54 }
 0x273   : > { %v8955_v25 = vsel %vm359_vm9, 1.0, %v14168_v48  ;;  %vm8958_vm11 = vmpackc.low %vm359_vm9, %vm358_vm8  ;;  %v1019_v8 = vmax.f32 %v998_v0, 0.0  ;;  %v974_v10 = vmul.f32 %v8781_v30, %v949_v63  ;;  %14173 = vst [vmem:[#allocation38_spill] sm:$0xff] %v8965_v44 }
 0x274   : > { %14169 = vst [vmem:[#allocation36_spill] sm:$0xff] %v8955_v25  ;;  %v14171_v41 = vsel %vm8958_vm11, 4294967295, %v14170_v41  ;;  %v7575_v32 = vpop.eup %7574  ;;  %v448_v39 = vsub.f32 1.0, %v8955_v25  ;;  %v911_v55 = vadd.f32 1e-05, %v890_v2  ;;  %v427_v34 = vmul.f32 %v8955_v25, %v8775_v17 }
 0x275   : > { %14172 = vst [vmem:[#allocation37_spill] sm:$0xff] %v14171_v41  ;;  %v950_v12 = vmul.f32 %v7575_v32, %v8655_v52  ;;  %v860_v50 = vpop.xlane.xlu0 %859  ;;  %v323_v22 = vpop.xlane.xlu1 %322  ;;  %v8970_v59 = vadd.f32 %v1019_v8, %v492_v21  ;;  %v999_v0 = vadd.f32 %v8784_v1, %v974_v10  ;;  %v493_v32 = vadd.f32 %v472_v56, %v426_v36 }
 0x276   : > { %v473_v63 = vmul.f32 %v8778_v23, %v448_v39  ;;  %7580 = vrsqrt.f32 %v911_v55  ;;  %v891_v54 = vmul.f32 0.03125, %v860_v50  ;;  %vm360_vm12 = vcmp.gt.f32.partialorder %v323_v22, 1e-06 }
 0x277   : > { %14174 = vst [vmem:[#allocation39_spill] sm:$0xff] %v8970_v59  ;;  %v8976_v2 = vsel %vm360_vm12, 1.0, %v14168_v48  ;;  %v1056_v52 = vpack.c.bf16 %v8970_v59, %v8965_v44  ;;  %v975_v4 = vmul.f32 %v8781_v30, %v950_v12  ;;  %v1020_v10 = vmax.f32 %v999_v0, 0.0 }
 0x278   : > { %14175 = vst [vmem:[#allocation40_spill] sm:$0xff] %v8976_v2  ;;  %v7577_v26 = vpop.eup %7576  ;;  %v912_v21 = vadd.f32 1e-05, %v891_v54  ;;  %v449_v8 = vsub.f32 1.0, %v8976_v2  ;;  %v494_v55 = vadd.f32 %v473_v63, %v427_v34  ;;  %v428_v36 = vmul.f32 %v8976_v2, %v8775_v17 }
 0x279   : > { %v951_v39 = vmul.f32 %v7577_v26, %v8668_v7  ;;  %v326_v50 = vpop.xlane.xlu0 %325  ;;  %7126 = vmatmul.mubr.msk.bf16.gmra.mrb[16].mxu1 %vm685_vm4, %v1056_v52  ;;  %v863_v41 = vpop.xlane.xlu1 %862  ;;  %v1000_v6 = vadd.f32 %v8784_v1, %v975_v4  ;;  %v14177_v7 = vmov 0  ;;  %v9000_v52 = vadd.f32 %v1020_v10, %v493_v32 }
 0x27a   : > { %7582 = vrsqrt.f32 %v912_v21  ;;  %vm361_vm14 = vcmp.gt.f32.partialorder %v326_v50, 1e-06  ;;  %v892_v45 = vmul.f32 0.03125, %v863_v41  ;;  %7129 = vmatprep.mubr.msk.bf16.mxu1 %vm8216_vm1, %v14168_v48  ;;  %v474_v41 = vmul.f32 %v8778_v23, %v449_v8 }
 0x27b   : > { %v8990_v56 = vsel %vm361_vm14, 1.0, %v14168_v48  ;;  %vm8993_vm15 = vmpackc.low %vm361_vm14, %vm360_vm12  ;;  %v1021_v12 = vmax.f32 %v1000_v6, 0.0  ;;  %v976_v34 = vmul.f32 %v8781_v30, %v951_v39  ;;  %14180 = vst [vmem:[#allocation43_spill] sm:$0xff] %v9000_v52 }
 0x27c   : > { %14176 = vst [vmem:[#allocation41_spill] sm:$0xff] %v8990_v56  ;;  %v14178_v7 = vsel %vm8993_vm15, 4294967295, %v14177_v7  ;;  %v7579_v0 = vpop.eup %7578  ;;  %v450_v63 = vsub.f32 1.0, %v8990_v56  ;;  %v913_v54 = vadd.f32 1e-05, %v892_v45  ;;  %v429_v22 = vmul.f32 %v8990_v56, %v8775_v17 }
 0x27d   : > { %14179 = vst [vmem:[#allocation42_spill] sm:$0xff] %v14178_v7  ;;  %v952_v4 = vmul.f32 %v7579_v0, %v8672_v28  ;;  %v866_v26 = vpop.xlane.xlu0 %865  ;;  %v329_v21 = vpop.xlane.xlu1 %328  ;;  %v9005_v50 = vadd.f32 %v1021_v12, %v494_v55  ;;  %v1001_v6 = vadd.f32 %v8784_v1, %v976_v34  ;;  %v495_v0 = vadd.f32 %v474_v41, %v428_v36 }
 0x27e   : > { %v475_v39 = vmul.f32 %v8778_v23, %v450_v63  ;;  %7584 = vrsqrt.f32 %v913_v54  ;;  %v893_v8 = vmul.f32 0.03125, %v866_v26  ;;  %vm362_vm3 = vcmp.gt.f32.partialorder %v329_v21, 1e-06 }
 0x27f   : > { %14181 = vst [vmem:[#allocation44_spill] sm:$0xff] %v9005_v50  ;;  %v9011_v45 = vsel %vm362_vm3, 1.0, %v14168_v48  ;;  %v1057_v28 = vpack.c.bf16 %v9005_v50, %v9000_v52  ;;  %v977_v32 = vmul.f32 %v8781_v30, %v952_v4  ;;  %v1022_v34 = vmax.f32 %v1001_v6, 0.0 }
 0x280   : > { %14182 = vst [vmem:[#allocation45_spill] sm:$0xff] %v9011_v45  ;;  %v7581_v10 = vpop.eup %7580  ;;  %v914_v55 = vadd.f32 1e-05, %v893_v8  ;;  %v451_v12 = vsub.f32 1.0, %v9011_v45  ;;  %v496_v54 = vadd.f32 %v475_v39, %v429_v22  ;;  %v14184_v41 = vmov 0 }
 0x281   : > { %v953_v63 = vmul.f32 %v7581_v10, %v8684_v62  ;;  %v332_v26 = vpop.xlane.xlu0 %331  ;;  %7130 = vmatmul.mubr.msk.bf16.gmra.mrb[20].mxu1 %vm685_vm4, %v1057_v28  ;;  %v9019_v7 = vpop.xlane.xlu1 %868  ;;  %v1002_v5 = vadd.f32 %v8784_v1, %v977_v32  ;;  %v430_v6 = vmul.f32 %v9011_v45, %v8775_v17  ;;  %v9037_v28 = vadd.f32 %v1022_v34, %v495_v0 }
 0x282   : > { %7586 = vrsqrt.f32 %v914_v55  ;;  %vm363_vm5 = vcmp.gt.f32.partialorder %v332_v26, 1e-06  ;;  %7133 = vmatprep.mubr.msk.bf16.mxu1 %vm8216_vm1, %v14168_v48  ;;  %v476_v39 = vmul.f32 %v8778_v23, %v451_v12 }
 0x283   : > { %v9025_v36 = vsel %vm363_vm5, 1.0, %v14168_v48  ;;  %vm9028_vm8 = vmpackc.low %vm363_vm5, %vm362_vm3  ;;  %v1023_v62 = vmax.f32 %v1002_v5, 0.0  ;;  %v978_v4 = vmul.f32 %v8781_v30, %v953_v63  ;;  %14187 = vst [vmem:[#allocation48_spill] sm:$0xff] %v9037_v28 }
 0x284   : > { %14183 = vst [vmem:[#allocation46_spill] sm:$0xff] %v9025_v36  ;;  %v14185_v41 = vsel %vm9028_vm8, 4294967295, %v14184_v41  ;;  %v7583_v22 = vpop.eup %7582  ;;  %v452_v8 = vsub.f32 1.0, %v9025_v36  ;;  %v431_v21 = vmul.f32 %v9025_v36, %v8775_v17 }
 0x285   : > { %14186 = vst [vmem:[#allocation47_spill] sm:$0xff] %v14185_v41  ;;  %v954_v32 = vmul.f32 %v7583_v22, %v8690_v47  ;;  %v872_v10 = vpop.xlane.xlu0 %871  ;;  %v335_v55 = vpop.xlane.xlu1 %334  ;;  %v9042_v5 = vadd.f32 %v1023_v62, %v496_v54  ;;  %v1003_v63 = vadd.f32 %v8784_v1, %v978_v4  ;;  %v497_v22 = vadd.f32 %v476_v39, %v430_v6 }
 0x286   : > { %v477_v26 = vmul.f32 %v8778_v23, %v452_v8  ;;  %vm364_vm9 = vcmp.gt.f32.partialorder %v335_v55, 1e-06  ;;  %v14191_v6 = vmov 0 }
 0x287   : > { %14188 = vst [vmem:[#allocation49_spill] sm:$0xff] %v9042_v5  ;;  %v9048_v12 = vsel %vm364_vm9, 1.0, %v14168_v48  ;;  %v1058_v0 = vpack.c.bf16 %v9042_v5, %v9037_v28  ;;  %v979_v47 = vmul.f32 %v8781_v30, %v954_v32  ;;  %v1024_v54 = vmax.f32 %v1003_v63, 0.0 }
 0x288   : > { %14189 = vst [vmem:[#allocation50_spill] sm:$0xff] %v9048_v12  ;;  %v7585_v34 = vpop.eup %7584  ;;  %v453_v41 = vsub.f32 1.0, %v9048_v12  ;;  %v498_v4 = vadd.f32 %v477_v26, %v431_v21  ;;  %v432_v21 = vmul.f32 %v9048_v12, %v8775_v17 }
 0x289   : > { %v955_v62 = vmul.f32 %v7585_v34, %v8716_v9  ;;  %7134 = vmatmul.mubr.msk.bf16.gmra.mrb[24].mxu1 %vm685_vm4, %v1058_v0  ;;  %v338_v8 = vpop.xlane.xlu0 %337  ;;  %v1004_v50 = vadd.f32 %v8784_v1, %v979_v47  ;;  %v9072_v0 = vadd.f32 %v1024_v54, %v497_v22 }
 0x28a   : > { %vm365_vm12 = vcmp.gt.f32.partialorder %v338_v8, 1e-06  ;;  %7137 = vmatprep.mubr.msk.bf16.mxu1 %vm8216_vm1, %v14168_v48  ;;  %v478_v63 = vmul.f32 %v8778_v23, %v453_v41 }
 0x28b   : > { %v9060_v5 = vsel %vm365_vm12, 1.0, %v14168_v48  ;;  %vm9063_vm14 = vmpackc.low %vm365_vm12, %vm364_vm9  ;;  %v1025_v39 = vmax.f32 %v1004_v50, 0.0  ;;  %v980_v9 = vmul.f32 %v8781_v30, %v955_v62  ;;  %14194 = vst [vmem:[#allocation53_spill] sm:$0xff] %v9072_v0  ;;  %vm2350_vm12 = vcmask 326656  }
 0x28c   : > { %14190 = vst [vmem:[#allocation51_spill] sm:$0xff] %v9060_v5  ;;  %v14192_v6 = vsel %vm9063_vm14, 4294967295, %v14191_v6  ;;  %v7587_v32 = vpop.eup %7586  ;;  %v454_v26 = vsub.f32 1.0, %v9060_v5  ;;  %v433_v55 = vmul.f32 %v9060_v5, %v8775_v17 }
 0x28d   : > { %14193 = vst [vmem:[#allocation52_spill] sm:$0xff] %v14192_v6  ;;  %v956_v47 = vmul.f32 %v7587_v32, %v8725_v13  ;;  %v9077_v34 = vadd.f32 %v1025_v39, %v498_v4  ;;  %v1005_v50 = vadd.f32 %v8784_v1, %v980_v9  ;;  %v499_v6 = vadd.f32 %v478_v63, %v432_v21 }
 0x28e   : > { %v479_v62 = vmul.f32 %v8778_v23, %v454_v26  ;;  %v894_v32 = vmul.f32 0.03125, %v9019_v7  ;;  %v895_v21 = vmul.f32 0.03125, %v872_v10 }
 0x28f   : > { %14195 = vst [vmem:[#allocation54_spill] sm:$0xff] %v9077_v34  ;;  %v1059_v8 = vpack.c.bf16 %v9077_v34, %v9072_v0  ;;  %v981_v41 = vmul.f32 %v8781_v30, %v956_v47  ;;  %v1026_v22 = vmax.f32 %v1005_v50, 0.0  ;;  %v9098_v47 = vpop.xlane.xlu0 %340 }
 0x290   : > { %v500_v28 = vadd.f32 %v479_v62, %v433_v55  ;;  %v915_v63 = vadd.f32 1e-05, %v894_v32  ;;  %v916_v26 = vadd.f32 1e-05, %v895_v21  ;;  %14198 = vst [vmem:[#allocation57_spill] sm:$0xff] %v9098_v47 }
 0x291   : > { %7138 = vmatmul.mubr.msk.bf16.gmra.mrb[28].mxu1 %vm685_vm4, %v1059_v8  ;;  %v1006_v13 = vadd.f32 %v8784_v1, %v981_v41  ;;  %v9088_v4 = vadd.f32 %v1026_v22, %v499_v6  ;;  %vm366_vm3 = vcmp.gt.f32.partialorder %v9098_v47, 1e-06 }
 0x292   : > { %7141 = vmatprep.mubr.msk.bf16.mxu1 %vm8216_vm1, %v14168_v48  ;;  %7588 = vrsqrt.f32 %v915_v63  ;;  %v9105_v50 = vsel %vm366_vm3, 1.0, %v14168_v48 }
 0x293   : > { %v1027_v54 = vmax.f32 %v1006_v13, 0.0  ;;  %14196 = vst [vmem:[#allocation55_spill] sm:$0xff] %v9088_v4  ;;  %7590 = vrsqrt.f32 %v916_v26  ;;  %14199 = vst [vmem:[#allocation58_spill] sm:$0xff] %v9105_v50  ;;  %v455_v62 = vsub.f32 1.0, %v9105_v50 }
 0x295   : > { %v9090_v39 = vadd.f32 %v1027_v54, %v500_v28  ;;  %v434_v54 = vmul.f32 %v9105_v50, %v8775_v17 }
 0x297   : > { %14197 = vst [vmem:[#allocation56_spill] sm:$0xff] %v9090_v39  ;;  %v1060_v9 = vpack.c.bf16 %v9090_v39, %v9088_v4 }
 0x299   : > { %7142 = vmatmul.mubr.msk.bf16.gmra.mrb[32].mxu1 %vm685_vm4, %v1060_v9  ;;  %v480_v9 = vmul.f32 %v8778_v23, %v455_v62 }
 0x29a   : > { %7145 = vmatprep.mubr.msk.bf16.mxu1 %vm8216_vm1, %v14168_v48 }
 0x29c   : > { %v7589_v6 = vpop.eup %7588 }
 0x29d   : > { %v7591_v28 = vpop.eup %7590  ;;  %v957_v55 = vmul.f32 %v7589_v6, %v8737_v57 }
 0x29e   : > { %v958_v7 = vmul.f32 %v7591_v28, %v8741_v43  ;;  %v9117_v43 = vpop.xlane.xlu0 %346  ;;  %v501_v28 = vadd.f32 %v480_v9, %v434_v54 }
 0x29f   : > { %v982_v41 = vmul.f32 %v8781_v30, %v957_v55  ;;  %14201 = vst [vmem:[#allocation60_spill] sm:$0xff] %v9117_v43  ;;  %vm368_vm9 = vcmp.gt.f32.partialorder %v9117_v43, 1e-06 }
 0x2a0   : > { %v983_v22 = vmul.f32 %v8781_v30, %v958_v7  ;;  %v9134_v62 = vsel %vm368_vm9, 1.0, %v14168_v48 }
 0x2a1   : > { %v1007_v32 = vadd.f32 %v8784_v1, %v982_v41  ;;  %14203 = vst [vmem:[#allocation62_spill] sm:$0xff] %v9134_v62 }
 0x2a2   : > { %v1008_v6 = vadd.f32 %v8784_v1, %v983_v22 }
 0x2a3   : > { %v1028_v7 = vmax.f32 %v1007_v32, 0.0  ;;  %v436_v32 = vmul.f32 %v9134_v62, %v8775_v17 }
 0x2a5   : > { %v9136_v41 = vadd.f32 %v1028_v7, %v501_v28 }
 0x2a7   : > { %14204 = vst [vmem:[#allocation63_spill] sm:$0xff] %v9136_v41 }
 0x2d2   : > { %v875_v10 = vpop.xlane.xlu1 %874 }
 0x2d3   : > { %v896_v8 = vmul.f32 0.03125, %v875_v10 }
 0x2d5   : > { %v917_v13 = vadd.f32 1e-05, %v896_v8  ;;  %v1029_v8 = vmax.f32 %v1008_v6, 0.0 }
 0x2d6   : > { %v9113_v57 = vpop.xlane.xlu1 %343 }
 0x2d7   : > { %14200 = vst [vmem:[#allocation59_spill] sm:$0xff] %v9113_v57  ;;  %7592 = vrsqrt.f32 %v917_v13  ;;  %vm367_vm5 = vcmp.gt.f32.partialorder %v9113_v57, 1e-06  ;;  %v457_v57 = vsub.f32 1.0, %v9134_v62 }
 0x2d8   : > { %v9123_v21 = vsel %vm367_vm5, 1.0, %v14168_v48 }
 0x2d9   : > { %14202 = vst [vmem:[#allocation61_spill] sm:$0xff] %v9123_v21  ;;  %v435_v63 = vmul.f32 %v9123_v21, %v8775_v17  ;;  %v456_v26 = vsub.f32 1.0, %v9123_v21  ;;  %v9160_v17 = vld [vmem:[#allocation2 + $0x1b0] ss:$0 sm:$0xff] }
 0x2db   : > { %v481_v55 = vmul.f32 %v8778_v23, %v456_v26 }
 0x2dd   : > { %v502_v10 = vadd.f32 %v481_v55, %v435_v63  ;;  %v482_v63 = vmul.f32 %v8778_v23, %v457_v57  ;;  %v9164_v23 = vrot.slane %v8705_v51, %v8766_v53 }
 0x2df   : > { %v9138_v13 = vadd.f32 %v1029_v8, %v502_v10  ;;  %v503_v28 = vadd.f32 %v482_v63, %v436_v32  ;;  %v13803_v10 = vmov 0   ;;  %14207 = vst [vmem:[#allocation66_spill] sm:$0xff] %v9164_v23 }
 0x2e0   : > { %1573 = vmatprep.subr.bf16.mxu0 %v13803_v10  ;;  %1605 = vmatprep.mubr.bf16.mxu0 %v13803_v10 }
 0x2e1   : > { %14205 = vst [vmem:[#allocation64_spill] sm:$0xff] %v9138_v13  ;;  %v7593_v22 = vpop.eup %7592  ;;  %v1061_v54 = vpack.c.bf16 %v9138_v13, %v9136_v41  ;;  %3772 = vmatprep.subr.bf16.mxu1 %v13803_v10 }
 0x2e2   : > { %v959_v9 = vmul.f32 %v7593_v22, %v8759_v35 }
 0x2e3   : > { %7146 = vmatmul.mubr.msk.bf16.gmra.mrb[36].mxu1 %vm685_vm4, %v1061_v54 }
 0x2e4   : > { %7149 = vmatprep.mubr.msk.bf16.mxu1 %vm8216_vm1, %v14168_v48  ;;  %v984_v26 = vmul.f32 %v8781_v30, %v959_v9 }
 0x2e6   : > { %v1009_v6 = vadd.f32 %v8784_v1, %v984_v26 }
 0x2e8   : > { %v1030_v55 = vmax.f32 %v1009_v6, 0.0 }
 0x2ea   : > { %v9152_v7 = vadd.f32 %v1030_v55, %v503_v28 }
 0x2ec   : > { %14206 = vst [vmem:[#allocation65_spill] sm:$0xff] %v9152_v7  ;;  %v1062_v35 = vpack.c.bf16 %v9152_v7, %v9152_v7 }
 0x2ee   : > { %7150 = vmatmul.mubr.msk.bf16.gmra.mrb[40].mxu1 %vm685_vm4, %v1062_v35 }
 0x32c   : > { %v1141_v30 = vpop.f32.mrb[0].mxu1 }
 0x32d   : > { %v9167_v1 = vadd.f32 %v9160_v17, %v1141_v30  ;;  %v7111_v57 = vpop.f32.mrb[1].mxu1 }
 0x32e   : > { %v1144_v8 = vpop.f32.mrb[2].mxu1 }
 0x32f   : > { %v1145_v22 = vadd.f32 %v9160_v17, %v1144_v8  ;;  %v7112_v54 = vpop.f32.mrb[3].mxu1  ;;  %v9172_v9 = vmul.f32 %v9164_v23, %v9167_v1  ;;  %v9182_v51 = vmul.f32 %v8719_v20, %v9167_v1 }
 0x331   : > { %v9175_v32 = vmul.f32 %v9164_v23, %v1145_v22  ;;  %v9178_v63 = vpack.c.bf16 %v1145_v22, %v9167_v1  ;;  %14208 = vst [vmem:[#allocation67_spill] sm:$0xff] %v9182_v51  ;;  %v9185_v26 = vmul.f32 %v8719_v20, %v1145_v22  ;;  %v9196_v10 = vmul.f32 %v8713_v27, %v1145_v22 }
 0x332   : > { %v9202_v47 = vmul.f32 %v8722_v14, %v1145_v22 }
 0x333   : > { %14209 = vst [vmem:[#allocation68_spill] sm:$0xff] %v9185_v26  ;;  %1392 = vrot.lane.b32.xlu1 %v9178_v63, %s8219_s12  ;;  %14210 = vst [vmem:[#allocation69_spill] sm:$0xff] %v9196_v10 }
 0x334   : > { %v1149_v55 = vpop.f32.mrb[4].mxu1  ;;  %14212 = vst [vmem:[#allocation71_spill] sm:$0xff] %v9202_v47 }
 0x335   : > { %v1150_v35 = vadd.f32 %v9160_v17, %v1149_v55  ;;  %v7115_v30 = vpop.f32.mrb[5].mxu1 }
 0x336   : > { %v1152_v57 = vpop.f32.mrb[6].mxu1 }
 0x337   : > { %v1153_v8 = vadd.f32 %v9160_v17, %v1152_v57  ;;  %v7116_v54 = vpop.f32.mrb[7].mxu1  ;;  %v9199_v43 = vmul.f32 %v8713_v27, %v1150_v35  ;;  %v9205_v6 = vmul.f32 %v8722_v14, %v1150_v35  ;;  %v9210_v55 = vmul.f32 %v9164_v23, %v1150_v35 }
 0x338   : > { %v9218_v54 = vmul.f32 %v8719_v20, %v1150_v35 }
 0x339   : > { %14211 = vst [vmem:[#allocation70_spill] sm:$0xff] %v9199_v43  ;;  %14213 = vst [vmem:[#allocation72_spill] sm:$0xff] %v9205_v6  ;;  %v9207_v28 = vpack.c.bf16 %v1153_v8, %v1150_v35  ;;  %v9213_v30 = vmul.f32 %v9164_v23, %v1153_v8  ;;  %v9221_v22 = vmul.f32 %v8719_v20, %v1153_v8 }
 0x33a   : > { %14214 = vst [vmem:[#allocation73_spill] sm:$0xff] %v9218_v54  ;;  %v9234_v52 = vmul.f32 %v8713_v27, %v1153_v8  ;;  %v9240_v59 = vmul.f32 %v8722_v14, %v1153_v8 }
 0x33b   : > { %14215 = vst [vmem:[#allocation74_spill] sm:$0xff] %v9221_v22  ;;  %1394 = vrot.lane.b32.xlu0 %v9207_v28, %s8219_s12 }
 0x33c   : > { %v1157_v41 = vpop.f32.mrb[8].mxu1  ;;  %14216 = vst [vmem:[#allocation75_spill] sm:$0xff] %v9234_v52  ;;  %14218 = vst [vmem:[#allocation77_spill] sm:$0xff] %v9240_v59 }
 0x33d   : > { %v1158_v57 = vadd.f32 %v9160_v17, %v1157_v41  ;;  %v7119_v35 = vpop.f32.mrb[9].mxu1 }
 0x33e   : > { %v1160_v4 = vpop.f32.mrb[10].mxu1 }
 0x33f   : > { %v1161_v34 = vadd.f32 %v9160_v17, %v1160_v4  ;;  %v7120_v0 = vpop.f32.mrb[11].mxu1  ;;  %v9237_v7 = vmul.f32 %v8713_v27, %v1158_v57  ;;  %v9243_v13 = vmul.f32 %v8722_v14, %v1158_v57  ;;  %v9248_v41 = vmul.f32 %v9164_v23, %v1158_v57 }
 0x340   : > { %v9256_v35 = vmul.f32 %v8719_v20, %v1158_v57 }
 0x341   : > { %14217 = vst [vmem:[#allocation76_spill] sm:$0xff] %v9237_v7  ;;  %14219 = vst [vmem:[#allocation78_spill] sm:$0xff] %v9243_v13  ;;  %v9245_v39 = vpack.c.bf16 %v1161_v34, %v1158_v57  ;;  %v9251_v4 = vmul.f32 %v9164_v23, %v1161_v34  ;;  %v9259_v8 = vmul.f32 %v8719_v20, %v1161_v34 }
 0x342   : > { %14220 = vst [vmem:[#allocation79_spill] sm:$0xff] %v9256_v35  ;;  %v9272_v33 = vmul.f32 %v8713_v27, %v1161_v34  ;;  %v9278_v3 = vmul.f32 %v8722_v14, %v1161_v34 }
 0x343   : > { %14221 = vst [vmem:[#allocation80_spill] sm:$0xff] %v9259_v8  ;;  %1396 = vrot.lane.b32.xlu1 %v9245_v39, %s8219_s12 }
 0x344   : > { %v1165_v49 = vpop.f32.mrb[12].mxu1  ;;  %14222 = vst [vmem:[#allocation81_spill] sm:$0xff] %v9272_v33  ;;  %14224 = vst [vmem:[#allocation83_spill] sm:$0xff] %v9278_v3 }
 0x345   : > { %v1166_v0 = vadd.f32 %v9160_v17, %v1165_v49  ;;  %v7123_v57 = vpop.f32.mrb[13].mxu1 }
 0x346   : > { %v1168_v46 = vpop.f32.mrb[14].mxu1 }
 0x347   : > { %v1169_v60 = vadd.f32 %v9160_v17, %v1168_v46  ;;  %v7124_v58 = vpop.f32.mrb[15].mxu1  ;;  %v9275_v44 = vmul.f32 %v8713_v27, %v1166_v0  ;;  %v9281_v18 = vmul.f32 %v8722_v14, %v1166_v0  ;;  %v9286_v49 = vmul.f32 %v9164_v23, %v1166_v0 }
 0x348   : > { %v9294_v57 = vmul.f32 %v8719_v20, %v1166_v0 }
 0x349   : > { %14223 = vst [vmem:[#allocation82_spill] sm:$0xff] %v9275_v44  ;;  %14225 = vst [vmem:[#allocation84_spill] sm:$0xff] %v9281_v18  ;;  %v9283_v38 = vpack.c.bf16 %v1169_v60, %v1166_v0  ;;  %v9289_v46 = vmul.f32 %v9164_v23, %v1169_v60  ;;  %v9297_v34 = vmul.f32 %v8719_v20, %v1169_v60 }
 0x34a   : > { %14226 = vst [vmem:[#allocation85_spill] sm:$0xff] %v9294_v57  ;;  %v9310_v54 = vmul.f32 %v8713_v27, %v1169_v60  ;;  %v9316_v3 = vmul.f32 %v8722_v14, %v1169_v60 }
 0x34b   : > { %14227 = vst [vmem:[#allocation86_spill] sm:$0xff] %v9297_v34  ;;  %1398 = vrot.lane.b32.xlu1 %v9283_v38, %s8219_s12 }
 0x34c   : > { %v1173_v47 = vpop.f32.mrb[16].mxu1  ;;  %14228 = vst [vmem:[#allocation87_spill] sm:$0xff] %v9310_v54  ;;  %14230 = vst [vmem:[#allocation89_spill] sm:$0xff] %v9316_v3 }
 0x34d   : > { %v1174_v58 = vadd.f32 %v9160_v17, %v1173_v47  ;;  %v7127_v0 = vpop.f32.mrb[17].mxu1 }
 0x34e   : > { %v1176_v53 = vpop.f32.mrb[18].mxu1 }
 0x34f   : > { %v1177_v35 = vadd.f32 %v9160_v17, %v1176_v53  ;;  %v7128_v8 = vpop.f32.mrb[19].mxu1  ;;  %v9313_v59 = vmul.f32 %v8713_v27, %v1174_v58  ;;  %v9319_v13 = vmul.f32 %v8722_v14, %v1174_v58  ;;  %v9324_v47 = vmul.f32 %v9164_v23, %v1174_v58 }
 0x350   : > { %v9332_v0 = vmul.f32 %v8719_v20, %v1174_v58 }
 0x351   : > { %14229 = vst [vmem:[#allocation88_spill] sm:$0xff] %v9313_v59  ;;  %14231 = vst [vmem:[#allocation90_spill] sm:$0xff] %v9319_v13  ;;  %v9321_v6 = vpack.c.bf16 %v1177_v35, %v1174_v58  ;;  %v9327_v53 = vmul.f32 %v9164_v23, %v1177_v35  ;;  %v9335_v60 = vmul.f32 %v8719_v20, %v1177_v35 }
 0x352   : > { %14232 = vst [vmem:[#allocation91_spill] sm:$0xff] %v9332_v0  ;;  %v9348_v59 = vmul.f32 %v8713_v27, %v1177_v35  ;;  %v9354_v3 = vmul.f32 %v8722_v14, %v1177_v35 }
 0x353   : > { %14233 = vst [vmem:[#allocation92_spill] sm:$0xff] %v9335_v60  ;;  %1400 = vrot.lane.b32.xlu1 %v9321_v6, %s8219_s12 }
 0x354   : > { %v1181_v34 = vpop.f32.mrb[20].mxu1  ;;  %14234 = vst [vmem:[#allocation93_spill] sm:$0xff] %v9348_v59  ;;  %14236 = vst [vmem:[#allocation95_spill] sm:$0xff] %v9354_v3 }
 0x355   : > { %v1182_v8 = vadd.f32 %v9160_v17, %v1181_v34  ;;  %v7131_v58 = vpop.f32.mrb[21].mxu1 }
 0x356   : > { %v1184_v51 = vpop.f32.mrb[22].mxu1 }
 0x357   : > { %v1185_v26 = vadd.f32 %v9160_v17, %v1184_v51  ;;  %v7132_v54 = vpop.f32.mrb[23].mxu1  ;;  %v9351_v18 = vmul.f32 %v8713_v27, %v1182_v8  ;;  %v9357_v57 = vmul.f32 %v8722_v14, %v1182_v8  ;;  %v9362_v34 = vmul.f32 %v9164_v23, %v1182_v8 }
 0x358   : > { %v9370_v58 = vmul.f32 %v8719_v20, %v1182_v8 }
 0x359   : > { %14235 = vst [vmem:[#allocation94_spill] sm:$0xff] %v9351_v18  ;;  %14237 = vst [vmem:[#allocation96_spill] sm:$0xff] %v9357_v57  ;;  %v9359_v22 = vpack.c.bf16 %v1185_v26, %v1182_v8  ;;  %v9365_v51 = vmul.f32 %v9164_v23, %v1185_v26  ;;  %v9373_v35 = vmul.f32 %v8719_v20, %v1185_v26 }
 0x35a   : > { %14238 = vst [vmem:[#allocation97_spill] sm:$0xff] %v9362_v34  ;;  %14240 = vst [vmem:[#allocation99_spill] sm:$0xff] %v9370_v58  ;;  %v9386_v52 = vmul.f32 %v8713_v27, %v1185_v26  ;;  %v9392_v3 = vmul.f32 %v8722_v14, %v1185_v26 }
 0x35b   : > { %14239 = vst [vmem:[#allocation98_spill] sm:$0xff] %v9365_v51  ;;  %14241 = vst [vmem:[#allocation100_spill] sm:$0xff] %v9373_v35  ;;  %1402 = vrot.lane.b32.xlu0 %v9359_v22, %s8219_s12 }
 0x35c   : > { %v1189_v60 = vpop.f32.mrb[24].mxu1  ;;  %14242 = vst [vmem:[#allocation101_spill] sm:$0xff] %v9386_v52  ;;  %14244 = vst [vmem:[#allocation103_spill] sm:$0xff] %v9392_v3 }
 0x35d   : > { %v1190_v54 = vadd.f32 %v9160_v17, %v1189_v60  ;;  %v7135_v8 = vpop.f32.mrb[25].mxu1 }
 0x35e   : > { %v1192_v59 = vpop.f32.mrb[26].mxu1 }
 0x35f   : > { %v1193_v18 = vadd.f32 %v9160_v17, %v1192_v59  ;;  %v7136_v44 = vpop.f32.mrb[27].mxu1  ;;  %v9389_v13 = vmul.f32 %v8713_v27, %v1190_v54  ;;  %v9395_v0 = vmul.f32 %v8722_v14, %v1190_v54  ;;  %v9400_v60 = vmul.f32 %v9164_v23, %v1190_v54 }
 0x360   : > { %v9408_v8 = vmul.f32 %v8719_v20, %v1190_v54 }
 0x361   : > { %14243 = vst [vmem:[#allocation102_spill] sm:$0xff] %v9389_v13  ;;  %14245 = vst [vmem:[#allocation104_spill] sm:$0xff] %v9395_v0  ;;  %v9397_v33 = vpack.c.bf16 %v1193_v18, %v1190_v54  ;;  %v9403_v59 = vmul.f32 %v9164_v23, %v1193_v18  ;;  %v9411_v26 = vmul.f32 %v8719_v20, %v1193_v18 }
 0x362   : > { %14246 = vst [vmem:[#allocation105_spill] sm:$0xff] %v9400_v60  ;;  %14248 = vst [vmem:[#allocation107_spill] sm:$0xff] %v9408_v8  ;;  %v9424_v43 = vmul.f32 %v8713_v27, %v1193_v18  ;;  %v9430_v3 = vmul.f32 %v8722_v14, %v1193_v18 }
 0x363   : > { %14247 = vst [vmem:[#allocation106_spill] sm:$0xff] %v9403_v59  ;;  %14249 = vst [vmem:[#allocation108_spill] sm:$0xff] %v9411_v26  ;;  %1404 = vrot.lane.b32.xlu1 %v9397_v33, %s8219_s12 }
 0x364   : > { %v1197_v35 = vpop.f32.mrb[28].mxu1  ;;  %14250 = vst [vmem:[#allocation109_spill] sm:$0xff] %v9424_v43  ;;  %14252 = vst [vmem:[#allocation111_spill] sm:$0xff] %v9430_v3 }
 0x365   : > { %v1198_v44 = vadd.f32 %v9160_v17, %v1197_v35  ;;  %v7139_v54 = vpop.f32.mrb[29].mxu1 }
 0x366   : > { %v1200_v52 = vpop.f32.mrb[30].mxu1 }
 0x367   : > { %v1201_v13 = vadd.f32 %v9160_v17, %v1200_v52  ;;  %v7140_v10 = vpop.f32.mrb[31].mxu1  ;;  %v9427_v57 = vmul.f32 %v8713_v27, %v1198_v44  ;;  %v9433_v58 = vmul.f32 %v8722_v14, %v1198_v44  ;;  %v9438_v35 = vmul.f32 %v9164_v23, %v1198_v44 }
 0x368   : > { %v9446_v54 = vmul.f32 %v8719_v20, %v1198_v44 }
 0x369   : > { %14251 = vst [vmem:[#allocation110_spill] sm:$0xff] %v9427_v57  ;;  %14253 = vst [vmem:[#allocation112_spill] sm:$0xff] %v9433_v58  ;;  %v9435_v7 = vpack.c.bf16 %v1201_v13, %v1198_v44  ;;  %v9441_v52 = vmul.f32 %v9164_v23, %v1201_v13  ;;  %v9449_v18 = vmul.f32 %v8719_v20, %v1201_v13 }
 0x36a   : > { %14254 = vst [vmem:[#allocation113_spill] sm:$0xff] %v9438_v35  ;;  %14256 = vst [vmem:[#allocation115_spill] sm:$0xff] %v9446_v54  ;;  %v9462_v34 = vmul.f32 %v8713_v27, %v1201_v13  ;;  %v9468_v3 = vmul.f32 %v8722_v14, %v1201_v13 }
 0x36b   : > { %14255 = vst [vmem:[#allocation114_spill] sm:$0xff] %v9441_v52  ;;  %14257 = vst [vmem:[#allocation116_spill] sm:$0xff] %v9449_v18  ;;  %1406 = vrot.lane.b32.xlu0 %v9435_v7, %s8219_s12 }
 0x36c   : > { %v1205_v26 = vpop.f32.mrb[32].mxu1  ;;  %14258 = vst [vmem:[#allocation117_spill] sm:$0xff] %v9462_v34  ;;  %14260 = vst [vmem:[#allocation119_spill] sm:$0xff] %v9468_v3 }
 0x36d   : > { %v1206_v10 = vadd.f32 %v9160_v17, %v1205_v26  ;;  %v7143_v44 = vpop.f32.mrb[33].mxu1 }
 0x36e   : > { %v1208_v43 = vpop.f32.mrb[34].mxu1 }
 0x36f   : > { %v1209_v57 = vadd.f32 %v9160_v17, %v1208_v43  ;;  %v7144_v59 = vpop.f32.mrb[35].mxu1  ;;  %v9465_v0 = vmul.f32 %v8713_v27, %v1206_v10  ;;  %v9471_v8 = vmul.f32 %v8722_v14, %v1206_v10  ;;  %v9476_v26 = vmul.f32 %v9164_v23, %v1206_v10 }
 0x370   : > { %v9484_v44 = vmul.f32 %v8719_v20, %v1206_v10 }
 0x371   : > { %14259 = vst [vmem:[#allocation118_spill] sm:$0xff] %v9465_v0  ;;  %14261 = vst [vmem:[#allocation120_spill] sm:$0xff] %v9471_v8  ;;  %v9473_v60 = vpack.c.bf16 %v1209_v57, %v1206_v10  ;;  %v9479_v43 = vmul.f32 %v9164_v23, %v1209_v57  ;;  %v9487_v13 = vmul.f32 %v8719_v20, %v1209_v57  ;;  %v14266_v10 = vmov 0  }
 0x372   : > { %14262 = vst [vmem:[#allocation121_spill] sm:$0xff] %v9476_v26  ;;  %14264 = vst [vmem:[#allocation123_spill] sm:$0xff] %v9484_v44  ;;  %v9506_v44 = vmul.f32 %v8713_v27, %v1209_v57 }
 0x373   : > { %14263 = vst [vmem:[#allocation122_spill] sm:$0xff] %v9479_v43  ;;  %14265 = vst [vmem:[#allocation124_spill] sm:$0xff] %v9487_v13  ;;  %1408 = vrot.lane.b32.xlu1 %v9473_v60, %s8219_s12 }
 0x374   : > { %14267 = vst [vmem:[#allocation125_spill] sm:$0xff] %v9506_v44 }
 0x3a5   : > { %v1393_v35 = vpop.permute.xlu1 %1392 }
 0x3a6   : > { %v1541_v59 = vsel %vm685_vm4, %v1393_v35, 0 }
 0x3a7   : > { %1574 = vmatpush1.bf16.xpose.msra.mxu0 %v1541_v59 }
 0x3a8   : > { %1575 = vmatprep.subr.bf16.mxu0 %v14266_v10 }
 0x3ad   : > { %v1395_v34 = vpop.permute.xlu0 %1394 }
 0x3ae   : > { %v1544_v0 = vsel %vm685_vm4, %v1395_v34, 0  ;;  %v9512_v34 = vmul.f32 %v8722_v14, %v1209_v57 }
 0x3af   : > { %1576 = vmatpush1.bf16.xpose.msra.mxu0 %v1544_v0 }
 0x3b0   : > { %1577 = vmatprep.subr.bf16.mxu0 %v14266_v10  ;;  %14269 = vst [vmem:[#allocation127_spill] sm:$0xff] %v9512_v34  ;;  %v9546_v34 = vmul.f32 %v8713_v27, %v9167_v1 }
 0x3b5   : > { %v1397_v58 = vpop.permute.xlu1 %1396 }
 0x3b6   : > { %v1547_v3 = vsel %vm685_vm4, %v1397_v58, 0  ;;  %v1213_v8 = vpop.f32.mrb[36].mxu1 }
 0x3b7   : > { %v1214_v54 = vadd.f32 %v9160_v17, %v1213_v8  ;;  %v7147_v26 = vpop.f32.mrb[37].mxu1  ;;  %1578 = vmatpush1.bf16.xpose.msra.mxu0 %v1547_v3 }
 0x3b8   : > { %v1216_v18 = vpop.f32.mrb[38].mxu1  ;;  %1579 = vmatprep.subr.bf16.mxu0 %v14266_v10 }
 0x3b9   : > { %v1217_v35 = vadd.f32 %v9160_v17, %v1216_v18  ;;  %v7148_v59 = vpop.f32.mrb[39].mxu1  ;;  %v9509_v0 = vmul.f32 %v8713_v27, %v1214_v54  ;;  %v9515_v58 = vmul.f32 %v8722_v14, %v1214_v54  ;;  %v9520_v3 = vmul.f32 %v9164_v23, %v1214_v54 }
 0x3ba   : > { %v9528_v59 = vmul.f32 %v8719_v20, %v1214_v54 }
 0x3bb   : > { %14268 = vst [vmem:[#allocation126_spill] sm:$0xff] %v9509_v0  ;;  %14270 = vst [vmem:[#allocation128_spill] sm:$0xff] %v9515_v58  ;;  %v9517_v8 = vpack.c.bf16 %v1217_v35, %v1214_v54  ;;  %v9523_v18 = vmul.f32 %v9164_v23, %v1217_v35  ;;  %v9531_v57 = vmul.f32 %v8719_v20, %v1217_v35 }
 0x3bc   : > { %v9549_v58 = vmul.f32 %v8713_v27, %v1217_v35 }
 0x3bd   : > { %14271 = vst [vmem:[#allocation129_spill] sm:$0xff] %v9517_v8  ;;  %1410 = vrot.lane.b32.xlu0 %v9517_v8, %s8219_s12  ;;  %v1399_v43 = vpop.permute.xlu1 %1398 }
 0x3be   : > { %v1550_v51 = vsel %vm685_vm4, %v1399_v43, 0  ;;  %v9553_v43 = vmul.f32 %v8722_v14, %v9167_v1 }
 0x3bf   : > { %1580 = vmatpush1.bf16.xpose.msra.mxu0 %v1550_v51 }
 0x3c0   : > { %1581 = vmatprep.subr.bf16.mxu0 %v14266_v10 }
 0x3c1   : > { %v1221_v54 = vpop.f32.mrb[40].mxu1 }
 0x3c2   : > { %v1222_v44 = vadd.f32 %v9160_v17, %v1221_v54  ;;  %v7151_v0 = vpop.f32.mrb[41].mxu1  ;;  %v9567_v54 = vmul.f32 %v8722_v14, %v1217_v35  ;;  %v14357_v35 = vld [vmem:[#allocation124_spill] sm:$0xff] }
 0x3c3   : > { %v1224_v13 = vpop.f32.mrb[42].mxu1 }
 0x3c4   : > { %v7152_v26 = vpop.f32.mrb[43].mxu1  ;;  %v9555_v51 = vpack.c.bf16 %v1222_v44, %v1222_v44  ;;  %v9558_v52 = vmul.f32 %v9164_v23, %v1222_v44  ;;  %v9561_v17 = vmul.f32 %v8713_v27, %v1222_v44  ;;  %v9564_v13 = vmul.f32 %v8719_v20, %v1222_v44 }
 0x3c5   : > { %v1401_v0 = vpop.permute.xlu1 %1400  ;;  %v9570_v8 = vmul.f32 %v8722_v14, %v1222_v44 }
 0x3c6   : > { %v1553_v1 = vsel %vm685_vm4, %v1401_v0, 0  ;;  %1412 = vrot.lane.b32.xlu1 %v9555_v51, %s8219_s12  ;;  %v1348_v27 = vpack.c.bf16 %v9561_v17, %v9549_v58  ;;  %v14325_v58 = vld [vmem:[#allocation79_spill] sm:$0xff] }
 0x3c7   : > { %1582 = vmatpush1.bf16.xpose.msra.mxu0 %v1553_v1 }
 0x3c8   : > { %1583 = vmatprep.subr.bf16.mxu0 %v14266_v10 }
 0x3cd   : > { %v1403_v44 = vpop.permute.xlu0 %1402 }
 0x3ce   : > { %v1556_v0 = vsel %vm685_vm4, %v1403_v44, 0 }
 0x3cf   : > { %1584 = vmatpush1.bf16.xpose.msra.mxu0 %v1556_v0 }
 0x3d0   : > { %1585 = vmatprep.subr.bf16.mxu0 %v14266_v10 }
 0x3d5   : > { %v1405_v14 = vpop.permute.xlu1 %1404 }
 0x3d6   : > { %v1559_v26 = vsel %vm685_vm4, %v1405_v14, 0 }
 0x3d7   : > { %1586 = vmatpush1.bf16.xpose.msra.mxu0 %v1559_v26 }
 0x3d8   : > { %1587 = vmatprep.subr.bf16.mxu0 %v14266_v10 }
 0x3db   : > { %2100 = vxpose.xlu0.b32.start [1/5] (short) (narrow) %v9048_v12, 8 }
 0x3dd   : > { %v1407_v1 = vpop.permute.xlu0 %1406 }
 0x3de   : > { %v1562_v20 = vsel %vm685_vm4, %v1407_v1, 0 }
 0x3df   : > { %2101 = vxpose.xlu0.b32.cont [2/5] (short) (narrow) %v9060_v5, 8  ;;  %1588 = vmatpush1.bf16.xpose.msra.mxu0 %v1562_v20 }
 0x3e0   : > { %1589 = vmatprep.subr.bf16.mxu0 %v14266_v10 }
 0x3e3   : > { %2102 = vxpose.xlu0.b32.cont [3/5] (short) (narrow) %v9105_v50, 8 }
 0x3e5   : > { %v1409_v44 = vpop.permute.xlu1 %1408 }
 0x3e6   : > { %v1565_v0 = vsel %vm685_vm4, %v1409_v44, 0  ;;  %v14289_v44 = vpack.c.bf16 %v9523_v18, %v9520_v3  ;;  %v14291_v3 = vld [vmem:[#allocation70_spill] sm:$0xff]  ;;  %v14292_v18 = vld [vmem:[#allocation69_spill] sm:$0xff] }
 0x3e7   : > { %2103 = vxpose.xlu0.b32.cont [4/5] (short) (narrow) %v9123_v21, 8  ;;  %1590 = vmatpush1.bf16.xpose.msra.mxu0 %v1565_v0 }
 0x3e8   : > { %1591 = vmatprep.subr.bf16.mxu0 %v14266_v10 }
 0x3eb   : > { %2104 = vxpose.xlu0.b32.end [5/5] (short) (narrow) %v9134_v62, 8  ;;  %v14358_v62 = vld [vmem:[#allocation123_spill] sm:$0xff] }
 0x3ef   : > { %2068 = vxpose.xlu1.b32.start [1/16] (narrow) %v8771_v31, 8  ;;  %v14378_v31 = vld [vmem:[#allocation89_spill] sm:$0xff] }
 0x3f3   : > { %2069 = vxpose.xlu1.b32.cont [2/16] (narrow) %v8787_v40, 8  ;;  %v14377_v40 = vld [vmem:[#allocation90_spill] sm:$0xff] }
 0x3f4   : > { %v14379_v23 = vpack.c.bf16 %v14377_v40, %v14378_v31  ;;  %v2047_v31 = vld [vmem:[%s13781_s2 + $0xa8] sm:$0xff] }
 0x3f7   : > { %2070 = vxpose.xlu1.b32.cont [3/16] (narrow) %v8806_v37, 8 }
 0x3fb   : > { %2071 = vxpose.xlu1.b32.cont [4/16] (narrow) %v8815_v11, 8  ;;  %v14375_v11 = vld [vmem:[#allocation83_spill] sm:$0xff] }
 0x3ff   : > { %2072 = vxpose.xlu1.b32.cont [5/16] (narrow) %v8836_v61, 8 }
 0x403   : > { %2073 = vxpose.xlu1.b32.cont [6/16] (narrow) %v8850_v29, 8 }
 0x407   : > { %2074 = vxpose.xlu1.b32.cont [7/16] (narrow) %v8871_v15, 8 }
 0x40b   : > { %2075 = vxpose.xlu1.b32.cont [8/16] (narrow) %v8885_v24, 8  ;;  %v14371_v24 = vld [vmem:[#allocation77_spill] sm:$0xff] }
 0x40f   : > { %2076 = vxpose.xlu1.b32.cont [9/16] (narrow) %v8906_v19, 8  ;;  %v14370_v19 = vld [vmem:[#allocation78_spill] sm:$0xff] }
 0x410   : > { %v14372_v15 = vpack.c.bf16 %v14370_v19, %v14371_v24 }
 0x413   : > { %2077 = vxpose.xlu1.b32.cont [10/16] (narrow) %v8920_v42, 8 }
 0x414   : > { %3611 = vrot.lane.b32.xlu0 %v9178_v63, %s8220_s13  ;;  %v14272_v63 = vpack.c.bf16 %v9175_v32, %v9172_v9  ;;  %v14274_v9 = vpack.c.bf16 %v9251_v4, %v9248_v41  ;;  %v14275_v32 = vpack.c.bf16 %v9289_v46, %v9286_v49  ;;  %v14283_v4 = vld [vmem:[#allocation114_spill] sm:$0xff]  ;;  %v14284_v49 = vld [vmem:[#allocation113_spill] sm:$0xff] }
 0x415   : > { %7550 = vset.pattern.permute.xlu0 %v14266_v10  ;;  %v14285_v46 = vpack.c.bf16 %v14283_v4, %v14284_v49 }
 0x417   : > { %2078 = vxpose.xlu1.b32.cont [11/16] (narrow) %v8941_v16, 8  ;;  %v14367_v16 = vld [vmem:[#allocation72_spill] sm:$0xff] }
 0x418   : > { %3613 = vrot.lane.b32.xlu0 %v9207_v28, %s8220_s13  ;;  %v14278_v28 = vld [vmem:[#allocation97_spill] sm:$0xff] }
 0x41b   : > { %2079 = vxpose.xlu1.b32.cont [12/16] (narrow) %v8955_v25, 8 }
 0x41c   : > { %3615 = vrot.lane.b32.xlu0 %v9245_v39, %s8220_s13 }
 0x41f   : > { %2080 = vxpose.xlu1.b32.cont [13/16] (narrow) %v8976_v2, 8 }
 0x420   : > { %3617 = vrot.lane.b32.xlu0 %v9283_v38, %s8220_s13 }
 0x423   : > { %2081 = vxpose.xlu1.b32.cont [14/16] (narrow) %v8990_v56, 8 }
 0x424   : > { %3621 = vrot.lane.b32.xlu0 %v9359_v22, %s8220_s13  ;;  %v14281_v22 = vld [vmem:[#allocation105_spill] sm:$0xff] }
 0x427   : > { %2082 = vxpose.xlu1.b32.cont [15/16] (narrow) %v9011_v45, 8 }
 0x428   : > { %3625 = vrot.lane.b32.xlu0 %v9435_v7, %s8220_s13  ;;  %v14273_v7 = vpack.c.bf16 %v9213_v30, %v9210_v55  ;;  %v14280_v30 = vld [vmem:[#allocation106_spill] sm:$0xff] }
 0x429   : > { %v14282_v41 = vpack.c.bf16 %v14280_v30, %v14281_v22  ;;  %v14303_v30 = vld [vmem:[#allocation94_spill] sm:$0xff]  ;;  %v14304_v22 = vld [vmem:[#allocation93_spill] sm:$0xff] }
 0x42b   : > { %2083 = vxpose.xlu1.b32.end [16/16] (narrow) %v9025_v36, 8 }
 0x42f   : > { %v1411_v20 = vpop.permute.xlu0 %1410 }
 0x430   : > { %v1568_v14 = vsel %vm685_vm4, %v1411_v20, 0 }
 0x431   : > { %1592 = vmatpush1.bf16.xpose.msra.mxu0 %v1568_v14  ;;  %v14290_v14 = vpack.c.bf16 %v9546_v34, %v9558_v52  ;;  %v14297_v52 = vld [vmem:[#allocation82_spill] sm:$0xff]  ;;  %v14298_v34 = vld [vmem:[#allocation81_spill] sm:$0xff] }
 0x432   : > { %1593 = vmatprep.subr.bf16.mxu0 %v14266_v10 }
 0x438   : > { %v1413_v39 = vpop.permute.xlu1 %1412 }
 0x439   : > { %v1571_v38 = vsel %vm685_vm4, %v1413_v39, 0 }
 0x43a   : > { %1594 = vmatpush1.bf16.xpose.msra.mxu0 %v1571_v38  ;;  %v14293_v38 = vpack.c.bf16 %v14291_v3, %v14292_v18  ;;  %v14313_v3 = vld [vmem:[#allocation117_spill] sm:$0xff] }
 0x43b   : > { %7153 = vmatprep.subr.bf16.mxu0 %v14168_v48 }
 0x441   : > { %6786 = vmatmul.mubr.msk.bf16.vlgmr.msra.gmra.mrb[44].mxu0 %vm685_vm4, %v14272_v63  ;;  %v14294_v63 = vld [vmem:[#allocation76_spill] sm:$0xff] }
 0x442   : > { %1615 = vmatprep.mubr.bf16.mxu0 %v14266_v10 }
 0x449   : > { %3619 = vrot.lane.b32.xlu1 %v9321_v6, %s8220_s13  ;;  %6787 = vmatmul.mubr.msk.bf16.gmra.mrb[48].mxu0 %vm685_vm4, %v14273_v7  ;;  %v14277_v6 = vld [vmem:[#allocation98_spill] sm:$0xff]  ;;  %v14295_v7 = vld [vmem:[#allocation75_spill] sm:$0xff] }
 0x44a   : > { %1625 = vmatprep.mubr.bf16.mxu0 %v14266_v10  ;;  %7551 = vset.pattern.permute.xlu1 %v14266_v10  ;;  %v14279_v55 = vpack.c.bf16 %v14277_v6, %v14278_v28  ;;  %v14301_v6 = vld [vmem:[#allocation87_spill] sm:$0xff] }
 0x44d   : > { %3623 = vrot.lane.b32.xlu1 %v9397_v33, %s8220_s13  ;;  %v14276_v33 = vpack.c.bf16 %v9327_v53, %v9324_v47  ;;  %v14286_v53 = vld [vmem:[#allocation122_spill] sm:$0xff] }
 0x451   : > { %3627 = vrot.lane.b32.xlu1 %v9473_v60, %s8220_s13  ;;  %6788 = vmatmul.mubr.msk.bf16.gmra.mrb[52].mxu0 %vm685_vm4, %v14274_v9  ;;  %v14287_v60 = vld [vmem:[#allocation121_spill] sm:$0xff]  ;;  %v14296_v9 = vpack.c.bf16 %v14294_v63, %v14295_v7 }
 0x452   : > { %1635 = vmatprep.mubr.bf16.mxu0 %v14266_v10  ;;  %v14288_v26 = vpack.c.bf16 %v14286_v53, %v14287_v60  ;;  %v14307_v53 = vld [vmem:[#allocation101_spill] sm:$0xff] }
 0x453   : > { %v14316_v63 = vld [vmem:[#allocation125_spill] sm:$0xff] }
 0x459   : > { %6789 = vmatmul.mubr.msk.bf16.gmra.mrb[56].mxu0 %vm685_vm4, %v14275_v32  ;;  %v14299_v32 = vpack.c.bf16 %v14297_v52, %v14298_v34  ;;  %v14319_v52 = vld [vmem:[#allocation67_spill] sm:$0xff] }
 0x45a   : > { %1645 = vmatprep.mubr.bf16.mxu0 %v14266_v10 }
 0x45b   : > { %v9677_v47 = vpop.trf.xlu0 }
 0x461   : > { %6790 = vmatmul.mubr.msk.bf16.gmra.mrb[60].mxu0 %vm685_vm4, %v14276_v33  ;;  %v14300_v33 = vld [vmem:[#allocation88_spill] sm:$0xff] }
 0x462   : > { %1655 = vmatprep.mubr.bf16.mxu0 %v14266_v10  ;;  %v14302_v28 = vpack.c.bf16 %v14300_v33, %v14301_v6  ;;  %v14322_v33 = vld [vmem:[#allocation73_spill] sm:$0xff] }
 0x469   : > { %6791 = vmatmul.mubr.msk.bf16.gmra.mrb[64].mxu0 %vm685_vm4, %v14279_v55 }
 0x46a   : > { %1665 = vmatprep.mubr.bf16.mxu0 %v14266_v10 }
 0x46f   : > { %v2084_v55 = vpop.trf.xlu1 }
 0x471   : > { %6792 = vmatmul.mubr.msk.bf16.gmra.mrb[68].mxu0 %vm685_vm4, %v14282_v41  ;;  %v14305_v41 = vpack.c.bf16 %v14303_v30, %v14304_v22  ;;  %v14328_v30 = vld [vmem:[#allocation85_spill] sm:$0xff] }
 0x472   : > { %1675 = vmatprep.mubr.bf16.mxu0 %v14266_v10 }
 0x479   : > { %6793 = vmatmul.mubr.msk.bf16.gmra.mrb[72].mxu0 %vm685_vm4, %v14285_v46  ;;  %v14306_v46 = vld [vmem:[#allocation102_spill] sm:$0xff] }
 0x47a   : > { %1685 = vmatprep.mubr.bf16.mxu0 %v14266_v10  ;;  %v14308_v60 = vpack.c.bf16 %v14306_v46, %v14307_v53  ;;  %v14333_v46 = vld [vmem:[#allocation11_spill] sm:$0xff] }
 0x47b   : > { %v9780_v53 = vrot.slane %v9677_v47, %v14333_v46  ;;  %v2029_v47 = vld [vmem:[%s13781_s2 + $0x18] sm:$0xff] }
 0x481   : > { %6794 = vmatmul.mubr.msk.bf16.gmra.mrb[76].mxu0 %vm685_vm4, %v14288_v26 }
 0x482   : > { %1695 = vmatprep.mubr.bf16.mxu0 %v14266_v10 }
 0x486   : > { %v3612_v1 = vpop.permute.xlu0 %3611 }
 0x487   : > { %3773 = vmatpush1.bf16.msra.mxu1 %v3612_v1 }
 0x488   : > { %3774 = vmatprep.subr.bf16.mxu1 %v14266_v10 }
 0x489   : > { %6795 = vmatmul.mubr.msk.bf16.gmra.mrb[80].mxu0 %vm685_vm4, %v14289_v44  ;;  %v14309_v44 = vld [vmem:[#allocation110_spill] sm:$0xff] }
 0x48a   : > { %v3614_v0 = vpop.permute.xlu0 %3613  ;;  %1705 = vmatprep.mubr.bf16.mxu0 %v14266_v10 }
 0x48b   : > { %3775 = vmatpush1.bf16.msra.mxu1 %v3614_v0  ;;  %v14310_v0 = vld [vmem:[#allocation109_spill] sm:$0xff] }
 0x48c   : > { %3776 = vmatprep.subr.bf16.mxu1 %v14266_v10 }
 0x48e   : > { %v3616_v20 = vpop.permute.xlu0 %3615 }
 0x48f   : > { %3777 = vmatpush1.bf16.msra.mxu1 %v3616_v20  ;;  %v14311_v20 = vpack.c.bf16 %v14309_v44, %v14310_v0  ;;  %v14334_v44 = vld [vmem:[#allocation100_spill] sm:$0xff]  ;;  %v14335_v0 = vld [vmem:[#allocation99_spill] sm:$0xff] }
 0x490   : > { %3778 = vmatprep.subr.bf16.mxu1 %v14266_v10 }
 0x491   : > { %6796 = vmatmul.mubr.msk.bf16.gmra.mrb[84].mxu0 %vm685_vm4, %v14290_v14 }
 0x492   : > { %v3618_v39 = vpop.permute.xlu0 %3617  ;;  %1715 = vmatprep.mubr.bf16.mxu0 %v14266_v10 }
 0x493   : > { %3779 = vmatpush1.bf16.msra.mxu1 %v3618_v39  ;;  %v14312_v39 = vld [vmem:[#allocation118_spill] sm:$0xff] }
 0x494   : > { %3780 = vmatprep.subr.bf16.mxu1 %v14266_v10  ;;  %v14314_v18 = vpack.c.bf16 %v14312_v39, %v14313_v3 }
 0x496   : > { %v3622_v49 = vpop.permute.xlu0 %3621 }
 0x499   : > { %6797 = vmatmul.mubr.msk.bf16.gmra.mrb[88].mxu0 %vm685_vm4, %v14293_v38  ;;  %v14315_v38 = vld [vmem:[#allocation126_spill] sm:$0xff] }
 0x49a   : > { %1725 = vmatprep.mubr.bf16.mxu0 %v14266_v10  ;;  %v3626_v1 = vpop.permute.xlu0 %3625  ;;  %v14317_v7 = vpack.c.bf16 %v14315_v38, %v14316_v63 }
 0x4a1   : > { %6798 = vmatmul.mubr.msk.bf16.gmra.mrb[92].mxu0 %vm685_vm4, %v14296_v9  ;;  %v14318_v9 = vld [vmem:[#allocation68_spill] sm:$0xff] }
 0x4a2   : > { %1735 = vmatprep.mubr.bf16.mxu0 %v14266_v10  ;;  %v14320_v34 = vpack.c.bf16 %v14318_v9, %v14319_v52 }
 0x4a9   : > { %6799 = vmatmul.mubr.msk.bf16.gmra.mrb[96].mxu0 %vm685_vm4, %v14299_v32  ;;  %v14321_v32 = vld [vmem:[#allocation74_spill] sm:$0xff] }
 0x4aa   : > { %1745 = vmatprep.mubr.bf16.mxu0 %v14266_v10  ;;  %v14323_v6 = vpack.c.bf16 %v14321_v32, %v14322_v33  ;;  %v2031_v32 = vld [vmem:[%s13781_s2 + $0x28] sm:$0xff] }
 0x4b1   : > { %6800 = vmatmul.mubr.msk.bf16.gmra.mrb[100].mxu0 %vm685_vm4, %v14302_v28  ;;  %v14324_v28 = vld [vmem:[#allocation80_spill] sm:$0xff] }
 0x4b2   : > { %1755 = vmatprep.mubr.bf16.mxu0 %v14266_v10  ;;  %v14326_v17 = vpack.c.bf16 %v14324_v28, %v14325_v58  ;;  %v2030_v28 = vld [vmem:[%s13781_s2 + $0x20] sm:$0xff]  ;;  %v14342_v58 = vld [vmem:[#allocation108_spill] sm:$0xff] }
 0x4b9   : > { %6801 = vmatmul.mubr.msk.bf16.gmra.mrb[104].mxu0 %vm685_vm4, %v14305_v41  ;;  %v14330_v41 = vld [vmem:[#allocation92_spill] sm:$0xff] }
 0x4ba   : > { %1765 = vmatprep.mubr.bf16.mxu0 %v14266_v10 }
 0x4bb   : > { %v3620_v4 = vpop.permute.xlu1 %3619 }
 0x4bc   : > { %3781 = vmatpush1.bf16.msra.mxu1 %v3620_v4  ;;  %v14331_v4 = vld [vmem:[#allocation91_spill] sm:$0xff] }
 0x4bd   : > { %3782 = vmatprep.subr.bf16.mxu1 %v14266_v10 }
 0x4bf   : > { %v3624_v26 = vpop.permute.xlu1 %3623 }
 0x4c0   : > { %3783 = vmatpush1.bf16.msra.mxu1 %v3622_v49  ;;  %v14332_v49 = vpack.c.bf16 %v14330_v41, %v14331_v4  ;;  %v2033_v41 = vld [vmem:[%s13781_s2 + $0x38] sm:$0xff]  ;;  %v9843_v4 = vadd.f32 %v9780_v53, %v2031_v32 }
 0x4c1   : > { %6802 = vmatmul.mubr.msk.bf16.gmra.mrb[108].mxu0 %vm685_vm4, %v14308_v60  ;;  %3784 = vmatprep.subr.bf16.mxu1 %v14266_v10  ;;  %v9783_v60 = vrot.slane %v2084_v55, %v14333_v46  ;;  %v2032_v46 = vld [vmem:[%s13781_s2 + $0x30] sm:$0xff] }
 0x4c2   : > { %1775 = vmatprep.mubr.bf16.mxu0 %v14266_v10 }
 0x4c3   : > { %v3628_v14 = vpop.permute.xlu1 %3627 }
 0x4c4   : > { %3785 = vmatpush1.bf16.msra.mxu1 %v3624_v26  ;;  %v2027_v26 = vld [vmem:[%s13781_s2 + $0x8] sm:$0xff] }
 0x4c5   : > { %3786 = vmatprep.subr.bf16.mxu1 %v14266_v10  ;;  %v9799_v55 = vadd.f32 %v9780_v53, %v2027_v26 }
 0x4c8   : > { %3787 = vmatpush1.bf16.msra.mxu1 %v3626_v1  ;;  %v2026_v1 = vld [vmem:[%s13781_s2] sm:$0xff] }
 0x4c9   : > { %6803 = vmatmul.mubr.msk.bf16.gmra.mrb[112].mxu0 %vm685_vm4, %v14311_v20  ;;  %3788 = vmatprep.subr.bf16.mxu1 %v14266_v10  ;;  %v14336_v20 = vpack.c.bf16 %v14334_v44, %v14335_v0  ;;  %v9806_v39 = vadd.f32 %v9783_v60, %v2026_v1  ;;  %v9853_v1 = vadd.f32 %v9783_v60, %v2030_v28 }
 0x4ca   : > { %1785 = vmatprep.mubr.bf16.mxu0 %v14266_v10  ;;  %v9856_v0 = vadd.f32 %v9780_v53, %v2033_v41  ;;  %v2035_v41 = vld [vmem:[%s13781_s2 + $0x48] sm:$0xff] }
 0x4cc   : > { %3789 = vmatpush1.bf16.msra.mxu1 %v3628_v14  ;;  %v2028_v14 = vld [vmem:[%s13781_s2 + $0x10] sm:$0xff] }
 0x4cd   : > { %3790 = vmatprep.subr.bf16.mxu1 %v14266_v10  ;;  %v9812_v63 = vadd.f32 %v9783_v60, %v2028_v14 }
 0x4cf   : > { %14338 = vst [vmem:[#allocation97_spill] sm:$0xff] %v9812_v63 }
 0x4d1   : > { %6804 = vmatmul.mubr.msk.bf16.gmra.mrb[116].mxu0 %vm685_vm4, %v14314_v18  ;;  %v9809_v18 = vadd.f32 %v9780_v53, %v2029_v47  ;;  %v9859_v47 = vadd.f32 %v9783_v60, %v2032_v46 }
 0x4d2   : > { %1795 = vmatprep.mubr.bf16.mxu0 %v14266_v10 }
 0x4d3   : > { %14337 = vst [vmem:[#allocation98_spill] sm:$0xff] %v9809_v18 }
 0x4d9   : > { %6805 = vmatmul.mubr.msk.bf16.gmra.mrb[120].mxu0 %vm685_vm4, %v14317_v7 }
 0x4da   : > { %1805 = vmatprep.mubr.bf16.mxu0 %v14266_v10 }
 0x4e1   : > { %6806 = vmatmul.mubr.msk.bf16.gmra.mrb[124].mxu0 %vm685_vm4, %v1348_v27  ;;  %v14327_v27 = vld [vmem:[#allocation86_spill] sm:$0xff] }
 0x4e2   : > { %1815 = vmatprep.mubr.bf16.mxu0 %v14266_v10  ;;  %v14329_v22 = vpack.c.bf16 %v14327_v27, %v14328_v30 }
 0x4e9   : > { %6807 = vmatmul.mubr.msk.bf16.gmra.mrb[128].mxu0 %vm685_vm4, %v14320_v34 }
 0x4ea   : > { %1825 = vmatprep.mubr.bf16.mxu0 %v14266_v10 }
 0x4f1   : > { %6808 = vmatmul.mubr.msk.bf16.gmra.mrb[132].mxu0 %vm685_vm4, %v14323_v6 }
 0x4f2   : > { %1835 = vmatprep.mubr.bf16.mxu0 %v14266_v10 }
 0x4f9   : > { %6809 = vmatmul.mubr.msk.bf16.gmra.mrb[136].mxu0 %vm685_vm4, %v14326_v17  ;;  %v14343_v17 = vld [vmem:[#allocation107_spill] sm:$0xff] }
 0x4fa   : > { %1845 = vmatprep.mubr.bf16.mxu0 %v14266_v10  ;;  %v14344_v27 = vpack.c.bf16 %v14342_v58, %v14343_v17  ;;  %v14350_v58 = vld [vmem:[#allocation116_spill] sm:$0xff]  ;;  %v14351_v17 = vld [vmem:[#allocation115_spill] sm:$0xff] }
 0x501   : > { %6810 = vmatmul.mubr.msk.bf16.gmra.mrb[140].mxu0 %vm685_vm4, %v14329_v22 }
 0x502   : > { %1855 = vmatprep.mubr.bf16.mxu0 %v14266_v10 }
 0x509   : > { %6811 = vmatmul.mubr.msk.bf16.gmra.mrb[144].mxu0 %vm685_vm4, %v14332_v49 }
 0x50a   : > { %1865 = vmatprep.mubr.bf16.mxu0 %v14266_v10 }
 0x511   : > { %6812 = vmatmul.mubr.msk.bf16.gmra.mrb[148].mxu0 %vm685_vm4, %v14336_v20 }
 0x512   : > { %1875 = vmatprep.mubr.bf16.mxu0 %v14266_v10 }
 0x514   : > { %v1607_v3 = vpop.f32.mrb[44].mxu0 }
 0x515   : > { %v1609_v38 = vpop.f32.mrb[45].mxu0  ;;  %v9818_v34 = vadd.f32 %v9806_v39, %v1607_v3 }
 0x516   : > { %v9815_v7 = vadd.f32 %v9799_v55, %v1609_v38  ;;  %v1611_v9 = vpop.f32.mrb[46].mxu0 }
 0x517   : > { %v1613_v52 = vpop.f32.mrb[47].mxu0  ;;  %14340 = vst [vmem:[#allocation105_spill] sm:$0xff] %v9818_v34  ;;  %v9837_v22 = vadd.f32 %v9812_v63, %v1611_v9 }
 0x518   : > { %14339 = vst [vmem:[#allocation106_spill] sm:$0xff] %v9815_v7  ;;  %v9824_v33 = vadd.f32 %v9809_v18, %v1613_v52  ;;  %v2351_v6 = vsel %vm2350_vm12, %v9815_v7, -inf }
 0x519   : > { %6813 = vmatmul.mubr.msk.bf16.gmra.mrb[152].mxu0 %vm685_vm4, %v14344_v27  ;;  %v2352_v30 = vmax.f32 %v9818_v34, %v2351_v6  ;;  %14345 = vst [vmem:[#allocation113_spill] sm:$0xff] %v9837_v22  ;;  %v2034_v6 = vld [vmem:[%s13781_s2 + $0x40] sm:$0xff]  ;;  %v14352_v27 = vpack.c.bf16 %v14350_v58, %v14351_v17 }
 0x51a   : > { %14341 = vst [vmem:[#allocation114_spill] sm:$0xff] %v9824_v33  ;;  %v2355_v49 = vsel %vm2350_vm12, %v9824_v33, -inf  ;;  %1885 = vmatprep.mubr.bf16.mxu0 %v14266_v10  ;;  %v9890_v46 = vadd.f32 %v9783_v60, %v2034_v6 }
 0x51b   : > { %2353 = vmax.xlane.f32.xlu0 %v2352_v30  ;;  %v2356_v26 = vmax.f32 %v9837_v22, %v2355_v49 }
 0x51c   : > { %v1617_v44 = vpop.f32.mrb[48].mxu0 }
 0x51d   : > { %v1619_v20 = vpop.f32.mrb[49].mxu0  ;;  %2357 = vmax.xlane.f32.xlu1 %v2356_v26  ;;  %v9865_v9 = vadd.f32 %v9853_v1, %v1617_v44  ;;  %v2037_v44 = vld [vmem:[%s13781_s2 + $0x58] sm:$0xff] }
 0x51e   : > { %v9862_v14 = vadd.f32 %v9843_v4, %v1619_v20  ;;  %v1621_v3 = vpop.f32.mrb[50].mxu0  ;;  %v9906_v17 = vadd.f32 %v9780_v53, %v2037_v44  ;;  %v14359_v44 = vpack.c.bf16 %v14357_v35, %v14358_v62  ;;  %v2041_v35 = vld [vmem:[%s13781_s2 + $0x78] sm:$0xff] }
 0x51f   : > { %v1623_v38 = vpop.f32.mrb[51].mxu0  ;;  %14347 = vst [vmem:[#allocation121_spill] sm:$0xff] %v9865_v9  ;;  %v9876_v28 = vadd.f32 %v9859_v47, %v1621_v3  ;;  %v9897_v3 = vadd.f32 %v9780_v53, %v2035_v41  ;;  %v9953_v12 = vadd.f32 %v9780_v53, %v2041_v35 }
 0x520   : > { %14346 = vst [vmem:[#allocation122_spill] sm:$0xff] %v9862_v14  ;;  %v9868_v52 = vadd.f32 %v9856_v0, %v1623_v38  ;;  %v2359_v32 = vsel %vm2350_vm12, %v9862_v14, -inf  ;;  %v2036_v38 = vld [vmem:[%s13781_s2 + $0x50] sm:$0xff]  ;;  %v2049_v14 = vld [vmem:[%s13781_s2 + $0xb8] sm:$0xff] }
 0x521   : > { %14349 = vst [vmem:[#allocation69_spill] sm:$0xff] %v9876_v28  ;;  %6814 = vmatmul.mubr.msk.bf16.gmra.mrb[156].mxu0 %vm685_vm4, %v14352_v27  ;;  %v2360_v30 = vmax.f32 %v9865_v9, %v2359_v32  ;;  %v2061_v9 = vld [vmem:[%s13781_s2 + $0x118] sm:$0xff] }
 0x522   : > { %14348 = vst [vmem:[#allocation70_spill] sm:$0xff] %v9868_v52  ;;  %v2363_v49 = vsel %vm2350_vm12, %v9868_v52, -inf  ;;  %1895 = vmatprep.mubr.bf16.mxu0 %v14266_v10  ;;  %v14384_v52 = vld [vmem:[#allocation95_spill] sm:$0xff] }
 0x523   : > { %2361 = vmax.xlane.f32.xlu0 %v2360_v30  ;;  %v2364_v26 = vmax.f32 %v9876_v28, %v2363_v49  ;;  %v9912_v30 = vadd.f32 %v9783_v60, %v2036_v38  ;;  %v2039_v38 = vld [vmem:[%s13781_s2 + $0x68] sm:$0xff] }
 0x524   : > { %v1627_v20 = vpop.f32.mrb[52].mxu0 }
 0x525   : > { %v1629_v32 = vpop.f32.mrb[53].mxu0  ;;  %2365 = vmax.xlane.f32.xlu1 %v2364_v26  ;;  %v9909_v27 = vadd.f32 %v9890_v46, %v1627_v20 }
 0x526   : > { %v9903_v58 = vadd.f32 %v9897_v3, %v1629_v32  ;;  %v1631_v6 = vpop.f32.mrb[54].mxu0 }
 0x527   : > { %14354 = vst [vmem:[#allocation75_spill] sm:$0xff] %v9909_v27  ;;  %v1633_v41 = vpop.f32.mrb[55].mxu0  ;;  %v9920_v32 = vadd.f32 %v9912_v30, %v1631_v6 }
 0x528   : > { %14353 = vst [vmem:[#allocation76_spill] sm:$0xff] %v9903_v58  ;;  %v9915_v49 = vadd.f32 %v9906_v17, %v1633_v41  ;;  %v2367_v26 = vsel %vm2350_vm12, %v9903_v58, -inf  ;;  %v2038_v41 = vld [vmem:[%s13781_s2 + $0x60] sm:$0xff] }
 0x529   : > { %14356 = vst [vmem:[#allocation81_spill] sm:$0xff] %v9920_v32  ;;  %6815 = vmatmul.mubr.msk.bf16.gmra.mrb[160].mxu0 %vm685_vm4, %v14359_v44  ;;  %v2368_v20 = vmax.f32 %v9909_v27, %v2367_v26  ;;  %v9941_v26 = vadd.f32 %v9780_v53, %v2039_v38  ;;  %v2040_v44 = vld [vmem:[%s13781_s2 + $0x70] sm:$0xff]  ;;  %v9947_v50 = vadd.f32 %v9783_v60, %v2038_v41 }
 0x52a   : > { %14355 = vst [vmem:[#allocation82_spill] sm:$0xff] %v9915_v49  ;;  %v2371_v21 = vsel %vm2350_vm12, %v9915_v49, -inf  ;;  %1905 = vmatprep.mubr.bf16.mxu0 %v14266_v10  ;;  %v9959_v38 = vadd.f32 %v9783_v60, %v2040_v44  ;;  %v2057_v49 = vld [vmem:[%s13781_s2 + $0xf8] sm:$0xff]  ;;  %v10068_v27 = vadd.f32 %v9780_v53, %v2047_v31 }
 0x52b   : > { %2369 = vmax.xlane.f32.xlu0 %v2368_v20  ;;  %v2372_v62 = vmax.f32 %v9920_v32, %v2371_v21  ;;  %v2044_v32 = vld [vmem:[%s13781_s2 + $0x90] sm:$0xff] }
 0x52c   : > { %v1637_v6 = vpop.f32.mrb[56].mxu0  ;;  %14362 = vst [vmem:[#allocation94_spill] sm:$0xff] %v9959_v38 }
 0x52d   : > { %v1639_v5 = vpop.f32.mrb[57].mxu0  ;;  %2373 = vmax.xlane.f32.xlu1 %v2372_v62  ;;  %v9956_v36 = vadd.f32 %v9947_v50, %v1637_v6  ;;  %v14365_v62 = vpack.c.bf16 %v9531_v57, %v9528_v59  ;;  %v14366_v59 = vpack.c.bf16 %v9553_v43, %v9564_v13 }
 0x52e   : > { %v9950_v20 = vadd.f32 %v9941_v26, %v1639_v5  ;;  %v1641_v21 = vpop.f32.mrb[58].mxu0 }
 0x52f   : > { %14361 = vst [vmem:[#allocation87_spill] sm:$0xff] %v9956_v36  ;;  %v1643_v45 = vpop.f32.mrb[59].mxu0  ;;  %v9967_v5 = vadd.f32 %v9959_v38, %v1641_v21 }
 0x530   : > { %14360 = vst [vmem:[#allocation88_spill] sm:$0xff] %v9950_v20  ;;  %v9962_v56 = vadd.f32 %v9953_v12, %v1643_v45  ;;  %v2375_v41 = vsel %vm2350_vm12, %v9950_v20, -inf }
 0x531   : > { %14364 = vst [vmem:[#allocation102_spill] sm:$0xff] %v9967_v5  ;;  %6816 = vmatmul.mubr.msk.bf16.gmra.mrb[164].mxu0 %vm685_vm4, %v14365_v62  ;;  %v2376_v35 = vmax.f32 %v9956_v36, %v2375_v41 }
 0x532   : > { %14363 = vst [vmem:[#allocation93_spill] sm:$0xff] %v9962_v56  ;;  %v2379_v6 = vsel %vm2350_vm12, %v9962_v56, -inf  ;;  %1915 = vmatprep.mubr.bf16.mxu0 %v14266_v10 }
 0x533   : > { %2377 = vmax.xlane.f32.xlu0 %v2376_v35  ;;  %v2380_v45 = vmax.f32 %v9967_v5, %v2379_v6  ;;  %v14368_v6 = vld [vmem:[#allocation71_spill] sm:$0xff] }
 0x534   : > { %v1647_v44 = vpop.f32.mrb[60].mxu0  ;;  %v14369_v42 = vpack.c.bf16 %v14367_v16, %v14368_v6 }
 0x535   : > { %v1649_v2 = vpop.f32.mrb[61].mxu0  ;;  %2381 = vmax.xlane.f32.xlu1 %v2380_v45 }
 0x536   : > { %v1651_v21 = vpop.f32.mrb[62].mxu0 }
 0x537   : > { %v1653_v25 = vpop.f32.mrb[63].mxu0 }
 0x539   : > { %6817 = vmatmul.mubr.msk.bf16.gmra.mrb[168].mxu0 %vm685_vm4, %v14366_v59 }
 0x53a   : > { %1925 = vmatprep.mubr.bf16.mxu0 %v14266_v10 }
 0x53c   : > { %v9983_v57 = vpop.f32.mrb[64].mxu0 }
 0x53d   : > { %v1659_v41 = vpop.f32.mrb[65].mxu0 }
 0x53e   : > { %v9985_v62 = vpop.f32.mrb[66].mxu0  ;;  %v10085_v31 = vadd.f32 %v10068_v27, %v1659_v41  ;;  %v10104_v41 = vadd.f32 %v9780_v53, %v2049_v14  ;;  %v2051_v14 = vld [vmem:[%s13781_s2 + $0xc8] sm:$0xff] }
 0x53f   : > { %v1663_v35 = vpop.f32.mrb[67].mxu0 }
 0x540   : > { %14386 = vst [vmem:[#allocation118_spill] sm:$0xff] %v10085_v31  ;;  %14390 = vst [vmem:[#allocation68_spill] sm:$0xff] %v10104_v41 }
 0x541   : > { %6818 = vmatmul.mubr.msk.bf16.gmra.mrb[172].mxu0 %vm685_vm4, %v14369_v42  ;;  %v14373_v42 = vld [vmem:[#allocation129_spill] sm:$0xff] }
 0x542   : > { %1935 = vmatprep.mubr.bf16.mxu0 %v14266_v10 }
 0x544   : > { %v9992_v45 = vpop.f32.mrb[68].mxu0 }
 0x545   : > { %v9994_v43 = vpop.f32.mrb[69].mxu0 }
 0x546   : > { %v9996_v13 = vpop.f32.mrb[70].mxu0  ;;  %3631 = vrot.lane.b32.xlu1 %v9555_v51, %s8220_s13  ;;  %v14374_v51 = vld [vmem:[#allocation84_spill] sm:$0xff] }
 0x547   : > { %v10000_v59 = vpop.f32.mrb[71].mxu0  ;;  %v14376_v37 = vpack.c.bf16 %v14374_v51, %v14375_v11  ;;  %v2043_v11 = vld [vmem:[%s13781_s2 + $0x88] sm:$0xff] }
 0x548   : > { %v10040_v56 = vadd.f32 %v9780_v53, %v2043_v11 }
 0x549   : > { %6819 = vmatmul.mubr.msk.bf16.gmra.mrb[176].mxu0 %vm685_vm4, %v14372_v15  ;;  %3629 = vrot.lane.b32.xlu0 %v14373_v42, %s8220_s13  ;;  %s231_s13 = sand.u32 1, %s8202_s19  }
 0x54a   : > { %1945 = vmatprep.mubr.bf16.mxu0 %v14266_v10  ;;  %v10053_v20 = vadd.f32 %v10040_v56, %v1649_v2  ;;  %v14383_v2 = vld [vmem:[#allocation96_spill] sm:$0xff]  ;;  %s7486_s16 = smul.u32 24, %s231_s13  ;;  %s13738_s7 = scalar_lea.sflag [#allocation4], %s231_s13 }
 0x54b   : > { %v14385_v28 = vpack.c.bf16 %v14383_v2, %v14384_v52  ;;  %v10088_v52 = vadd.f32 %v9780_v53, %v2057_v49  ;;  %v10096_v2 = vadd.f32 %v9783_v60, %v2044_v32  ;;  %v2056_v49 = vld [vmem:[%s13781_s2 + $0xf0] sm:$0xff] }
 0x54c   : > { %v10009_v16 = vpop.f32.mrb[72].mxu0  ;;  %14380 = vst [vmem:[#allocation101_spill] sm:$0xff] %v10053_v20  ;;  %s233_s17 = scalar_lea.vmem [#allocation5], %s7486_s16 }
 0x54d   : > { %v10011_v6 = vpop.f32.mrb[73].mxu0  ;;  %14387 = vst [vmem:[#allocation117_spill] sm:$0xff] %v10088_v52  ;;  %14389 = vst [vmem:[#allocation125_spill] sm:$0xff] %v10096_v2  ;;  %v10117_v22 = vadd.f32 %v10096_v2, %v1651_v21  ;;  %v10134_v21 = vadd.f32 %v10104_v41, %v1663_v35  ;;  %v10151_v35 = vadd.f32 %v9780_v53, %v2051_v14  ;;  %v14398_v41 = vld [vmem:[#allocation104_spill] sm:$0xff]  ;;  %s6658_s23 = sshll.u32 %s233_s17, 4  ;;  %s13731_s23 = int_to_ptr.vmem [resolvable:$true] %s6658_s23 }
 0x54e   : > { %v10013_v29 = vpop.f32.mrb[74].mxu0  ;;  %s8144_s8 = scalar_lea.vmem %s13731_s23, 384  ;;  %p8151_p2 = scmp.lt.s32.totalorder %s13731_s23, %s8149_s9 }
 0x54f   : > { %v1683_v61 = vpop.f32.mrb[75].mxu0  ;;  %14392 = vst [vmem:[#allocation74_spill] sm:$0xff] %v10117_v22  ;;  %14393 = vst [vmem:[#allocation73_spill] sm:$0xff] %v10134_v21  ;;  %p8145_p6 = scmp.ne.s32.totalorder %s13731_s23, %s8144_s8  ;;  %p8152_p3 = scmp.lt.s32.totalorder %s8150_s10, %s8144_s8 }
 0x551   : > { %6820 = vmatmul.mubr.msk.bf16.gmra.mrb[180].mxu0 %vm685_vm4, %v14376_v37  ;;  %v2045_v37 = vld [vmem:[%s13781_s2 + $0x98] sm:$0xff]  ;;  %p8146_p10 = pnand %p8145_p6, %p14930_p9  ;;  %p8153_p4 = por %p8152_p3, %p8151_p2 }
 0x552   : > { %1955 = vmatprep.mubr.bf16.mxu0 %v14266_v10  ;;  %v10056_v36 = vadd.f32 %v9780_v53, %v2045_v37 }
 0x553   : > { %p8147_p12 = pneg %p8146_p10 }
 0x554   : > { %v10020_v15 = vpop.f32.mrb[76].mxu0  ;;  %14381 = vst [vmem:[#allocation110_spill] sm:$0xff] %v10056_v36  ;;  %v10065_v58 = vadd.f32 %v10056_v36, %v1653_v25  ;;  %v2046_v25 = vld [vmem:[%s13781_s2 + $0xa0] sm:$0xff] }
 0x555   : > { %v10022_v24 = vpop.f32.mrb[77].mxu0  ;;  %v10120_v7 = vadd.f32 %v9783_v60, %v2046_v25  ;;  %v10137_v25 = vadd.f32 %v9780_v53, %v2061_v9  ;;  %v2060_v9 = vld [vmem:[%s13781_s2 + $0x110] sm:$0xff]  ;;  %p8154_p7 = pnand %p8153_p4, %p8147_p12 }
 0x556   : > { %v10024_v19 = vpop.f32.mrb[78].mxu0  ;;  %14382 = vst [vmem:[#allocation109_spill] sm:$0xff] %v10065_v58  ;;  %v2387_v32 = vsel %vm2350_vm12, %v10065_v58, -inf  ;;  %v2048_v58 = vld [vmem:[%s13781_s2 + $0xb0] sm:$0xff] }
 0x557   : > { %v1693_v42 = vpop.f32.mrb[79].mxu0  ;;  %14394 = vst [vmem:[#allocation80_spill] sm:$0xff] %v10137_v25  ;;  %v10141_v38 = vadd.f32 %v10120_v7, %v9983_v57  ;;  %v10167_v14 = vadd.f32 %v9783_v60, %v2048_v58  ;;  %v10184_v58 = vadd.f32 %v10151_v35, %v9994_v43 }
 0x558   : > { %v10157_v57 = vadd.f32 %v10137_v25, %v1693_v42  ;;  %v14413_v25 = vld [vmem:[#allocation111_spill] sm:$0xff] }
 0x559   : > { %6821 = vmatmul.mubr.msk.bf16.gmra.mrb[184].mxu0 %vm685_vm4, %v14379_v23  ;;  %v2042_v23 = vld [vmem:[%s13781_s2 + $0x80] sm:$0xff]  ;;  %14395 = vst [vmem:[#allocation79_spill] sm:$0xff] %v10141_v38  ;;  %14402 = vst [vmem:[#allocation91_spill] sm:$0xff] %v10184_v58 }
 0x55a   : > { %1965 = vmatprep.mubr.bf16.mxu0 %v14266_v10  ;;  %v10075_v37 = vadd.f32 %v9783_v60, %v2042_v23  ;;  %14397 = vst [vmem:[#allocation85_spill] sm:$0xff] %v10157_v57  ;;  %v2419_v43 = vsel %vm2350_vm12, %v10157_v57, -inf }
 0x55c   : > { %v10037_v51 = vpop.f32.mrb[80].mxu0  ;;  %v10093_v23 = vadd.f32 %v10075_v37, %v1647_v44 }
 0x55d   : > { %v10042_v5 = vpop.f32.mrb[81].mxu0 }
 0x55e   : > { %v10047_v40 = vpop.f32.mrb[82].mxu0  ;;  %14388 = vst [vmem:[#allocation126_spill] sm:$0xff] %v10093_v23 }
 0x55f   : > { %v1703_v11 = vpop.f32.mrb[83].mxu0 }
 0x561   : > { %6822 = vmatmul.mubr.msk.bf16.gmra.mrb[188].mxu0 %vm685_vm4, %v14385_v28  ;;  %v2383_v28 = vsel %vm2350_vm12, %v10053_v20, -inf  ;;  %v10110_v20 = vadd.f32 %v10088_v52, %v1683_v61  ;;  %v2391_v52 = vsel %vm2350_vm12, %v10085_v31, -inf  ;;  %v2065_v31 = vld [vmem:[%s13781_s2 + $0x138] sm:$0xff] }
 0x562   : > { %1975 = vmatprep.mubr.bf16.mxu0 %v14266_v10  ;;  %v2384_v61 = vmax.f32 %v10093_v23, %v2383_v28  ;;  %v10144_v28 = vadd.f32 %v9783_v60, %v2056_v49  ;;  %v2388_v23 = vmax.f32 %v10117_v22, %v2387_v32  ;;  %v14399_v49 = vld [vmem:[#allocation103_spill] sm:$0xff]  ;;  %v2392_v32 = vmax.f32 %v10141_v38, %v2391_v52  ;;  %v2053_v22 = vld [vmem:[%s13781_s2 + $0xd8] sm:$0xff]  ;;  %v2050_v52 = vld [vmem:[%s13781_s2 + $0xc0] sm:$0xff] }
 0x563   : > { %14391 = vst [vmem:[#allocation67_spill] sm:$0xff] %v10110_v20  ;;  %v14400_v36 = vpack.c.bf16 %v14398_v41, %v14399_v49  ;;  %v10187_v41 = vadd.f32 %v9780_v53, %v2065_v31  ;;  %v10200_v38 = vadd.f32 %v9780_v53, %v2053_v22  ;;  %v2064_v31 = vld [vmem:[%s13781_s2 + $0x130] sm:$0xff]  ;;  %v2055_v22 = vld [vmem:[%s13781_s2 + $0xe8] sm:$0xff] }
 0x564   : > { %v10101_v33 = vpop.f32.mrb[84].mxu0  ;;  %14396 = vst [vmem:[#allocation86_spill] sm:$0xff] %v10144_v28  ;;  %v10174_v42 = vadd.f32 %v10144_v28, %v10013_v29  ;;  %v10191_v29 = vadd.f32 %v10167_v14, %v9985_v62 }
 0x565   : > { %v10112_v44 = vpop.f32.mrb[85].mxu0  ;;  %14403 = vst [vmem:[#allocation11_spill] sm:$0xff] %v10187_v41  ;;  %v10208_v62 = vadd.f32 %v10187_v41, %v1703_v11  ;;  %v2399_v11 = vsel %vm2350_vm12, %v10184_v58, -inf  ;;  %v10241_v58 = vadd.f32 %v9780_v53, %v2055_v22 }
 0x566   : > { %v10125_v34 = vpop.f32.mrb[86].mxu0  ;;  %14401 = vst [vmem:[#allocation92_spill] sm:$0xff] %v10174_v42  ;;  %14404 = vst [vmem:[#allocation100_spill] sm:$0xff] %v10191_v29 }
 0x567   : > { %v1713_v2 = vpop.f32.mrb[87].mxu0  ;;  %14406 = vst [vmem:[#allocation108_spill] sm:$0xff] %v10208_v62  ;;  %v2427_v41 = vsel %vm2350_vm12, %v10208_v62, -inf }
 0x568   : > { %2385 = vmax.xlane.f32.xlu0 %v2384_v61  ;;  %v2411_v61 = vsel %vm2350_vm12, %v10110_v20, -inf }
 0x569   : > { %6823 = vmatmul.mubr.msk.bf16.gmra.mrb[192].mxu0 %vm685_vm4, %v14400_v36  ;;  %v2395_v36 = vsel %vm2350_vm12, %v10134_v21, -inf  ;;  %v2412_v20 = vmax.f32 %v10174_v42, %v2411_v61 }
 0x56a   : > { %2389 = vmax.xlane.f32.xlu1 %v2388_v23  ;;  %1985 = vmatprep.mubr.bf16.mxu0 %v14266_v10  ;;  %v10194_v23 = vadd.f32 %v9783_v60, %v2060_v9  ;;  %v2396_v21 = vmax.f32 %v10191_v29, %v2395_v36  ;;  %v2052_v36 = vld [vmem:[%s13781_s2 + $0xd0] sm:$0xff] }
 0x56c   : > { %14405 = vst [vmem:[#allocation99_spill] sm:$0xff] %v10194_v23  ;;  %v10196_v49 = vpop.f32.mrb[88].mxu0  ;;  %2393 = vmax.xlane.f32.xlu0 %v2392_v32  ;;  %v10214_v32 = vadd.f32 %v9783_v60, %v2050_v52  ;;  %v10221_v61 = vadd.f32 %v10194_v23, %v10024_v19  ;;  %v10230_v52 = vadd.f32 %v10200_v38, %v10000_v59  ;;  %v14412_v23 = vld [vmem:[#allocation112_spill] sm:$0xff] }
 0x56d   : > { %v10210_v9 = vpop.f32.mrb[89].mxu0  ;;  %v10246_v59 = vadd.f32 %v9799_v55, %v1713_v2  ;;  %v14414_v28 = vpack.c.bf16 %v14412_v23, %v14413_v25  ;;  %v2054_v25 = vld [vmem:[%s13781_s2 + $0xe0] sm:$0xff] }
 0x56e   : > { %14407 = vst [vmem:[#allocation107_spill] sm:$0xff] %v10221_v61  ;;  %v1721_v57 = vpop.f32.mrb[90].mxu0  ;;  %2413 = vmax.xlane.f32.xlu1 %v2412_v20  ;;  %14408 = vst [vmem:[#allocation116_spill] sm:$0xff] %v10230_v52  ;;  %v10234_v29 = vadd.f32 %v10214_v32, %v9992_v45  ;;  %v2420_v19 = vmax.f32 %v10221_v61, %v2419_v43  ;;  %v10238_v20 = vadd.f32 %v9783_v60, %v2064_v31 }
 0x56f   : > { %v1723_v42 = vpop.f32.mrb[91].mxu0  ;;  %14411 = vst [vmem:[#allocation123_spill] sm:$0xff] %v10246_v59  ;;  %v10254_v43 = vadd.f32 %v9783_v60, %v2052_v36  ;;  %v2403_v2 = vsel %vm2350_vm12, %v10230_v52, -inf  ;;  %v2435_v36 = vsel %vm2350_vm12, %v10246_v59, -inf }
 0x570   : > { %14409 = vst [vmem:[#allocation115_spill] sm:$0xff] %v10234_v29  ;;  %14410 = vst [vmem:[#allocation124_spill] sm:$0xff] %v10238_v20  ;;  %2397 = vmax.xlane.f32.xlu0 %v2396_v21  ;;  %v2400_v45 = vmax.f32 %v10234_v29, %v2399_v11  ;;  %v2059_v21 = vld [vmem:[%s13781_s2 + $0x108] sm:$0xff]  ;;  %v10261_v31 = vadd.f32 %v10238_v20, %v10047_v40  ;;  %v14425_v29 = vld [vmem:[#allocation120_spill] sm:$0xff] }
 0x571   : > { %6824 = vmatmul.mubr.msk.bf16.gmra.mrb[196].mxu0 %vm685_vm4, %v14414_v28  ;;  %v10271_v28 = vadd.f32 %v10241_v58, %v10011_v6  ;;  %v10275_v23 = vadd.f32 %v10254_v43, %v9996_v13  ;;  %v10281_v11 = vadd.f32 %v9780_v53, %v2059_v21  ;;  %v10292_v13 = vadd.f32 %v9783_v60, %v2054_v25 }
 0x572   : > { %14415 = vst [vmem:[#allocation72_spill] sm:$0xff] %v10261_v31  ;;  %2421 = vmax.xlane.f32.xlu1 %v2420_v19  ;;  %1995 = vmatprep.mubr.bf16.mxu0 %v14266_v10  ;;  %v2428_v40 = vmax.f32 %v10261_v31, %v2427_v41  ;;  %v10286_v19 = vadd.f32 %v9843_v4, %v1723_v42  ;;  %v2063_v41 = vld [vmem:[%s13781_s2 + $0x128] sm:$0xff] }
 0x573   : > { %14416 = vst [vmem:[#allocation71_spill] sm:$0xff] %v10271_v28  ;;  %14417 = vst [vmem:[#allocation78_spill] sm:$0xff] %v10275_v23  ;;  %v2404_v62 = vmax.f32 %v10275_v23, %v2403_v2  ;;  %v2407_v42 = vsel %vm2350_vm12, %v10271_v28, -inf  ;;  %v2058_v2 = vld [vmem:[%s13781_s2 + $0x100] sm:$0xff]  ;;  %v10308_v25 = vadd.f32 %v10281_v11, %v10022_v24  ;;  %v10312_v31 = vadd.f32 %v10292_v13, %v10009_v16  ;;  %v14426_v24 = vld [vmem:[#allocation119_spill] sm:$0xff] }
 0x574   : > { %v10278_v22 = vpop.f32.mrb[92].mxu0  ;;  %2401 = vmax.xlane.f32.xlu0 %v2400_v45  ;;  %14418 = vst [vmem:[#allocation77_spill] sm:$0xff] %v10281_v11  ;;  %14419 = vst [vmem:[#allocation129_spill] sm:$0xff] %v10286_v19  ;;  %v10299_v45 = vadd.f32 %v9806_v39, %v10125_v34  ;;  %v2443_v61 = vsel %vm2350_vm12, %v10286_v19, -inf  ;;  %v14427_v23 = vpack.c.bf16 %v14425_v29, %v14426_v24 }
 0x575   : > { %v10288_v6 = vpop.f32.mrb[93].mxu0  ;;  %14421 = vst [vmem:[#allocation83_spill] sm:$0xff] %v10308_v25  ;;  %14422 = vst [vmem:[#allocation90_spill] sm:$0xff] %v10312_v31  ;;  %v2408_v16 = vmax.f32 %v10312_v31, %v2407_v42  ;;  %v10329_v52 = vadd.f32 %v9783_v60, %v2058_v2  ;;  %v2415_v29 = vsel %vm2350_vm12, %v10308_v25, -inf }
 0x576   : > { %14420 = vst [vmem:[#allocation84_spill] sm:$0xff] %v10299_v45  ;;  %v1731_v21 = vpop.f32.mrb[94].mxu0  ;;  %2429 = vmax.xlane.f32.xlu1 %v2428_v40  ;;  %v2436_v34 = vmax.f32 %v10299_v45, %v2435_v36  ;;  %v10316_v40 = vadd.f32 %v9780_v53, %v2063_v41  ;;  %v10335_v36 = vadd.f32 %v9853_v1, %v1721_v57 }
 0x577   : > { %v1733_v59 = vpop.f32.mrb[95].mxu0  ;;  %14428 = vst [vmem:[#allocation95_spill] sm:$0xff] %v10329_v52  ;;  %v10349_v41 = vadd.f32 %v10329_v52, %v10020_v15  ;;  %v10362_v45 = vadd.f32 %v9890_v46, %v1731_v21 }
 0x578   : > { %2405 = vmax.xlane.f32.xlu0 %v2404_v62  ;;  %14423 = vst [vmem:[#allocation89_spill] sm:$0xff] %v10316_v40  ;;  %v10321_v28 = vadd.f32 %v9897_v3, %v1733_v59  ;;  %v2067_v62 = vld [vmem:[%s13781_s2 + $0x148] sm:$0xff]  ;;  %14429 = vst [vmem:[#allocation104_spill] sm:$0xff] %v10335_v36  ;;  %v2062_v59 = vld [vmem:[%s13781_s2 + $0x120] sm:$0xff]  ;;  %v2444_v57 = vmax.f32 %v10335_v36, %v2443_v61 }
 0x579   : > { %6825 = vmatmul.mubr.msk.bf16.gmra.mrb[200].mxu0 %vm685_vm4, %v14427_v23  ;;  %v10345_v23 = vadd.f32 %v10316_v40, %v10042_v5  ;;  %14431 = vst [vmem:[#allocation112_spill] sm:$0xff] %v10349_v41  ;;  %v10353_v2 = vadd.f32 %v9780_v53, %v2067_v62  ;;  %v2416_v19 = vmax.f32 %v10349_v41, %v2415_v29  ;;  %14434 = vst [vmem:[#allocation119_spill] sm:$0xff] %v10362_v45  ;;  %v2066_v53 = vld [vmem:[%s13781_s2 + $0x140] sm:$0xff]  ;;  %v14440_v36 = vld [vmem:[#allocation127_spill] sm:$0xff] }
 0x57a   : > { %14424 = vst [vmem:[#allocation96_spill] sm:$0xff] %v10321_v28  ;;  %2437 = vmax.xlane.f32.xlu1 %v2436_v34  ;;  %2005 = vmatprep.mubr.bf16.mxu0 %v14266_v10  ;;  %v2451_v34 = vsel %vm2350_vm12, %v10321_v28, -inf  ;;  %v10359_v5 = vadd.f32 %v9783_v60, %v2062_v59  ;;  %v14439_v28 = vld [vmem:[#allocation128_spill] sm:$0xff]  ;;  %v10390_v41 = vadd.f32 %v9783_v60, %v2066_v53 }
 0x57b   : > { %14430 = vst [vmem:[#allocation103_spill] sm:$0xff] %v10345_v23  ;;  %14432 = vst [vmem:[#allocation111_spill] sm:$0xff] %v10353_v2  ;;  %v2423_v61 = vsel %vm2350_vm12, %v10345_v23, -inf  ;;  %v2452_v21 = vmax.f32 %v10362_v45, %v2451_v34  ;;  %v14441_v23 = vpack.c.bf16 %v14439_v28, %v14440_v36  ;;  %v10399_v34 = vadd.f32 %v9809_v18, %v10210_v9  ;;  %v14480_v45 = vld [vmem:[#allocation114_spill] sm:$0xff] }
 0x57c   : > { %v1737_v42 = vpop.f32.mrb[96].mxu0  ;;  %2409 = vmax.xlane.f32.xlu0 %v2408_v16  ;;  %14433 = vst [vmem:[#allocation120_spill] sm:$0xff] %v10359_v5  ;;  %v10371_v16 = vadd.f32 %v10353_v2, %v10112_v44  ;;  %v10375_v29 = vadd.f32 %v10359_v5, %v10037_v51  ;;  %14442 = vst [vmem:[#allocation128_spill] sm:$0xff] %v10390_v41  ;;  %v10404_v36 = vadd.f32 %v10390_v41, %v10101_v33 }
 0x57d   : > { %v1739_v24 = vpop.f32.mrb[97].mxu0  ;;  %14443 = vst [vmem:[#allocation127_spill] sm:$0xff] %v10399_v34  ;;  %v2439_v53 = vsel %vm2350_vm12, %v10399_v34, -inf  ;;  %v10411_v9 = vadd.f32 %v9856_v0, %v10288_v6 }
 0x57e   : > { %v1741_v15 = vpop.f32.mrb[98].mxu0  ;;  %2445 = vmax.xlane.f32.xlu1 %v2444_v57  ;;  %14435 = vst [vmem:[#allocation130_spill] sm:$0xff] %v10371_v16  ;;  %14436 = vst [vmem:[#allocation131_spill] sm:$0xff] %v10375_v29  ;;  %v2424_v44 = vmax.f32 %v10375_v29, %v2423_v61  ;;  %v14490_v29 = vld [vmem:[#allocation70_spill] sm:$0xff] }
 0x57f   : > { %v1743_v62 = vpop.f32.mrb[99].mxu0  ;;  %v10382_v57 = vadd.f32 %v9947_v50, %v1741_v15  ;;  %14444 = vst [vmem:[#allocation134_spill] sm:$0xff] %v10404_v36  ;;  %14445 = vst [vmem:[#allocation135_spill] sm:$0xff] %v10411_v9 }
 0x580   : > { %v10379_v59 = vadd.f32 %v9941_v26, %v1743_v62  ;;  %2417 = vmax.xlane.f32.xlu0 %v2416_v19  ;;  %v2431_v19 = vsel %vm2350_vm12, %v10371_v16, -inf }
 0x581   : > { %14438 = vst [vmem:[#allocation133_spill] sm:$0xff] %v10382_v57  ;;  %6826 = vmatmul.mubr.msk.bf16.gmra.mrb[204].mxu0 %vm685_vm4, %v14441_v23  ;;  %v2432_v15 = vmax.f32 %v10404_v36, %v2431_v19 }
 0x582   : > { %14437 = vst [vmem:[#allocation132_spill] sm:$0xff] %v10379_v59  ;;  %v2459_v51 = vsel %vm2350_vm12, %v10379_v59, -inf  ;;  %2453 = vmax.xlane.f32.xlu1 %v2452_v21  ;;  %2015 = vmatprep.mubr.bf16.mxu0 %v14266_v10  ;;  %v10415_v21 = vadd.f32 %v9812_v63, %v10196_v49  ;;  %v2447_v49 = vsel %vm2350_vm12, %v10411_v9, -inf  ;;  %v14458_v9 = vld [vmem:[#allocation94_spill] sm:$0xff] }
 0x583   : > { %v2460_v28 = vmax.f32 %v10382_v57, %v2459_v51  ;;  %v14449_v51 = vpack.c.bf16 %v9570_v8, %v9567_v54  ;;  %v10440_v8 = vadd.f32 %v9859_v47, %v10278_v22 }
 0x584   : > { %v1747_v60 = vpop.f32.mrb[100].mxu0  ;;  %2425 = vmax.xlane.f32.xlu0 %v2424_v44  ;;  %14446 = vst [vmem:[#allocation136_spill] sm:$0xff] %v10415_v21  ;;  %v2440_v6 = vmax.f32 %v10415_v21, %v2439_v53  ;;  %v14462_v21 = vld [vmem:[#allocation125_spill] sm:$0xff] }
 0x585   : > { %v1749_v23 = vpop.f32.mrb[101].mxu0  ;;  %14451 = vst [vmem:[#allocation140_spill] sm:$0xff] %v10440_v8  ;;  %v2448_v53 = vmax.f32 %v10440_v8, %v2447_v49 }
 0x586   : > { %v1751_v61 = vpop.f32.mrb[102].mxu0  ;;  %2461 = vmax.xlane.f32.xlu1 %v2460_v28  ;;  %v10435_v28 = vadd.f32 %v9906_v17, %v1739_v24 }
 0x587   : > { %v1753_v62 = vpop.f32.mrb[103].mxu0  ;;  %v10421_v44 = vadd.f32 %v10075_v37, %v1751_v61 }
 0x588   : > { %v10418_v33 = vadd.f32 %v10040_v56, %v1753_v62  ;;  %2433 = vmax.xlane.f32.xlu0 %v2432_v15  ;;  %14450 = vst [vmem:[#allocation139_spill] sm:$0xff] %v10435_v28 }
 0x589   : > { %14448 = vst [vmem:[#allocation138_spill] sm:$0xff] %v10421_v44  ;;  %6827 = vmatmul.mubr.msk.bf16.gmra.mrb[208].mxu0 %vm685_vm4, %v14449_v51  ;;  %v2455_v51 = vsel %vm2350_vm12, %v10435_v28, -inf  ;;  %v14456_v28 = vld [vmem:[#allocation110_spill] sm:$0xff] }
 0x58a   : > { %14447 = vst [vmem:[#allocation137_spill] sm:$0xff] %v10418_v33  ;;  %v2467_v19 = vsel %vm2350_vm12, %v10418_v33, -inf  ;;  %7157 = vmatprep.mubr.msk.bf16.mxu0 %vm8216_vm1, %v14168_v48  ;;  %v10446_v33 = vadd.f32 %v9953_v12, %v1749_v23 }
 0x58b   : > { %v2468_v15 = vmax.f32 %v10421_v44, %v2467_v19  ;;  %v10449_v19 = vadd.f32 %v9912_v30, %v1737_v42  ;;  %v14460_v44 = vld [vmem:[#allocation68_spill] sm:$0xff] }
 0x58c   : > { %v1757_v54 = vpop.f32.mrb[104].mxu0  ;;  %2441 = vmax.xlane.f32.xlu0 %v2440_v6  ;;  %14452 = vst [vmem:[#allocation141_spill] sm:$0xff] %v10446_v33  ;;  %v2463_v23 = vsel %vm2350_vm12, %v10446_v33, -inf }
 0x58d   : > { %v1759_v61 = vpop.f32.mrb[105].mxu0  ;;  %2469 = vmax.xlane.f32.xlu1 %v2468_v15  ;;  %14453 = vst [vmem:[#allocation142_spill] sm:$0xff] %v10449_v19  ;;  %v2456_v49 = vmax.f32 %v10449_v19, %v2455_v51  ;;  %v10476_v59 = vadd.f32 %v14462_v21, %v1757_v54 }
 0x58e   : > { %v1761_v62 = vpop.f32.mrb[106].mxu0  ;;  %v10463_v8 = vadd.f32 %v14456_v28, %v1759_v61 }
 0x58f   : > { %v1763_v24 = vpop.f32.mrb[107].mxu0  ;;  %v10455_v6 = vadd.f32 %v10120_v7, %v1761_v62  ;;  %14463 = vst [vmem:[#allocation125_spill] sm:$0xff] %v10476_v59 }
 0x590   : > { %v10452_v22 = vadd.f32 %v10068_v27, %v1763_v24  ;;  %2449 = vmax.xlane.f32.xlu0 %v2448_v53  ;;  %14457 = vst [vmem:[#allocation110_spill] sm:$0xff] %v10463_v8  ;;  %v10467_v24 = vadd.f32 %v14458_v9, %v1747_v60 }
 0x591   : > { %14455 = vst [vmem:[#allocation144_spill] sm:$0xff] %v10455_v6 }
 0x592   : > { %14454 = vst [vmem:[#allocation143_spill] sm:$0xff] %v10452_v22  ;;  %v2475_v15 = vsel %vm2350_vm12, %v10452_v22, -inf  ;;  %14459 = vst [vmem:[#allocation94_spill] sm:$0xff] %v10467_v24  ;;  %v2464_v51 = vmax.f32 %v10467_v24, %v2463_v23  ;;  %v2471_v22 = vsel %vm2350_vm12, %v10463_v8, -inf }
 0x593   : > { %v2476_v42 = vmax.f32 %v10455_v6, %v2475_v15  ;;  %v2472_v15 = vmax.f32 %v10476_v59, %v2471_v22 }
 0x594   : > { %v1767_v53 = vpop.f32.mrb[108].mxu0  ;;  %2457 = vmax.xlane.f32.xlu0 %v2456_v49 }
 0x595   : > { %v1769_v62 = vpop.f32.mrb[109].mxu0  ;;  %2477 = vmax.xlane.f32.xlu1 %v2476_v42  ;;  %v10491_v54 = vadd.f32 %v10167_v14, %v1767_v53 }
 0x596   : > { %v1771_v19 = vpop.f32.mrb[110].mxu0  ;;  %v10473_v33 = vadd.f32 %v14460_v44, %v1769_v62 }
 0x597   : > { %v1773_v61 = vpop.f32.mrb[111].mxu0  ;;  %v10482_v49 = vadd.f32 %v10214_v32, %v1771_v19  ;;  %14466 = vst [vmem:[#allocation147_spill] sm:$0xff] %v10491_v54 }
 0x598   : > { %14461 = vst [vmem:[#allocation68_spill] sm:$0xff] %v10473_v33  ;;  %v10479_v60 = vadd.f32 %v10151_v35, %v1773_v61  ;;  %2465 = vmax.xlane.f32.xlu0 %v2464_v51  ;;  %v2479_v42 = vsel %vm2350_vm12, %v10473_v33, -inf }
 0x599   : > { %14465 = vst [vmem:[#allocation146_spill] sm:$0xff] %v10482_v49  ;;  %v2480_v19 = vmax.f32 %v10491_v54, %v2479_v42  ;;  %v14471_v54 = vld [vmem:[#allocation117_spill] sm:$0xff] }
 0x59a   : > { %14464 = vst [vmem:[#allocation145_spill] sm:$0xff] %v10479_v60  ;;  %v2483_v23 = vsel %vm2350_vm12, %v10479_v60, -inf }
 0x59b   : > { %v2484_v62 = vmax.f32 %v10482_v49, %v2483_v23  ;;  %v14473_v49 = vld [vmem:[#allocation86_spill] sm:$0xff] }
 0x59c   : > { %v1777_v8 = vpop.f32.mrb[112].mxu0  ;;  %2473 = vmax.xlane.f32.xlu0 %v2472_v15 }
 0x59d   : > { %v1779_v61 = vpop.f32.mrb[113].mxu0  ;;  %2485 = vmax.xlane.f32.xlu1 %v2484_v62  ;;  %v10498_v60 = vadd.f32 %v10254_v43, %v1777_v8 }
 0x59e   : > { %v10495_v51 = vadd.f32 %v10200_v38, %v1779_v61  ;;  %v1781_v22 = vpop.f32.mrb[114].mxu0 }
 0x59f   : > { %14468 = vst [vmem:[#allocation149_spill] sm:$0xff] %v10498_v60  ;;  %v1783_v59 = vpop.f32.mrb[115].mxu0  ;;  %v10507_v62 = vadd.f32 %v10292_v13, %v1781_v22 }
 0x5a0   : > { %14467 = vst [vmem:[#allocation148_spill] sm:$0xff] %v10495_v51  ;;  %v2487_v23 = vsel %vm2350_vm12, %v10495_v51, -inf  ;;  %v10503_v53 = vadd.f32 %v10241_v58, %v1783_v59  ;;  %2481 = vmax.xlane.f32.xlu0 %v2480_v19 }
 0x5a1   : > { %v2488_v15 = vmax.f32 %v10498_v60, %v2487_v23  ;;  %14470 = vst [vmem:[#allocation151_spill] sm:$0xff] %v10507_v62 }
 0x5a2   : > { %14469 = vst [vmem:[#allocation150_spill] sm:$0xff] %v10503_v53  ;;  %v2491_v42 = vsel %vm2350_vm12, %v10503_v53, -inf }
 0x5a3   : > { %v2492_v61 = vmax.f32 %v10507_v62, %v2491_v42  ;;  %v14478_v62 = vld [vmem:[#allocation106_spill] sm:$0xff] }
 0x5a4   : > { %v1787_v8 = vpop.f32.mrb[116].mxu0  ;;  %2489 = vmax.xlane.f32.xlu0 %v2488_v15 }
 0x5a5   : > { %v1789_v33 = vpop.f32.mrb[117].mxu0  ;;  %2493 = vmax.xlane.f32.xlu1 %v2492_v61  ;;  %v10516_v19 = vadd.f32 %v14473_v49, %v1787_v8  ;;  %v14477_v61 = vld [vmem:[#allocation105_spill] sm:$0xff] }
 0x5a6   : > { %v10513_v51 = vadd.f32 %v14471_v54, %v1789_v33  ;;  %v1791_v59 = vpop.f32.mrb[118].mxu0 }
 0x5a7   : > { %14474 = vst [vmem:[#allocation86_spill] sm:$0xff] %v10516_v19  ;;  %v1793_v23 = vpop.f32.mrb[119].mxu0  ;;  %v10525_v15 = vadd.f32 %v10329_v52, %v1791_v59 }
 0x5a8   : > { %14472 = vst [vmem:[#allocation117_spill] sm:$0xff] %v10513_v51  ;;  %v2495_v22 = vsel %vm2350_vm12, %v10513_v51, -inf  ;;  %v10521_v60 = vadd.f32 %v10281_v11, %v1793_v23  ;;  %v2354_v53 = vpop.xlane.xlu0 %2353  ;;  %v14479_v23 = vld [vmem:[#allocation113_spill] sm:$0xff] }
 0x5a9   : > { %v2496_v42 = vmax.f32 %v10516_v19, %v2495_v22  ;;  %14476 = vst [vmem:[#allocation153_spill] sm:$0xff] %v10525_v15  ;;  %v2687_v33 = vsub.f32 %v14477_v61, %v2354_v53  ;;  %v2688_v24 = vsub.f32 %v14478_v62, %v2354_v53  ;;  %v14481_v62 = vld [vmem:[#allocation80_spill] sm:$0xff] }
 0x5aa   : > { %14475 = vst [vmem:[#allocation152_spill] sm:$0xff] %v10521_v60  ;;  %v2499_v8 = vsel %vm2350_vm12, %v10521_v60, -inf  ;;  %v2358_v6 = vpop.xlane.xlu1 %2357 }
 0x5ab   : > { %v2500_v57 = vmax.f32 %v10525_v15, %v2499_v8  ;;  %v2855_v51 = vmul.f32 1.442695, %v2687_v33  ;;  %v2857_v34 = vmul.f32 1.442695, %v2688_v24  ;;  %v2689_v36 = vsub.f32 %v14479_v23, %v2358_v6  ;;  %2497 = vmax.xlane.f32.xlu0 %v2496_v42  ;;  %v14483_v8 = vld [vmem:[#allocation99_spill] sm:$0xff]  ;;  %v14488_v42 = vld [vmem:[#allocation122_spill] sm:$0xff] }
 0x5ac   : > { %v2690_v22 = vsub.f32 %v14480_v45, %v2358_v6  ;;  %v1797_v19 = vpop.f32.mrb[120].mxu0 }
 0x5ad   : > { %7594 = vpow2.f32 %v2855_v51  ;;  %v2859_v59 = vmul.f32 1.442695, %v2689_v36  ;;  %v1799_v16 = vpop.f32.mrb[121].mxu0  ;;  %2501 = vmax.xlane.f32.xlu1 %v2500_v57  ;;  %v10538_v33 = vadd.f32 %v14483_v8, %v1797_v19 }
 0x5ae   : > { %7596 = vpow2.f32 %v2857_v34  ;;  %v2861_v53 = vmul.f32 1.442695, %v2690_v22  ;;  %v10535_v61 = vadd.f32 %v14481_v62, %v1799_v16  ;;  %v1801_v60 = vpop.f32.mrb[122].mxu0  ;;  %v14487_v16 = vld [vmem:[#allocation121_spill] sm:$0xff] }
 0x5af   : > { %7598 = vpow2.f32 %v2859_v59  ;;  %14484 = vst [vmem:[#allocation106_spill] sm:$0xff] %v10538_v33  ;;  %v1803_v24 = vpop.f32.mrb[123].mxu0  ;;  %v10547_v34 = vadd.f32 %v10359_v5, %v1801_v60 }
 0x5b0   : > { %14482 = vst [vmem:[#allocation105_spill] sm:$0xff] %v10535_v61  ;;  %7600 = vpow2.f32 %v2861_v53  ;;  %v2503_v45 = vsel %vm2350_vm12, %v10535_v61, -inf  ;;  %v10543_v6 = vadd.f32 %v10316_v40, %v1803_v24  ;;  %v2362_v36 = vpop.xlane.xlu0 %2361  ;;  %v14489_v24 = vld [vmem:[#allocation69_spill] sm:$0xff] }
 0x5b1   : > { %v2504_v57 = vmax.f32 %v10538_v33, %v2503_v45  ;;  %14486 = vst [vmem:[#allocation114_spill] sm:$0xff] %v10547_v34  ;;  %v2691_v51 = vsub.f32 %v14487_v16, %v2362_v36  ;;  %v2692_v23 = vsub.f32 %v14488_v42, %v2362_v36  ;;  %v14491_v16 = vld [vmem:[#allocation11_spill] sm:$0xff] }
 0x5b2   : > { %14485 = vst [vmem:[#allocation113_spill] sm:$0xff] %v10543_v6  ;;  %v2507_v19 = vsel %vm2350_vm12, %v10543_v6, -inf  ;;  %v2366_v22 = vpop.xlane.xlu1 %2365 }
 0x5b3   : > { %v2508_v59 = vmax.f32 %v10547_v34, %v2507_v19  ;;  %v2863_v53 = vmul.f32 1.442695, %v2691_v51  ;;  %v2865_v61 = vmul.f32 1.442695, %v2692_v23  ;;  %v2693_v15 = vsub.f32 %v14489_v24, %v2366_v22  ;;  %2505 = vmax.xlane.f32.xlu0 %v2504_v57 }
 0x5b4   : > { %v2694_v45 = vsub.f32 %v14490_v29, %v2366_v22  ;;  %v1807_v33 = vpop.f32.mrb[124].mxu0 }
 0x5b5   : > { %7602 = vpow2.f32 %v2863_v53  ;;  %v2867_v60 = vmul.f32 1.442695, %v2693_v15  ;;  %v1809_v25 = vpop.f32.mrb[125].mxu0  ;;  %2509 = vmax.xlane.f32.xlu1 %v2508_v59  ;;  %v10562_v51 = vadd.f32 %v10238_v20, %v1807_v33  ;;  %v14496_v59 = vld [vmem:[#allocation75_spill] sm:$0xff]  ;;  %v14497_v53 = vld [vmem:[#allocation76_spill] sm:$0xff] }
 0x5b6   : > { %7604 = vpow2.f32 %v2865_v61  ;;  %v2869_v36 = vmul.f32 1.442695, %v2694_v45  ;;  %v10557_v42 = vadd.f32 %v14491_v16, %v1809_v25  ;;  %v1811_v6 = vpop.f32.mrb[126].mxu0 }
 0x5b7   : > { %v10559_v31 = vpop.eup %7594  ;;  %7606 = vpow2.f32 %v2867_v60  ;;  %14493 = vst [vmem:[#allocation122_spill] sm:$0xff] %v10562_v51  ;;  %v1813_v57 = vpop.f32.mrb[127].mxu0  ;;  %v10567_v15 = vadd.f32 %v10390_v41, %v1811_v6 }
 0x5b8   : > { %14492 = vst [vmem:[#allocation121_spill] sm:$0xff] %v10557_v42  ;;  %v7597_v23 = vpop.eup %7596  ;;  %7608 = vpow2.f32 %v2869_v36  ;;  %v2511_v29 = vsel %vm2350_vm12, %v10557_v42, -inf  ;;  %v10570_v61 = vadd.f32 %v10353_v2, %v1813_v57  ;;  %v2370_v25 = vpop.xlane.xlu0 %2369  ;;  %v14499_v2 = vld [vmem:[#allocation81_spill] sm:$0xff] }
 0x5b9   : > { %14494 = vst [vmem:[#allocation69_spill] sm:$0xff] %v10567_v15  ;;  %v10572_v19 = vpop.eup %7598  ;;  %v2512_v22 = vmax.f32 %v10562_v51, %v2511_v29  ;;  %v2695_v33 = vsub.f32 %v14496_v59, %v2370_v25  ;;  %v2696_v24 = vsub.f32 %v14497_v53, %v2370_v25  ;;  %v3191_v45 = vsel %vm2350_vm12, %v7597_v23, 0.0  ;;  %v14500_v59 = vld [vmem:[#allocation82_spill] sm:$0xff] }
 0x5ba   : > { %14495 = vst [vmem:[#allocation70_spill] sm:$0xff] %v10570_v61  ;;  %v7601_v60 = vpop.eup %7600  ;;  %v2515_v36 = vsel %vm2350_vm12, %v10570_v61, -inf  ;;  %v2374_v6 = vpop.xlane.xlu1 %2373  ;;  %v10581_v42 = vadd.f32 %v10559_v31, %v3191_v45 }
 0x5bb   : > { %v2516_v57 = vmax.f32 %v10567_v15, %v2515_v36  ;;  %v2871_v34 = vmul.f32 1.442695, %v2695_v33  ;;  %v2873_v41 = vmul.f32 1.442695, %v2696_v24  ;;  %v2697_v29 = vsub.f32 %v14499_v2, %v2374_v6  ;;  %2513 = vmax.xlane.f32.xlu0 %v2512_v22 }
 0x5bc   : > { %14498 = vst [vmem:[#allocation75_spill] sm:$0xff] %v10581_v42  ;;  %v2698_v51 = vsub.f32 %v14500_v59, %v2374_v6  ;;  %v1817_v25 = vpop.f32.mrb[128].mxu0  ;;  %v3528_v53 = vpack.c.bf16 %v7601_v60, %v7597_v23  ;;  %v3195_v20 = vsel %vm2350_vm12, %v7601_v60, 0.0  ;;  %v14506_v6 = vld [vmem:[#allocation87_spill] sm:$0xff] }
 0x5bd   : > { %7610 = vpow2.f32 %v2871_v34  ;;  %v2875_v16 = vmul.f32 1.442695, %v2697_v29  ;;  %v1819_v61 = vpop.f32.mrb[129].mxu0  ;;  %2517 = vmax.xlane.f32.xlu1 %v2516_v57  ;;  %v10588_v45 = vadd.f32 %v10572_v19, %v3195_v20  ;;  %v10597_v23 = vadd.f32 %v9806_v39, %v1817_v25  ;;  %v14507_v29 = vld [vmem:[#allocation88_spill] sm:$0xff] }
 0x5be   : > { %7612 = vpow2.f32 %v2873_v41  ;;  %v2877_v36 = vmul.f32 1.442695, %v2698_v51  ;;  %6828 = vmatprep.mubr.msk.bf16.mxu1 %vm2350_vm12, %v3528_v53  ;;  %v10592_v2 = vadd.f32 %v9799_v55, %v1819_v61  ;;  %v1821_v22 = vpop.f32.mrb[130].mxu0 }
 0x5bf   : > { %14501 = vst [vmem:[#allocation76_spill] sm:$0xff] %v10588_v45  ;;  %v10594_v33 = vpop.eup %7602  ;;  %7614 = vpow2.f32 %v2875_v16  ;;  %14503 = vst [vmem:[#allocation82_spill] sm:$0xff] %v10597_v23  ;;  %v1823_v34 = vpop.f32.mrb[131].mxu0  ;;  %v10604_v41 = vadd.f32 %v9812_v63, %v1821_v22 }
 0x5c0   : > { %14502 = vst [vmem:[#allocation81_spill] sm:$0xff] %v10592_v2  ;;  %v10599_v24 = vpop.eup %7604  ;;  %7616 = vpow2.f32 %v2877_v36  ;;  %v2519_v20 = vsel %vm2350_vm12, %v10592_v2, -inf  ;;  %v10607_v51 = vadd.f32 %v9809_v18, %v1823_v34  ;;  %v2378_v61 = vpop.xlane.xlu0 %2377 }
 0x5c1   : > { %14504 = vst [vmem:[#allocation154_spill] sm:$0xff] %v10604_v41  ;;  %v10609_v60 = vpop.eup %7606  ;;  %v2520_v16 = vmax.f32 %v10597_v23, %v2519_v20  ;;  %v2699_v57 = vsub.f32 %v14506_v6, %v2378_v61  ;;  %v2700_v59 = vsub.f32 %v14507_v29, %v2378_v61  ;;  %v3199_v25 = vsel %vm2350_vm12, %v10599_v24, 0.0  ;;  %v14509_v20 = vld [vmem:[#allocation102_spill] sm:$0xff]  ;;  %v14510_v6 = vld [vmem:[#allocation93_spill] sm:$0xff] }
 0x5c2   : > { %14505 = vst [vmem:[#allocation155_spill] sm:$0xff] %v10607_v51  ;;  %v7609_v53 = vpop.eup %7608  ;;  %v2523_v36 = vsel %vm2350_vm12, %v10607_v51, -inf  ;;  %v2382_v22 = vpop.xlane.xlu1 %2381  ;;  %v10619_v34 = vadd.f32 %v10594_v33, %v3199_v25 }
 0x5c3   : > { %v2524_v45 = vmax.f32 %v10604_v41, %v2523_v36  ;;  %v2879_v42 = vmul.f32 1.442695, %v2699_v57  ;;  %v2881_v15 = vmul.f32 1.442695, %v2700_v59  ;;  %v2701_v23 = vsub.f32 %v14509_v20, %v2382_v22  ;;  %2521 = vmax.xlane.f32.xlu0 %v2520_v16 }
 0x5c4   : > { %14508 = vst [vmem:[#allocation87_spill] sm:$0xff] %v10619_v34  ;;  %v2702_v61 = vsub.f32 %v14510_v6, %v2382_v22  ;;  %v1827_v29 = vpop.f32.mrb[132].mxu0  ;;  %v3630_v2 = vpop.permute.xlu0 %3629  ;;  %v3203_v63 = vsel %vm2350_vm12, %v7609_v53, 0.0 }
 0x5c5   : > { %7618 = vpow2.f32 %v2879_v42  ;;  %v2883_v18 = vmul.f32 1.442695, %v2701_v23  ;;  %v1829_v51 = vpop.f32.mrb[133].mxu0  ;;  %2525 = vmax.xlane.f32.xlu1 %v2524_v45  ;;  %3791 = vmatpush1.bf16.msra.mxu1 %v3630_v2  ;;  %v10626_v25 = vadd.f32 %v10609_v60, %v3203_v63  ;;  %v10635_v42 = vadd.f32 %v9853_v1, %v1827_v29 }
 0x5c6   : > { %7620 = vpow2.f32 %v2881_v15  ;;  %v2885_v57 = vmul.f32 1.442695, %v2702_v61  ;;  %v10629_v59 = vadd.f32 %v9843_v4, %v1829_v51  ;;  %v1831_v16 = vpop.f32.mrb[134].mxu0  ;;  %v3632_v36 = vpop.permute.xlu1 %3631  ;;  %3792 = vmatprep.subr.bf16.mxu1 %v14266_v10  ;;  %v3527_v29 = vpack.c.bf16 %v10572_v19, %v10559_v31 }
 0x5c7   : > { %14511 = vst [vmem:[#allocation88_spill] sm:$0xff] %v10626_v25  ;;  %v10632_v22 = vpop.eup %7610  ;;  %7622 = vpow2.f32 %v2883_v18  ;;  %14513 = vst [vmem:[#allocation93_spill] sm:$0xff] %v10635_v42  ;;  %v3770_v45 = vsel %vm556_vm0, %v3632_v36, 0  ;;  %v1833_v2 = vpop.f32.mrb[135].mxu0  ;;  %v10645_v20 = vadd.f32 %v9859_v47, %v1831_v16  ;;  %v3530_v16 = vpack.c.bf16 %v7609_v53, %v10599_v24 }
 0x5c8   : > { %14512 = vst [vmem:[#allocation102_spill] sm:$0xff] %v10629_v59  ;;  %v7613_v63 = vpop.eup %7612  ;;  %7624 = vpow2.f32 %v2885_v57  ;;  %v2527_v15 = vsel %vm2350_vm12, %v10629_v59, -inf  ;;  %v10641_v23 = vadd.f32 %v9856_v0, %v1833_v2  ;;  %v3529_v59 = vpack.c.bf16 %v10609_v60, %v10594_v33 }
 0x5c9   : > { %v7615_v51 = vpop.eup %7614  ;;  %v2528_v10 = vmax.f32 %v10635_v42, %v2527_v15  ;;  %14515 = vst [vmem:[#allocation157_spill] sm:$0xff] %v10645_v20  ;;  %3793 = vmatpush1.bf16.msra.mxu1 %v3770_v45  ;;  %v3207_v18 = vsel %vm2350_vm12, %v7613_v63, 0.0  ;;  %vm5175_vm0 = vcmask 523264  }
 0x5ca   : > { %14514 = vst [vmem:[#allocation156_spill] sm:$0xff] %v10641_v23  ;;  %v7617_v6 = vpop.eup %7616  ;;  %v2531_v61 = vsel %vm2350_vm12, %v10641_v23, -inf  ;;  %v10653_v57 = vadd.f32 %v10632_v22, %v3207_v18  ;;  %7201 = vmatprep.subr.bf16.mxu1 %v14168_v48 }
 0x5cb   : > { %v2532_v36 = vmax.f32 %v10645_v20, %v2531_v61  ;;  %2529 = vmax.xlane.f32.xlu0 %v2528_v10  ;;  %v3211_v45 = vsel %vm2350_vm12, %v7617_v6, 0.0 }
 0x5cc   : > { %14516 = vst [vmem:[#allocation158_spill] sm:$0xff] %v10653_v57  ;;  %v1837_v2 = vpop.f32.mrb[136].mxu0  ;;  %3805 = vmatmul.mubr.bf16.vlgmr.msra.gmra.mrb[44].mxu1 %v3527_v29  ;;  %v10659_v15 = vadd.f32 %v7615_v51, %v3211_v45 }
 0x5cd   : > { %v1839_v42 = vpop.f32.mrb[137].mxu0  ;;  %2533 = vmax.xlane.f32.xlu1 %v2532_v36  ;;  %6829 = vmatprep.mubr.msk.bf16.mxu1 %vm2350_vm12, %v3530_v16  ;;  %v10666_v61 = vadd.f32 %v9890_v46, %v1837_v2 }
 0x5ce   : > { %14517 = vst [vmem:[#allocation159_spill] sm:$0xff] %v10659_v15  ;;  %v10663_v31 = vadd.f32 %v9897_v3, %v1839_v42  ;;  %v1841_v19 = vpop.f32.mrb[138].mxu0 }
 0x5cf   : > { %v7619_v18 = vpop.eup %7618  ;;  %14519 = vst [vmem:[#allocation161_spill] sm:$0xff] %v10666_v61  ;;  %v1843_v10 = vpop.f32.mrb[139].mxu0  ;;  %v10675_v16 = vadd.f32 %v9912_v30, %v1841_v19 }
 0x5d0   : > { %14518 = vst [vmem:[#allocation160_spill] sm:$0xff] %v10663_v31  ;;  %v7621_v24 = vpop.eup %7620  ;;  %v2535_v53 = vsel %vm2350_vm12, %v10663_v31, -inf  ;;  %v10671_v29 = vadd.f32 %v9906_v17, %v1843_v10  ;;  %v3532_v31 = vpack.c.bf16 %v7617_v6, %v7613_v63 }
 0x5d1   : > { %v7623_v45 = vpop.eup %7622  ;;  %v2536_v36 = vmax.f32 %v10666_v61, %v2535_v53  ;;  %14521 = vst [vmem:[#allocation163_spill] sm:$0xff] %v10675_v16  ;;  %v3215_v42 = vsel %vm2350_vm12, %v7621_v24, 0.0 }
 0x5d2   : > { %14520 = vst [vmem:[#allocation162_spill] sm:$0xff] %v10671_v29  ;;  %v7625_v20 = vpop.eup %7624  ;;  %v2539_v2 = vsel %vm2350_vm12, %v10671_v29, -inf  ;;  %v10682_v23 = vadd.f32 %v7619_v18, %v3215_v42 }
 0x5d3   : > { %v2540_v10 = vmax.f32 %v10675_v16, %v2539_v2  ;;  %2537 = vmax.xlane.f32.xlu0 %v2536_v36  ;;  %v3219_v53 = vsel %vm2350_vm12, %v7625_v20, 0.0  ;;  %v3534_v2 = vpack.c.bf16 %v7625_v20, %v7621_v24 }
 0x5d4   : > { %14522 = vst [vmem:[#allocation164_spill] sm:$0xff] %v10682_v23  ;;  %v1847_v61 = vpop.f32.mrb[140].mxu0  ;;  %3813 = vmatmul.mubr.bf16.gmra.mrb[48].mxu1 %v3529_v59  ;;  %v10686_v19 = vadd.f32 %v7623_v45, %v3219_v53 }
 0x5d5   : > { %v1849_v41 = vpop.f32.mrb[141].mxu0  ;;  %2541 = vmax.xlane.f32.xlu1 %v2540_v10  ;;  %6830 = vmatprep.mubr.msk.bf16.mxu1 %vm2350_vm12, %v3532_v31  ;;  %v10693_v60 = vadd.f32 %v9947_v50, %v1847_v61  ;;  %v3531_v31 = vpack.c.bf16 %v7615_v51, %v10632_v22 }
 0x5d6   : > { %14523 = vst [vmem:[#allocation165_spill] sm:$0xff] %v10686_v19  ;;  %v10690_v29 = vadd.f32 %v9941_v26, %v1849_v41  ;;  %v1851_v33 = vpop.f32.mrb[142].mxu0 }
 0x5d7   : > { %14525 = vst [vmem:[#allocation167_spill] sm:$0xff] %v10693_v60  ;;  %v1853_v42 = vpop.f32.mrb[143].mxu0  ;;  %v10702_v36 = vadd.f32 %v14458_v9, %v1851_v33 }
 0x5d8   : > { %14524 = vst [vmem:[#allocation166_spill] sm:$0xff] %v10690_v29  ;;  %v2543_v63 = vsel %vm2350_vm12, %v10690_v29, -inf  ;;  %v10698_v6 = vadd.f32 %v9953_v12, %v1853_v42 }
 0x5d9   : > { %v2544_v59 = vmax.f32 %v10693_v60, %v2543_v63  ;;  %14527 = vst [vmem:[#allocation169_spill] sm:$0xff] %v10702_v36 }
 0x5da   : > { %14526 = vst [vmem:[#allocation168_spill] sm:$0xff] %v10698_v6  ;;  %v2547_v41 = vsel %vm2350_vm12, %v10698_v6, -inf }
 0x5db   : > { %v2548_v61 = vmax.f32 %v10702_v36, %v2547_v41  ;;  %2545 = vmax.xlane.f32.xlu0 %v2544_v59  ;;  %v3533_v41 = vpack.c.bf16 %v7623_v45, %v7619_v18  ;;  %v14547_v36 = vld [vmem:[#allocation109_spill] sm:$0xff] }
 0x5dc   : > { %v1857_v10 = vpop.f32.mrb[144].mxu0  ;;  %3821 = vmatmul.mubr.bf16.gmra.mrb[52].mxu1 %v3531_v31 }
 0x5dd   : > { %v1859_v53 = vpop.f32.mrb[145].mxu0  ;;  %2549 = vmax.xlane.f32.xlu1 %v2548_v61  ;;  %6831 = vmatprep.mubr.msk.bf16.mxu1 %vm2350_vm12, %v3534_v2  ;;  %v10713_v63 = vadd.f32 %v10075_v37, %v1857_v10 }
 0x5de   : > { %v10710_v42 = vadd.f32 %v10040_v56, %v1859_v53  ;;  %v1861_v33 = vpop.f32.mrb[146].mxu0 }
 0x5df   : > { %14529 = vst [vmem:[#allocation171_spill] sm:$0xff] %v10713_v63  ;;  %v1863_v60 = vpop.f32.mrb[147].mxu0  ;;  %v10722_v24 = vadd.f32 %v14462_v21, %v1861_v33 }
 0x5e0   : > { %14528 = vst [vmem:[#allocation170_spill] sm:$0xff] %v10710_v42  ;;  %v2551_v22 = vsel %vm2350_vm12, %v10710_v42, -inf  ;;  %v10718_v51 = vadd.f32 %v14456_v28, %v1863_v60 }
 0x5e1   : > { %v2552_v20 = vmax.f32 %v10713_v63, %v2551_v22  ;;  %14531 = vst [vmem:[#allocation173_spill] sm:$0xff] %v10722_v24  ;;  %v14546_v63 = vld [vmem:[#allocation74_spill] sm:$0xff] }
 0x5e2   : > { %14530 = vst [vmem:[#allocation172_spill] sm:$0xff] %v10718_v51  ;;  %v2555_v59 = vsel %vm2350_vm12, %v10718_v51, -inf }
 0x5e3   : > { %v2556_v31 = vmax.f32 %v10722_v24, %v2555_v59  ;;  %2553 = vmax.xlane.f32.xlu0 %v2552_v20 }
 0x5e4   : > { %v1867_v61 = vpop.f32.mrb[148].mxu0  ;;  %3829 = vmatmul.mubr.bf16.gmra.mrb[56].mxu1 %v3533_v41 }
 0x5e5   : > { %v1869_v2 = vpop.f32.mrb[149].mxu0  ;;  %2557 = vmax.xlane.f32.xlu1 %v2556_v31  ;;  %v10731_v53 = vadd.f32 %v10120_v7, %v1867_v61 }
 0x5e6   : > { %v10728_v10 = vadd.f32 %v10068_v27, %v1869_v2  ;;  %v1871_v60 = vpop.f32.mrb[150].mxu0 }
 0x5e7   : > { %14533 = vst [vmem:[#allocation175_spill] sm:$0xff] %v10731_v53  ;;  %v1873_v33 = vpop.f32.mrb[151].mxu0  ;;  %v10740_v20 = vadd.f32 %v10167_v14, %v1871_v60 }
 0x5e8   : > { %14532 = vst [vmem:[#allocation174_spill] sm:$0xff] %v10728_v10  ;;  %v2559_v22 = vsel %vm2350_vm12, %v10728_v10, -inf  ;;  %v10736_v18 = vadd.f32 %v14460_v44, %v1873_v33 }
 0x5e9   : > { %v2560_v45 = vmax.f32 %v10731_v53, %v2559_v22  ;;  %14535 = vst [vmem:[#allocation177_spill] sm:$0xff] %v10740_v20 }
 0x5ea   : > { %14534 = vst [vmem:[#allocation176_spill] sm:$0xff] %v10736_v18  ;;  %v2563_v59 = vsel %vm2350_vm12, %v10736_v18, -inf }
 0x5eb   : > { %v2564_v41 = vmax.f32 %v10740_v20, %v2563_v59  ;;  %2561 = vmax.xlane.f32.xlu0 %v2560_v45 }
 0x5ec   : > { %v1877_v31 = vpop.f32.mrb[152].mxu0 }
 0x5ed   : > { %v1879_v61 = vpop.f32.mrb[153].mxu0  ;;  %2565 = vmax.xlane.f32.xlu1 %v2564_v41  ;;  %v10749_v33 = vadd.f32 %v10214_v32, %v1877_v31 }
 0x5ee   : > { %v10746_v2 = vadd.f32 %v10151_v35, %v1879_v61  ;;  %v1881_v24 = vpop.f32.mrb[154].mxu0 }
 0x5ef   : > { %14537 = vst [vmem:[#allocation179_spill] sm:$0xff] %v10749_v33  ;;  %v1883_v22 = vpop.f32.mrb[155].mxu0  ;;  %v10758_v45 = vadd.f32 %v10254_v43, %v1881_v24 }
 0x5f0   : > { %14536 = vst [vmem:[#allocation178_spill] sm:$0xff] %v10746_v2  ;;  %v2567_v60 = vsel %vm2350_vm12, %v10746_v2, -inf  ;;  %v10754_v53 = vadd.f32 %v10200_v38, %v1883_v22 }
 0x5f1   : > { %v2568_v59 = vmax.f32 %v10749_v33, %v2567_v60  ;;  %14539 = vst [vmem:[#allocation181_spill] sm:$0xff] %v10758_v45 }
 0x5f2   : > { %14538 = vst [vmem:[#allocation180_spill] sm:$0xff] %v10754_v53  ;;  %v2571_v41 = vsel %vm2350_vm12, %v10754_v53, -inf  ;;  %v14542_v53 = vld [vmem:[#allocation126_spill] sm:$0xff] }
 0x5f3   : > { %v2572_v61 = vmax.f32 %v10758_v45, %v2571_v41  ;;  %2569 = vmax.xlane.f32.xlu0 %v2568_v59  ;;  %v14543_v41 = vld [vmem:[#allocation101_spill] sm:$0xff] }
 0x5f4   : > { %v1887_v31 = vpop.f32.mrb[156].mxu0 }
 0x5f5   : > { %v1889_v20 = vpop.f32.mrb[157].mxu0  ;;  %2573 = vmax.xlane.f32.xlu1 %v2572_v61  ;;  %v2386_v18 = vpop.xlane.xlu0 %2385  ;;  %v10767_v10 = vadd.f32 %v10292_v13, %v1887_v31 }
 0x5f6   : > { %v10764_v2 = vadd.f32 %v10241_v58, %v1889_v20  ;;  %v1891_v22 = vpop.f32.mrb[158].mxu0  ;;  %v2703_v51 = vsub.f32 %v14542_v53, %v2386_v18  ;;  %v2704_v59 = vsub.f32 %v14543_v41, %v2386_v18 }
 0x5f7   : > { %14541 = vst [vmem:[#allocation183_spill] sm:$0xff] %v10767_v10  ;;  %v1893_v60 = vpop.f32.mrb[159].mxu0  ;;  %v2390_v24 = vpop.xlane.xlu1 %2389  ;;  %v10778_v20 = vadd.f32 %v14473_v49, %v1891_v22 }
 0x5f8   : > { %14540 = vst [vmem:[#allocation182_spill] sm:$0xff] %v10764_v2  ;;  %v2575_v33 = vsel %vm2350_vm12, %v10764_v2, -inf  ;;  %v10774_v45 = vadd.f32 %v14471_v54, %v1893_v60  ;;  %v2705_v31 = vsub.f32 %v14546_v63, %v2390_v24  ;;  %v2706_v42 = vsub.f32 %v14547_v36, %v2390_v24  ;;  %v14549_v24 = vld [vmem:[#allocation118_spill] sm:$0xff] }
 0x5f9   : > { %v2576_v61 = vmax.f32 %v10767_v10, %v2575_v33  ;;  %14545 = vst [vmem:[#allocation101_spill] sm:$0xff] %v10778_v20  ;;  %v2394_v6 = vpop.xlane.xlu0 %2393  ;;  %v2887_v60 = vmul.f32 1.442695, %v2703_v51  ;;  %v2889_v16 = vmul.f32 1.442695, %v2704_v59  ;;  %v14552_v59 = vld [vmem:[#allocation100_spill] sm:$0xff] }
 0x5fa   : > { %14544 = vst [vmem:[#allocation126_spill] sm:$0xff] %v10774_v45  ;;  %v2579_v2 = vsel %vm2350_vm12, %v10774_v45, -inf  ;;  %v2891_v29 = vmul.f32 1.442695, %v2705_v31  ;;  %v2893_v18 = vmul.f32 1.442695, %v2706_v42  ;;  %v2708_v10 = vsub.f32 %v14549_v24, %v2394_v6 }
 0x5fb   : > { %v2580_v53 = vmax.f32 %v10778_v20, %v2579_v2  ;;  %2577 = vmax.xlane.f32.xlu0 %v2576_v61  ;;  %v14551_v2 = vld [vmem:[#allocation73_spill] sm:$0xff]  ;;  %v14555_v24 = vld [vmem:[#allocation79_spill] sm:$0xff] }
 0x5fc   : > { %v1897_v41 = vpop.f32.mrb[160].mxu0  ;;  %7626 = vpow2.f32 %v2891_v29  ;;  %v2897_v20 = vmul.f32 1.442695, %v2708_v10 }
 0x5fd   : > { %v1899_v33 = vpop.f32.mrb[161].mxu0  ;;  %2581 = vmax.xlane.f32.xlu1 %v2580_v53  ;;  %v2398_v22 = vpop.xlane.xlu0 %2397  ;;  %7628 = vpow2.f32 %v2893_v18  ;;  %v10790_v45 = vadd.f32 %v10329_v52, %v1897_v41  ;;  %v14585_v52 = vld [vmem:[#allocation107_spill] sm:$0xff] }
 0x5fe   : > { %v10786_v63 = vadd.f32 %v10281_v11, %v1899_v33  ;;  %v1901_v36 = vpop.f32.mrb[162].mxu0  ;;  %v2710_v42 = vsub.f32 %v14551_v2, %v2398_v22  ;;  %7630 = vpow2.f32 %v2887_v60  ;;  %v2709_v31 = vsub.f32 %v14552_v59, %v2398_v22 }
 0x5ff   : > { %14550 = vst [vmem:[#allocation109_spill] sm:$0xff] %v10790_v45  ;;  %v1903_v61 = vpop.f32.mrb[163].mxu0  ;;  %7632 = vpow2.f32 %v2889_v16  ;;  %v10801_v33 = vadd.f32 %v14483_v8, %v1901_v36  ;;  %v2707_v2 = vsub.f32 %v14555_v24, %v2394_v6  ;;  %v14557_v24 = vld [vmem:[#allocation91_spill] sm:$0xff] }
 0x600   : > { %14548 = vst [vmem:[#allocation74_spill] sm:$0xff] %v10786_v63  ;;  %v2583_v51 = vsel %vm2350_vm12, %v10786_v63, -inf  ;;  %v10797_v29 = vadd.f32 %v14481_v62, %v1903_v61  ;;  %v2901_v18 = vmul.f32 1.442695, %v2710_v42  ;;  %v10806_v63 = vpop.xlane.xlu1 %2413  ;;  %v2899_v61 = vmul.f32 1.442695, %v2709_v31 }
 0x601   : > { %v2584_v53 = vmax.f32 %v10790_v45, %v2583_v51  ;;  %14554 = vst [vmem:[#allocation73_spill] sm:$0xff] %v10801_v33  ;;  %v2402_v41 = vpop.xlane.xlu0 %2401  ;;  %v2895_v36 = vmul.f32 1.442695, %v2707_v2  ;;  %v14559_v45 = vld [vmem:[#allocation116_spill] sm:$0xff]  ;;  %v14560_v2 = vld [vmem:[#allocation78_spill] sm:$0xff] }
 0x602   : > { %14553 = vst [vmem:[#allocation118_spill] sm:$0xff] %v10797_v29  ;;  %v2587_v60 = vsel %vm2350_vm12, %v10797_v29, -inf  ;;  %7634 = vpow2.f32 %v2901_v18  ;;  %v2712_v29 = vsub.f32 %v14557_v24, %v2402_v41 }
 0x603   : > { %v2588_v22 = vmax.f32 %v10801_v33, %v2587_v60  ;;  %2585 = vmax.xlane.f32.xlu0 %v2584_v53  ;;  %7636 = vpow2.f32 %v2897_v20 }
 0x604   : > { %v1907_v16 = vpop.f32.mrb[164].mxu0  ;;  %7638 = vpow2.f32 %v2899_v61  ;;  %v10827_v24 = vpop.xlane.xlu1 %2421  ;;  %v2905_v25 = vmul.f32 1.442695, %v2712_v29 }
 0x605   : > { %v1909_v51 = vpop.f32.mrb[165].mxu0  ;;  %2589 = vmax.xlane.f32.xlu1 %v2588_v22  ;;  %v2406_v42 = vpop.xlane.xlu0 %2405  ;;  %v10814_v10 = vadd.f32 %v10359_v5, %v1907_v16  ;;  %7640 = vpow2.f32 %v2895_v36  ;;  %v14572_v5 = vld [vmem:[#allocation90_spill] sm:$0xff]  ;;  %v2721_v11 = vsub.f32 %v14585_v52, %v10827_v24  ;;  %v14588_v52 = vld [vmem:[#allocation72_spill] sm:$0xff] }
 0x606   : > { %v10810_v59 = vadd.f32 %v10316_v40, %v1909_v51  ;;  %v1911_v6 = vpop.f32.mrb[166].mxu0  ;;  %v2714_v60 = vsub.f32 %v14559_v45, %v2406_v42  ;;  %v10817_v31 = vpop.eup %7626  ;;  %v2713_v22 = vsub.f32 %v14560_v2, %v2406_v42  ;;  %v14561_v51 = vld [vmem:[#allocation11_spill] sm:$0xff]  ;;  %v14563_v45 = vld [vmem:[#allocation124_spill] sm:$0xff] }
 0x607   : > { %14558 = vst [vmem:[#allocation79_spill] sm:$0xff] %v10814_v10  ;;  %v1913_v53 = vpop.f32.mrb[167].mxu0  ;;  %v10825_v20 = vpop.eup %7628  ;;  %v10831_v19 = vadd.f32 %v14563_v45, %v1911_v6  ;;  %v14566_v2 = vld [vmem:[#allocation67_spill] sm:$0xff] }
 0x608   : > { %14556 = vst [vmem:[#allocation100_spill] sm:$0xff] %v10810_v59  ;;  %v2591_v18 = vsel %vm2350_vm12, %v10810_v59, -inf  ;;  %v10823_v33 = vadd.f32 %v14561_v51, %v1913_v53  ;;  %v2909_v23 = vmul.f32 1.442695, %v2714_v60  ;;  %v10833_v61 = vpop.eup %7630  ;;  %v14565_v59 = vld [vmem:[#allocation115_spill] sm:$0xff]  ;;  %v2718_v34 = vsub.f32 %v14566_v2, %v10806_v63 }
 0x609   : > { %v2592_v16 = vmax.f32 %v10814_v10, %v2591_v18  ;;  %14564 = vst [vmem:[#allocation116_spill] sm:$0xff] %v10831_v19  ;;  %v2410_v57 = vpop.xlane.xlu0 %2409  ;;  %v2711_v15 = vsub.f32 %v14565_v59, %v2402_v41  ;;  %v10838_v53 = vpop.eup %7632  ;;  %v14567_v18 = vld [vmem:[#allocation71_spill] sm:$0xff]  ;;  %v2907_v10 = vmul.f32 1.442695, %v2713_v22  ;;  %v3535_v41 = vpack.c.bf16 %v10817_v31, %v10833_v61 }
 0x60a   : > { %14562 = vst [vmem:[#allocation91_spill] sm:$0xff] %v10823_v33  ;;  %v2595_v42 = vsel %vm2350_vm12, %v10823_v33, -inf  ;;  %v2716_v6 = vsub.f32 %v14567_v18, %v2410_v57  ;;  %v3536_v36 = vpack.c.bf16 %v10825_v20, %v10838_v53  ;;  %7642 = vpow2.f32 %v2909_v23  ;;  %v14570_v23 = vld [vmem:[#allocation128_spill] sm:$0xff] }
 0x60b   : > { %v2596_v60 = vmax.f32 %v10831_v19, %v2595_v42  ;;  %2593 = vmax.xlane.f32.xlu0 %v2592_v16  ;;  %v2903_v29 = vmul.f32 1.442695, %v2711_v15  ;;  %v14568_v42 = vld [vmem:[#allocation111_spill] sm:$0xff]  ;;  %v2917_v18 = vmul.f32 1.442695, %v2718_v34  ;;  %7644 = vpow2.f32 %v2905_v25  ;;  %v10856_v19 = vpop.xlane.xlu1 %2429 }
 0x60c   : > { %v1917_v59 = vpop.f32.mrb[168].mxu0  ;;  %v2913_v33 = vmul.f32 1.442695, %v2716_v6  ;;  %6832 = vmatprep.mubr.msk.bf16.mxu1 %vm2350_vm12, %v3536_v36  ;;  %v10854_v16 = vpop.eup %7634  ;;  %7646 = vpow2.f32 %v2907_v10  ;;  %v2715_v15 = vsub.f32 %v14572_v5, %v2410_v57  ;;  %v14573_v34 = vld [vmem:[#allocation83_spill] sm:$0xff] }
 0x60d   : > { %v1919_v45 = vpop.f32.mrb[169].mxu0  ;;  %2597 = vmax.xlane.f32.xlu1 %v2596_v60  ;;  %v10848_v51 = vpop.xlane.xlu0 %2417  ;;  %3837 = vmatmul.mubr.bf16.gmra.mrb[60].mxu1 %v3535_v41  ;;  %v10859_v6 = vadd.f32 %v14570_v23, %v1917_v59  ;;  %v14574_v59 = vld [vmem:[#allocation92_spill] sm:$0xff] }
 0x60e   : > { %v10852_v2 = vadd.f32 %v14568_v42, %v1919_v45  ;;  %v1921_v22 = vpop.f32.mrb[170].mxu0  ;;  %v10864_v45 = vpop.eup %7636  ;;  %7648 = vpow2.f32 %v2913_v33  ;;  %v2720_v25 = vsub.f32 %v14573_v34, %v10848_v51  ;;  %v2717_v10 = vsub.f32 %v14574_v59, %v10806_v63  ;;  %v14576_v33 = vld [vmem:[#allocation85_spill] sm:$0xff] }
 0x60f   : > { %14571 = vst [vmem:[#allocation115_spill] sm:$0xff] %v10859_v6  ;;  %v1923_v60 = vpop.f32.mrb[171].mxu0  ;;  %v10871_v41 = vpop.eup %7638  ;;  %7650 = vpow2.f32 %v2903_v29  ;;  %v3538_v57 = vpack.c.bf16 %v10854_v16, %v10864_v45  ;;  %v10883_v34 = vadd.f32 %v9806_v39, %v1921_v22 }
 0x610   : > { %14569 = vst [vmem:[#allocation78_spill] sm:$0xff] %v10852_v2  ;;  %v2599_v36 = vsel %vm2350_vm12, %v10852_v2, -inf  ;;  %v10876_v5 = vadd.f32 %v9799_v55, %v1923_v60  ;;  %7652 = vpow2.f32 %v2917_v18  ;;  %v2911_v2 = vmul.f32 1.442695, %v2715_v15  ;;  %v10890_v29 = vpop.xlane.xlu1 %2437 }
 0x611   : > { %v2600_v42 = vmax.f32 %v10859_v6, %v2599_v36  ;;  %v10869_v40 = vpop.xlane.xlu0 %2425  ;;  %v2722_v36 = vsub.f32 %v14576_v33, %v10827_v24  ;;  %14577 = vst [vmem:[#allocation71_spill] sm:$0xff] %v10883_v34  ;;  %v10885_v6 = vpop.eup %7640  ;;  %6833 = vmatprep.mubr.msk.bf16.mxu1 %vm2350_vm12, %v3538_v57  ;;  %v2921_v60 = vmul.f32 1.442695, %v2720_v25  ;;  %v2915_v39 = vmul.f32 1.442695, %v2717_v10  ;;  %v14581_v25 = vld [vmem:[#allocation112_spill] sm:$0xff] }
 0x612   : > { %14575 = vst [vmem:[#allocation67_spill] sm:$0xff] %v10876_v5  ;;  %v2603_v63 = vsel %vm2350_vm12, %v10876_v5, -inf  ;;  %v3537_v59 = vpack.c.bf16 %v10871_v41, %v10885_v6  ;;  %v14579_v5 = vld [vmem:[#allocation98_spill] sm:$0xff]  ;;  %7654 = vpow2.f32 %v2911_v2  ;;  %v2725_v24 = vsub.f32 %v14588_v52, %v10856_v19 }
 0x613   : > { %2601 = vmax.xlane.f32.xlu0 %v2600_v42  ;;  %v2604_v18 = vmax.f32 %v10883_v34, %v2603_v63  ;;  %v2925_v15 = vmul.f32 1.442695, %v2722_v36  ;;  %v2719_v63 = vsub.f32 %v14581_v25, %v10848_v51  ;;  %v14582_v34 = vld [vmem:[#allocation97_spill] sm:$0xff]  ;;  %7656 = vpow2.f32 %v2921_v60  ;;  %v14586_v36 = vld [vmem:[#allocation103_spill] sm:$0xff]  ;;  %v14589_v60 = vld [vmem:[#allocation108_spill] sm:$0xff] }
 0x614   : > { %v1927_v55 = vpop.f32.mrb[172].mxu0  ;;  %v10897_v33 = vpop.eup %7642  ;;  %7658 = vpow2.f32 %v2915_v39 }
 0x615   : > { %v1929_v22 = vpop.f32.mrb[173].mxu0  ;;  %v10895_v42 = vpop.xlane.xlu0 %2433  ;;  %14578 = vst [vmem:[#allocation90_spill] sm:$0xff] %v10897_v33  ;;  %3845 = vmatmul.mubr.bf16.gmra.mrb[64].mxu1 %v3537_v59  ;;  %2605 = vmax.xlane.f32.xlu1 %v2604_v18  ;;  %v10905_v8 = vadd.f32 %v14582_v34, %v1927_v55  ;;  %7660 = vpow2.f32 %v2925_v15 }
 0x616   : > { %v10900_v23 = vadd.f32 %v14579_v5, %v1929_v22  ;;  %v1931_v57 = vpop.f32.mrb[174].mxu0  ;;  %v10907_v62 = vpop.eup %7644  ;;  %v2724_v5 = vsub.f32 %v14586_v36, %v10869_v40  ;;  %v2726_v22 = vsub.f32 %v14589_v60, %v10856_v19  ;;  %v2923_v60 = vmul.f32 1.442695, %v2721_v11 }
 0x617   : > { %14583 = vst [vmem:[#allocation92_spill] sm:$0xff] %v10905_v8  ;;  %v1933_v10 = vpop.f32.mrb[175].mxu0  ;;  %14584 = vst [vmem:[#allocation85_spill] sm:$0xff] %v10907_v62  ;;  %v10915_v2 = vpop.eup %7646  ;;  %v3540_v55 = vpack.c.bf16 %v10897_v33, %v10907_v62  ;;  %v10930_v39 = vadd.f32 %v9853_v1, %v1931_v57  ;;  %v14591_v62 = vld [vmem:[#allocation84_spill] sm:$0xff] }
 0x618   : > { %14580 = vst [vmem:[#allocation83_spill] sm:$0xff] %v10900_v23  ;;  %v2607_v18 = vsel %vm2350_vm12, %v10900_v23, -inf  ;;  %v10919_v34 = vadd.f32 %v9843_v4, %v1933_v10  ;;  %v10923_v59 = vpop.eup %7648  ;;  %v2446_v25 = vpop.xlane.xlu1 %2445  ;;  %v2919_v4 = vmul.f32 1.442695, %v2719_v63  ;;  %v2929_v23 = vmul.f32 1.442695, %v2724_v5 }
 0x619   : > { %v2608_v51 = vmax.f32 %v10905_v8, %v2607_v18  ;;  %14590 = vst [vmem:[#allocation112_spill] sm:$0xff] %v10930_v39  ;;  %v10932_v36 = vpop.eup %7650  ;;  %6834 = vmatprep.mubr.msk.bf16.mxu1 %vm2350_vm12, %v3540_v55  ;;  %v10937_v18 = vpop.xlane.xlu0 %2441  ;;  %v2931_v8 = vmul.f32 1.442695, %v2725_v24  ;;  %v2933_v55 = vmul.f32 1.442695, %v2726_v22 }
 0x61a   : > { %14587 = vst [vmem:[#allocation98_spill] sm:$0xff] %v10919_v34  ;;  %v2611_v10 = vsel %vm2350_vm12, %v10919_v34, -inf  ;;  %v10939_v52 = vpop.eup %7652  ;;  %v3539_v1 = vpack.c.bf16 %v10915_v2, %v10932_v36  ;;  %7662 = vpow2.f32 %v2919_v4 }
 0x61b   : > { %2609 = vmax.xlane.f32.xlu0 %v2608_v51  ;;  %v2612_v19 = vmax.f32 %v10930_v39, %v2611_v10  ;;  %v3542_v63 = vpack.c.bf16 %v10939_v52, %v10923_v59  ;;  %v2729_v51 = vsub.f32 %v14591_v62, %v10890_v29  ;;  %v14593_v10 = vld [vmem:[#allocation131_spill] sm:$0xff]  ;;  %7664 = vpow2.f32 %v2929_v23 }
 0x61c   : > { %v1937_v15 = vpop.f32.mrb[176].mxu0  ;;  %v2723_v39 = vsub.f32 %v14593_v10, %v10869_v40  ;;  %v10960_v22 = vpop.xlane.xlu1 %2453  ;;  %7666 = vpow2.f32 %v2923_v60 }
 0x61d   : > { %v1939_v57 = vpop.f32.mrb[177].mxu0  ;;  %3853 = vmatmul.mubr.bf16.gmra.mrb[68].mxu1 %v3539_v1  ;;  %2613 = vmax.xlane.f32.xlu1 %v2612_v19  ;;  %v10955_v11 = vadd.f32 %v9859_v47, %v1937_v15  ;;  %v10969_v40 = vpop.eup %7654  ;;  %v14598_v47 = vld [vmem:[#allocation123_spill] sm:$0xff]  ;;  %7668 = vpow2.f32 %v2933_v55 }
 0x61e   : > { %v1941_v34 = vpop.f32.mrb[178].mxu0  ;;  %v10949_v33 = vadd.f32 %v9856_v0, %v1939_v57  ;;  %6835 = vmatprep.mubr.msk.bf16.mxu1 %vm2350_vm12, %v3542_v63  ;;  %v14596_v0 = vld [vmem:[#allocation130_spill] sm:$0xff]  ;;  %v2730_v15 = vsub.f32 %v14598_v47, %v10890_v29  ;;  %v10974_v1 = vpop.xlane.xlu0 %2449  ;;  %v14599_v63 = vld [vmem:[#allocation104_spill] sm:$0xff]  ;;  %7670 = vpow2.f32 %v2931_v8  ;;  %v2939_v47 = vmul.f32 1.442695, %v2729_v51 }
 0x61f   : > { %v1943_v5 = vpop.f32.mrb[179].mxu0  ;;  %14594 = vst [vmem:[#allocation107_spill] sm:$0xff] %v10955_v11  ;;  %v2728_v62 = vsub.f32 %v14596_v0, %v10895_v42  ;;  %v10967_v19 = vadd.f32 %v9890_v46, %v1941_v34  ;;  %v10978_v57 = vpop.eup %7656  ;;  %v14600_v46 = vld [vmem:[#allocation129_spill] sm:$0xff]  ;;  %v2927_v0 = vmul.f32 1.442695, %v2723_v39  ;;  %v14605_v51 = vld [vmem:[#allocation96_spill] sm:$0xff] }
 0x620   : > { %14592 = vst [vmem:[#allocation97_spill] sm:$0xff] %v10949_v33  ;;  %v10958_v24 = vadd.f32 %v9897_v3, %v1943_v5  ;;  %v2615_v4 = vsel %vm2350_vm12, %v10949_v33, -inf  ;;  %v2733_v5 = vsub.f32 %v14599_v63, %v2446_v25  ;;  %v2734_v34 = vsub.f32 %v14600_v46, %v2446_v25  ;;  %v10983_v60 = vpop.eup %7658  ;;  %v14603_v25 = vld [vmem:[#allocation119_spill] sm:$0xff] }
 0x621   : > { %14597 = vst [vmem:[#allocation72_spill] sm:$0xff] %v10967_v19  ;;  %v2616_v3 = vmax.f32 %v10955_v11, %v2615_v4  ;;  %14601 = vst [vmem:[#allocation108_spill] sm:$0xff] %v10983_v60  ;;  %v10985_v4 = vpop.eup %7660  ;;  %v2937_v33 = vmul.f32 1.442695, %v2728_v62  ;;  %v2941_v63 = vmul.f32 1.442695, %v2730_v15  ;;  %v2737_v46 = vsub.f32 %v14603_v25, %v10960_v22  ;;  %v2462_v11 = vpop.xlane.xlu1 %2461 }
 0x622   : > { %14595 = vst [vmem:[#allocation103_spill] sm:$0xff] %v10958_v24  ;;  %v2619_v23 = vsel %vm2350_vm12, %v10958_v24, -inf  ;;  %14602 = vst [vmem:[#allocation84_spill] sm:$0xff] %v10985_v4  ;;  %v3541_v24 = vpack.c.bf16 %v10983_v60, %v10969_v40  ;;  %v2949_v8 = vmul.f32 1.442695, %v2734_v34  ;;  %v2738_v62 = vsub.f32 %v14605_v51, %v10960_v22  ;;  %v14607_v25 = vld [vmem:[#allocation134_spill] sm:$0xff] }
 0x623   : > { %v2620_v10 = vmax.f32 %v10967_v19, %v2619_v23  ;;  %2617 = vmax.xlane.f32.xlu0 %v2616_v3  ;;  %v3544_v23 = vpack.c.bf16 %v10985_v4, %v10978_v57  ;;  %v2947_v19 = vmul.f32 1.442695, %v2733_v5  ;;  %7672 = vpow2.f32 %v2927_v0  ;;  %v11003_v4 = vpop.xlane.xlu0 %2457 }
 0x624   : > { %v1947_v29 = vpop.f32.mrb[180].mxu0  ;;  %v2727_v60 = vsub.f32 %v14607_v25, %v10895_v42  ;;  %7674 = vpow2.f32 %v2937_v33  ;;  %v11017_v42 = vpop.eup %7662  ;;  %v2955_v0 = vmul.f32 1.442695, %v2737_v46 }
 0x625   : > { %v1949_v55 = vpop.f32.mrb[181].mxu0  ;;  %2621 = vmax.xlane.f32.xlu1 %v2620_v10  ;;  %3861 = vmatmul.mubr.bf16.gmra.mrb[72].mxu1 %v3541_v24  ;;  %v10999_v10 = vadd.f32 %v9912_v30, %v1947_v29  ;;  %v14609_v24 = vld [vmem:[#allocation127_spill] sm:$0xff]  ;;  %7676 = vpow2.f32 %v2939_v47  ;;  %v14613_v47 = vld [vmem:[#allocation136_spill] sm:$0xff] }
 0x626   : > { %v10994_v39 = vadd.f32 %v9906_v17, %v1949_v55  ;;  %v1951_v3 = vpop.f32.mrb[182].mxu0  ;;  %6836 = vmatprep.mubr.msk.bf16.mxu1 %vm2350_vm12, %v3544_v23  ;;  %v2732_v30 = vsub.f32 %v14609_v24, %v10937_v18  ;;  %v11021_v55 = vpop.eup %7664  ;;  %7678 = vpow2.f32 %v2941_v63  ;;  %v14612_v23 = vld [vmem:[#allocation132_spill] sm:$0xff]  ;;  %v2731_v46 = vsub.f32 %v14613_v47, %v10937_v18  ;;  %v14616_v47 = vld [vmem:[#allocation135_spill] sm:$0xff] }
 0x627   : > { %14606 = vst [vmem:[#allocation130_spill] sm:$0xff] %v10999_v10  ;;  %v1953_v15 = vpop.f32.mrb[183].mxu0  ;;  %v11015_v34 = vadd.f32 %v9947_v50, %v1951_v3  ;;  %v2742_v51 = vsub.f32 %v14612_v23, %v2462_v11  ;;  %v11026_v50 = vpop.eup %7666  ;;  %7680 = vpow2.f32 %v2947_v19  ;;  %v2935_v3 = vmul.f32 1.442695, %v2727_v60 }
 0x628   : > { %14604 = vst [vmem:[#allocation131_spill] sm:$0xff] %v10994_v39  ;;  %v2623_v17 = vsel %vm2350_vm12, %v10994_v39, -inf  ;;  %v11009_v5 = vadd.f32 %v9941_v26, %v1953_v15  ;;  %v14611_v26 = vld [vmem:[#allocation133_spill] sm:$0xff]  ;;  %v2470_v15 = vpop.xlane.xlu1 %2469  ;;  %v11030_v24 = vpop.eup %7668  ;;  %7682 = vpow2.f32 %v2949_v8  ;;  %v2957_v63 = vmul.f32 1.442695, %v2738_v62 }
 0x629   : > { %v2624_v22 = vmax.f32 %v10999_v10, %v2623_v17  ;;  %14610 = vst [vmem:[#allocation104_spill] sm:$0xff] %v11015_v34  ;;  %v2741_v33 = vsub.f32 %v14611_v26, %v2462_v11  ;;  %v3543_v11 = vpack.c.bf16 %v11026_v50, %v11017_v42  ;;  %7684 = vpow2.f32 %v2955_v0  ;;  %v11035_v23 = vpop.xlane.xlu0 %2465  ;;  %v11042_v8 = vpop.eup %7670  ;;  %v14618_v39 = vld [vmem:[#allocation137_spill] sm:$0xff] }
 0x62a   : > { %14608 = vst [vmem:[#allocation123_spill] sm:$0xff] %v11009_v5  ;;  %v2627_v29 = vsel %vm2350_vm12, %v11009_v5, -inf  ;;  %v2945_v5 = vmul.f32 1.442695, %v2732_v30  ;;  %v3546_v19 = vpack.c.bf16 %v11030_v24, %v11021_v55  ;;  %v2965_v30 = vmul.f32 1.442695, %v2742_v51 }
 0x62b   : > { %v2628_v25 = vmax.f32 %v11015_v34, %v2627_v29  ;;  %2625 = vmax.xlane.f32.xlu0 %v2624_v22  ;;  %v14614_v22 = vld [vmem:[#allocation138_spill] sm:$0xff]  ;;  %v2963_v62 = vmul.f32 1.442695, %v2741_v33  ;;  %v2736_v34 = vsub.f32 %v14616_v47, %v10974_v1  ;;  %7686 = vpow2.f32 %v2935_v3  ;;  %v14619_v33 = vld [vmem:[#allocation140_spill] sm:$0xff] }
 0x62c   : > { %v1957_v17 = vpop.f32.mrb[184].mxu0  ;;  %v2745_v29 = vsub.f32 %v14614_v22, %v2470_v15  ;;  %v2943_v22 = vmul.f32 1.442695, %v2731_v46  ;;  %v2746_v10 = vsub.f32 %v14618_v39, %v2470_v15  ;;  %7688 = vpow2.f32 %v2945_v5  ;;  %v14621_v39 = vld [vmem:[#allocation142_spill] sm:$0xff] }
 0x62d   : > { %v1959_v26 = vpop.f32.mrb[185].mxu0  ;;  %2629 = vmax.xlane.f32.xlu1 %v2628_v25  ;;  %3869 = vmatmul.mubr.bf16.gmra.mrb[76].mxu1 %v3543_v11  ;;  %v11047_v0 = vadd.f32 %v14458_v9, %v1957_v17  ;;  %v2735_v51 = vsub.f32 %v14619_v33, %v10974_v1  ;;  %v11059_v17 = vpop.eup %7672  ;;  %7690 = vpow2.f32 %v2957_v63  ;;  %v2739_v15 = vsub.f32 %v14621_v39, %v11003_v4 }
 0x62e   : > { %v11040_v18 = vadd.f32 %v9953_v12, %v1959_v26  ;;  %v1961_v60 = vpop.f32.mrb[186].mxu0  ;;  %6837 = vmatprep.mubr.msk.bf16.mxu1 %vm2350_vm12, %v3546_v19  ;;  %v2478_v26 = vpop.xlane.xlu1 %2477  ;;  %v2971_v3 = vmul.f32 1.442695, %v2745_v29  ;;  %7692 = vpow2.f32 %v2963_v62  ;;  %v2953_v1 = vmul.f32 1.442695, %v2736_v34  ;;  %v14623_v19 = vld [vmem:[#allocation139_spill] sm:$0xff] }
 0x62f   : > { %14617 = vst [vmem:[#allocation119_spill] sm:$0xff] %v11047_v0  ;;  %v1963_v25 = vpop.f32.mrb[187].mxu0  ;;  %v11064_v46 = vadd.f32 %v10075_v37, %v1961_v60  ;;  %v11066_v5 = vpop.eup %7674  ;;  %v2740_v47 = vsub.f32 %v14623_v19, %v11003_v4  ;;  %7694 = vpow2.f32 %v2965_v30  ;;  %v2973_v63 = vmul.f32 1.442695, %v2746_v10  ;;  %v14624_v29 = vld [vmem:[#allocation144_spill] sm:$0xff]  ;;  %v14625_v4 = vld [vmem:[#allocation143_spill] sm:$0xff] }
 0x630   : > { %14615 = vst [vmem:[#allocation129_spill] sm:$0xff] %v11040_v18  ;;  %v2631_v12 = vsel %vm2350_vm12, %v11040_v18, -inf  ;;  %v11057_v9 = vadd.f32 %v10040_v56, %v1963_v25  ;;  %v11072_v25 = vpop.eup %7676  ;;  %v11075_v33 = vpop.xlane.xlu0 %2473  ;;  %7696 = vpow2.f32 %v2943_v22  ;;  %v2951_v34 = vmul.f32 1.442695, %v2735_v51 }
 0x631   : > { %v2632_v11 = vmax.f32 %v11047_v0, %v2631_v12  ;;  %14622 = vst [vmem:[#allocation134_spill] sm:$0xff] %v11064_v46  ;;  %v2749_v12 = vsub.f32 %v14624_v29, %v2478_v26  ;;  %v11078_v62 = vpop.eup %7678  ;;  %v2750_v39 = vsub.f32 %v14625_v4, %v2478_v26  ;;  %7698 = vpow2.f32 %v2971_v3  ;;  %v14629_v26 = vld [vmem:[#allocation94_spill] sm:$0xff] }
 0x632   : > { %14620 = vst [vmem:[#allocation96_spill] sm:$0xff] %v11057_v9  ;;  %v2635_v56 = vsel %vm2350_vm12, %v11057_v9, -inf  ;;  %v11083_v9 = vpop.eup %7680  ;;  %v2959_v10 = vmul.f32 1.442695, %v2739_v15  ;;  %v3548_v30 = vpack.c.bf16 %v11078_v62, %v11066_v5  ;;  %7700 = vpow2.f32 %v2953_v1 }
 0x633   : > { %2633 = vmax.xlane.f32.xlu0 %v2632_v11  ;;  %v2636_v37 = vmax.f32 %v11064_v46, %v2635_v56  ;;  %v3545_v11 = vpack.c.bf16 %v11042_v8, %v11059_v17  ;;  %14626 = vst [vmem:[#allocation127_spill] sm:$0xff] %v11083_v9  ;;  %v11090_v22 = vpop.eup %7682  ;;  %v2961_v51 = vmul.f32 1.442695, %v2740_v47  ;;  %v2743_v4 = vsub.f32 %v14629_v26, %v11035_v23 }
 0x634   : > { %v1967_v60 = vpop.f32.mrb[188].mxu0  ;;  %14628 = vst [vmem:[#allocation132_spill] sm:$0xff] %v11090_v22  ;;  %v11097_v15 = vpop.eup %7684  ;;  %7702 = vpow2.f32 %v2973_v63  ;;  %v2979_v18 = vmul.f32 1.442695, %v2749_v12  ;;  %v2981_v47 = vmul.f32 1.442695, %v2750_v39 }
 0x635   : > { %v1969_v19 = vpop.f32.mrb[189].mxu0  ;;  %2637 = vmax.xlane.f32.xlu1 %v2636_v37  ;;  %3877 = vmatmul.mubr.bf16.gmra.mrb[80].mxu1 %v3545_v11  ;;  %v11095_v46 = vadd.f32 %v14462_v21, %v1967_v60  ;;  %7704 = vpow2.f32 %v2951_v34  ;;  %v2486_v37 = vpop.xlane.xlu1 %2485  ;;  %v4488_v60 = vld [vmem:[#allocation2 + $0x38] sm:$0xff]  ;;  %v14633_v12 = vld [vmem:[#allocation141_spill] sm:$0xff]  ;;  %v2967_v39 = vmul.f32 1.442695, %v2743_v4 }
 0x636   : > { %v11088_v56 = vadd.f32 %v14456_v28, %v1969_v19  ;;  %v1971_v29 = vpop.f32.mrb[190].mxu0  ;;  %6838 = vmatprep.mubr.msk.bf16.mxu1 %vm2350_vm12, %v3548_v30  ;;  %v4489_v19 = vld [vmem:[#allocation2 + $0x40] sm:$0xff]  ;;  %v11109_v63 = vpop.eup %7686  ;;  %7706 = vpow2.f32 %v2959_v10  ;;  %v2744_v30 = vsub.f32 %v14633_v12, %v11035_v23  ;;  %v14636_v23 = vld [vmem:[#allocation110_spill] sm:$0xff] }
 0x637   : > { %14630 = vst [vmem:[#allocation136_spill] sm:$0xff] %v11095_v46  ;;  %v1973_v3 = vpop.f32.mrb[191].mxu0  ;;  %v11107_v21 = vadd.f32 %v10120_v7, %v1971_v29  ;;  %v11113_v26 = vpop.xlane.xlu0 %2481  ;;  %7708 = vpow2.f32 %v2961_v51  ;;  %v14634_v7 = vld [vmem:[#allocation125_spill] sm:$0xff]  ;;  %v2748_v10 = vsub.f32 %v14636_v23, %v11075_v33  ;;  %v14637_v12 = vld [vmem:[#allocation146_spill] sm:$0xff]  ;;  %v3547_v51 = vpack.c.bf16 %v11072_v25, %v11109_v63 }
 0x638   : > { %14627 = vst [vmem:[#allocation133_spill] sm:$0xff] %v11088_v56  ;;  %v2639_v28 = vsel %vm2350_vm12, %v11088_v56, -inf  ;;  %v11103_v1 = vadd.f32 %v10068_v27, %v1973_v3  ;;  %v11117_v34 = vpop.eup %7688  ;;  %v2747_v29 = vsub.f32 %v14634_v7, %v11075_v33  ;;  %7710 = vpow2.f32 %v2979_v18  ;;  %v14638_v7 = vld [vmem:[#allocation145_spill] sm:$0xff] }
 0x639   : > { %v2640_v11 = vmax.f32 %v11095_v46, %v2639_v28  ;;  %14632 = vst [vmem:[#allocation135_spill] sm:$0xff] %v11107_v21  ;;  %v11122_v28 = vpop.eup %7690  ;;  %v2753_v56 = vsub.f32 %v14637_v12, %v2486_v37  ;;  %7712 = vpow2.f32 %v2981_v47  ;;  %v2754_v18 = vsub.f32 %v14638_v7, %v2486_v37 }
 0x63a   : > { %14631 = vst [vmem:[#allocation138_spill] sm:$0xff] %v11103_v1  ;;  %v2643_v27 = vsel %vm2350_vm12, %v11103_v1, -inf  ;;  %14635 = vst [vmem:[#allocation137_spill] sm:$0xff] %v11122_v28  ;;  %v4492_v1 = vpack.c.bf16 %v4489_v19, %v4488_v60  ;;  %v11127_v0 = vpop.eup %7692  ;;  %v3550_v33 = vpack.c.bf16 %v11090_v22, %v11117_v34  ;;  %7714 = vpow2.f32 %v2967_v39 }
 0x63b   : > { %v2644_v3 = vmax.f32 %v11107_v21, %v2643_v27  ;;  %2641 = vmax.xlane.f32.xlu0 %v2640_v11  ;;  %v11131_v27 = vpop.eup %7694  ;;  %v2969_v11 = vmul.f32 1.442695, %v2744_v30  ;;  %v2975_v47 = vmul.f32 1.442695, %v2747_v29  ;;  %v2977_v30 = vmul.f32 1.442695, %v2748_v10  ;;  %v11147_v21 = vpop.xlane.xlu0 %2489 }
 0x63c   : > { %v1977_v46 = vpop.f32.mrb[192].mxu0  ;;  %7154 = vmatpush3.bf16.msra.mxu0 %v4492_v1  ;;  %v11139_v19 = vpop.eup %7696  ;;  %v2987_v7 = vmul.f32 1.442695, %v2753_v56  ;;  %v14643_v29 = vld [vmem:[#allocation68_spill] sm:$0xff]  ;;  %v3227_v22 = vsel %vm2350_vm12, %v10825_v20, 0.0 }
 0x63d   : > { %v1979_v4 = vpop.f32.mrb[193].mxu0  ;;  %2645 = vmax.xlane.f32.xlu1 %v2644_v3  ;;  %3885 = vmatmul.mubr.bf16.gmra.mrb[84].mxu1 %v3547_v51  ;;  %v11142_v3 = vadd.f32 %v10167_v14, %v1977_v46  ;;  %v11145_v37 = vpop.eup %7698  ;;  %v14642_v14 = vld [vmem:[#allocation147_spill] sm:$0xff]  ;;  %v2752_v51 = vsub.f32 %v14643_v29, %v11113_v26  ;;  %7716 = vpow2.f32 %v2969_v11 }
 0x63e   : > { %v11137_v23 = vadd.f32 %v14460_v44, %v1979_v4  ;;  %v1981_v60 = vpop.f32.mrb[194].mxu0  ;;  %7155 = vmatprep.subr.bf16.mxu0 %v14168_v48  ;;  %6839 = vmatprep.mubr.msk.bf16.mxu1 %vm2350_vm12, %v3550_v33  ;;  %v11155_v39 = vpop.eup %7700  ;;  %v2751_v46 = vsub.f32 %v14642_v14, %v11113_v26  ;;  %v2989_v33 = vmul.f32 1.442695, %v2754_v18  ;;  %7718 = vpow2.f32 %v2975_v47  ;;  %v14645_v14 = vld [vmem:[#allocation148_spill] sm:$0xff] }
 0x63f   : > { %14640 = vst [vmem:[#allocation142_spill] sm:$0xff] %v11142_v3  ;;  %v1983_v12 = vpop.f32.mrb[195].mxu0  ;;  %v11163_v10 = vadd.f32 %v10214_v32, %v1981_v60  ;;  %v11165_v4 = vpop.eup %7702  ;;  %v2756_v48 = vsub.f32 %v14645_v14, %v11147_v21  ;;  %7720 = vpow2.f32 %v2977_v30  ;;  %v3549_v32 = vpack.c.bf16 %v11083_v9, %v11139_v19  ;;  %v14647_v30 = vld [vmem:[#allocation150_spill] sm:$0xff] }
 0x640   : > { %14639 = vst [vmem:[#allocation140_spill] sm:$0xff] %v11137_v23  ;;  %v2647_v44 = vsel %vm2350_vm12, %v11137_v23, -inf  ;;  %v11153_v1 = vadd.f32 %v10151_v35, %v1983_v12  ;;  %v2494_v23 = vpop.xlane.xlu1 %2493  ;;  %v11169_v12 = vpop.eup %7704  ;;  %v3552_v11 = vpack.c.bf16 %v11122_v28, %v11155_v39  ;;  %7722 = vpow2.f32 %v2987_v7 }
 0x641   : > { %v2648_v56 = vmax.f32 %v11142_v3, %v2647_v44  ;;  %14644 = vst [vmem:[#allocation144_spill] sm:$0xff] %v11163_v10  ;;  %v11174_v44 = vpop.eup %7706  ;;  %v2983_v47 = vmul.f32 1.442695, %v2751_v46  ;;  %v2985_v29 = vmul.f32 1.442695, %v2752_v51  ;;  %v2498_v3 = vpop.xlane.xlu0 %2497  ;;  %7724 = vpow2.f32 %v2989_v33 }
 0x642   : > { %14641 = vst [vmem:[#allocation139_spill] sm:$0xff] %v11153_v1  ;;  %v2651_v35 = vsel %vm2350_vm12, %v11153_v1, -inf  ;;  %v11180_v60 = vpop.eup %7708  ;;  %v14646_v1 = vld [vmem:[#allocation151_spill] sm:$0xff]  ;;  %v2993_v46 = vmul.f32 1.442695, %v2756_v48 }
 0x643   : > { %v2652_v26 = vmax.f32 %v11163_v10, %v2651_v35  ;;  %2649 = vmax.xlane.f32.xlu0 %v2648_v56  ;;  %v2757_v14 = vsub.f32 %v14646_v1, %v2494_v23  ;;  %v11183_v56 = vpop.eup %7710  ;;  %v2758_v10 = vsub.f32 %v14647_v30, %v2494_v23  ;;  %v3223_v23 = vsel %vm2350_vm12, %v10838_v53, 0.0 }
 0x644   : > { %v1987_v18 = vpop.f32.mrb[196].mxu0  ;;  %v11191_v7 = vpop.eup %7712  ;;  %7726 = vpow2.f32 %v2983_v47 }
 0x645   : > { %v1989_v35 = vpop.f32.mrb[197].mxu0  ;;  %2653 = vmax.xlane.f32.xlu1 %v2652_v26  ;;  %3893 = vmatmul.mubr.bf16.gmra.mrb[88].mxu1 %v3549_v32  ;;  %v11194_v1 = vadd.f32 %v10254_v43, %v1987_v18  ;;  %v11197_v26 = vadd.f32 %v10817_v31, %v3227_v22  ;;  %v11209_v43 = vadd.f32 %v10833_v61, %v3223_v23  ;;  %v11211_v32 = vpop.eup %7714  ;;  %v2995_v31 = vmul.f32 1.442695, %v2757_v14  ;;  %v14653_v22 = vld [vmem:[#allocation117_spill] sm:$0xff] }
 0x646   : > { %v11187_v9 = vadd.f32 %v10200_v38, %v1989_v35  ;;  %v1991_v28 = vpop.f32.mrb[198].mxu0  ;;  %v14650_v38 = vld [vmem:[#allocation86_spill] sm:$0xff]  ;;  %v2502_v35 = vpop.xlane.xlu1 %2501  ;;  %6840 = vmatprep.mubr.msk.bf16.mxu1 %vm2350_vm12, %v3552_v11  ;;  %v2760_v18 = vsub.f32 %v14653_v22, %v2498_v3  ;;  %v2997_v11 = vmul.f32 1.442695, %v2758_v10  ;;  %v3551_v61 = vpack.c.bf16 %v11097_v15, %v11169_v12  ;;  %v14656_v10 = vld [vmem:[#allocation152_spill] sm:$0xff] }
 0x647   : > { %14649 = vst [vmem:[#allocation94_spill] sm:$0xff] %v11194_v1  ;;  %v1993_v51 = vpop.f32.mrb[199].mxu0  ;;  %v2759_v33 = vsub.f32 %v14650_v38, %v2498_v3  ;;  %14652 = vst [vmem:[#allocation125_spill] sm:$0xff] %v11209_v43  ;;  %v11216_v30 = vadd.f32 %v10292_v13, %v1991_v28  ;;  %v2506_v38 = vpop.xlane.xlu0 %2505  ;;  %7728 = vpow2.f32 %v2985_v29  ;;  %v3554_v3 = vpack.c.bf16 %v11131_v27, %v11180_v60 }
 0x648   : > { %14648 = vst [vmem:[#allocation143_spill] sm:$0xff] %v11187_v9  ;;  %v2655_v20 = vsel %vm2350_vm12, %v11187_v9, -inf  ;;  %v11206_v48 = vadd.f32 %v10241_v58, %v1993_v51  ;;  %v14655_v51 = vld [vmem:[#allocation153_spill] sm:$0xff]  ;;  %v11226_v13 = vpop.eup %7716  ;;  %7730 = vpow2.f32 %v2993_v46  ;;  %v2762_v47 = vsub.f32 %v14656_v10, %v2502_v35 }
 0x649   : > { %v2656_v53 = vmax.f32 %v11194_v1, %v2655_v20  ;;  %14654 = vst [vmem:[#allocation110_spill] sm:$0xff] %v11216_v30  ;;  %v2761_v23 = vsub.f32 %v14655_v51, %v2502_v35  ;;  %v2999_v28 = vmul.f32 1.442695, %v2759_v33  ;;  %v11231_v29 = vpop.eup %7718  ;;  %7732 = vpow2.f32 %v2995_v31  ;;  %v14659_v33 = vld [vmem:[#allocation105_spill] sm:$0xff] }
 0x64a   : > { %14651 = vst [vmem:[#allocation141_spill] sm:$0xff] %v11206_v48  ;;  %v2659_v58 = vsel %vm2350_vm12, %v11206_v48, -inf  ;;  %v2510_v20 = vpop.xlane.xlu1 %2509  ;;  %v3235_v48 = vsel %vm2350_vm12, %v10854_v16, 0.0  ;;  %v3001_v51 = vmul.f32 1.442695, %v2760_v18  ;;  %v11237_v46 = vpop.eup %7720  ;;  %7734 = vpow2.f32 %v2997_v11 }
 0x64b   : > { %v2660_v14 = vmax.f32 %v11216_v30, %v2659_v58  ;;  %2657 = vmax.xlane.f32.xlu0 %v2656_v53  ;;  %v14657_v58 = vld [vmem:[#allocation106_spill] sm:$0xff]  ;;  %v11235_v9 = vadd.f32 %v10871_v41, %v3235_v48  ;;  %v2764_v35 = vsub.f32 %v14659_v33, %v2506_v38  ;;  %v11240_v10 = vpop.xlane.xlu0 %2513  ;;  %v3231_v31 = vsel %vm2350_vm12, %v10864_v45, 0.0  ;;  %v11247_v18 = vpop.eup %7722 }
 0x64c   : > { %v1997_v22 = vpop.f32.mrb[200].mxu0  ;;  %v2763_v53 = vsub.f32 %v14657_v58, %v2506_v38  ;;  %v14661_v58 = vld [vmem:[#allocation114_spill] sm:$0xff]  ;;  %v11254_v38 = vadd.f32 %v10885_v6, %v3231_v31  ;;  %v11256_v33 = vpop.eup %7724  ;;  %7736 = vpow2.f32 %v2999_v28  ;;  %v14668_v31 = vld [vmem:[#allocation113_spill] sm:$0xff] }
 0x64d   : > { %v1999_v30 = vpop.f32.mrb[201].mxu0  ;;  %2661 = vmax.xlane.f32.xlu1 %v2660_v14  ;;  %14658 = vst [vmem:[#allocation146_spill] sm:$0xff] %v11235_v9  ;;  %v3003_v14 = vmul.f32 1.442695, %v2761_v23  ;;  %v2765_v41 = vsub.f32 %v14661_v58, %v2510_v20  ;;  %3901 = vmatmul.mubr.bf16.gmra.mrb[92].mxu1 %v3551_v61  ;;  %v11251_v48 = vadd.f32 %v14473_v49, %v1997_v22  ;;  %7738 = vpow2.f32 %v3001_v51  ;;  %v14666_v22 = vld [vmem:[#allocation95_spill] sm:$0xff]  ;;  %v14670_v51 = vld [vmem:[#allocation121_spill] sm:$0xff] }
 0x64e   : > { %v11243_v16 = vadd.f32 %v14471_v54, %v1999_v30  ;;  %v2001_v1 = vpop.f32.mrb[202].mxu0  ;;  %14663 = vst [vmem:[#allocation68_spill] sm:$0xff] %v11254_v38  ;;  %v3005_v54 = vmul.f32 1.442695, %v2762_v47  ;;  %6841 = vmatprep.mubr.msk.bf16.mxu1 %vm2350_vm12, %v3554_v3  ;;  %v14664_v30 = vld [vmem:[#allocation77_spill] sm:$0xff]  ;;  %v2766_v38 = vsub.f32 %v14668_v31, %v2510_v20  ;;  %v14669_v47 = vld [vmem:[#allocation90_spill] sm:$0xff] }
 0x64f   : > { %14662 = vst [vmem:[#allocation147_spill] sm:$0xff] %v11251_v48  ;;  %v2003_v11 = vpop.f32.mrb[203].mxu0  ;;  %v3007_v61 = vmul.f32 1.442695, %v2763_v53  ;;  %v11266_v58 = vadd.f32 %v14666_v22, %v2001_v1  ;;  %v3009_v6 = vmul.f32 1.442695, %v2764_v35  ;;  %7740 = vpow2.f32 %v3003_v14  ;;  %v11276_v1 = vpop.eup %7726 }
 0x650   : > { %14660 = vst [vmem:[#allocation145_spill] sm:$0xff] %v11243_v16  ;;  %v2663_v45 = vsel %vm2350_vm12, %v11243_v16, -inf  ;;  %v11262_v23 = vadd.f32 %v14664_v30, %v2003_v11  ;;  %v2522_v3 = vpop.xlane.xlu0 %2521  ;;  %v3243_v16 = vsel %vm2350_vm12, %v14669_v47, 0.0  ;;  %v3011_v11 = vmul.f32 1.442695, %v2765_v41  ;;  %v14672_v30 = vld [vmem:[#allocation85_spill] sm:$0xff]  ;;  %v2518_v14 = vpop.xlane.xlu1 %2517 }
 0x651   : > { %v2664_v49 = vmax.f32 %v11251_v48, %v2663_v45  ;;  %14667 = vst [vmem:[#allocation151_spill] sm:$0xff] %v11266_v58  ;;  %v2768_v53 = vsub.f32 %v14670_v51, %v11240_v10  ;;  %7742 = vpow2.f32 %v3005_v54  ;;  %v11279_v20 = vadd.f32 %v10915_v2, %v3243_v16  ;;  %v11283_v31 = vpop.eup %7728  ;;  %v14673_v41 = vld [vmem:[#allocation81_spill] sm:$0xff]  ;;  %v14680_v9 = vld [vmem:[#allocation82_spill] sm:$0xff] }
 0x652   : > { %14665 = vst [vmem:[#allocation148_spill] sm:$0xff] %v11262_v23  ;;  %v2667_v28 = vsel %vm2350_vm12, %v11262_v23, -inf  ;;  %v3239_v22 = vsel %vm2350_vm12, %v14672_v30, 0.0  ;;  %7744 = vpow2.f32 %v3007_v61  ;;  %v2772_v47 = vsub.f32 %v14673_v41, %v2522_v3  ;;  %v11291_v51 = vpop.eup %7730  ;;  %v14675_v30 = vld [vmem:[#allocation80_spill] sm:$0xff] }
 0x653   : > { %v2668_v45 = vmax.f32 %v11266_v58, %v2667_v28  ;;  %2665 = vmax.xlane.f32.xlu0 %v2664_v49  ;;  %14671 = vst [vmem:[#allocation150_spill] sm:$0xff] %v11279_v20  ;;  %v3553_v28 = vpack.c.bf16 %v11127_v0, %v11174_v44  ;;  %v11289_v54 = vadd.f32 %v10932_v36, %v3239_v22  ;;  %7746 = vpow2.f32 %v3009_v6  ;;  %v11298_v41 = vpop.eup %7732  ;;  %v14677_v58 = vld [vmem:[#allocation122_spill] sm:$0xff]  ;;  %v14678_v36 = vld [vmem:[#allocation99_spill] sm:$0xff] }
 0x654   : > { %v2007_v35 = vpop.f32.mrb[204].mxu0  ;;  %v3013_v2 = vmul.f32 1.442695, %v2766_v38  ;;  %v3556_v16 = vpack.c.bf16 %v11165_v4, %v11226_v13  ;;  %7748 = vpow2.f32 %v3011_v11  ;;  %v3017_v48 = vmul.f32 1.442695, %v2768_v53  ;;  %v11305_v38 = vpop.eup %7734  ;;  %v14683_v53 = vld [vmem:[#allocation120_spill] sm:$0xff] }
 0x655   : > { %v2009_v49 = vpop.f32.mrb[205].mxu0  ;;  %2669 = vmax.xlane.f32.xlu1 %v2668_v45  ;;  %14674 = vst [vmem:[#allocation86_spill] sm:$0xff] %v11289_v54  ;;  %v2767_v45 = vsub.f32 %v14677_v58, %v11240_v10  ;;  %3909 = vmatmul.mubr.bf16.gmra.mrb[96].mxu1 %v3553_v28  ;;  %v11303_v22 = vadd.f32 %v14678_v36, %v2007_v35  ;;  %v14679_v54 = vld [vmem:[#allocation70_spill] sm:$0xff]  ;;  %v3025_v10 = vmul.f32 1.442695, %v2772_v47  ;;  %v3247_v28 = vsel %vm2350_vm12, %v10923_v59, 0.0 }
 0x656   : > { %v11296_v61 = vadd.f32 %v14675_v30, %v2009_v49  ;;  %v2011_v23 = vpop.f32.mrb[206].mxu0  ;;  %v2770_v20 = vsub.f32 %v14679_v54, %v2518_v14  ;;  %v2771_v49 = vsub.f32 %v14680_v9, %v2522_v3  ;;  %6842 = vmatprep.mubr.msk.bf16.mxu1 %vm2350_vm12, %v3556_v16  ;;  %v14681_v30 = vld [vmem:[#allocation89_spill] sm:$0xff]  ;;  %v11321_v54 = vpop.eup %7736  ;;  %v11327_v36 = vadd.f32 %v10969_v40, %v3247_v28 }
 0x657   : > { %v2013_v6 = vpop.f32.mrb[207].mxu0  ;;  %v11317_v35 = vadd.f32 %v14683_v53, %v2011_v23  ;;  %v14685_v9 = vld [vmem:[#allocation69_spill] sm:$0xff]  ;;  %v3251_v47 = vsel %vm2350_vm12, %v10939_v52, 0.0  ;;  %7750 = vpow2.f32 %v3013_v2  ;;  %v3015_v59 = vmul.f32 1.442695, %v2767_v45 }
 0x658   : > { %14676 = vst [vmem:[#allocation117_spill] sm:$0xff] %v11296_v61  ;;  %v2671_v11 = vsel %vm2350_vm12, %v11296_v61, -inf  ;;  %v11313_v43 = vadd.f32 %v14681_v30, %v2013_v6  ;;  %v2769_v3 = vsub.f32 %v14685_v9, %v2518_v14  ;;  %v11331_v6 = vpop.eup %7738  ;;  %v14686_v23 = vld [vmem:[#allocation149_spill] sm:$0xff]  ;;  %7752 = vpow2.f32 %v3017_v48  ;;  %v14687_v9 = vld [vmem:[#allocation108_spill] sm:$0xff] }
 0x659   : > { %v2672_v58 = vmax.f32 %v11303_v22, %v2671_v11  ;;  %14684 = vst [vmem:[#allocation152_spill] sm:$0xff] %v11317_v35  ;;  %v2755_v11 = vsub.f32 %v14686_v23, %v11147_v21  ;;  %v3023_v14 = vmul.f32 1.442695, %v2771_v49  ;;  %v3331_v40 = vsel %vm2350_vm12, %v11305_v38, 0.0  ;;  %v11341_v52 = vpop.eup %7740 }
 0x65a   : > { %14682 = vst [vmem:[#allocation153_spill] sm:$0xff] %v11313_v43  ;;  %v2675_v16 = vsel %vm2350_vm12, %v11313_v43, -inf  ;;  %v11337_v43 = vadd.f32 %v14687_v9, %v3251_v47  ;;  %v3021_v28 = vmul.f32 1.442695, %v2770_v20  ;;  %7754 = vpow2.f32 %v3025_v10 }
 0x65b   : > { %v2676_v30 = vmax.f32 %v11317_v35, %v2675_v16  ;;  %2673 = vmax.xlane.f32.xlu0 %v2672_v58  ;;  %v3555_v21 = vpack.c.bf16 %v11145_v37, %v11211_v32  ;;  %v11346_v45 = vadd.f32 %v11298_v41, %v3331_v40  ;;  %v11348_v48 = vpop.eup %7742  ;;  %v3019_v49 = vmul.f32 1.442695, %v2769_v3  ;;  %v14688_v16 = vld [vmem:[#allocation11_spill] sm:$0xff] }
 0x65c   : > { %v2017_v53 = vpop.f32.mrb[208].mxu0  ;;  %v3558_v58 = vpack.c.bf16 %v11191_v7, %v11237_v46  ;;  %v3335_v20 = vsel %vm2350_vm12, %v11331_v6, 0.0  ;;  %v11357_v10 = vpop.eup %7744  ;;  %7756 = vpow2.f32 %v3015_v59  ;;  %v3255_v35 = vsel %vm2350_vm12, %v10978_v57, 0.0  ;;  %v14691_v59 = vld [vmem:[#allocation111_spill] sm:$0xff]  ;;  %v14692_v57 = vld [vmem:[#allocation128_spill] sm:$0xff] }
 0x65d   : > { %v2019_v2 = vpop.f32.mrb[209].mxu0  ;;  %2677 = vmax.xlane.f32.xlu1 %v2676_v30  ;;  %3917 = vmatmul.mubr.bf16.gmra.mrb[100].mxu1 %v3555_v21  ;;  %v14690_v30 = vld [vmem:[#allocation124_spill] sm:$0xff]  ;;  %v11363_v3 = vadd.f32 %v11321_v54, %v3335_v20  ;;  %7758 = vpow2.f32 %v3023_v14 }
 0x65e   : > { %v11353_v47 = vadd.f32 %v14688_v16, %v2019_v2  ;;  %v2021_v23 = vpop.f32.mrb[210].mxu0  ;;  %v11360_v9 = vadd.f32 %v14690_v30, %v2017_v53  ;;  %v11367_v2 = vpop.eup %7746  ;;  %6843 = vmatprep.mubr.msk.bf16.mxu1 %vm2350_vm12, %v3558_v58  ;;  %v11376_v53 = vadd.f32 %v11017_v42, %v3255_v35  ;;  %7760 = vpow2.f32 %v3021_v28  ;;  %v14693_v58 = vld [vmem:[#allocation84_spill] sm:$0xff] }
 0x65f   : > { %v2023_v40 = vpop.f32.mrb[211].mxu0  ;;  %v11378_v30 = vpop.eup %7748  ;;  %v11382_v61 = vadd.f32 %v14692_v57, %v2021_v23  ;;  %7762 = vpow2.f32 %v3019_v49  ;;  %v3557_v28 = vpack.c.bf16 %v11183_v56, %v11231_v29  ;;  %v3339_v49 = vsel %vm2350_vm12, %v11348_v48, 0.0  ;;  %v14694_v57 = vld [vmem:[#allocation75_spill] sm:$0xff] }
 0x660   : > { %14689 = vst [vmem:[#allocation106_spill] sm:$0xff] %v11353_v47  ;;  %v2679_v16 = vsel %vm2350_vm12, %v11353_v47, -inf  ;;  %v11373_v21 = vadd.f32 %v14691_v59, %v2023_v40  ;;  %v3259_v47 = vsel %vm2350_vm12, %v14693_v58, 0.0  ;;  %v2991_v40 = vmul.f32 1.442695, %v2755_v11 }
 0x661   : > { %v2680_v20 = vmax.f32 %v11360_v9, %v2679_v16  ;;  %v11390_v42 = vadd.f32 %v11026_v50, %v3259_v47  ;;  %v11392_v35 = vpop.eup %7750  ;;  %v3560_v11 = vpack.c.bf16 %v11256_v33, %v11283_v31  ;;  %v3275_v16 = vsel %vm2350_vm12, %v11078_v62, 0.0 }
 0x662   : > { %v2683_v14 = vsel %vm2350_vm12, %v11373_v21, -inf  ;;  %v11398_v23 = vpop.eup %7752  ;;  %v11405_v50 = vadd.f32 %v11341_v52, %v3339_v49  ;;  %v3343_v47 = vsel %vm2350_vm12, %v11367_v2, 0.0  ;;  %7764 = vpow2.f32 %v2991_v40 }
 0x663   : > { %v2684_v59 = vmax.f32 %v11382_v61, %v2683_v14  ;;  %2681 = vmax.xlane.f32.xlu0 %v2680_v20  ;;  %v11413_v14 = vadd.f32 %v11357_v10, %v3343_v47  ;;  %v3263_v58 = vsel %vm2350_vm12, %v11021_v55, 0.0  ;;  %v3267_v62 = vsel %vm2350_vm12, %v11030_v24, 0.0  ;;  %v14695_v55 = vld [vmem:[#allocation76_spill] sm:$0xff] }
 0x664   : > { %v11409_v20 = vpop.eup %7754  ;;  %v11423_v49 = vadd.f32 %v11059_v17, %v3263_v58  ;;  %v11426_v40 = vadd.f32 %v11042_v8, %v3267_v62  ;;  %v3276_v24 = vadd.f32 %v11072_v25, %v3275_v16  ;;  %v3351_v8 = vsel %vm2350_vm12, %v11398_v23, 0.0 }
 0x665   : > { %2685 = vmax.xlane.f32.xlu1 %v2684_v59  ;;  %3925 = vmatmul.mubr.bf16.gmra.mrb[104].mxu1 %v3557_v28  ;;  %v3279_v59 = vsel %vm2350_vm12, %v11117_v34, 0.0  ;;  %v3347_v28 = vsel %vm2350_vm12, %v11392_v35, 0.0  ;;  %v3359_v17 = vsel %vm2350_vm12, %v11409_v20, 0.0  ;;  %v3271_v34 = vsel %vm2350_vm12, %v11066_v5, 0.0 }
 0x666   : > { %6844 = vmatprep.mubr.msk.bf16.mxu1 %vm2350_vm12, %v3560_v11  ;;  %v11430_v47 = vpop.eup %7756  ;;  %v11435_v11 = vadd.f32 %v11378_v30, %v3347_v28  ;;  %v3280_v62 = vadd.f32 %v11139_v19, %v3279_v59  ;;  %v11454_v28 = vadd.f32 %v11109_v63, %v3271_v34  ;;  %v3562_v5 = vpack.c.bf16 %v11305_v38, %v11291_v51  ;;  %v14699_v34 = vld [vmem:[#allocation87_spill] sm:$0xff] }
 0x667   : > { %3193 = vadd.xlane.f32.xlu0 %v14694_v57  ;;  %v11437_v57 = vpop.eup %7758  ;;  %v11451_v16 = vadd.f32 %v11430_v47, %v3351_v8  ;;  %v3287_v63 = vsel %vm2350_vm12, %v11155_v39, 0.0  ;;  %v14697_v8 = vld [vmem:[#allocation88_spill] sm:$0xff]  ;;  %v3564_v39 = vpack.c.bf16 %v11348_v48, %v11331_v6  ;;  %v3563_v6 = vpack.c.bf16 %v11341_v52, %v11321_v54  ;;  %v14707_v52 = vld [vmem:[#allocation165_spill] sm:$0xff] }
 0x668   : > { %14696 = vst [vmem:[#allocation105_spill] sm:$0xff] %v11435_v11  ;;  %v11445_v58 = vpop.eup %7760  ;;  %v3360_v11 = vadd.f32 %v11437_v57, %v3359_v17  ;;  %v14698_v17 = vld [vmem:[#allocation132_spill] sm:$0xff] }
 0x669   : > { %3197 = vadd.xlane.f32.xlu1 %v14695_v55  ;;  %v11448_v25 = vpop.eup %7762  ;;  %v3559_v55 = vpack.c.bf16 %v11247_v18, %v11276_v1  ;;  %v3355_v19 = vsel %vm2350_vm12, %v11445_v58, 0.0  ;;  %v3283_v38 = vsel %vm2350_vm12, %v14698_v17, 0.0  ;;  %v14701_v17 = vld [vmem:[#allocation155_spill] sm:$0xff] }
 0x66a   : > { %v11464_v59 = vadd.f32 %v11448_v25, %v3355_v19  ;;  %v2526_v19 = vpop.xlane.xlu1 %2525 }
 0x66b   : > { %3277 = vadd.xlane.f32.xlu0 %v3276_v24 }
 0x66c   : > { %v11469_v24 = vpop.eup %7764 }
 0x66d   : > { %3281 = vadd.xlane.f32.xlu1 %v3280_v62  ;;  %3933 = vmatmul.mubr.bf16.gmra.mrb[108].mxu1 %v3559_v55  ;;  %v3288_v62 = vadd.f32 %v11169_v12, %v3287_v63  ;;  %v14700_v55 = vld [vmem:[#allocation127_spill] sm:$0xff]  ;;  %v14703_v63 = vld [vmem:[#allocation137_spill] sm:$0xff] }
 0x66e   : > { %6845 = vmatprep.mubr.msk.bf16.mxu1 %vm2350_vm12, %v3562_v5  ;;  %v3284_v5 = vadd.f32 %v14700_v55, %v3283_v38  ;;  %v14702_v12 = vld [vmem:[#allocation159_spill] sm:$0xff] }
 0x66f   : > { %3361 = vadd.xlane.f32.xlu0 %v3360_v11  ;;  %v3561_v11 = vpack.c.bf16 %v11298_v41, %v11469_v24  ;;  %v3291_v41 = vsel %vm2350_vm12, %v14703_v63, 0.0 }
 0x670   : > { %v3292_v48 = vadd.f32 %v11097_v15, %v3291_v41  ;;  %v3299_v15 = vsel %vm2350_vm12, %v11131_v27, 0.0 }
 0x671   : > { %3205 = vadd.xlane.f32.xlu1 %v14697_v8  ;;  %v3295_v8 = vsel %vm2350_vm12, %v11180_v60, 0.0  ;;  %v3566_v60 = vpack.c.bf16 %v11392_v35, %v11367_v2  ;;  %v14709_v35 = vld [vmem:[#allocation164_spill] sm:$0xff] }
 0x672   : > { %v3296_v38 = vadd.f32 %v11174_v44, %v3295_v8  ;;  %v3303_v44 = vsel %vm2350_vm12, %v11226_v13, 0.0  ;;  %v14706_v8 = vld [vmem:[#allocation156_spill] sm:$0xff]  ;;  %v3565_v13 = vpack.c.bf16 %v11378_v30, %v11357_v10  ;;  %v14711_v10 = vld [vmem:[#allocation162_spill] sm:$0xff] }
 0x673   : > { %3201 = vadd.xlane.f32.xlu0 %v14699_v34  ;;  %v2774_v34 = vsub.f32 %v14701_v17, %v2526_v19  ;;  %v2530_v17 = vpop.xlane.xlu0 %2529 }
 0x675   : > { %3289 = vadd.xlane.f32.xlu1 %v3288_v62  ;;  %3941 = vmatmul.mubr.bf16.gmra.mrb[112].mxu1 %v3561_v11  ;;  %v14704_v62 = vld [vmem:[#allocation158_spill] sm:$0xff]  ;;  %v3029_v55 = vmul.f32 1.442695, %v2774_v34  ;;  %v2534_v11 = vpop.xlane.xlu1 %2533 }
 0x676   : > { %6846 = vmatprep.mubr.msk.bf16.mxu1 %vm2350_vm12, %v3564_v39  ;;  %v2778_v54 = vsub.f32 %v14706_v8, %v2534_v11  ;;  %v14708_v34 = vld [vmem:[#allocation102_spill] sm:$0xff]  ;;  %v14714_v8 = vld [vmem:[#allocation125_spill] sm:$0xff] }
 0x677   : > { %3285 = vadd.xlane.f32.xlu0 %v3284_v5  ;;  %v14705_v5 = vld [vmem:[#allocation154_spill] sm:$0xff]  ;;  %7766 = vpow2.f32 %v3029_v55  ;;  %v2776_v2 = vsub.f32 %v14708_v34, %v2530_v17  ;;  %v3568_v55 = vpack.c.bf16 %v11445_v58, %v11398_v23  ;;  %v14712_v23 = vld [vmem:[#allocation93_spill] sm:$0xff] }
 0x678   : > { %v2773_v39 = vsub.f32 %v14705_v5, %v2526_v19  ;;  %v3304_v19 = vadd.f32 %v11211_v32, %v3303_v44  ;;  %v3037_v41 = vmul.f32 1.442695, %v2778_v54  ;;  %v2775_v58 = vsub.f32 %v14712_v23, %v2530_v17 }
 0x679   : > { %3213 = vadd.xlane.f32.xlu1 %v14702_v12  ;;  %v2542_v63 = vpop.xlane.xlu1 %2541  ;;  %v3033_v27 = vmul.f32 1.442695, %v2776_v2  ;;  %v3307_v5 = vsel %vm2350_vm12, %v11165_v4, 0.0  ;;  %v14715_v2 = vld [vmem:[#allocation161_spill] sm:$0xff] }
 0x67a   : > { %v3027_v12 = vmul.f32 1.442695, %v2773_v39  ;;  %v2782_v30 = vsub.f32 %v14711_v10, %v2542_v63  ;;  %v3308_v4 = vadd.f32 %v11145_v37, %v3307_v5  ;;  %v3031_v17 = vmul.f32 1.442695, %v2775_v58  ;;  %v14722_v58 = vld [vmem:[#allocation68_spill] sm:$0xff] }
 0x67b   : > { %3209 = vadd.xlane.f32.xlu0 %v14704_v62  ;;  %v2538_v62 = vpop.xlane.xlu0 %2537  ;;  %v3319_v37 = vsel %vm2350_vm12, %v11283_v31, 0.0 }
 0x67c   : > { %7768 = vpow2.f32 %v3027_v12  ;;  %v3320_v5 = vadd.f32 %v11276_v1, %v3319_v37 }
 0x67d   : > { %3297 = vadd.xlane.f32.xlu1 %v3296_v38  ;;  %3949 = vmatmul.mubr.bf16.gmra.mrb[116].mxu1 %v3563_v6  ;;  %v3300_v38 = vadd.f32 %v11127_v0, %v3299_v15  ;;  %v14710_v6 = vld [vmem:[#allocation157_spill] sm:$0xff]  ;;  %v11512_v32 = vpop.xlane.xlu1 %2549  ;;  %7770 = vpow2.f32 %v3037_v41  ;;  %v3045_v15 = vmul.f32 1.442695, %v2782_v30  ;;  %v14716_v41 = vld [vmem:[#allocation163_spill] sm:$0xff]  ;;  %v14721_v30 = vld [vmem:[#allocation170_spill] sm:$0xff] }
 0x67e   : > { %6847 = vmatprep.mubr.msk.bf16.mxu1 %vm2350_vm12, %v3566_v60  ;;  %v3311_v60 = vsel %vm2350_vm12, %v11237_v46, 0.0  ;;  %7772 = vpow2.f32 %v3033_v27 }
 0x67f   : > { %3293 = vadd.xlane.f32.xlu0 %v3292_v48  ;;  %v2777_v48 = vsub.f32 %v14710_v6, %v2534_v11  ;;  %v2546_v0 = vpop.xlane.xlu0 %2545  ;;  %v14713_v11 = vld [vmem:[#allocation160_spill] sm:$0xff]  ;;  %v3312_v46 = vadd.f32 %v11231_v29, %v3311_v60  ;;  %v2781_v29 = vsub.f32 %v14716_v41, %v2542_v63  ;;  %v14720_v6 = vld [vmem:[#allocation167_spill] sm:$0xff]  ;;  %v3315_v60 = vsel %vm2350_vm12, %v11191_v7, 0.0 }
 0x680   : > { %v2780_v44 = vsub.f32 %v14713_v11, %v2538_v62 }
 0x681   : > { %3221 = vadd.xlane.f32.xlu1 %v14707_v52  ;;  %v11522_v39 = vpop.eup %7766  ;;  %v3035_v54 = vmul.f32 1.442695, %v2777_v48  ;;  %v11527_v52 = vpop.xlane.xlu1 %2557  ;;  %v2783_v48 = vsub.f32 %v14720_v6, %v2546_v0  ;;  %v3043_v31 = vmul.f32 1.442695, %v2781_v29  ;;  %v14729_v6 = vld [vmem:[#allocation175_spill] sm:$0xff] }
 0x682   : > { %v3041_v12 = vmul.f32 1.442695, %v2780_v44  ;;  %v14723_v44 = vld [vmem:[#allocation169_spill] sm:$0xff] }
 0x683   : > { %3217 = vadd.xlane.f32.xlu0 %v14709_v35  ;;  %v2554_v34 = vpop.xlane.xlu0 %2553  ;;  %v2779_v35 = vsub.f32 %v14715_v2, %v2538_v62  ;;  %7774 = vpow2.f32 %v3035_v54  ;;  %v14719_v62 = vld [vmem:[#allocation146_spill] sm:$0xff]  ;;  %v3047_v1 = vmul.f32 1.442695, %v2783_v48  ;;  %v14725_v2 = vld [vmem:[#allocation172_spill] sm:$0xff] }
 0x684   : > { %7776 = vpow2.f32 %v3045_v15  ;;  %v2788_v23 = vsub.f32 %v14721_v30, %v2554_v34  ;;  %v14724_v15 = vld [vmem:[#allocation171_spill] sm:$0xff] }
 0x685   : > { %3305 = vadd.xlane.f32.xlu1 %v3304_v19  ;;  %3957 = vmatmul.mubr.bf16.gmra.mrb[120].mxu1 %v3565_v13  ;;  %v3570_v19 = vpack.c.bf16 %v11522_v39, %v11409_v20  ;;  %v14717_v13 = vld [vmem:[#allocation166_spill] sm:$0xff]  ;;  %7778 = vpow2.f32 %v3031_v17  ;;  %v3039_v27 = vmul.f32 1.442695, %v2779_v35  ;;  %v2787_v7 = vsub.f32 %v14724_v15, %v2554_v34 }
 0x686   : > { %6848 = vmatprep.mubr.msk.bf16.mxu1 %vm2350_vm12, %v3568_v55  ;;  %v11537_v55 = vpop.xlane.xlu1 %2565  ;;  %v11547_v63 = vpop.eup %7768  ;;  %7780 = vpow2.f32 %v3041_v12  ;;  %v3316_v17 = vadd.f32 %v11183_v56, %v3315_v60  ;;  %v2790_v35 = vsub.f32 %v14725_v2, %v11527_v52  ;;  %v14726_v12 = vld [vmem:[#allocation174_spill] sm:$0xff]  ;;  %v3327_v56 = vsel %vm2350_vm12, %v11291_v51, 0.0 }
 0x687   : > { %3301 = vadd.xlane.f32.xlu0 %v3300_v38  ;;  %v2784_v38 = vsub.f32 %v14717_v13, %v2546_v0  ;;  %v11544_v20 = vpop.xlane.xlu0 %2561  ;;  %v11552_v10 = vpop.eup %7770  ;;  %7782 = vpow2.f32 %v3039_v27  ;;  %v3055_v29 = vmul.f32 1.442695, %v2787_v7  ;;  %v14727_v13 = vld [vmem:[#allocation173_spill] sm:$0xff] }
 0x688   : > { %v7773_v0 = vpop.eup %7772  ;;  %7784 = vpow2.f32 %v3043_v31  ;;  %v2792_v34 = vsub.f32 %v14726_v12, %v11544_v20  ;;  %v3061_v27 = vmul.f32 1.442695, %v2790_v35  ;;  %v2791_v48 = vsub.f32 %v14729_v6, %v11544_v20  ;;  %v14730_v31 = vld [vmem:[#allocation176_spill] sm:$0xff]  ;;  %v14735_v12 = vld [vmem:[#allocation179_spill] sm:$0xff] }
 0x689   : > { %3229 = vadd.xlane.f32.xlu1 %v11197_v26  ;;  %v3567_v26 = vpack.c.bf16 %v11448_v25, %v11430_v47  ;;  %v14718_v47 = vld [vmem:[#allocation168_spill] sm:$0xff]  ;;  %v3049_v11 = vmul.f32 1.442695, %v2784_v38  ;;  %v2789_v38 = vsub.f32 %v14727_v13, %v11527_v52  ;;  %v2794_v30 = vsub.f32 %v14730_v31, %v11537_v55  ;;  %v14731_v52 = vld [vmem:[#allocation86_spill] sm:$0xff] }
 0x68a   : > { %v2786_v25 = vsub.f32 %v14718_v47, %v11512_v32  ;;  %v14728_v47 = vld [vmem:[#allocation150_spill] sm:$0xff]  ;;  %v3065_v51 = vmul.f32 1.442695, %v2792_v34  ;;  %v3367_v20 = vsel %vm2350_vm12, %v7773_v0, 0.0 }
 0x68b   : > { %3225 = vadd.xlane.f32.xlu0 %v14714_v8  ;;  %v2785_v8 = vsub.f32 %v14723_v44, %v11512_v32  ;;  %v3572_v32 = vpack.c.bf16 %v11552_v10, %v7773_v0  ;;  %7786 = vpow2.f32 %v3049_v11  ;;  %v3363_v11 = vsel %vm2350_vm12, %v11522_v39, 0.0  ;;  %v14734_v0 = vld [vmem:[#allocation180_spill] sm:$0xff] }
 0x68c   : > { %v3053_v54 = vmul.f32 1.442695, %v2786_v25  ;;  %v3323_v25 = vsel %vm2350_vm12, %v11256_v33, 0.0  ;;  %v3069_v39 = vmul.f32 1.442695, %v2794_v30 }
 0x68d   : > { %3313 = vadd.xlane.f32.xlu1 %v3312_v46  ;;  %3965 = vmatmul.mubr.bf16.gmra.mrb[124].mxu1 %v3567_v26  ;;  %v11559_v46 = vpop.xlane.xlu1 %2573  ;;  %v11562_v26 = vpop.xlane.xlu0 %2569  ;;  %v3051_v41 = vmul.f32 1.442695, %v2785_v8  ;;  %v3324_v33 = vadd.f32 %v11247_v18, %v3323_v25  ;;  %v3059_v8 = vmul.f32 1.442695, %v2789_v38 }
 0x68e   : > { %6849 = vmatprep.mubr.msk.bf16.mxu1 %vm2350_vm12, %v3570_v19  ;;  %v3057_v19 = vmul.f32 1.442695, %v2788_v23  ;;  %7788 = vpow2.f32 %v3053_v54  ;;  %v3328_v23 = vadd.f32 %v11469_v24, %v3327_v56  ;;  %v14732_v54 = vld [vmem:[#allocation178_spill] sm:$0xff]  ;;  %v2798_v2 = vsub.f32 %v14734_v0, %v11559_v46 }
 0x68f   : > { %3309 = vadd.xlane.f32.xlu0 %v3308_v4  ;;  %v3569_v4 = vpack.c.bf16 %v11547_v63, %v11437_v57  ;;  %7790 = vpow2.f32 %v3047_v1  ;;  %v2796_v15 = vsub.f32 %v14732_v54, %v11562_v26  ;;  %v2795_v34 = vsub.f32 %v14735_v12, %v11562_v26  ;;  %v14737_v54 = vld [vmem:[#allocation71_spill] sm:$0xff] }
 0x690   : > { %7792 = vpow2.f32 %v3057_v19 }
 0x691   : > { %3237 = vadd.xlane.f32.xlu1 %v14719_v62  ;;  %v11572_v57 = vpop.xlane.xlu1 %2581  ;;  %v11579_v37 = vpop.xlane.xlu0 %2577  ;;  %7794 = vpow2.f32 %v3051_v41  ;;  %v3073_v38 = vmul.f32 1.442695, %v2796_v15 }
 0x692   : > { %v7775_v62 = vpop.eup %7774  ;;  %7796 = vpow2.f32 %v3055_v29  ;;  %v3371_v29 = vsel %vm2350_vm12, %v11552_v10, 0.0  ;;  %v3077_v10 = vmul.f32 1.442695, %v2798_v2 }
 0x693   : > { %3233 = vadd.xlane.f32.xlu0 %v14722_v58  ;;  %v7777_v60 = vpop.eup %7776  ;;  %7798 = vpow2.f32 %v3061_v27  ;;  %v3372_v30 = vadd.f32 %v7775_v62, %v3371_v29 }
 0x694   : > { %v7779_v58 = vpop.eup %7778  ;;  %7800 = vpow2.f32 %v3065_v51 }
 0x695   : > { %3321 = vadd.xlane.f32.xlu1 %v3320_v5  ;;  %3973 = vmatmul.mubr.bf16.gmra.mrb[128].mxu1 %v3569_v4  ;;  %v11590_v5 = vpop.xlane.xlu1 %2589  ;;  %v7781_v44 = vpop.eup %7780  ;;  %v3571_v24 = vpack.c.bf16 %v7775_v62, %v7779_v58  ;;  %v3063_v4 = vmul.f32 1.442695, %v2791_v48  ;;  %v3368_v56 = vadd.f32 %v7779_v58, %v3367_v20  ;;  %7802 = vpow2.f32 %v3059_v8 }
 0x696   : > { %6850 = vmatprep.mubr.msk.bf16.mxu1 %vm2350_vm12, %v3572_v32  ;;  %v11598_v7 = vpop.xlane.xlu0 %2585  ;;  %v3574_v1 = vpack.c.bf16 %v7777_v60, %v7781_v44  ;;  %v3364_v32 = vadd.f32 %v11547_v63, %v3363_v11  ;;  %v7783_v19 = vpop.eup %7782  ;;  %v3375_v26 = vsel %vm2350_vm12, %v7781_v44, 0.0  ;;  %v3379_v11 = vsel %vm2350_vm12, %v7777_v60, 0.0 }
 0x697   : > { %3317 = vadd.xlane.f32.xlu0 %v3316_v17  ;;  %v14733_v17 = vld [vmem:[#allocation177_spill] sm:$0xff]  ;;  %v7785_v13 = vpop.eup %7784  ;;  %7804 = vpow2.f32 %v3063_v4 }
 0x698   : > { %v2793_v18 = vsub.f32 %v14733_v17, %v11537_v55  ;;  %v7787_v6 = vpop.eup %7786  ;;  %7806 = vpow2.f32 %v3069_v39  ;;  %v3380_v0 = vadd.f32 %v7785_v13, %v3379_v11 }
 0x699   : > { %3245 = vadd.xlane.f32.xlu1 %v14728_v47  ;;  %v14736_v47 = vld [vmem:[#allocation181_spill] sm:$0xff]  ;;  %v7789_v31 = vpop.eup %7788  ;;  %7808 = vpow2.f32 %v3073_v38  ;;  %v14740_v38 = vld [vmem:[#allocation183_spill] sm:$0xff] }
 0x69a   : > { %v11609_v41 = vpop.xlane.xlu1 %2597  ;;  %v2797_v25 = vsub.f32 %v14736_v47, %v11559_v46  ;;  %v11616_v63 = vpop.xlane.xlu0 %2593  ;;  %v3067_v48 = vmul.f32 1.442695, %v2793_v18  ;;  %v3573_v46 = vpack.c.bf16 %v7785_v13, %v7783_v19  ;;  %v3576_v17 = vpack.c.bf16 %v7789_v31, %v7787_v6 }
 0x69b   : > { %3241 = vadd.xlane.f32.xlu0 %v14731_v52  ;;  %v11621_v52 = vpop.eup %7790  ;;  %v3383_v18 = vsel %vm2350_vm12, %v7787_v6, 0.0  ;;  %v3387_v2 = vsel %vm2350_vm12, %v7789_v31, 0.0  ;;  %v2799_v47 = vsub.f32 %v14740_v38, %v11579_v37  ;;  %v14743_v31 = vld [vmem:[#allocation83_spill] sm:$0xff] }
 0x69c   : > { %v11624_v20 = vpop.eup %7792  ;;  %v3075_v44 = vmul.f32 1.442695, %v2797_v25  ;;  %7810 = vpow2.f32 %v3067_v48  ;;  %v14742_v48 = vld [vmem:[#allocation92_spill] sm:$0xff] }
 0x69d   : > { %3329 = vadd.xlane.f32.xlu1 %v3328_v23  ;;  %3981 = vmatmul.mubr.bf16.gmra.mrb[132].mxu1 %v3571_v24  ;;  %v3071_v23 = vmul.f32 1.442695, %v2795_v34  ;;  %v14738_v24 = vld [vmem:[#allocation67_spill] sm:$0xff]  ;;  %v7795_v62 = vpop.eup %7794  ;;  %7812 = vpow2.f32 %v3077_v10  ;;  %v3391_v34 = vsel %vm2350_vm12, %v11624_v20, 0.0 }
 0x69e   : > { %6851 = vmatprep.mubr.msk.bf16.mxu1 %vm2350_vm12, %v3574_v1  ;;  %v11631_v1 = vpop.eup %7796  ;;  %v3388_v11 = vadd.f32 %v7795_v62, %v3387_v2  ;;  %v14747_v2 = vld [vmem:[#allocation112_spill] sm:$0xff] }
 0x69f   : > { %v11604_v35 = vpop.f32.mrb[44].mxu1  ;;  %3325 = vadd.xlane.f32.xlu0 %v3324_v33  ;;  %v3376_v33 = vadd.f32 %v7783_v19, %v3375_v26  ;;  %7814 = vpow2.f32 %v3071_v23  ;;  %v3384_v26 = vadd.f32 %v11621_v52, %v3383_v18  ;;  %v3575_v23 = vpack.c.bf16 %v7795_v62, %v11621_v52  ;;  %v14746_v62 = vld [vmem:[#allocation126_spill] sm:$0xff] }
 0x6a0   : > { %v3808_v55 = vpop.f32.mrb[45].mxu1  ;;  %v11626_v8 = vpop.xlane.xlu0 %2601  ;;  %7816 = vpow2.f32 %v3075_v44  ;;  %v3392_v44 = vadd.f32 %v11631_v1, %v3391_v34  ;;  %v14745_v18 = vmov 0.0   ;;  %v14748_v34 = vld [vmem:[#allocation98_spill] sm:$0xff] }
 0x6a1   : > { %v11618_v27 = vpop.f32.mrb[46].mxu1  ;;  %3365 = vadd.xlane.f32.xlu1 %v3364_v32  ;;  %v7799_v32 = vpop.eup %7798  ;;  %v4490_v55 = vld [vmem:[#allocation2 + $0x48] sm:$0xff] }
 0x6a2   : > { %v3811_v51 = vpop.f32.mrb[47].mxu1  ;;  %v2606_v58 = vpop.xlane.xlu1 %2605 }
 0x6a3   : > { %3369 = vadd.xlane.f32.xlu0 %v3368_v56  ;;  %v2813_v15 = vsub.f32 %v14737_v54, %v2606_v58  ;;  %v2814_v4 = vsub.f32 %v14738_v24, %v2606_v58  ;;  %v4491_v56 = vld [vmem:[#allocation2 + $0x50] sm:$0xff]  ;;  %v11639_v29 = vpop.eup %7800  ;;  %v14744_v58 = vld [vmem:[#allocation182_spill] sm:$0xff]  ;;  %v3395_v54 = vsel %vm2350_vm12, %v7799_v32, 0.0 }
 0x6a4   : > { %v4493_v6 = vpack.c.bf16 %v4491_v56, %v4490_v55  ;;  %v3399_v52 = vsel %vm2350_vm12, %v11639_v29, 0.0 }
 0x6a5   : > { %3373 = vadd.xlane.f32.xlu1 %v3372_v30  ;;  %3989 = vmatmul.mubr.bf16.gmra.mrb[136].mxu1 %v3573_v46  ;;  %v3109_v60 = vmul.f32 1.442695, %v2814_v4  ;;  %v3107_v19 = vmul.f32 1.442695, %v2813_v15  ;;  %v11649_v46 = vpop.eup %7802 }
 0x6a6   : > { %6852 = vmatprep.mubr.msk.bf16.mxu1 %vm2350_vm12, %v3576_v17  ;;  %7156 = vmatpush3.bf16.msra.mxu0 %v4493_v6  ;;  %v11655_v15 = vpop.eup %7804 }
 0x6a7   : > { %v11633_v39 = vpop.f32.mrb[48].mxu1  ;;  %3377 = vadd.xlane.f32.xlu0 %v3376_v33  ;;  %7818 = vpow2.f32 %v3109_v60  ;;  %v2800_v33 = vsub.f32 %v14744_v58, %v11579_v37  ;;  %7249 = vmatprep.subr.bf16.mxu0 %v14745_v18  ;;  %v11660_v60 = vpop.eup %7806  ;;  %v3079_v37 = vmul.f32 1.442695, %v2799_v47  ;;  %v3396_v47 = vadd.f32 %v11649_v46, %v3395_v54  ;;  %v14752_v54 = vld [vmem:[#allocation107_spill] sm:$0xff] }
 0x6a8   : > { %14739 = vst [vmem:[#allocation114_spill] sm:$0xff] %v11633_v39  ;;  %v3816_v12 = vpop.f32.mrb[49].mxu1  ;;  %v2610_v13 = vpop.xlane.xlu0 %2609  ;;  %7820 = vpow2.f32 %v3107_v19  ;;  %v3578_v19 = vpack.c.bf16 %v7799_v32, %v11624_v20  ;;  %v3403_v20 = vsel %vm2350_vm12, %v11660_v60, 0.0 }
 0x6a9   : > { %v11643_v25 = vpop.f32.mrb[50].mxu1  ;;  %3381 = vadd.xlane.f32.xlu1 %v3380_v0  ;;  %v2815_v51 = vsub.f32 %v14742_v48, %v2610_v13  ;;  %v2816_v10 = vsub.f32 %v14743_v31, %v2610_v13  ;;  %v2802_v0 = vsub.f32 %v14746_v62, %v11572_v57  ;;  %v11667_v56 = vpop.eup %7808  ;;  %v3081_v31 = vmul.f32 1.442695, %v2800_v33 }
 0x6aa   : > { %14741 = vst [vmem:[#allocation77_spill] sm:$0xff] %v11643_v25  ;;  %v3819_v30 = vpop.f32.mrb[51].mxu1  ;;  %v2614_v17 = vpop.xlane.xlu1 %2613  ;;  %v3407_v33 = vsel %vm2350_vm12, %v11667_v56, 0.0 }
 0x6ab   : > { %3385 = vadd.xlane.f32.xlu0 %v3384_v26  ;;  %v3111_v24 = vmul.f32 1.442695, %v2815_v51  ;;  %v3113_v4 = vmul.f32 1.442695, %v2816_v10  ;;  %v2817_v12 = vsub.f32 %v14747_v2, %v2614_v17  ;;  %v2818_v55 = vsub.f32 %v14748_v34, %v2614_v17  ;;  %v11672_v26 = vpop.eup %7810  ;;  %v14750_v10 = vld [vmem:[#allocation101_spill] sm:$0xff]  ;;  %v14755_v2 = vld [vmem:[#allocation72_spill] sm:$0xff] }
 0x6ac   : > { %v3400_v51 = vadd.f32 %v11655_v15, %v3399_v52  ;;  %v11678_v32 = vpop.eup %7812  ;;  %v2801_v30 = vsub.f32 %v14750_v10, %v11572_v57  ;;  %v14754_v57 = vld [vmem:[#allocation109_spill] sm:$0xff]  ;;  %v14756_v34 = vld [vmem:[#allocation103_spill] sm:$0xff] }
 0x6ad   : > { %3389 = vadd.xlane.f32.xlu1 %v3388_v11  ;;  %7822 = vpow2.f32 %v3111_v24  ;;  %3997 = vmatmul.mubr.bf16.gmra.mrb[140].mxu1 %v3575_v23  ;;  %v3117_v38 = vmul.f32 1.442695, %v2818_v55  ;;  %v3115_v6 = vmul.f32 1.442695, %v2817_v12  ;;  %v3085_v23 = vmul.f32 1.442695, %v2802_v0 }
 0x6ae   : > { %7824 = vpow2.f32 %v3113_v4  ;;  %6853 = vmatprep.mubr.msk.bf16.mxu1 %vm2350_vm12, %v3578_v19  ;;  %v14753_v4 = vld [vmem:[#allocation97_spill] sm:$0xff]  ;;  %v2803_v0 = vsub.f32 %v14754_v57, %v11598_v7  ;;  %v3404_v19 = vadd.f32 %v11672_v26, %v3403_v20  ;;  %v3411_v10 = vsel %vm2350_vm12, %v11678_v32, 0.0 }
 0x6af   : > { %v11669_v13 = vpop.f32.mrb[52].mxu1  ;;  %3393 = vadd.xlane.f32.xlu0 %v3392_v44  ;;  %7826 = vpow2.f32 %v3079_v37  ;;  %v11684_v44 = vpop.eup %7814 }
 0x6b0   : > { %14749 = vst [vmem:[#allocation95_spill] sm:$0xff] %v11669_v13  ;;  %v3824_v48 = vpop.f32.mrb[53].mxu1  ;;  %v2618_v58 = vpop.xlane.xlu0 %2617  ;;  %7828 = vpow2.f32 %v3117_v38  ;;  %v14792_v13 = vld [vmem:[#allocation148_spill] sm:$0xff] }
 0x6b1   : > { %v11682_v11 = vpop.f32.mrb[54].mxu1  ;;  %3397 = vadd.xlane.f32.xlu1 %v3396_v47  ;;  %v2819_v24 = vsub.f32 %v14752_v54, %v2618_v58  ;;  %v2820_v17 = vsub.f32 %v14753_v4, %v2618_v58  ;;  %v11690_v37 = vpop.eup %7816  ;;  %7830 = vpow2.f32 %v3115_v6  ;;  %v3577_v58 = vpack.c.bf16 %v11649_v46, %v11631_v1 }
 0x6b2   : > { %14751 = vst [vmem:[#allocation113_spill] sm:$0xff] %v11682_v11  ;;  %v3827_v52 = vpop.f32.mrb[55].mxu1  ;;  %v2622_v62 = vpop.xlane.xlu1 %2621  ;;  %7832 = vpow2.f32 %v3081_v31  ;;  %v3408_v4 = vadd.f32 %v11684_v44, %v3407_v33  ;;  %v3580_v6 = vpack.c.bf16 %v11660_v60, %v11639_v29  ;;  %v3412_v1 = vadd.f32 %v11690_v37, %v3411_v10 }
 0x6b3   : > { %v2821_v12 = vsub.f32 %v14755_v2, %v2622_v62  ;;  %v2822_v55 = vsub.f32 %v14756_v34, %v2622_v62  ;;  %3401 = vadd.xlane.f32.xlu0 %v3400_v51  ;;  %v11697_v38 = vpop.eup %7818  ;;  %v3119_v47 = vmul.f32 1.442695, %v2819_v24  ;;  %v3121_v48 = vmul.f32 1.442695, %v2820_v17  ;;  %v14758_v62 = vld [vmem:[#allocation118_spill] sm:$0xff]  ;;  %v14760_v34 = vld [vmem:[#allocation131_spill] sm:$0xff] }
 0x6b4   : > { %v11704_v52 = vpop.eup %7820  ;;  %v3443_v20 = vsel %vm2350_vm12, %v11697_v38, 0.0  ;;  %v3083_v24 = vmul.f32 1.442695, %v2801_v30  ;;  %v3087_v17 = vmul.f32 1.442695, %v2803_v0  ;;  %v2806_v33 = vsub.f32 %v14758_v62, %v11590_v5  ;;  %v14759_v2 = vld [vmem:[#allocation130_spill] sm:$0xff] }
 0x6b5   : > { %v3125_v54 = vmul.f32 1.442695, %v2822_v55  ;;  %3405 = vadd.xlane.f32.xlu1 %v3404_v19  ;;  %7834 = vpow2.f32 %v3119_v47  ;;  %v3123_v51 = vmul.f32 1.442695, %v2821_v12  ;;  %4005 = vmatmul.mubr.bf16.gmra.mrb[144].mxu1 %v3577_v58  ;;  %v3444_v30 = vadd.f32 %v11704_v52, %v3443_v20 }
 0x6b6   : > { %7836 = vpow2.f32 %v3121_v48  ;;  %6854 = vmatprep.mubr.msk.bf16.mxu1 %vm2350_vm12, %v3580_v6  ;;  %v14763_v6 = vld [vmem:[#allocation104_spill] sm:$0xff] }
 0x6b7   : > { %v11710_v31 = vpop.f32.mrb[56].mxu1  ;;  %3409 = vadd.xlane.f32.xlu0 %v3408_v4  ;;  %v11713_v46 = vpop.eup %7822  ;;  %7838 = vpow2.f32 %v3085_v23  ;;  %v14762_v23 = vld [vmem:[#allocation74_spill] sm:$0xff] }
 0x6b8   : > { %14757 = vst [vmem:[#allocation90_spill] sm:$0xff] %v11710_v31  ;;  %v2626_v29 = vpop.xlane.xlu0 %2625  ;;  %v3832_v60 = vpop.f32.mrb[57].mxu1  ;;  %7840 = vpow2.f32 %v3125_v54  ;;  %v2804_v0 = vsub.f32 %v14762_v23, %v11598_v7  ;;  %v14765_v7 = vld [vmem:[#allocation73_spill] sm:$0xff] }
 0x6b9   : > { %v11718_v57 = vpop.eup %7824  ;;  %v2823_v12 = vsub.f32 %v14759_v2, %v2626_v29  ;;  %v2824_v55 = vsub.f32 %v14760_v34, %v2626_v29  ;;  %v11722_v19 = vpop.f32.mrb[58].mxu1  ;;  %3413 = vadd.xlane.f32.xlu1 %v3412_v1  ;;  %7842 = vpow2.f32 %v3123_v51  ;;  %v14764_v29 = vld [vmem:[#allocation123_spill] sm:$0xff]  ;;  %v2805_v51 = vsub.f32 %v14765_v7, %v11590_v5  ;;  %v14770_v7 = vld [vmem:[#allocation100_spill] sm:$0xff] }
 0x6ba   : > { %14761 = vst [vmem:[#allocation121_spill] sm:$0xff] %v11722_v19  ;;  %v3835_v47 = vpop.f32.mrb[59].mxu1  ;;  %v2630_v48 = vpop.xlane.xlu1 %2629  ;;  %v3447_v10 = vsel %vm2350_vm12, %v11718_v57, 0.0  ;;  %7844 = vpow2.f32 %v3083_v24  ;;  %v3093_v2 = vmul.f32 1.442695, %v2806_v33  ;;  %v3579_v34 = vpack.c.bf16 %v11672_v26, %v11655_v15  ;;  %v14766_v26 = vld [vmem:[#allocation91_spill] sm:$0xff] }
 0x6bb   : > { %v11729_v58 = vpop.eup %7826  ;;  %v3127_v54 = vmul.f32 1.442695, %v2823_v12  ;;  %v3129_v4 = vmul.f32 1.442695, %v2824_v55  ;;  %v2825_v62 = vsub.f32 %v14763_v6, %v2630_v48  ;;  %v2826_v60 = vsub.f32 %v14764_v29, %v2630_v48  ;;  %3445 = vadd.xlane.f32.xlu0 %v3444_v30  ;;  %v14767_v47 = vld [vmem:[#allocation119_spill] sm:$0xff] }
 0x6bc   : > { %v11733_v1 = vpop.eup %7828  ;;  %v3448_v20 = vadd.f32 %v11713_v46, %v3447_v10  ;;  %7846 = vpow2.f32 %v3087_v17  ;;  %v3089_v23 = vmul.f32 1.442695, %v2804_v0  ;;  %v3582_v30 = vpack.c.bf16 %v11678_v32, %v11667_v56  ;;  %v14768_v10 = vld [vmem:[#allocation129_spill] sm:$0xff]  ;;  %v14769_v6 = vld [vmem:[#allocation79_spill] sm:$0xff] }
 0x6bd   : > { %v3133_v12 = vmul.f32 1.442695, %v2826_v60  ;;  %v11740_v55 = vpop.eup %7830  ;;  %7848 = vpow2.f32 %v3129_v4  ;;  %v3451_v24 = vsel %vm2350_vm12, %v11733_v1, 0.0  ;;  %4013 = vmatmul.mubr.bf16.gmra.mrb[148].mxu1 %v3579_v34  ;;  %v3131_v17 = vmul.f32 1.442695, %v2825_v62 }
 0x6be   : > { %3449 = vadd.xlane.f32.xlu1 %v3448_v20  ;;  %v7833_v5 = vpop.eup %7832  ;;  %7850 = vpow2.f32 %v3127_v54  ;;  %v3091_v15 = vmul.f32 1.442695, %v2805_v51  ;;  %v2810_v0 = vsub.f32 %v14766_v26, %v11609_v41  ;;  %6855 = vmatprep.mubr.msk.bf16.mxu1 %vm2350_vm12, %v3582_v30  ;;  %v3452_v4 = vadd.f32 %v11740_v55, %v3451_v24  ;;  %v14771_v30 = vld [vmem:[#allocation134_spill] sm:$0xff]  ;;  %v14772_v26 = vld [vmem:[#allocation96_spill] sm:$0xff] }
 0x6bf   : > { %3249 = vadd.xlane.f32.xlu0 %v11327_v36  ;;  %v11747_v33 = vpop.eup %7834  ;;  %7852 = vpow2.f32 %v3133_v12  ;;  %v2807_v62 = vsub.f32 %v14769_v6, %v11616_v63  ;;  %v2808_v51 = vsub.f32 %v14770_v7, %v11616_v63 }
 0x6c0   : > { %v2634_v56 = vpop.xlane.xlu0 %2633  ;;  %v11752_v32 = vpop.eup %7836  ;;  %7854 = vpow2.f32 %v3093_v2 }
 0x6c1   : > { %v2827_v48 = vsub.f32 %v14767_v47, %v2634_v56  ;;  %v2828_v54 = vsub.f32 %v14768_v10, %v2634_v56  ;;  %v7839_v36 = vpop.eup %7838  ;;  %7856 = vpow2.f32 %v3089_v23  ;;  %v3455_v29 = vsel %vm2350_vm12, %v11752_v32, 0.0 }
 0x6c2   : > { %3253 = vadd.xlane.f32.xlu1 %v11337_v43  ;;  %v11762_v60 = vpop.eup %7840  ;;  %7858 = vpow2.f32 %v3131_v17  ;;  %v2638_v34 = vpop.xlane.xlu1 %2637  ;;  %v3101_v23 = vmul.f32 1.442695, %v2810_v0  ;;  %v3456_v56 = vadd.f32 %v11747_v33, %v3455_v29  ;;  %v3581_v47 = vpack.c.bf16 %v11690_v37, %v11684_v44 }
 0x6c3   : > { %v3135_v20 = vmul.f32 1.442695, %v2827_v48  ;;  %v3137_v2 = vmul.f32 1.442695, %v2828_v54  ;;  %3453 = vadd.xlane.f32.xlu0 %v3452_v4  ;;  %v11766_v12 = vpop.eup %7842  ;;  %v2829_v24 = vsub.f32 %v14771_v30, %v2638_v34  ;;  %v2830_v43 = vsub.f32 %v14772_v26, %v2638_v34  ;;  %v14773_v48 = vld [vmem:[#allocation116_spill] sm:$0xff]  ;;  %v14775_v34 = vld [vmem:[#allocation133_spill] sm:$0xff] }
 0x6c4   : > { %7860 = vpow2.f32 %v3091_v15  ;;  %v3459_v63 = vsel %vm2350_vm12, %v11762_v60, 0.0  ;;  %v7845_v17 = vpop.eup %7844  ;;  %v2809_v10 = vsub.f32 %v14773_v48, %v11609_v41  ;;  %v3584_v0 = vpack.c.bf16 %v7839_v36, %v7833_v5 }
 0x6c5   : > { %7862 = vpow2.f32 %v3137_v2  ;;  %v3141_v54 = vmul.f32 1.442695, %v2830_v43  ;;  %v3097_v6 = vmul.f32 1.442695, %v2808_v51  ;;  %4021 = vmatmul.mubr.bf16.gmra.mrb[152].mxu1 %v3581_v47  ;;  %v3415_v44 = vsel %vm2350_vm12, %v7833_v5, 0.0  ;;  %v14774_v51 = vld [vmem:[#allocation136_spill] sm:$0xff] }
 0x6c6   : > { %3457 = vadd.xlane.f32.xlu1 %v3456_v56  ;;  %v11777_v4 = vpop.eup %7846  ;;  %7864 = vpow2.f32 %v3135_v20  ;;  %v3095_v15 = vmul.f32 1.442695, %v2807_v62  ;;  %v3139_v29 = vmul.f32 1.442695, %v2829_v24  ;;  %6856 = vmatprep.mubr.msk.bf16.mxu1 %vm2350_vm12, %v3584_v0  ;;  %v3460_v7 = vadd.f32 %v11766_v12, %v3459_v63 }
 0x6c7   : > { %3333 = vadd.xlane.f32.xlu0 %v11346_v45  ;;  %v11781_v37 = vpop.eup %7848  ;;  %7866 = vpow2.f32 %v3101_v23  ;;  %v3099_v62 = vmul.f32 1.442695, %v2809_v10  ;;  %v14776_v23 = vld [vmem:[#allocation78_spill] sm:$0xff]  ;;  %v3583_v26 = vpack.c.bf16 %v7845_v17, %v11729_v58  ;;  %v3419_v56 = vsel %vm2350_vm12, %v7839_v36, 0.0  ;;  %v14778_v10 = vld [vmem:[#allocation115_spill] sm:$0xff] }
 0x6c8   : > { %v2642_v41 = vpop.xlane.xlu0 %2641  ;;  %v11785_v2 = vpop.eup %7850  ;;  %7868 = vpow2.f32 %v3141_v54  ;;  %v3463_v45 = vsel %vm2350_vm12, %v11781_v37, 0.0  ;;  %v2812_v24 = vsub.f32 %v14776_v23, %v11626_v8  ;;  %v14777_v54 = vld [vmem:[#allocation138_spill] sm:$0xff] }
 0x6c9   : > { %v2831_v20 = vsub.f32 %v14774_v51, %v2642_v41  ;;  %v2832_v30 = vsub.f32 %v14775_v34, %v2642_v41  ;;  %v11791_v5 = vpop.eup %7852  ;;  %7870 = vpow2.f32 %v3097_v6  ;;  %v2811_v51 = vsub.f32 %v14778_v10, %v11626_v8 }
 0x6ca   : > { %3337 = vadd.xlane.f32.xlu1 %v11363_v3  ;;  %v2646_v43 = vpop.xlane.xlu1 %2645  ;;  %v11798_v47 = vpop.eup %7854  ;;  %7872 = vpow2.f32 %v3139_v29  ;;  %v14779_v3 = vld [vmem:[#allocation135_spill] sm:$0xff]  ;;  %v3464_v23 = vadd.f32 %v11785_v2, %v3463_v45  ;;  %v3416_v6 = vadd.f32 %v11729_v58, %v3415_v44  ;;  %v3420_v29 = vadd.f32 %v7845_v17, %v3419_v56 }
 0x6cb   : > { %v3143_v63 = vmul.f32 1.442695, %v2831_v20  ;;  %v3145_v48 = vmul.f32 1.442695, %v2832_v30  ;;  %v2834_v0 = vsub.f32 %v14777_v54, %v2646_v43  ;;  %3461 = vadd.xlane.f32.xlu0 %v3460_v7  ;;  %v11801_v41 = vpop.eup %7856  ;;  %v2833_v34 = vsub.f32 %v14779_v3, %v2646_v43  ;;  %v14782_v3 = vld [vmem:[#allocation144_spill] sm:$0xff] }
 0x6cc   : > { %v11807_v18 = vpop.eup %7858  ;;  %7874 = vpow2.f32 %v3095_v15  ;;  %v3467_v20 = vsel %vm2350_vm12, %v11791_v5, 0.0  ;;  %v3105_v7 = vmul.f32 1.442695, %v2812_v24  ;;  %v3586_v30 = vpack.c.bf16 %v11798_v47, %v11801_v41 }
 0x6cd   : > { %v3149_v36 = vmul.f32 1.442695, %v2834_v0  ;;  %7876 = vpow2.f32 %v3145_v48  ;;  %4029 = vmatmul.mubr.bf16.gmra.mrb[156].mxu1 %v3583_v26  ;;  %v3103_v15 = vmul.f32 1.442695, %v2811_v51  ;;  %v3147_v58 = vmul.f32 1.442695, %v2833_v34 }
 0x6ce   : > { %3465 = vadd.xlane.f32.xlu1 %v3464_v23  ;;  %v11814_v8 = vpop.eup %7860  ;;  %7878 = vpow2.f32 %v3143_v63  ;;  %6857 = vmatprep.mubr.msk.bf16.mxu1 %vm2350_vm12, %v3586_v30  ;;  %v3468_v24 = vadd.f32 %v11807_v18, %v3467_v20  ;;  %v14780_v48 = vld [vmem:[#allocation142_spill] sm:$0xff]  ;;  %v14781_v0 = vld [vmem:[#allocation140_spill] sm:$0xff]  ;;  %v14783_v23 = vld [vmem:[#allocation139_spill] sm:$0xff] }
 0x6cf   : > { %3417 = vadd.xlane.f32.xlu0 %v3416_v6  ;;  %v11816_v45 = vpop.eup %7862  ;;  %7880 = vpow2.f32 %v3099_v62 }
 0x6d0   : > { %v2650_v44 = vpop.xlane.xlu0 %2649  ;;  %v11820_v43 = vpop.eup %7864  ;;  %7882 = vpow2.f32 %v3149_v36  ;;  %v3471_v17 = vsel %vm2350_vm12, %v11816_v45, 0.0 }
 0x6d1   : > { %v2835_v54 = vsub.f32 %v14780_v48, %v2650_v44  ;;  %v2836_v63 = vsub.f32 %v14781_v0, %v2650_v44  ;;  %v11826_v26 = vpop.eup %7866  ;;  %7884 = vpow2.f32 %v3105_v7  ;;  %v3472_v6 = vadd.f32 %v11820_v43, %v3471_v17 }
 0x6d2   : > { %3421 = vadd.xlane.f32.xlu1 %v3420_v29  ;;  %v2654_v62 = vpop.xlane.xlu1 %2653  ;;  %v11828_v56 = vpop.eup %7868  ;;  %7886 = vpow2.f32 %v3147_v58  ;;  %v3585_v7 = vpack.c.bf16 %v11814_v8, %v11777_v4 }
 0x6d3   : > { %v3151_v10 = vmul.f32 1.442695, %v2835_v54  ;;  %v3153_v51 = vmul.f32 1.442695, %v2836_v63  ;;  %v2837_v34 = vsub.f32 %v14782_v3, %v2654_v62  ;;  %v2838_v36 = vsub.f32 %v14783_v23, %v2654_v62  ;;  %3469 = vadd.xlane.f32.xlu0 %v3468_v24  ;;  %v11833_v20 = vpop.eup %7870  ;;  %v14784_v63 = vld [vmem:[#allocation94_spill] sm:$0xff]  ;;  %v14785_v62 = vld [vmem:[#allocation143_spill] sm:$0xff] }
 0x6d4   : > { %7888 = vpow2.f32 %v3103_v15  ;;  %v11837_v29 = vpop.eup %7872  ;;  %v3588_v48 = vpack.c.bf16 %v11826_v26, %v11833_v20  ;;  %v3475_v58 = vsel %vm2350_vm12, %v11828_v56, 0.0 }
 0x6d5   : > { %v3157_v30 = vmul.f32 1.442695, %v2838_v36  ;;  %7890 = vpow2.f32 %v3153_v51  ;;  %v3155_v44 = vmul.f32 1.442695, %v2837_v34  ;;  %4037 = vmatmul.mubr.bf16.gmra.mrb[160].mxu1 %v3585_v7  ;;  %v3476_v3 = vadd.f32 %v11837_v29, %v3475_v58  ;;  %v14786_v7 = vld [vmem:[#allocation110_spill] sm:$0xff] }
 0x6d6   : > { %3473 = vadd.xlane.f32.xlu1 %v3472_v6  ;;  %v11843_v24 = vpop.eup %7874  ;;  %7892 = vpow2.f32 %v3151_v10  ;;  %6858 = vmatprep.mubr.msk.bf16.mxu1 %vm2350_vm12, %v3588_v48  ;;  %v14787_v48 = vld [vmem:[#allocation141_spill] sm:$0xff] }
 0x6d7   : > { %3257 = vadd.xlane.f32.xlu0 %v11376_v53  ;;  %v11846_v15 = vpop.eup %7876  ;;  %7894 = vpow2.f32 %v3157_v30 }
 0x6d8   : > { %v2658_v54 = vpop.xlane.xlu0 %2657  ;;  %v11849_v0 = vpop.eup %7878  ;;  %v3479_v10 = vsel %vm2350_vm12, %v11846_v15, 0.0  ;;  %7896 = vpow2.f32 %v3155_v44 }
 0x6d9   : > { %v2839_v17 = vsub.f32 %v14784_v63, %v2658_v54  ;;  %v2840_v51 = vsub.f32 %v14785_v62, %v2658_v54  ;;  %v11856_v34 = vpop.eup %7880  ;;  %v3480_v58 = vadd.f32 %v11849_v0, %v3479_v10 }
 0x6da   : > { %3261 = vadd.xlane.f32.xlu1 %v11390_v42  ;;  %v2662_v53 = vpop.xlane.xlu1 %2661  ;;  %v11859_v23 = vpop.eup %7882  ;;  %v3587_v62 = vpack.c.bf16 %v11856_v34, %v11843_v24 }
 0x6db   : > { %v3159_v36 = vmul.f32 1.442695, %v2839_v17  ;;  %v3161_v6 = vmul.f32 1.442695, %v2840_v51  ;;  %v2841_v30 = vsub.f32 %v14786_v7, %v2662_v53  ;;  %v2842_v63 = vsub.f32 %v14787_v48, %v2662_v53  ;;  %3477 = vadd.xlane.f32.xlu0 %v3476_v3  ;;  %v11863_v54 = vpop.eup %7884  ;;  %v14789_v48 = vld [vmem:[#allocation145_spill] sm:$0xff] }
 0x6dc   : > { %v11868_v19 = vpop.eup %7886  ;;  %v3590_v42 = vpack.c.bf16 %v11697_v38, %v11863_v54  ;;  %v3483_v17 = vsel %vm2350_vm12, %v11859_v23, 0.0  ;;  %v14788_v38 = vld [vmem:[#allocation147_spill] sm:$0xff] }
 0x6dd   : > { %v3165_v44 = vmul.f32 1.442695, %v2842_v63  ;;  %7898 = vpow2.f32 %v3161_v6  ;;  %4045 = vmatmul.mubr.bf16.gmra.mrb[164].mxu1 %v3587_v62  ;;  %v3163_v3 = vmul.f32 1.442695, %v2841_v30 }
 0x6de   : > { %3481 = vadd.xlane.f32.xlu1 %v3480_v58  ;;  %v11874_v51 = vpop.eup %7888  ;;  %7900 = vpow2.f32 %v3159_v36  ;;  %6859 = vmatprep.mubr.msk.bf16.mxu1 %vm2350_vm12, %v3590_v42  ;;  %v3484_v58 = vadd.f32 %v11868_v19, %v3483_v17 }
 0x6df   : > { %3341 = vadd.xlane.f32.xlu0 %v11405_v50  ;;  %v11877_v10 = vpop.eup %7890  ;;  %7902 = vpow2.f32 %v3165_v44  ;;  %v3423_v44 = vsel %vm2350_vm12, %v11801_v41, 0.0  ;;  %v3589_v39 = vpack.c.bf16 %v11704_v52, %v11874_v51 }
 0x6e0   : > { %v2666_v53 = vpop.xlane.xlu0 %2665  ;;  %v11880_v6 = vpop.eup %7892  ;;  %v3487_v36 = vsel %vm2350_vm12, %v11877_v10, 0.0  ;;  %7904 = vpow2.f32 %v3163_v3  ;;  %v3424_v41 = vadd.f32 %v11777_v4, %v3423_v44  ;;  %v3427_v3 = vsel %vm2350_vm12, %v11798_v47, 0.0 }
 0x6e1   : > { %v2843_v7 = vsub.f32 %v14788_v38, %v2666_v53  ;;  %v2844_v63 = vsub.f32 %v14789_v48, %v2666_v53  ;;  %v11887_v30 = vpop.eup %7894  ;;  %v11889_v50 = vpop.f32.mrb[60].mxu1  ;;  %v14791_v48 = vld [vmem:[#allocation151_spill] sm:$0xff]  ;;  %v3428_v47 = vadd.f32 %v11814_v8, %v3427_v3 }
 0x6e2   : > { %14790 = vst [vmem:[#allocation85_spill] sm:$0xff] %v11889_v50  ;;  %3345 = vadd.xlane.f32.xlu1 %v11413_v14  ;;  %v2670_v62 = vpop.xlane.xlu1 %2669  ;;  %v3840_v42 = vpop.f32.mrb[61].mxu1  ;;  %v3488_v50 = vadd.f32 %v11880_v6, %v3487_v36 }
 0x6e3   : > { %v3167_v38 = vmul.f32 1.442695, %v2843_v7  ;;  %v3169_v31 = vmul.f32 1.442695, %v2844_v63  ;;  %3485 = vadd.xlane.f32.xlu0 %v3484_v58  ;;  %v11894_v53 = vpop.eup %7896  ;;  %v11896_v17 = vpop.f32.mrb[62].mxu1  ;;  %v2845_v11 = vsub.f32 %v14791_v48, %v2670_v62  ;;  %v2846_v25 = vsub.f32 %v14792_v13, %v2670_v62  ;;  %v14794_v48 = vld [vmem:[#allocation152_spill] sm:$0xff] }
 0x6e4   : > { %v3843_v14 = vpop.f32.mrb[63].mxu1  ;;  %v3491_v7 = vsel %vm2350_vm12, %v11887_v30, 0.0  ;;  %v3592_v58 = vpack.c.bf16 %v11733_v1, %v11718_v57 }
 0x6e5   : > { %7906 = vpow2.f32 %v3169_v31  ;;  %v3173_v63 = vmul.f32 1.442695, %v2846_v25  ;;  %4053 = vmatmul.mubr.bf16.gmra.mrb[168].mxu1 %v3589_v39  ;;  %v3171_v52 = vmul.f32 1.442695, %v2845_v11  ;;  %v3492_v36 = vadd.f32 %v11894_v53, %v3491_v7  ;;  %v14793_v31 = vld [vmem:[#allocation117_spill] sm:$0xff] }
 0x6e6   : > { %3489 = vadd.xlane.f32.xlu1 %v3488_v50  ;;  %7908 = vpow2.f32 %v3167_v38  ;;  %6860 = vmatprep.mubr.msk.bf16.mxu1 %vm2350_vm12, %v3592_v58  ;;  %v14795_v14 = vld [vmem:[#allocation153_spill] sm:$0xff]  ;;  %v3591_v58 = vpack.c.bf16 %v11740_v55, %v11713_v46 }
 0x6e7   : > { %3425 = vadd.xlane.f32.xlu0 %v3424_v41  ;;  %v11910_v13 = vpop.eup %7898  ;;  %7910 = vpow2.f32 %v3173_v63 }
 0x6e8   : > { %v2674_v4 = vpop.xlane.xlu0 %2673  ;;  %v11915_v62 = vpop.eup %7900  ;;  %v3495_v39 = vsel %vm2350_vm12, %v11910_v13, 0.0  ;;  %7912 = vpow2.f32 %v3171_v52  ;;  %v3594_v52 = vpack.c.bf16 %v11762_v60, %v11752_v32 }
 0x6e9   : > { %v2847_v25 = vsub.f32 %v11303_v22, %v2674_v4  ;;  %v2848_v57 = vsub.f32 %v14793_v31, %v2674_v4  ;;  %v11921_v1 = vpop.eup %7902  ;;  %v11923_v11 = vpop.f32.mrb[64].mxu1  ;;  %v3496_v3 = vadd.f32 %v11915_v62, %v3495_v39  ;;  %v14796_v39 = vld [vmem:[#allocation106_spill] sm:$0xff] }
 0x6ea   : > { %3429 = vadd.xlane.f32.xlu1 %v3428_v47  ;;  %v2678_v50 = vpop.xlane.xlu1 %2677  ;;  %v3848_v44 = vpop.f32.mrb[65].mxu1  ;;  %v3499_v4 = vsel %vm2350_vm12, %v11921_v1, 0.0 }
 0x6eb   : > { %v3175_v8 = vmul.f32 1.442695, %v2847_v25  ;;  %v3177_v42 = vmul.f32 1.442695, %v2848_v57  ;;  %3493 = vadd.xlane.f32.xlu0 %v3492_v36  ;;  %v11925_v38 = vpop.f32.mrb[66].mxu1  ;;  %v2849_v22 = vsub.f32 %v14794_v48, %v2678_v50  ;;  %v2850_v41 = vsub.f32 %v14795_v14, %v2678_v50  ;;  %v11930_v7 = vpop.eup %7904 }
 0x6ec   : > { %v3851_v63 = vpop.f32.mrb[67].mxu1  ;;  %v3500_v46 = vadd.f32 %v11930_v7, %v3499_v4  ;;  %v14797_v4 = vld [vmem:[#allocation105_spill] sm:$0xff] }
 0x6ed   : > { %7914 = vpow2.f32 %v3177_v42  ;;  %v3181_v47 = vmul.f32 1.442695, %v2850_v41  ;;  %4061 = vmatmul.mubr.bf16.gmra.mrb[172].mxu1 %v3591_v58  ;;  %v3179_v25 = vmul.f32 1.442695, %v2849_v22 }
 0x6ee   : > { %3497 = vadd.xlane.f32.xlu1 %v3496_v3  ;;  %7916 = vpow2.f32 %v3175_v8  ;;  %6861 = vmatprep.mubr.msk.bf16.mxu1 %vm2350_vm12, %v3594_v52  ;;  %v3593_v3 = vpack.c.bf16 %v11766_v12, %v11747_v33 }
 0x6ef   : > { %3265 = vadd.xlane.f32.xlu0 %v11423_v49  ;;  %v11939_v36 = vpop.eup %7906  ;;  %7918 = vpow2.f32 %v3181_v47 }
 0x6f0   : > { %v2682_v31 = vpop.xlane.xlu0 %2681  ;;  %v11943_v55 = vpop.eup %7908  ;;  %v3503_v60 = vsel %vm2350_vm12, %v11939_v36, 0.0  ;;  %7920 = vpow2.f32 %v3179_v25 }
 0x6f1   : > { %v2851_v57 = vsub.f32 %v11360_v9, %v2682_v31  ;;  %v2852_v32 = vsub.f32 %v14796_v39, %v2682_v31  ;;  %v11949_v50 = vpop.f32.mrb[68].mxu1  ;;  %v11952_v44 = vpop.eup %7910  ;;  %v3504_v14 = vadd.f32 %v11943_v55, %v3503_v60  ;;  %v3595_v60 = vpack.c.bf16 %v11807_v18, %v11785_v2 }
 0x6f2   : > { %3269 = vadd.xlane.f32.xlu1 %v11426_v40  ;;  %v2686_v49 = vpop.xlane.xlu1 %2685  ;;  %v3856_v8 = vpop.f32.mrb[69].mxu1  ;;  %v3596_v40 = vpack.c.bf16 %v11791_v5, %v11781_v37  ;;  %v3507_v58 = vsel %vm2350_vm12, %v11952_v44, 0.0 }
 0x6f3   : > { %v3183_v42 = vmul.f32 1.442695, %v2851_v57  ;;  %v3185_v48 = vmul.f32 1.442695, %v2852_v32  ;;  %3501 = vadd.xlane.f32.xlu0 %v3500_v46  ;;  %v11954_v22 = vpop.f32.mrb[70].mxu1  ;;  %v2854_v9 = vsub.f32 %v11373_v21, %v2686_v49  ;;  %v11960_v63 = vpop.eup %7912  ;;  %v2853_v21 = vsub.f32 %v11382_v61, %v2686_v49 }
 0x6f4   : > { %v3859_v41 = vpop.f32.mrb[71].mxu1  ;;  %v3508_v12 = vadd.f32 %v11960_v63, %v3507_v58  ;;  %v3431_v61 = vsel %vm2350_vm12, %v11833_v20, 0.0  ;;  %v3598_v8 = vpack.c.bf16 %v11828_v56, %v11816_v45  ;;  %v3600_v58 = vpack.c.bf16 %v11859_v23, %v11846_v15 }
 0x6f5   : > { %7922 = vpow2.f32 %v3185_v48  ;;  %4069 = vmatmul.mubr.bf16.gmra.mrb[176].mxu1 %v3593_v3  ;;  %v3189_v52 = vmul.f32 1.442695, %v2854_v9  ;;  %v3187_v31 = vmul.f32 1.442695, %v2853_v21  ;;  %v3432_v49 = vadd.f32 %v11843_v24, %v3431_v61  ;;  %v12011_v41 = vpop.xlane.xlu0 %3193 }
 0x6f6   : > { %3505 = vadd.xlane.f32.xlu1 %v3504_v14  ;;  %7924 = vpow2.f32 %v3183_v42  ;;  %6862 = vmatprep.mubr.msk.bf16.mxu1 %vm2350_vm12, %v3596_v40  ;;  %v3439_v21 = vsel %vm2350_vm12, %v11863_v54, 0.0 }
 0x6f7   : > { %3349 = vadd.xlane.f32.xlu0 %v14797_v4  ;;  %v11968_v47 = vpop.eup %7914  ;;  %7926 = vpow2.f32 %v3189_v52  ;;  %v12021_v4 = vpop.xlane.xlu1 %3197 }
 0x6f8   : > { %v11971_v33 = vpop.eup %7916  ;;  %v3511_v37 = vsel %vm2350_vm12, %v11968_v47, 0.0  ;;  %v11976_v5 = vpop.f32.mrb[72].mxu1  ;;  %7928 = vpow2.f32 %v3187_v31  ;;  %v3602_v31 = vpack.c.bf16 %v11887_v30, %v11877_v10  ;;  %v3601_v10 = vpack.c.bf16 %v11894_v53, %v11880_v6  ;;  %v14800_v53 = vld [vmem:[#allocation114_spill] sm:$0xff] }
 0x6f9   : > { %v11981_v25 = vpop.eup %7918  ;;  %v3864_v46 = vpop.f32.mrb[73].mxu1  ;;  %v3512_v39 = vadd.f32 %v11971_v33, %v3511_v37  ;;  %v3604_v30 = vpack.c.bf16 %v11921_v1, %v11910_v13 }
 0x6fa   : > { %3353 = vadd.xlane.f32.xlu1 %v11451_v16  ;;  %v11983_v57 = vpop.f32.mrb[74].mxu1  ;;  %v3435_v16 = vsel %vm2350_vm12, %v11826_v26, 0.0  ;;  %v11991_v20 = vpop.eup %7920  ;;  %v3515_v42 = vsel %vm2350_vm12, %v11981_v25, 0.0 }
 0x6fb   : > { %3509 = vadd.xlane.f32.xlu0 %v3508_v12  ;;  %v3867_v32 = vpop.f32.mrb[75].mxu1  ;;  %v3436_v18 = vadd.f32 %v11856_v34, %v3435_v16  ;;  %v3516_v26 = vadd.f32 %v11991_v20, %v3515_v42  ;;  %v3597_v34 = vpack.c.bf16 %v11837_v29, %v11820_v43  ;;  %v3440_v43 = vadd.f32 %v11874_v51, %v3439_v21  ;;  %v12033_v15 = vpop.xlane.xlu0 %3277 }
 0x6fc   : > { %v12038_v37 = vpop.xlane.xlu1 %3281  ;;  %v3599_v51 = vpack.c.bf16 %v11868_v19, %v11849_v0  ;;  %v3603_v21 = vpack.c.bf16 %v11930_v7, %v11915_v62  ;;  %v14802_v7 = vld [vmem:[#allocation95_spill] sm:$0xff] }
 0x6fd   : > { %4077 = vmatmul.mubr.bf16.gmra.mrb[180].mxu1 %v3595_v60 }
 0x6fe   : > { %3513 = vadd.xlane.f32.xlu1 %v3512_v39  ;;  %6863 = vmatprep.mubr.msk.bf16.mxu1 %vm2350_vm12, %v3598_v8  ;;  %v14799_v8 = vld [vmem:[#allocation8_spill] sm:$0xff] }
 0x6ff   : > { %3433 = vadd.xlane.f32.xlu0 %v3432_v49  ;;  %v11997_v48 = vpop.eup %7922  ;;  %v14798_v49 = vld [vmem:[#allocation66_spill] sm:$0xff] }
 0x700   : > { %v12001_v2 = vpop.eup %7924  ;;  %v3519_v45 = vsel %vm2350_vm12, %v11997_v48, 0.0  ;;  %v12006_v56 = vpop.f32.mrb[76].mxu1  ;;  %v4141_v16 = vmul.f32 %v11604_v35, %v14798_v49  ;;  %v4142_v35 = vmul.f32 %v11618_v27, %v14798_v49  ;;  %v4143_v13 = vmul.f32 %v14800_v53, %v14798_v49 }
 0x701   : > { %v3872_v24 = vpop.f32.mrb[77].mxu1  ;;  %v3520_v14 = vadd.f32 %v12001_v2, %v3519_v45  ;;  %v12015_v40 = vpop.eup %7926  ;;  %v3606_v27 = vpack.c.bf16 %v11952_v44, %v11939_v36  ;;  %v4145_v36 = vmul.f32 %v14802_v7, %v14798_v49 }
 0x702   : > { %3437 = vadd.xlane.f32.xlu1 %v3436_v18  ;;  %v12008_v9 = vpop.f32.mrb[78].mxu1  ;;  %v12025_v52 = vpop.eup %7928  ;;  %v3523_v29 = vsel %vm2350_vm12, %v12015_v40, 0.0 }
 0x703   : > { %3517 = vadd.xlane.f32.xlu0 %v3516_v26  ;;  %v3875_v3 = vpop.f32.mrb[79].mxu1  ;;  %v12049_v39 = vpop.xlane.xlu1 %3205 }
 0x705   : > { %4085 = vmatmul.mubr.bf16.gmra.mrb[184].mxu1 %v3597_v34 }
 0x706   : > { %3521 = vadd.xlane.f32.xlu1 %v3520_v14  ;;  %6864 = vmatprep.mubr.msk.bf16.mxu1 %vm2350_vm12, %v3600_v58 }
 0x707   : > { %3273 = vadd.xlane.f32.xlu0 %v11454_v28  ;;  %v3524_v28 = vadd.f32 %v12025_v52, %v3523_v29  ;;  %v12063_v26 = vpop.xlane.xlu1 %3289 }
 0x708   : > { %v12030_v12 = vpop.f32.mrb[80].mxu1 }
 0x709   : > { %v3880_v23 = vpop.f32.mrb[81].mxu1 }
 0x70a   : > { %3357 = vadd.xlane.f32.xlu1 %v11464_v59  ;;  %v12035_v54 = vpop.f32.mrb[82].mxu1  ;;  %v12045_v59 = vpop.xlane.xlu0 %3361 }
 0x70b   : > { %3441 = vadd.xlane.f32.xlu0 %v3440_v43  ;;  %v3883_v61 = vpop.f32.mrb[83].mxu1  ;;  %v12079_v43 = vpop.xlane.xlu1 %3213 }
 0x70d   : > { %4093 = vmatmul.mubr.bf16.gmra.mrb[188].mxu1 %v3599_v51 }
 0x70e   : > { %3525 = vadd.xlane.f32.xlu1 %v3524_v28  ;;  %6865 = vmatprep.mubr.msk.bf16.mxu1 %vm2350_vm12, %v3602_v31  ;;  %v12058_v42 = vpop.xlane.xlu0 %3201  ;;  %v14801_v28 = vld [vmem:[#allocation77_spill] sm:$0xff] }
 0x70f   : > { %v4144_v61 = vmul.f32 %v14801_v28, %v14798_v49  ;;  %v12091_v44 = vpop.xlane.xlu1 %3297 }
 0x710   : > { %v12047_v46 = vpop.f32.mrb[84].mxu1 }
 0x711   : > { %v3888_v32 = vpop.f32.mrb[85].mxu1 }
 0x712   : > { %v3889_v60 = vpop.f32.mrb[86].mxu1  ;;  %v12070_v1 = vpop.xlane.xlu0 %3285 }
 0x713   : > { %v4183_v19 = vmul.f32 %v3889_v60, %v14799_v8  ;;  %v3891_v0 = vpop.f32.mrb[87].mxu1 }
 0x714   : > { %v3605_v0 = vpack.c.bf16 %v11960_v63, %v11943_v55  ;;  %v14804_v63 = vld [vmem:[#allocation90_spill] sm:$0xff] }
 0x715   : > { %v12060_v18 = vadd.f32 %v4183_v19, %v4141_v16  ;;  %4101 = vmatmul.mubr.bf16.gmra.mrb[192].mxu1 %v3601_v10  ;;  %v3608_v10 = vpack.c.bf16 %v11981_v25, %v11968_v47  ;;  %v4147_v47 = vmul.f32 %v14804_v63, %v14798_v49 }
 0x716   : > { %6866 = vmatprep.mubr.msk.bf16.mxu1 %vm2350_vm12, %v3604_v30  ;;  %v12086_v51 = vpop.xlane.xlu0 %3209 }
 0x718   : > { %v3894_v45 = vpop.f32.mrb[88].mxu1 }
 0x719   : > { %v4184_v24 = vmul.f32 %v3894_v45, %v14799_v8  ;;  %v3896_v14 = vpop.f32.mrb[89].mxu1 }
 0x71a   : > { %v3897_v6 = vpop.f32.mrb[90].mxu1  ;;  %v12103_v45 = vpop.xlane.xlu0 %3293 }
 0x71b   : > { %v12072_v3 = vadd.f32 %v4184_v24, %v4142_v35  ;;  %v4185_v34 = vmul.f32 %v3897_v6, %v14799_v8  ;;  %v3899_v58 = vpop.f32.mrb[91].mxu1  ;;  %v14803_v24 = vld [vmem:[#allocation113_spill] sm:$0xff]  ;;  %v12107_v6 = vpop.xlane.xlu1 %3221 }
 0x71c   : > { %v4146_v14 = vmul.f32 %v14803_v24, %v14798_v49 }
 0x71d   : > { %v12081_v29 = vadd.f32 %v4185_v34, %v4143_v13  ;;  %4109 = vmatmul.mubr.bf16.gmra.mrb[196].mxu1 %v3603_v21  ;;  %v3607_v21 = vpack.c.bf16 %v11991_v20, %v11971_v33  ;;  %v14806_v20 = vld [vmem:[#allocation85_spill] sm:$0xff] }
 0x71e   : > { %6867 = vmatprep.mubr.msk.bf16.mxu1 %vm2350_vm12, %v3606_v27  ;;  %v3610_v27 = vpack.c.bf16 %v12015_v40, %v11997_v48  ;;  %v4149_v48 = vmul.f32 %v14806_v20, %v14798_v49  ;;  %v4153_v20 = vmul.f32 %v11949_v50, %v14798_v49  ;;  %v4155_v50 = vmul.f32 %v11976_v5, %v14798_v49 }
 0x720   : > { %v3902_v23 = vpop.f32.mrb[92].mxu1 }
 0x721   : > { %v4186_v31 = vmul.f32 %v3902_v23, %v14799_v8  ;;  %v3904_v32 = vpop.f32.mrb[93].mxu1  ;;  %v12119_v23 = vpop.xlane.xlu0 %3217 }
 0x722   : > { %v3905_v62 = vpop.f32.mrb[94].mxu1  ;;  %v14805_v32 = vld [vmem:[#allocation121_spill] sm:$0xff] }
 0x723   : > { %v12093_v60 = vadd.f32 %v4186_v31, %v4144_v61  ;;  %v4187_v16 = vmul.f32 %v3905_v62, %v14799_v8  ;;  %v3907_v19 = vpop.f32.mrb[95].mxu1  ;;  %v12124_v61 = vpop.xlane.xlu1 %3305  ;;  %v4148_v62 = vmul.f32 %v14805_v32, %v14798_v49 }
 0x725   : > { %v12100_v30 = vadd.f32 %v4187_v16, %v4145_v36  ;;  %4117 = vmatmul.mubr.bf16.gmra.mrb[200].mxu1 %v3605_v0  ;;  %v12131_v40 = vpop.xlane.xlu0 %3301 }
 0x726   : > { %6868 = vmatprep.mubr.msk.bf16.mxu1 %vm2350_vm12, %v3608_v10  ;;  %v3609_v10 = vpack.c.bf16 %v12025_v52, %v12001_v2  ;;  %v4151_v2 = vmul.f32 %v11923_v11, %v14798_v49 }
 0x728   : > { %v3910_v35 = vpop.f32.mrb[96].mxu1 }
 0x729   : > { %v4188_v53 = vmul.f32 %v3910_v35, %v14799_v8  ;;  %v3912_v13 = vpop.f32.mrb[97].mxu1  ;;  %v12138_v35 = vpop.xlane.xlu1 %3229 }
 0x72a   : > { %v3913_v55 = vpop.f32.mrb[98].mxu1  ;;  %14807 = vst [vmem:[#allocation81_spill] sm:$0xff] %v12138_v35  ;;  %v4150_v13 = vmul.f32 %v11896_v17, %v14798_v49 }
 0x72b   : > { %v12112_v25 = vadd.f32 %v4188_v53, %v4146_v14  ;;  %v4189_v34 = vmul.f32 %v3913_v55, %v14799_v8  ;;  %v3915_v58 = vpop.f32.mrb[99].mxu1  ;;  %v14808_v14 = vmov 0.0   ;;  %v12146_v55 = vpop.xlane.xlu0 %3225 }
 0x72c   : > { %14809 = vst [vmem:[#allocation80_spill] sm:$0xff] %v12146_v55 }
 0x72d   : > { %v12121_v28 = vadd.f32 %v4189_v34, %v4147_v47  ;;  %4125 = vmatmul.mubr.bf16.gmra.mrb[204].mxu1 %v3607_v21  ;;  %v12151_v52 = vpop.xlane.xlu1 %3313 }
 0x72e   : > { %6869 = vmatprep.mubr.msk.bf16.mxu1 %vm2350_vm12, %v3610_v27  ;;  %14810 = vst [vmem:[#allocation122_spill] sm:$0xff] %v12151_v52 }
 0x72f   : > { %v12158_v32 = vpop.xlane.xlu0 %3309 }
 0x730   : > { %v3918_v31 = vpop.f32.mrb[100].mxu1 }
 0x731   : > { %v4190_v7 = vmul.f32 %v3918_v31, %v14799_v8  ;;  %v3920_v36 = vpop.f32.mrb[101].mxu1 }
 0x732   : > { %v3921_v33 = vpop.f32.mrb[102].mxu1 }
 0x733   : > { %v12133_v16 = vadd.f32 %v4190_v7, %v4148_v62  ;;  %v4191_v19 = vmul.f32 %v3921_v33, %v14799_v8  ;;  %v3923_v0 = vpop.f32.mrb[103].mxu1  ;;  %v4152_v62 = vmul.f32 %v11925_v38, %v14798_v49  ;;  %v12162_v7 = vpop.xlane.xlu1 %3237 }
 0x734   : > { %14811 = vst [vmem:[#allocation99_spill] sm:$0xff] %v12162_v7 }
 0x735   : > { %v12140_v24 = vadd.f32 %v4191_v19, %v4149_v48  ;;  %4133 = vmatmul.mubr.bf16.gmra.mrb[208].mxu1 %v3609_v10  ;;  %v12170_v10 = vpop.xlane.xlu0 %3233 }
 0x736   : > { %7205 = vmatprep.mubr.msk.bf16.mxu1 %vm8216_vm1, %v14808_v14  ;;  %14812 = vst [vmem:[#allocation70_spill] sm:$0xff] %v12170_v10 }
 0x738   : > { %v3926_v53 = vpop.f32.mrb[104].mxu1 }
 0x739   : > { %v4192_v63 = vmul.f32 %v3926_v53, %v14799_v8  ;;  %v3928_v47 = vpop.f32.mrb[105].mxu1 }
 0x73a   : > { %v3929_v34 = vpop.f32.mrb[106].mxu1 }
 0x73b   : > { %v12153_v58 = vadd.f32 %v4192_v63, %v4150_v13  ;;  %v4193_v21 = vmul.f32 %v3929_v34, %v14799_v8  ;;  %v3931_v27 = vpop.f32.mrb[107].mxu1  ;;  %v12174_v13 = vpop.xlane.xlu1 %3321  ;;  %v4154_v63 = vmul.f32 %v11954_v22, %v14798_v49  ;;  %v4156_v22 = vmul.f32 %v11983_v57, %v14798_v49 }
 0x73c   : > { %14813 = vst [vmem:[#allocation82_spill] sm:$0xff] %v12174_v13 }
 0x73d   : > { %v12156_v31 = vadd.f32 %v4193_v21, %v4151_v2  ;;  %v12181_v21 = vpop.xlane.xlu0 %3317 }
 0x73e   : > { %14814 = vst [vmem:[#allocation89_spill] sm:$0xff] %v12181_v21 }
 0x740   : > { %v3934_v17 = vpop.f32.mrb[108].mxu1 }
 0x741   : > { %v4194_v36 = vmul.f32 %v3934_v17, %v14799_v8  ;;  %v3936_v11 = vpop.f32.mrb[109].mxu1 }
 0x742   : > { %v3937_v33 = vpop.f32.mrb[110].mxu1 }
 0x743   : > { %v12167_v48 = vadd.f32 %v4194_v36, %v4152_v62  ;;  %v4195_v19 = vmul.f32 %v3937_v33, %v14799_v8  ;;  %v3939_v0 = vpop.f32.mrb[111].mxu1  ;;  %v12186_v36 = vpop.xlane.xlu1 %3245 }
 0x744   : > { %14815 = vst [vmem:[#allocation120_spill] sm:$0xff] %v12186_v36 }
 0x745   : > { %v12172_v53 = vadd.f32 %v4195_v19, %v4153_v20  ;;  %v12192_v20 = vpop.xlane.xlu0 %3241 }
 0x746   : > { %14816 = vst [vmem:[#allocation69_spill] sm:$0xff] %v12192_v20 }
 0x748   : > { %v3942_v38 = vpop.f32.mrb[112].mxu1 }
 0x749   : > { %v4196_v47 = vmul.f32 %v3942_v38, %v14799_v8  ;;  %v3944_v34 = vpop.f32.mrb[113].mxu1  ;;  %v4157_v38 = vmul.f32 %v12006_v56, %v14798_v49 }
 0x74a   : > { %v3945_v2 = vpop.f32.mrb[114].mxu1 }
 0x74b   : > { %v12183_v27 = vadd.f32 %v4196_v47, %v4154_v63  ;;  %v4197_v17 = vmul.f32 %v3945_v2, %v14799_v8  ;;  %v3947_v62 = vpop.f32.mrb[115].mxu1  ;;  %v12197_v63 = vpop.xlane.xlu1 %3329 }
 0x74c   : > { %14817 = vst [vmem:[#allocation149_spill] sm:$0xff] %v12197_v63  ;;  %v4158_v62 = vmul.f32 %v12008_v9, %v14798_v49 }
 0x74d   : > { %v12188_v11 = vadd.f32 %v4197_v17, %v4155_v50  ;;  %v12204_v17 = vpop.xlane.xlu0 %3325 }
 0x74e   : > { %14818 = vst [vmem:[#allocation108_spill] sm:$0xff] %v12204_v17 }
 0x750   : > { %v3950_v33 = vpop.f32.mrb[116].mxu1 }
 0x751   : > { %v4198_v19 = vmul.f32 %v3950_v33, %v14799_v8  ;;  %v3952_v5 = vpop.f32.mrb[117].mxu1  ;;  %v12208_v33 = vpop.xlane.xlu1 %3365 }
 0x752   : > { %v3953_v0 = vpop.f32.mrb[118].mxu1 }
 0x753   : > { %v12199_v47 = vadd.f32 %v4198_v19, %v4156_v22  ;;  %v4199_v34 = vmul.f32 %v3953_v0, %v14799_v8  ;;  %v3955_v2 = vpop.f32.mrb[119].mxu1  ;;  %v4159_v22 = vmul.f32 %v12030_v12, %v14798_v49  ;;  %v4161_v12 = vmul.f32 %v12047_v46, %v14798_v49 }
 0x755   : > { %v12202_v50 = vadd.f32 %v4199_v34, %v4157_v38  ;;  %v12216_v34 = vpop.xlane.xlu0 %3369  ;;  %v12220_v20 = vpop.xlane.xlu1 %3373 }
 0x758   : > { %v3958_v57 = vpop.f32.mrb[120].mxu1 }
 0x759   : > { %v4200_v5 = vmul.f32 %v3958_v57, %v14799_v8  ;;  %v3960_v56 = vpop.f32.mrb[121].mxu1  ;;  %v4160_v57 = vmul.f32 %v12035_v54, %v14798_v49 }
 0x75a   : > { %v3961_v36 = vpop.f32.mrb[122].mxu1 }
 0x75b   : > { %v12213_v19 = vadd.f32 %v4200_v5, %v4158_v62  ;;  %v4201_v0 = vmul.f32 %v3961_v36, %v14799_v8  ;;  %v3963_v38 = vpop.f32.mrb[123].mxu1  ;;  %v12227_v62 = vpop.xlane.xlu0 %3377 }
 0x75d   : > { %v12218_v2 = vadd.f32 %v4201_v0, %v4159_v22  ;;  %v12232_v0 = vpop.xlane.xlu1 %3381 }
 0x75f   : > { %v12236_v54 = vpop.xlane.xlu0 %3385 }
 0x760   : > { %v3966_v9 = vpop.f32.mrb[124].mxu1 }
 0x761   : > { %v4202_v56 = vmul.f32 %v3966_v9, %v14799_v8  ;;  %v3968_v63 = vpop.f32.mrb[125].mxu1  ;;  %v14819_v9 = vld [vmem:[#allocation9_spill] sm:$0xff]  ;;  %v12239_v21 = vpop.xlane.xlu1 %3389 }
 0x762   : > { %v3969_v17 = vpop.f32.mrb[126].mxu1 }
 0x763   : > { %v12229_v36 = vadd.f32 %v4202_v56, %v4160_v57  ;;  %v4203_v5 = vmul.f32 %v3969_v17, %v14799_v8  ;;  %v3971_v22 = vpop.f32.mrb[127].mxu1 }
 0x765   : > { %v12234_v38 = vadd.f32 %v4203_v5, %v4161_v12  ;;  %v12248_v12 = vpop.xlane.xlu0 %3393  ;;  %v12250_v22 = vpop.xlane.xlu1 %3397 }
 0x766   : > { %14820 = vst [vmem:[#allocation11_spill] sm:$0xff] %v12248_v12  ;;  %14821 = vst [vmem:[#allocation124_spill] sm:$0xff] %v12250_v22 }
 0x768   : > { %v3974_v7 = vpop.f32.mrb[128].mxu1 }
 0x769   : > { %v4267_v63 = vmul.f32 %v3974_v7, %v14819_v9  ;;  %v3976_v10 = vpop.f32.mrb[129].mxu1 }
 0x76a   : > { %v3977_v13 = vpop.f32.mrb[130].mxu1 }
 0x76b   : > { %v12242_v46 = vadd.f32 %v4267_v63, %v12060_v18  ;;  %v4268_v57 = vmul.f32 %v3977_v13, %v14819_v9  ;;  %v3979_v17 = vpop.f32.mrb[131].mxu1  ;;  %v12257_v13 = vpop.xlane.xlu0 %3401 }
 0x76c   : > { %14822 = vst [vmem:[#allocation111_spill] sm:$0xff] %v12257_v13 }
 0x76d   : > { %v12246_v56 = vadd.f32 %v4268_v57, %v12072_v3  ;;  %v12262_v57 = vpop.xlane.xlu1 %3405 }
 0x76e   : > { %14823 = vst [vmem:[#allocation128_spill] sm:$0xff] %v12262_v57 }
 0x770   : > { %v3982_v5 = vpop.f32.mrb[132].mxu1 }
 0x771   : > { %v4269_v7 = vmul.f32 %v3982_v5, %v14819_v9  ;;  %v3984_v10 = vpop.f32.mrb[133].mxu1 }
 0x772   : > { %v3985_v35 = vpop.f32.mrb[134].mxu1  ;;  %v12265_v10 = vpop.xlane.xlu0 %3409 }
 0x773   : > { %v12254_v55 = vadd.f32 %v4269_v7, %v12081_v29  ;;  %v4270_v18 = vmul.f32 %v3985_v35, %v14819_v9  ;;  %v3987_v63 = vpop.f32.mrb[135].mxu1  ;;  %14824 = vst [vmem:[#allocation84_spill] sm:$0xff] %v12265_v10 }
 0x774   : > { %v12271_v63 = vpop.xlane.xlu1 %3413 }
 0x775   : > { %v12260_v3 = vadd.f32 %v4270_v18, %v12093_v60  ;;  %14825 = vst [vmem:[#allocation75_spill] sm:$0xff] %v12271_v63 }
 0x776   : > { %v12276_v57 = vpop.xlane.xlu0 %3445 }
 0x778   : > { %v3990_v17 = vpop.f32.mrb[136].mxu1  ;;  %v12279_v52 = vpop.xlane.xlu1 %3449 }
 0x779   : > { %v4271_v22 = vmul.f32 %v3990_v17, %v14819_v9  ;;  %v3992_v12 = vpop.f32.mrb[137].mxu1 }
 0x77a   : > { %v3993_v5 = vpop.f32.mrb[138].mxu1 }
 0x77b   : > { %v12268_v29 = vadd.f32 %v4271_v22, %v12100_v30  ;;  %v4272_v35 = vmul.f32 %v3993_v5, %v14819_v9  ;;  %v3995_v7 = vpop.f32.mrb[139].mxu1 }
 0x77c   : > { %v12290_v63 = vpop.xlane.xlu1 %3253 }
 0x77d   : > { %v12274_v60 = vadd.f32 %v4272_v35, %v12112_v25  ;;  %v12288_v25 = vpop.xlane.xlu0 %3249  ;;  %14830 = vst [vmem:[#allocation127_spill] sm:$0xff] %v12290_v63 }
 0x77e   : > { %14829 = vst [vmem:[#allocation87_spill] sm:$0xff] %v12288_v25 }
 0x77f   : > { %14826 = vst [vmem:[#allocation76_spill] sm:$0xff] %v12274_v60 }
 0x780   : > { %v3998_v18 = vpop.f32.mrb[140].mxu1 }
 0x781   : > { %v4273_v17 = vmul.f32 %v3998_v18, %v14819_v9  ;;  %v4000_v12 = vpop.f32.mrb[141].mxu1 }
 0x782   : > { %v4001_v13 = vpop.f32.mrb[142].mxu1 }
 0x783   : > { %v12282_v30 = vadd.f32 %v4273_v17, %v12121_v28  ;;  %v4274_v22 = vmul.f32 %v4001_v13, %v14819_v9  ;;  %v4003_v5 = vpop.f32.mrb[143].mxu1  ;;  %v12297_v13 = vpop.xlane.xlu0 %3453 }
 0x785   : > { %14827 = vst [vmem:[#allocation88_spill] sm:$0xff] %v12282_v30  ;;  %v12286_v7 = vadd.f32 %v4274_v22, %v12133_v16  ;;  %v12302_v22 = vpop.xlane.xlu1 %3457 }
 0x787   : > { %14828 = vst [vmem:[#allocation132_spill] sm:$0xff] %v12286_v7  ;;  %v5010_v7 = vld [vmem:[#allocation2 + $0x60] sm:$0xff] }
 0x788   : > { %v4006_v35 = vpop.f32.mrb[144].mxu1 }
 0x789   : > { %v4275_v18 = vmul.f32 %v4006_v35, %v14819_v9  ;;  %v4008_v12 = vpop.f32.mrb[145].mxu1 }
 0x78a   : > { %v4009_v10 = vpop.f32.mrb[146].mxu1  ;;  %v12305_v12 = vpop.xlane.xlu0 %3333 }
 0x78b   : > { %v12294_v60 = vadd.f32 %v4275_v18, %v12140_v24  ;;  %v4276_v28 = vmul.f32 %v4009_v10, %v14819_v9  ;;  %v4011_v17 = vpop.f32.mrb[147].mxu1  ;;  %14833 = vst [vmem:[#allocation137_spill] sm:$0xff] %v12305_v12 }
 0x78c   : > { %v12311_v17 = vpop.xlane.xlu1 %3337 }
 0x78d   : > { %14831 = vst [vmem:[#allocation155_spill] sm:$0xff] %v12294_v60  ;;  %v12300_v16 = vadd.f32 %v4276_v28, %v12153_v58  ;;  %v5009_v60 = vld [vmem:[#allocation2 + $0x58] sm:$0xff] }
 0x78e   : > { %v5013_v30 = vpack.c.bf16 %v5010_v7, %v5009_v60 }
 0x78f   : > { %14832 = vst [vmem:[#allocation159_spill] sm:$0xff] %v12300_v16  ;;  %v12316_v16 = vpop.xlane.xlu0 %3461 }
 0x790   : > { %v4014_v5 = vpop.f32.mrb[148].mxu1  ;;  %7202 = vmatpush3.bf16.msra.mxu1 %v5013_v30 }
 0x791   : > { %v4277_v63 = vmul.f32 %v4014_v5, %v14819_v9  ;;  %v4016_v25 = vpop.f32.mrb[149].mxu1  ;;  %7203 = vmatprep.subr.bf16.mxu1 %v14808_v14 }
 0x792   : > { %v4017_v35 = vpop.f32.mrb[150].mxu1 }
 0x793   : > { %v12308_v24 = vadd.f32 %v4277_v63, %v12156_v31  ;;  %v4278_v10 = vmul.f32 %v4017_v35, %v14819_v9  ;;  %v4019_v18 = vpop.f32.mrb[151].mxu1  ;;  %v12319_v31 = vpop.xlane.xlu1 %3465 }
 0x795   : > { %v12314_v58 = vadd.f32 %v4278_v10, %v12167_v48  ;;  %v12329_v10 = vpop.xlane.xlu0 %3417 }
 0x797   : > { %14834 = vst [vmem:[#allocation158_spill] sm:$0xff] %v12314_v58 }
 0x798   : > { %v4022_v28 = vpop.f32.mrb[152].mxu1 }
 0x799   : > { %v4279_v5 = vmul.f32 %v4022_v28, %v14819_v9  ;;  %v4024_v25 = vpop.f32.mrb[153].mxu1 }
 0x79a   : > { %v4025_v12 = vpop.f32.mrb[154].mxu1  ;;  %v12331_v25 = vpop.xlane.xlu1 %3421 }
 0x79b   : > { %v12322_v63 = vadd.f32 %v4279_v5, %v12172_v53  ;;  %v4280_v35 = vmul.f32 %v4025_v12, %v14819_v9  ;;  %v4027_v18 = vpop.f32.mrb[155].mxu1  ;;  %v12338_v5 = vpop.xlane.xlu0 %3469 }
 0x79d   : > { %14835 = vst [vmem:[#allocation154_spill] sm:$0xff] %v12322_v63  ;;  %v12326_v48 = vadd.f32 %v4280_v35, %v12183_v27 }
 0x79e   : > { %v12343_v35 = vpop.xlane.xlu1 %3473 }
 0x79f   : > { %14836 = vst [vmem:[#allocation156_spill] sm:$0xff] %v12326_v48 }
 0x7a0   : > { %v4030_v28 = vpop.f32.mrb[156].mxu1 }
 0x7a1   : > { %v4281_v60 = vmul.f32 %v4030_v28, %v14819_v9  ;;  %v4032_v7 = vpop.f32.mrb[157].mxu1 }
 0x7a2   : > { %v4033_v58 = vpop.f32.mrb[158].mxu1  ;;  %v12346_v7 = vpop.xlane.xlu0 %3257 }
 0x7a3   : > { %v12335_v53 = vadd.f32 %v4281_v60, %v12188_v11  ;;  %v4282_v12 = vmul.f32 %v4033_v58, %v14819_v9  ;;  %v4035_v30 = vpop.f32.mrb[159].mxu1 }
 0x7a4   : > { %v4225_v30 = vmul.f32 %v12033_v15, %v14799_v8  ;;  %v4310_v15 = vmul.f32 %v12208_v33, %v14819_v9 }
 0x7a5   : > { %14837 = vst [vmem:[#allocation165_spill] sm:$0xff] %v12335_v53  ;;  %v12341_v27 = vadd.f32 %v4282_v12, %v12199_v47  ;;  %v12354_v47 = vpop.xlane.xlu1 %3261 }
 0x7a6   : > { %14840 = vst [vmem:[#allocation157_spill] sm:$0xff] %v12354_v47  ;;  %v4227_v47 = vmul.f32 %v12070_v1, %v14799_v8  ;;  %v4312_v1 = vmul.f32 %v12220_v20, %v14819_v9 }
 0x7a7   : > { %14838 = vst [vmem:[#allocation102_spill] sm:$0xff] %v12341_v27 }
 0x7a8   : > { %v4038_v18 = vpop.f32.mrb[160].mxu1 }
 0x7a9   : > { %v4283_v48 = vmul.f32 %v4038_v18, %v14819_v9  ;;  %v4040_v63 = vpop.f32.mrb[161].mxu1  ;;  %v4162_v18 = vmul.f32 %v12011_v41, %v14798_v49 }
 0x7aa   : > { %v4041_v28 = vpop.f32.mrb[162].mxu1  ;;  %v4226_v63 = vmul.f32 %v12038_v37, %v14799_v8 }
 0x7ab   : > { %v12349_v11 = vadd.f32 %v4283_v48, %v12202_v50  ;;  %v4284_v58 = vmul.f32 %v4041_v28, %v14819_v9  ;;  %v4043_v60 = vpop.f32.mrb[163].mxu1  ;;  %v4309_v50 = vmul.f32 %v12045_v59, %v14819_v9  ;;  %v4163_v48 = vmul.f32 %v12021_v4, %v14798_v49  ;;  %v12376_v4 = vpop.xlane.xlu1 %3481 }
 0x7ac   : > { %v4246_v60 = vadd.f32 %v4225_v30, %v4162_v18 }
 0x7ad   : > { %14839 = vst [vmem:[#allocation164_spill] sm:$0xff] %v12349_v11  ;;  %v12357_v12 = vadd.f32 %v4284_v58, %v12213_v19  ;;  %v14842_v11 = vld [vmem:[#allocation10_spill] sm:$0xff]  ;;  %v12371_v58 = vpop.xlane.xlu0 %3477  ;;  %v4247_v41 = vadd.f32 %v4226_v63, %v4163_v48  ;;  %v4165_v48 = vmul.f32 %v12049_v39, %v14798_v49 }
 0x7ae   : > { %v4393_v19 = vmul.f32 %v12276_v57, %v14842_v11  ;;  %v4394_v59 = vmul.f32 %v12279_v52, %v14842_v11  ;;  %v4330_v53 = vadd.f32 %v4309_v50, %v4246_v60  ;;  %v4228_v52 = vmul.f32 %v12063_v26, %v14799_v8 }
 0x7af   : > { %14841 = vst [vmem:[#allocation162_spill] sm:$0xff] %v12357_v12  ;;  %v4331_v57 = vadd.f32 %v4310_v15, %v4247_v41  ;;  %v4164_v50 = vmul.f32 %v12058_v42, %v14798_v49  ;;  %v4395_v26 = vmul.f32 %v12297_v13, %v14842_v11  ;;  %v12401_v15 = vpop.xlane.xlu1 %3345  ;;  %v4229_v13 = vmul.f32 %v12103_v45, %v14799_v8 }
 0x7b0   : > { %v4046_v28 = vpop.f32.mrb[164].mxu1  ;;  %v4167_v45 = vmul.f32 %v12079_v43, %v14798_v49 }
 0x7b1   : > { %v4285_v37 = vmul.f32 %v4046_v28, %v14819_v9  ;;  %v4048_v12 = vpop.f32.mrb[165].mxu1  ;;  %v4414_v28 = vadd.f32 %v4393_v19, %v4330_v53  ;;  %v4415_v63 = vadd.f32 %v4394_v59, %v4331_v57  ;;  %v4248_v53 = vadd.f32 %v4227_v47, %v4164_v50 }
 0x7b2   : > { %v4049_v27 = vpop.f32.mrb[166].mxu1  ;;  %v4396_v19 = vmul.f32 %v12302_v22, %v14842_v11  ;;  %v4230_v22 = vmul.f32 %v12091_v44, %v14799_v8  ;;  %v4314_v50 = vmul.f32 %v12232_v0, %v14819_v9  ;;  %v4397_v44 = vmul.f32 %v12316_v16, %v14842_v11 }
 0x7b3   : > { %v12379_v33 = vadd.f32 %v4285_v37, %v12218_v2  ;;  %v4286_v30 = vmul.f32 %v4049_v27, %v14819_v9  ;;  %v4051_v18 = vpop.f32.mrb[167].mxu1  ;;  %v4311_v2 = vmul.f32 %v12216_v34, %v14819_v9  ;;  %v12393_v27 = vpop.xlane.xlu0 %3341  ;;  %7930 = vrcp.f32 %v4414_v28 }
 0x7b4   : > { %v4249_v34 = vadd.f32 %v4228_v52, %v4165_v48  ;;  %7932 = vrcp.f32 %v4415_v63  ;;  %v4313_v52 = vmul.f32 %v12227_v62, %v14819_v9  ;;  %v12421_v63 = vpop.xlane.xlu1 %3489  ;;  %v4398_v62 = vmul.f32 %v12319_v31, %v14842_v11 }
 0x7b5   : > { %v12385_v12 = vadd.f32 %v4286_v30, %v12229_v36  ;;  %v4332_v37 = vadd.f32 %v4311_v2, %v4248_v53  ;;  %v4231_v16 = vmul.f32 %v12131_v40, %v14799_v8  ;;  %v4169_v40 = vmul.f32 %v12107_v6, %v14798_v49 }
 0x7b6   : > { %v4333_v59 = vadd.f32 %v4312_v1, %v4249_v34  ;;  %v4251_v1 = vadd.f32 %v4230_v22, %v4167_v45  ;;  %v4400_v6 = vmul.f32 %v12343_v35, %v14842_v11 }
 0x7b7   : > { %v4416_v30 = vadd.f32 %v4395_v26, %v4332_v37  ;;  %v12412_v18 = vpop.xlane.xlu0 %3485 }
 0x7b8   : > { %v4054_v36 = vpop.f32.mrb[168].mxu1  ;;  %v4417_v28 = vadd.f32 %v4396_v19, %v4333_v59  ;;  %v4335_v19 = vadd.f32 %v4314_v50, %v4251_v1  ;;  %v12438_v37 = vpop.xlane.xlu1 %3429  ;;  %v4232_v59 = vmul.f32 %v12124_v61, %v14799_v8  ;;  %v4399_v61 = vmul.f32 %v12338_v5, %v14842_v11 }
 0x7b9   : > { %v4287_v42 = vmul.f32 %v4054_v36, %v14819_v9  ;;  %v4056_v60 = vpop.f32.mrb[169].mxu1  ;;  %7934 = vrcp.f32 %v4416_v30  ;;  %v4315_v30 = vmul.f32 %v12236_v54, %v14819_v9 }
 0x7ba   : > { %v4057_v39 = vpop.f32.mrb[170].mxu1  ;;  %7936 = vrcp.f32 %v4417_v28  ;;  %v4253_v54 = vadd.f32 %v4232_v59, %v4169_v40 }
 0x7bb   : > { %v12407_v20 = vadd.f32 %v4287_v42, %v12234_v38  ;;  %v4351_v47 = vmul.f32 %v4057_v39, %v14842_v11  ;;  %v4059_v41 = vpop.f32.mrb[171].mxu1  ;;  %v4166_v38 = vmul.f32 %v12086_v51, %v14798_v49  ;;  %v12432_v26 = vpop.xlane.xlu0 %3425 }
 0x7bd   : > { %v4372_v57 = vadd.f32 %v4351_v47, %v12242_v46  ;;  %v4250_v46 = vadd.f32 %v4229_v13, %v4166_v38  ;;  %v7931_v53 = vpop.eup %7930  ;;  %v4419_v13 = vadd.f32 %v4398_v62, %v4335_v19 }
 0x7be   : > { %v7933_v34 = vpop.eup %7932 }
 0x7bf   : > { %v4334_v43 = vadd.f32 %v4313_v52, %v4250_v46  ;;  %v4456_v47 = vmul.f32 %v7931_v53, %v4372_v57  ;;  %v4316_v57 = vmul.f32 %v12239_v21, %v14819_v9 }
 0x7c0   : > { %v4062_v2 = vpop.f32.mrb[172].mxu1 }
 0x7c1   : > { %v4352_v48 = vmul.f32 %v4062_v2, %v14842_v11  ;;  %v4064_v51 = vpop.f32.mrb[173].mxu1  ;;  %v4418_v39 = vadd.f32 %v4397_v44, %v4334_v43  ;;  %v12461_v2 = vpop.xlane.xlu1 %3497  ;;  %v4337_v1 = vadd.f32 %v4316_v57, %v4253_v54  ;;  %v14843_v43 = vld [vmem:[#allocation122_spill] sm:$0xff]  ;;  %v4402_v57 = vmul.f32 %v12376_v4, %v14842_v11 }
 0x7c2   : > { %v4065_v36 = vpop.f32.mrb[174].mxu1  ;;  %v4233_v51 = vmul.f32 %v12158_v32, %v14799_v8  ;;  %v14846_v32 = vld [vmem:[#allocation81_spill] sm:$0xff] }
 0x7c3   : > { %v4373_v0 = vadd.f32 %v4352_v48, %v12246_v56  ;;  %v4353_v42 = vmul.f32 %v4065_v36, %v14842_v11  ;;  %v4067_v60 = vpop.f32.mrb[175].mxu1  ;;  %v4168_v56 = vmul.f32 %v12119_v23, %v14798_v49  ;;  %7938 = vrcp.f32 %v4418_v39  ;;  %v7935_v21 = vpop.eup %7934 }
 0x7c4   : > { %7940 = vrcp.f32 %v4419_v13  ;;  %v7937_v48 = vpop.eup %7936  ;;  %v14844_v60 = vld [vmem:[#allocation80_spill] sm:$0xff]  ;;  %v4401_v13 = vmul.f32 %v12371_v58, %v14842_v11 }
 0x7c5   : > { %v4457_v31 = vmul.f32 %v7933_v34, %v4373_v0  ;;  %v4374_v41 = vadd.f32 %v4353_v42, %v12254_v55  ;;  %v4252_v38 = vadd.f32 %v4231_v16, %v4168_v56  ;;  %v12453_v55 = vpop.xlane.xlu0 %3493  ;;  %v4234_v0 = vmul.f32 %v14843_v43, %v14799_v8  ;;  %v14845_v34 = vld [vmem:[#allocation11_spill] sm:$0xff]  ;;  %v12482_v56 = vpop.xlane.xlu1 %3269 }
 0x7c6   : > { %v4421_v42 = vadd.f32 %v4400_v6, %v4337_v1  ;;  %v4317_v16 = vmul.f32 %v14845_v34, %v14819_v9  ;;  %v14851_v1 = vld [vmem:[#allocation82_spill] sm:$0xff]  ;;  %v14854_v34 = vld [vmem:[#allocation99_spill] sm:$0xff] }
 0x7c7   : > { %v4477_v22 = vpack.c.bf16 %v4457_v31, %v4456_v47  ;;  %v4336_v50 = vadd.f32 %v4315_v30, %v4252_v38  ;;  %v4458_v35 = vmul.f32 %v7935_v21, %v4374_v41  ;;  %v4171_v47 = vmul.f32 %v14846_v32, %v14798_v49  ;;  %v14847_v31 = vld [vmem:[#allocation124_spill] sm:$0xff] }
 0x7c8   : > { %v4070_v28 = vpop.f32.mrb[176].mxu1  ;;  %v4318_v41 = vmul.f32 %v14847_v31, %v14819_v9  ;;  %v4403_v31 = vmul.f32 %v12412_v18, %v14842_v11 }
 0x7c9   : > { %v4354_v23 = vmul.f32 %v4070_v28, %v14842_v11  ;;  %v4072_v52 = vpop.f32.mrb[177].mxu1  ;;  %7158 = vmatmul.mubr.msk.bf16.vlgmr.msra.gmra.mrb[212].mxu0 %vm685_vm4, %v4477_v22  ;;  %v4420_v62 = vadd.f32 %v4399_v61, %v4336_v50  ;;  %v12474_v19 = vpop.xlane.xlu0 %3265  ;;  %v4255_v40 = vadd.f32 %v4234_v0, %v4171_v47  ;;  %v14853_v0 = vld [vmem:[#allocation111_spill] sm:$0xff] }
 0x7ca   : > { %v4073_v45 = vpop.f32.mrb[178].mxu1  ;;  %7161 = vmatprep.mubr.msk.bf16.mxu0 %vm8216_vm1, %v14808_v14 }
 0x7cb   : > { %v4375_v5 = vadd.f32 %v4354_v23, %v12260_v3  ;;  %v4355_v46 = vmul.f32 %v4073_v45, %v14842_v11  ;;  %v4075_v44 = vpop.f32.mrb[179].mxu1  ;;  %v4170_v3 = vmul.f32 %v14844_v60, %v14798_v49  ;;  %7942 = vrcp.f32 %v4420_v62  ;;  %v14848_v23 = vld [vmem:[#allocation76_spill] sm:$0xff]  ;;  %v14849_v45 = vld [vmem:[#allocation89_spill] sm:$0xff]  ;;  %v12503_v60 = vpop.xlane.xlu1 %3505 }
 0x7cc   : > { %7944 = vrcp.f32 %v4421_v42  ;;  %v4235_v21 = vmul.f32 %v14849_v45, %v14799_v8  ;;  %v4339_v50 = vadd.f32 %v4318_v41, %v4255_v40  ;;  %v4236_v62 = vmul.f32 %v14851_v1, %v14799_v8  ;;  %v14860_v1 = vld [vmem:[#allocation69_spill] sm:$0xff] }
 0x7cd   : > { %v4459_v36 = vmul.f32 %v7937_v48, %v4375_v5  ;;  %v4376_v53 = vadd.f32 %v4355_v46, %v12268_v29  ;;  %v4254_v59 = vadd.f32 %v4233_v51, %v4170_v3  ;;  %v7939_v38 = vpop.eup %7938  ;;  %v12494_v46 = vpop.xlane.xlu0 %3501  ;;  %v14850_v48 = vld [vmem:[#allocation88_spill] sm:$0xff]  ;;  %v4319_v42 = vmul.f32 %v14853_v0, %v14819_v9 }
 0x7ce   : > { %v7941_v6 = vpop.eup %7940  ;;  %v14862_v0 = vld [vmem:[#allocation120_spill] sm:$0xff] }
 0x7cf   : > { %v4478_v39 = vpack.c.bf16 %v4459_v36, %v4458_v35  ;;  %v4338_v61 = vadd.f32 %v4317_v16, %v4254_v59  ;;  %v4460_v4 = vmul.f32 %v7939_v38, %v4376_v53  ;;  %v4423_v35 = vadd.f32 %v4402_v57, %v4339_v50  ;;  %v14852_v36 = vld [vmem:[#allocation70_spill] sm:$0xff]  ;;  %v14855_v53 = vld [vmem:[#allocation128_spill] sm:$0xff]  ;;  %v14858_v50 = vld [vmem:[#allocation155_spill] sm:$0xff] }
 0x7d0   : > { %v4078_v29 = vpop.f32.mrb[180].mxu1  ;;  %v4172_v43 = vmul.f32 %v14852_v36, %v14798_v49  ;;  %v4173_v16 = vmul.f32 %v14854_v34, %v14798_v49 }
 0x7d1   : > { %v4356_v30 = vmul.f32 %v4078_v29, %v14842_v11  ;;  %v4080_v22 = vpop.f32.mrb[181].mxu1  ;;  %7162 = vmatmul.mubr.msk.bf16.gmra.mrb[216].mxu0 %vm685_vm4, %v4478_v39  ;;  %v4422_v5 = vadd.f32 %v4401_v13, %v4338_v61  ;;  %v4320_v39 = vmul.f32 %v14855_v53, %v14819_v9  ;;  %v4404_v13 = vmul.f32 %v12421_v63, %v14842_v11  ;;  %v12517_v57 = vpop.xlane.xlu0 %3349 }
 0x7d2   : > { %v4081_v28 = vpop.f32.mrb[182].mxu1  ;;  %7165 = vmatprep.mubr.msk.bf16.mxu0 %vm8216_vm1, %v14808_v14  ;;  %v4256_v47 = vadd.f32 %v4235_v21, %v4172_v43  ;;  %v4257_v59 = vadd.f32 %v4236_v62, %v4173_v16  ;;  %v12523_v63 = vpop.xlane.xlu1 %3353  ;;  %v4174_v62 = vmul.f32 %v14860_v1, %v14798_v49  ;;  %v4405_v53 = vmul.f32 %v12453_v55, %v14842_v11  ;;  %v14864_v55 = vld [vmem:[#allocation159_spill] sm:$0xff] }
 0x7d3   : > { %v4377_v58 = vadd.f32 %v4356_v30, %v14848_v23  ;;  %v4357_v52 = vmul.f32 %v4081_v28, %v14842_v11  ;;  %v4083_v54 = vpop.f32.mrb[183].mxu1  ;;  %7946 = vrcp.f32 %v4422_v5  ;;  %v14856_v28 = vld [vmem:[#allocation132_spill] sm:$0xff]  ;;  %v14867_v1 = vld [vmem:[#allocation127_spill] sm:$0xff] }
 0x7d4   : > { %7948 = vrcp.f32 %v4423_v35  ;;  %v4340_v40 = vadd.f32 %v4319_v42, %v4256_v47  ;;  %v4341_v54 = vadd.f32 %v4320_v39, %v4257_v59  ;;  %v14861_v35 = vld [vmem:[#allocation84_spill] sm:$0xff]  ;;  %v4175_v42 = vmul.f32 %v14862_v0, %v14798_v49 }
 0x7d5   : > { %v4461_v44 = vmul.f32 %v7941_v6, %v4377_v58  ;;  %v4378_v51 = vadd.f32 %v4357_v52, %v14850_v48  ;;  %v7943_v22 = vpop.eup %7942  ;;  %v14857_v58 = vld [vmem:[#allocation108_spill] sm:$0xff]  ;;  %v4321_v36 = vmul.f32 %v14861_v35, %v14819_v9  ;;  %v12538_v39 = vpop.xlane.xlu0 %3509 }
 0x7d6   : > { %v7945_v23 = vpop.eup %7944  ;;  %v4237_v52 = vmul.f32 %v14857_v58, %v14799_v8  ;;  %v4424_v6 = vadd.f32 %v4403_v31, %v4340_v40  ;;  %v4425_v48 = vadd.f32 %v4404_v13, %v4341_v54 }
 0x7d7   : > { %v4479_v3 = vpack.c.bf16 %v4461_v44, %v4460_v4  ;;  %v4462_v45 = vmul.f32 %v7943_v22, %v4378_v51  ;;  %v14859_v4 = vld [vmem:[#allocation149_spill] sm:$0xff] }
 0x7d8   : > { %v4086_v32 = vpop.f32.mrb[184].mxu1  ;;  %v4238_v44 = vmul.f32 %v14859_v4, %v14799_v8  ;;  %v4258_v16 = vadd.f32 %v4237_v52, %v4174_v62  ;;  %7950 = vrcp.f32 %v4424_v6  ;;  %v4240_v6 = vmul.f32 %v12311_v17, %v14799_v8 }
 0x7d9   : > { %v4358_v41 = vmul.f32 %v4086_v32, %v14842_v11  ;;  %v4088_v29 = vpop.f32.mrb[185].mxu1  ;;  %7166 = vmatmul.mubr.msk.bf16.gmra.mrb[220].mxu0 %vm685_vm4, %v4479_v3  ;;  %v14863_v3 = vld [vmem:[#allocation75_spill] sm:$0xff]  ;;  %7952 = vrcp.f32 %v4425_v48  ;;  %v4323_v4 = vmul.f32 %v12329_v10, %v14819_v9  ;;  %v4177_v62 = vmul.f32 %v14867_v1, %v14798_v49 }
 0x7da   : > { %v4089_v30 = vpop.f32.mrb[186].mxu1  ;;  %7169 = vmatprep.mubr.msk.bf16.mxu0 %vm8216_vm1, %v14808_v14  ;;  %v4322_v51 = vmul.f32 %v14863_v3, %v14819_v9  ;;  %v4259_v31 = vadd.f32 %v4238_v44, %v4175_v42  ;;  %v4342_v13 = vadd.f32 %v4321_v36, %v4258_v16  ;;  %v12557_v44 = vpop.xlane.xlu0 %3433  ;;  %v4407_v17 = vmul.f32 %v12494_v46, %v14842_v11 }
 0x7db   : > { %v4379_v18 = vadd.f32 %v4358_v41, %v14856_v28  ;;  %v4359_v38 = vmul.f32 %v4089_v30, %v14842_v11  ;;  %v4091_v61 = vpop.f32.mrb[187].mxu1  ;;  %v4406_v41 = vmul.f32 %v12461_v2, %v14842_v11  ;;  %v3514_v30 = vpop.xlane.xlu1 %3513  ;;  %v4261_v10 = vadd.f32 %v4240_v6, %v4177_v62 }
 0x7dc   : > { %v14865_v61 = vld [vmem:[#allocation137_spill] sm:$0xff]  ;;  %v4426_v58 = vadd.f32 %v4405_v53, %v4342_v13  ;;  %v4408_v42 = vmul.f32 %v12503_v60, %v14842_v11  ;;  %v14869_v13 = vld [vmem:[#allocation154_spill] sm:$0xff]  ;;  %v4410_v6 = vmul.f32 %v3514_v30, %v14842_v11 }
 0x7dd   : > { %v4463_v21 = vmul.f32 %v7945_v23, %v4379_v18  ;;  %v4380_v5 = vadd.f32 %v4359_v38, %v14858_v50  ;;  %v7947_v59 = vpop.eup %7946  ;;  %v4343_v38 = vadd.f32 %v4322_v51, %v4259_v31  ;;  %v4239_v23 = vmul.f32 %v14865_v61, %v14799_v8 }
 0x7de   : > { %v7949_v18 = vpop.eup %7948  ;;  %7954 = vrcp.f32 %v4426_v58  ;;  %v4241_v31 = vmul.f32 %v12393_v27, %v14799_v8  ;;  %v14870_v27 = vld [vmem:[#allocation157_spill] sm:$0xff]  ;;  %v4326_v58 = vmul.f32 %v12438_v37, %v14819_v9 }
 0x7df   : > { %v4480_v43 = vpack.c.bf16 %v4463_v21, %v4462_v45  ;;  %v4464_v52 = vmul.f32 %v7947_v59, %v4380_v5  ;;  %v4427_v45 = vadd.f32 %v4406_v41, %v4343_v38  ;;  %v14866_v21 = vld [vmem:[#allocation87_spill] sm:$0xff]  ;;  %v4324_v5 = vmul.f32 %v12331_v25, %v14819_v9  ;;  %v3438_v36 = vpop.xlane.xlu1 %3437 }
 0x7e0   : > { %v4094_v34 = vpop.f32.mrb[188].mxu1  ;;  %v4176_v50 = vmul.f32 %v14866_v21, %v14798_v49 }
 0x7e1   : > { %v4360_v32 = vmul.f32 %v4094_v34, %v14842_v11  ;;  %v4096_v47 = vpop.f32.mrb[189].mxu1  ;;  %7170 = vmatmul.mubr.msk.bf16.gmra.mrb[224].mxu0 %vm685_vm4, %v4480_v43  ;;  %7956 = vrcp.f32 %v4427_v45  ;;  %v14868_v34 = vld [vmem:[#allocation158_spill] sm:$0xff] }
 0x7e2   : > { %v4097_v29 = vpop.f32.mrb[190].mxu1  ;;  %7173 = vmatprep.mubr.msk.bf16.mxu0 %vm8216_vm1, %v14808_v14  ;;  %v4260_v35 = vadd.f32 %v4239_v23, %v4176_v50  ;;  %v7951_v25 = vpop.eup %7950  ;;  %v4345_v47 = vadd.f32 %v4324_v5, %v4261_v10  ;;  %v4179_v23 = vmul.f32 %v14870_v27, %v14798_v49 }
 0x7e3   : > { %v4381_v22 = vadd.f32 %v4360_v32, %v14864_v55  ;;  %v4361_v40 = vmul.f32 %v4097_v29, %v14842_v11  ;;  %v4099_v28 = vpop.f32.mrb[191].mxu1  ;;  %v7953_v32 = vpop.eup %7952 }
 0x7e4   : > { %v4344_v51 = vadd.f32 %v4323_v4, %v4260_v35  ;;  %v3518_v29 = vpop.xlane.xlu0 %3517  ;;  %v4178_v28 = vmul.f32 %v12346_v7, %v14798_v49  ;;  %v3522_v38 = vpop.xlane.xlu1 %3521  ;;  %v14871_v4 = vld [vmem:[#allocation156_spill] sm:$0xff] }
 0x7e5   : > { %v4465_v2 = vmul.f32 %v7949_v18, %v4381_v22  ;;  %v4382_v54 = vadd.f32 %v4361_v40, %v12308_v24  ;;  %v4242_v22 = vmul.f32 %v12401_v15, %v14799_v8  ;;  %v4429_v40 = vadd.f32 %v4408_v42, %v4345_v47 }
 0x7e6   : > { %v4428_v41 = vadd.f32 %v4407_v17, %v4344_v51  ;;  %v4325_v18 = vmul.f32 %v12432_v26, %v14819_v9  ;;  %v4409_v15 = vmul.f32 %v12538_v39, %v14842_v11  ;;  %v4244_v42 = vmul.f32 %v12523_v63, %v14799_v8 }
 0x7e7   : > { %v4481_v48 = vpack.c.bf16 %v4465_v2, %v4464_v52  ;;  %v4466_v59 = vmul.f32 %v7951_v25, %v4382_v54  ;;  %v4262_v2 = vadd.f32 %v4241_v31, %v4178_v28  ;;  %v4263_v26 = vadd.f32 %v4242_v22, %v4179_v23  ;;  %v14874_v23 = vld [vmem:[#allocation164_spill] sm:$0xff] }
 0x7e8   : > { %v4102_v24 = vpop.f32.mrb[192].mxu1  ;;  %7958 = vrcp.f32 %v4428_v41  ;;  %v7955_v37 = vpop.eup %7954  ;;  %v4180_v25 = vmul.f32 %v12474_v19, %v14798_v49  ;;  %v4327_v51 = vmul.f32 %v12557_v44, %v14819_v9  ;;  %v4411_v63 = vmul.f32 %v3518_v29, %v14842_v11 }
 0x7e9   : > { %v4362_v43 = vmul.f32 %v4102_v24, %v14842_v11  ;;  %v4104_v0 = vpop.f32.mrb[193].mxu1  ;;  %7174 = vmatmul.mubr.msk.bf16.gmra.mrb[228].mxu0 %vm685_vm4, %v4481_v48  ;;  %7960 = vrcp.f32 %v4429_v40  ;;  %v4346_v21 = vadd.f32 %v4325_v18, %v4262_v2  ;;  %v3274_v50 = vpop.xlane.xlu0 %3273  ;;  %v4347_v5 = vadd.f32 %v4326_v58, %v4263_v26 }
 0x7ea   : > { %v4105_v3 = vpop.f32.mrb[194].mxu1  ;;  %7177 = vmatprep.mubr.msk.bf16.mxu0 %vm8216_vm1, %v14808_v14  ;;  %v4243_v24 = vmul.f32 %v12517_v57, %v14799_v8  ;;  %v3358_v17 = vpop.xlane.xlu1 %3357  ;;  %v14872_v0 = vld [vmem:[#allocation165_spill] sm:$0xff]  ;;  %v4181_v57 = vmul.f32 %v12482_v56, %v14798_v49  ;;  %v4412_v41 = vmul.f32 %v3522_v38, %v14842_v11  ;;  %v4182_v56 = vmul.f32 %v3274_v50, %v14798_v49 }
 0x7eb   : > { %v4383_v16 = vadd.f32 %v4362_v43, %v14868_v34  ;;  %v4363_v46 = vmul.f32 %v4105_v3, %v14842_v11  ;;  %v4107_v53 = vpop.f32.mrb[195].mxu1  ;;  %v7957_v62 = vpop.eup %7956  ;;  %v4430_v35 = vadd.f32 %v4409_v15, %v4346_v21  ;;  %v4431_v3 = vadd.f32 %v4410_v6, %v4347_v5 }
 0x7ec   : > { %v4265_v44 = vadd.f32 %v4244_v42, %v4181_v57 }
 0x7ed   : > { %v4467_v60 = vmul.f32 %v7953_v32, %v4383_v16  ;;  %v4384_v55 = vadd.f32 %v4363_v46, %v14869_v13  ;;  %v4328_v16 = vmul.f32 %v3438_v36, %v14819_v9  ;;  %v4245_v46 = vmul.f32 %v3358_v17, %v14799_v8  ;;  %v3442_v47 = vpop.xlane.xlu0 %3441 }
 0x7ee   : > { %v4264_v32 = vadd.f32 %v4243_v24, %v4180_v25  ;;  %7962 = vrcp.f32 %v4430_v35  ;;  %v4329_v18 = vmul.f32 %v3442_v47, %v14819_v9  ;;  %v3526_v38 = vpop.xlane.xlu1 %3525  ;;  %v14876_v47 = vld [vmem:[#allocation18_spill] sm:$0xff] }
 0x7ef   : > { %v4482_v61 = vpack.c.bf16 %v4467_v60, %v4466_v59  ;;  %v4468_v30 = vmul.f32 %v7955_v37, %v4384_v55  ;;  %7964 = vrcp.f32 %v4431_v3  ;;  %v14873_v60 = vld [vmem:[#allocation102_spill] sm:$0xff]  ;;  %v4349_v40 = vadd.f32 %v4328_v16, %v4265_v44 }
 0x7f0   : > { %v4110_v52 = vpop.f32.mrb[196].mxu1  ;;  %v4348_v59 = vadd.f32 %v4327_v51, %v4264_v32  ;;  %v4266_v28 = vadd.f32 %v4245_v46, %v4182_v56  ;;  %v14875_v37 = vld [vmem:[#allocation162_spill] sm:$0xff] }
 0x7f1   : > { %v4364_v54 = vmul.f32 %v4110_v52, %v14842_v11  ;;  %v4112_v7 = vpop.f32.mrb[197].mxu1  ;;  %7178 = vmatmul.mubr.msk.bf16.gmra.mrb[232].mxu0 %vm685_vm4, %v4482_v61  ;;  %v4433_v52 = vadd.f32 %v4412_v41, %v4349_v40  ;;  %v14877_v41 = vld [vmem:[#allocation19_spill] sm:$0xff] }
 0x7f2   : > { %v4113_v45 = vpop.f32.mrb[198].mxu1  ;;  %7181 = vmatprep.mubr.msk.bf16.mxu0 %vm8216_vm1, %v14808_v14  ;;  %v7959_v8 = vpop.eup %7958  ;;  %v4432_v61 = vadd.f32 %v4411_v63, %v4348_v59  ;;  %v4350_v15 = vadd.f32 %v4329_v18, %v4266_v28  ;;  %v14879_v18 = vld [vmem:[#allocation24_spill] sm:$0xff] }
 0x7f3   : > { %v4385_v48 = vadd.f32 %v4364_v54, %v14871_v4  ;;  %v4365_v39 = vmul.f32 %v4113_v45, %v14842_v11  ;;  %v4115_v1 = vpop.f32.mrb[199].mxu1  ;;  %v7961_v22 = vpop.eup %7960  ;;  %v4413_v54 = vmul.f32 %v3526_v38, %v14842_v11 }
 0x7f4   : > { %7966 = vrcp.f32 %v4432_v61 }
 0x7f5   : > { %v4469_v43 = vmul.f32 %v7957_v62, %v4385_v48  ;;  %v4386_v10 = vadd.f32 %v4365_v39, %v14872_v0  ;;  %7968 = vrcp.f32 %v4433_v52  ;;  %v4434_v39 = vadd.f32 %v4413_v54, %v4350_v15 }
 0x7f7   : > { %v4483_v34 = vpack.c.bf16 %v4469_v43, %v4468_v30  ;;  %v4470_v27 = vmul.f32 %v7959_v8, %v4386_v10  ;;  %7970 = vrcp.f32 %v4434_v39 }
 0x7f8   : > { %v4118_v53 = vpop.f32.mrb[200].mxu1  ;;  %v7963_v45 = vpop.eup %7962 }
 0x7f9   : > { %v4366_v31 = vmul.f32 %v4118_v53, %v14842_v11  ;;  %v4120_v19 = vpop.f32.mrb[201].mxu1  ;;  %7182 = vmatmul.mubr.msk.bf16.gmra.mrb[236].mxu0 %vm685_vm4, %v4483_v34  ;;  %v7965_v48 = vpop.eup %7964 }
 0x7fa   : > { %v4121_v36 = vpop.f32.mrb[202].mxu1  ;;  %7185 = vmatprep.mubr.msk.bf16.mxu0 %vm8216_vm1, %v14808_v14 }
 0x7fb   : > { %v4387_v29 = vadd.f32 %v4366_v31, %v14873_v60  ;;  %v4367_v13 = vmul.f32 %v4121_v36, %v14842_v11  ;;  %v4123_v55 = vpop.f32.mrb[203].mxu1 }
 0x7fc   : > { %v14878_v55 = vld [vmem:[#allocation23_spill] sm:$0xff] }
 0x7fd   : > { %v4471_v49 = vmul.f32 %v7961_v22, %v4387_v29  ;;  %v4388_v58 = vadd.f32 %v4367_v13, %v14874_v23 }
 0x7fe   : > { %v7967_v0 = vpop.eup %7966 }
 0x7ff   : > { %v4484_v2 = vpack.c.bf16 %v4471_v49, %v4470_v27  ;;  %v4472_v1 = vmul.f32 %v7963_v45, %v4388_v58  ;;  %v7969_v25 = vpop.eup %7968 }
 0x800   : > { %v4126_v7 = vpop.f32.mrb[204].mxu1 }
 0x801   : > { %v4368_v26 = vmul.f32 %v4126_v7, %v14842_v11  ;;  %v4128_v6 = vpop.f32.mrb[205].mxu1  ;;  %7186 = vmatmul.mubr.msk.bf16.gmra.mrb[240].mxu0 %vm685_vm4, %v4484_v2  ;;  %v7971_v16 = vpop.eup %7970  ;;  %v14880_v2 = vld [vmem:[#allocation28_spill] sm:$0xff] }
 0x802   : > { %v4129_v9 = vpop.f32.mrb[206].mxu1  ;;  %7189 = vmatprep.mubr.msk.bf16.mxu0 %vm8216_vm1, %v14808_v14 }
 0x803   : > { %v4389_v21 = vadd.f32 %v4368_v26, %v14875_v37  ;;  %v4369_v50 = vmul.f32 %v4129_v9, %v14842_v11  ;;  %v4131_v4 = vpop.f32.mrb[207].mxu1  ;;  %v14881_v26 = vld [vmem:[#allocation29_spill] sm:$0xff] }
 0x805   : > { %v4473_v62 = vmul.f32 %v7965_v48, %v4389_v21  ;;  %v4390_v5 = vadd.f32 %v4369_v50, %v12379_v33  ;;  %v14882_v48 = vld [vmem:[#allocation33_spill] sm:$0xff] }
 0x807   : > { %v4485_v24 = vpack.c.bf16 %v4473_v62, %v4472_v1  ;;  %v4474_v33 = vmul.f32 %v7967_v0, %v4390_v5  ;;  %v14883_v5 = vld [vmem:[#allocation34_spill] sm:$0xff]  ;;  %v5012_v0 = vld [vmem:[#allocation2 + $0x70] sm:$0xff] }
 0x808   : > { %v4134_v35 = vpop.f32.mrb[208].mxu1 }
 0x809   : > { %v4370_v17 = vmul.f32 %v4134_v35, %v14842_v11  ;;  %v4136_v30 = vpop.f32.mrb[209].mxu1  ;;  %7190 = vmatmul.mubr.msk.bf16.gmra.mrb[244].mxu0 %vm685_vm4, %v4485_v24 }
 0x80a   : > { %v4137_v43 = vpop.f32.mrb[210].mxu1  ;;  %7193 = vmatprep.mubr.msk.bf16.mxu0 %vm8216_vm1, %v14808_v14 }
 0x80b   : > { %v4391_v10 = vadd.f32 %v4370_v17, %v12385_v12  ;;  %v4371_v42 = vmul.f32 %v4137_v43, %v14842_v11  ;;  %v4139_v3 = vpop.f32.mrb[211].mxu1  ;;  %v12640_v11 = vld [vmem:[#allocation2 + $0x1b8] ss:$0 sm:$0xff]  ;;  %v5011_v43 = vld [vmem:[#allocation2 + $0x68] sm:$0xff] }
 0x80c   : > { %v5014_v3 = vpack.c.bf16 %v5012_v0, %v5011_v43  ;;  %v14892_v43 = vld [vmem:[#allocation55_spill] sm:$0xff] }
 0x80d   : > { %v4475_v51 = vmul.f32 %v7969_v25, %v4391_v10  ;;  %v4392_v34 = vadd.f32 %v4371_v42, %v12407_v20 }
 0x80e   : > { %7204 = vmatpush3.bf16.msra.mxu1 %v5014_v3  ;;  %v14893_v3 = vld [vmem:[#allocation56_spill] sm:$0xff] }
 0x80f   : > { %v4486_v57 = vpack.c.bf16 %v4475_v51, %v4474_v33  ;;  %v4476_v46 = vmul.f32 %v7971_v16, %v4392_v34  ;;  %v14884_v33 = vld [vmem:[#allocation38_spill] sm:$0xff]  ;;  %v14885_v16 = vld [vmem:[#allocation39_spill] sm:$0xff] }
 0x811   : > { %7194 = vmatmul.mubr.msk.bf16.gmra.mrb[248].mxu0 %vm685_vm4, %v4486_v57  ;;  %v4487_v53 = vpack.c.bf16 %v4476_v46, %v4476_v46 }
 0x812   : > { %7197 = vmatprep.mubr.msk.bf16.mxu0 %vm8216_vm1, %v14808_v14 }
 0x819   : > { %7198 = vmatmul.mubr.msk.bf16.gmra.mrb[252].mxu0 %vm685_vm4, %v4487_v53 }
 0x81a   : > { %7257 = vmatprep.mubr.msk.bf16.mxu0 %vm8216_vm1, %v14808_v14 }
 0x89c   : > { %v4566_v12 = vpop.f32.mrb[212].mxu0 }
 0x89d   : > { %v4567_v32 = vadd.f32 %v12640_v11, %v4566_v12  ;;  %v7159_v20 = vpop.f32.mrb[213].mxu0 }
 0x89e   : > { %v4569_v63 = vpop.f32.mrb[214].mxu0 }
 0x89f   : > { %v12644_v31 = vadd.f32 %v4567_v32, %v14876_v47  ;;  %v4570_v19 = vadd.f32 %v12640_v11, %v4569_v63  ;;  %v7160_v44 = vpop.f32.mrb[215].mxu0 }
 0x8a1   : > { %v12648_v56 = vadd.f32 %v4570_v19, %v14877_v41  ;;  %v4675_v36 = vsel %vm685_vm4, %v12644_v31, 0.0  ;;  %v14886_v19 = vld [vmem:[#allocation43_spill] sm:$0xff] }
 0x8a2   : > { %4676 = vadd.xlane.f32.xlu0 %v4675_v36 }
 0x8a3   : > { %v4678_v8 = vsel %vm685_vm4, %v12648_v56, 0.0 }
 0x8a4   : > { %4679 = vadd.xlane.f32.xlu1 %v4678_v8  ;;  %v4574_v59 = vpop.f32.mrb[216].mxu0  ;;  %v14887_v8 = vld [vmem:[#allocation44_spill] sm:$0xff] }
 0x8a5   : > { %v4575_v60 = vadd.f32 %v12640_v11, %v4574_v59  ;;  %v7163_v29 = vpop.f32.mrb[217].mxu0 }
 0x8a6   : > { %v4577_v13 = vpop.f32.mrb[218].mxu0 }
 0x8a7   : > { %v12656_v22 = vadd.f32 %v4575_v60, %v14878_v55  ;;  %v4578_v40 = vadd.f32 %v12640_v11, %v4577_v13  ;;  %v7164_v28 = vpop.f32.mrb[219].mxu0 }
 0x8a9   : > { %v12660_v61 = vadd.f32 %v4578_v40, %v14879_v18  ;;  %v4681_v38 = vsel %vm685_vm4, %v12656_v22, 0.0  ;;  %v14888_v18 = vld [vmem:[#allocation48_spill] sm:$0xff] }
 0x8aa   : > { %4682 = vadd.xlane.f32.xlu0 %v4681_v38 }
 0x8ab   : > { %v4684_v27 = vsel %vm685_vm4, %v12660_v61, 0.0 }
 0x8ac   : > { %4685 = vadd.xlane.f32.xlu1 %v4684_v27  ;;  %v4582_v49 = vpop.f32.mrb[220].mxu0 }
 0x8ad   : > { %v4583_v23 = vadd.f32 %v12640_v11, %v4582_v49  ;;  %v7167_v58 = vpop.f32.mrb[221].mxu0 }
 0x8ae   : > { %v4585_v52 = vpop.f32.mrb[222].mxu0 }
 0x8af   : > { %v12668_v15 = vadd.f32 %v4583_v23, %v14880_v2  ;;  %v4586_v54 = vadd.f32 %v12640_v11, %v4585_v52  ;;  %v7168_v7 = vpop.f32.mrb[223].mxu0  ;;  %v14889_v23 = vld [vmem:[#allocation49_spill] sm:$0xff] }
 0x8b1   : > { %v12672_v6 = vadd.f32 %v4586_v54, %v14881_v26  ;;  %v4687_v9 = vsel %vm685_vm4, %v12668_v15, 0.0 }
 0x8b2   : > { %4688 = vadd.xlane.f32.xlu0 %v4687_v9 }
 0x8b3   : > { %v4690_v45 = vsel %vm685_vm4, %v12672_v6, 0.0 }
 0x8b4   : > { %4691 = vadd.xlane.f32.xlu1 %v4690_v45  ;;  %v4590_v37 = vpop.f32.mrb[224].mxu0  ;;  %v14890_v45 = vld [vmem:[#allocation53_spill] sm:$0xff] }
 0x8b5   : > { %v4591_v21 = vadd.f32 %v12640_v11, %v4590_v37  ;;  %v7171_v50 = vpop.f32.mrb[225].mxu0 }
 0x8b6   : > { %v4593_v4 = vpop.f32.mrb[226].mxu0 }
 0x8b7   : > { %v12680_v39 = vadd.f32 %v4591_v21, %v14882_v48  ;;  %v4594_v1 = vadd.f32 %v12640_v11, %v4593_v4  ;;  %v7172_v62 = vpop.f32.mrb[227].mxu0  ;;  %v14891_v4 = vld [vmem:[#allocation54_spill] sm:$0xff] }
 0x8b9   : > { %v12684_v24 = vadd.f32 %v4594_v1, %v14883_v5  ;;  %v4693_v35 = vsel %vm685_vm4, %v12680_v39, 0.0 }
 0x8ba   : > { %4694 = vadd.xlane.f32.xlu0 %v4693_v35 }
 0x8bb   : > { %v4696_v17 = vsel %vm685_vm4, %v12684_v24, 0.0 }
 0x8bc   : > { %4697 = vadd.xlane.f32.xlu1 %v4696_v17  ;;  %v4598_v30 = vpop.f32.mrb[228].mxu0 }
 0x8bd   : > { %v4599_v10 = vadd.f32 %v12640_v11, %v4598_v30  ;;  %v7175_v42 = vpop.f32.mrb[229].mxu0 }
 0x8be   : > { %v4601_v25 = vpop.f32.mrb[230].mxu0 }
 0x8bf   : > { %v12692_v51 = vadd.f32 %v4599_v10, %v14884_v33  ;;  %v4602_v34 = vadd.f32 %v12640_v11, %v4601_v25  ;;  %v7176_v57 = vpop.f32.mrb[231].mxu0 }
 0x8c1   : > { %v12696_v46 = vadd.f32 %v4602_v34, %v14885_v16  ;;  %v4699_v53 = vsel %vm685_vm4, %v12692_v51, 0.0 }
 0x8c2   : > { %4700 = vadd.xlane.f32.xlu0 %v4699_v53 }
 0x8c3   : > { %v4702_v12 = vsel %vm685_vm4, %v12696_v46, 0.0 }
 0x8c4   : > { %4703 = vadd.xlane.f32.xlu1 %v4702_v12  ;;  %v4606_v32 = vpop.f32.mrb[232].mxu0 }
 0x8c5   : > { %v4607_v20 = vadd.f32 %v12640_v11, %v4606_v32  ;;  %v7179_v63 = vpop.f32.mrb[233].mxu0  ;;  %v14894_v32 = vld [vmem:[#allocation63_spill] sm:$0xff] }
 0x8c6   : > { %v4609_v47 = vpop.f32.mrb[234].mxu0 }
 0x8c7   : > { %v12704_v44 = vadd.f32 %v4607_v20, %v14886_v19  ;;  %v4610_v41 = vadd.f32 %v12640_v11, %v4609_v47  ;;  %v7180_v36 = vpop.f32.mrb[235].mxu0  ;;  %v14895_v19 = vld [vmem:[#allocation64_spill] sm:$0xff] }
 0x8c9   : > { %v12708_v59 = vadd.f32 %v4610_v41, %v14887_v8  ;;  %v4705_v60 = vsel %vm685_vm4, %v12704_v44, 0.0 }
 0x8ca   : > { %4706 = vadd.xlane.f32.xlu0 %v4705_v60 }
 0x8cb   : > { %v4708_v29 = vsel %vm685_vm4, %v12708_v59, 0.0 }
 0x8cc   : > { %4709 = vadd.xlane.f32.xlu1 %v4708_v29  ;;  %v4614_v13 = vpop.f32.mrb[236].mxu0 }
 0x8cd   : > { %v4615_v55 = vadd.f32 %v12640_v11, %v4614_v13  ;;  %v7183_v40 = vpop.f32.mrb[237].mxu0 }
 0x8ce   : > { %v4617_v28 = vpop.f32.mrb[238].mxu0 }
 0x8cf   : > { %v12716_v38 = vadd.f32 %v4615_v55, %v14888_v18  ;;  %v4618_v27 = vadd.f32 %v12640_v11, %v4617_v28  ;;  %v7184_v49 = vpop.f32.mrb[239].mxu0 }
 0x8d1   : > { %v12720_v58 = vadd.f32 %v4618_v27, %v14889_v23  ;;  %v4711_v52 = vsel %vm685_vm4, %v12716_v38, 0.0 }
 0x8d2   : > { %4712 = vadd.xlane.f32.xlu0 %v4711_v52 }
 0x8d3   : > { %v4714_v2 = vsel %vm685_vm4, %v12720_v58, 0.0 }
 0x8d4   : > { %4715 = vadd.xlane.f32.xlu1 %v4714_v2  ;;  %v4622_v54 = vpop.f32.mrb[240].mxu0 }
 0x8d5   : > { %v4623_v7 = vadd.f32 %v12640_v11, %v4622_v54  ;;  %v7187_v26 = vpop.f32.mrb[241].mxu0  ;;  %v14896_v54 = vld [vmem:[#allocation65_spill] sm:$0xff] }
 0x8d6   : > { %v4625_v9 = vpop.f32.mrb[242].mxu0 }
 0x8d7   : > { %v12728_v37 = vadd.f32 %v4623_v7, %v14890_v45  ;;  %v4626_v21 = vadd.f32 %v12640_v11, %v4625_v9  ;;  %v7188_v50 = vpop.f32.mrb[243].mxu0 }
 0x8d9   : > { %v12732_v48 = vadd.f32 %v4626_v21, %v14891_v4  ;;  %v4717_v1 = vsel %vm685_vm4, %v12728_v37, 0.0 }
 0x8da   : > { %4718 = vadd.xlane.f32.xlu0 %v4717_v1 }
 0x8db   : > { %v4720_v62 = vsel %vm685_vm4, %v12732_v48, 0.0 }
 0x8dc   : > { %4721 = vadd.xlane.f32.xlu1 %v4720_v62  ;;  %v4630_v5 = vpop.f32.mrb[244].mxu0 }
 0x8dd   : > { %v4631_v35 = vadd.f32 %v12640_v11, %v4630_v5  ;;  %v7191_v17 = vpop.f32.mrb[245].mxu0 }
 0x8de   : > { %v4633_v30 = vpop.f32.mrb[246].mxu0 }
 0x8df   : > { %v12740_v0 = vadd.f32 %v4631_v35, %v14892_v43  ;;  %v4634_v10 = vadd.f32 %v12640_v11, %v4633_v30  ;;  %v7192_v42 = vpop.f32.mrb[247].mxu0 }
 0x8e1   : > { %v12744_v25 = vadd.f32 %v4634_v10, %v14893_v3  ;;  %v4723_v33 = vsel %vm685_vm4, %v12740_v0, 0.0 }
 0x8e2   : > { %4724 = vadd.xlane.f32.xlu0 %v4723_v33 }
 0x8e3   : > { %v4726_v34 = vsel %vm685_vm4, %v12744_v25, 0.0 }
 0x8e4   : > { %4727 = vadd.xlane.f32.xlu1 %v4726_v34  ;;  %v4638_v57 = vpop.f32.mrb[248].mxu0 }
 0x8e5   : > { %v4639_v16 = vadd.f32 %v12640_v11, %v4638_v57  ;;  %v7195_v53 = vpop.f32.mrb[249].mxu0 }
 0x8e6   : > { %v4641_v12 = vpop.f32.mrb[250].mxu0 }
 0x8e7   : > { %v12752_v20 = vadd.f32 %v4639_v16, %v14894_v32  ;;  %v4642_v63 = vadd.f32 %v12640_v11, %v4641_v12  ;;  %v7196_v47 = vpop.f32.mrb[251].mxu0 }
 0x8e9   : > { %v12756_v41 = vadd.f32 %v4642_v63, %v14895_v19  ;;  %v4729_v36 = vsel %vm685_vm4, %v12752_v20, 0.0 }
 0x8ea   : > { %4730 = vadd.xlane.f32.xlu0 %v4729_v36 }
 0x8eb   : > { %v4732_v8 = vsel %vm685_vm4, %v12756_v41, 0.0 }
 0x8ec   : > { %4733 = vadd.xlane.f32.xlu1 %v4732_v8  ;;  %v4646_v60 = vpop.f32.mrb[252].mxu0 }
 0x8ed   : > { %v7199_v29 = vpop.f32.mrb[253].mxu0  ;;  %v4647_v27 = vadd.f32 %v12640_v11, %v4646_v60 }
 0x8ee   : > { %v4649_v13 = vpop.f32.mrb[254].mxu0 }
 0x8ef   : > { %v7200_v55 = vpop.f32.mrb[255].mxu0  ;;  %v12772_v7 = vadd.f32 %v4647_v27, %v14896_v54 }
 0x8f1   : > { %v4735_v4 = vsel %vm685_vm4, %v12772_v7, 0.0 }
 0x92f   : > { %v4677_v40 = vpop.xlane.xlu0 %4676 }
 0x930   : > { %v4738_v28 = vmul.f32 0.03125, %v4677_v40 }
 0x931   : > { %v4680_v18 = vpop.xlane.xlu1 %4679 }
 0x932   : > { %v12764_v49 = vsub.f32 %v12644_v31, %v4738_v28  ;;  %v4739_v23 = vmul.f32 0.03125, %v4680_v18 }
 0x934   : > { %v12767_v52 = vsub.f32 %v12648_v56, %v4739_v23  ;;  %v4780_v2 = vmul.f32 %v12764_v49, %v12764_v49 }
 0x936   : > { %v4801_v26 = vsel %vm685_vm4, %v4780_v2, 0.0  ;;  %v4781_v9 = vmul.f32 %v12767_v52, %v12767_v52 }
 0x937   : > { %v4683_v45 = vpop.xlane.xlu0 %4682  ;;  %4802 = vadd.xlane.f32.xlu0 %v4801_v26 }
 0x938   : > { %v4740_v11 = vmul.f32 0.03125, %v4683_v45  ;;  %v4804_v31 = vsel %vm685_vm4, %v4781_v9, 0.0 }
 0x939   : > { %4805 = vadd.xlane.f32.xlu1 %v4804_v31  ;;  %v4686_v21 = vpop.xlane.xlu1 %4685 }
 0x93a   : > { %v12779_v56 = vsub.f32 %v12656_v22, %v4740_v11  ;;  %v4741_v50 = vmul.f32 0.03125, %v4686_v21 }
 0x93b   : > { %4736 = vadd.xlane.f32.xlu0 %v4735_v4 }
 0x93c   : > { %v12784_v1 = vsub.f32 %v12660_v61, %v4741_v50  ;;  %v4782_v62 = vmul.f32 %v12779_v56, %v12779_v56 }
 0x93e   : > { %v4807_v5 = vsel %vm685_vm4, %v4782_v62, 0.0  ;;  %v4783_v35 = vmul.f32 %v12784_v1, %v12784_v1 }
 0x93f   : > { %v4689_v17 = vpop.xlane.xlu0 %4688  ;;  %4808 = vadd.xlane.f32.xlu1 %v4807_v5 }
 0x940   : > { %v4742_v22 = vmul.f32 0.03125, %v4689_v17  ;;  %v4810_v30 = vsel %vm685_vm4, %v4783_v35, 0.0 }
 0x941   : > { %4811 = vadd.xlane.f32.xlu0 %v4810_v30  ;;  %v4692_v43 = vpop.xlane.xlu1 %4691 }
 0x942   : > { %v12793_v10 = vsub.f32 %v12668_v15, %v4742_v22  ;;  %v4743_v61 = vmul.f32 0.03125, %v4692_v43 }
 0x944   : > { %v12796_v42 = vsub.f32 %v12672_v6, %v4743_v61  ;;  %v4784_v3 = vmul.f32 %v12793_v10, %v12793_v10 }
 0x946   : > { %v4813_v33 = vsel %vm685_vm4, %v4784_v3, 0.0  ;;  %v4785_v34 = vmul.f32 %v12796_v42, %v12796_v42 }
 0x947   : > { %v4695_v57 = vpop.xlane.xlu0 %4694  ;;  %4814 = vadd.xlane.f32.xlu1 %v4813_v33 }
 0x948   : > { %v4744_v16 = vmul.f32 0.03125, %v4695_v57  ;;  %v4816_v53 = vsel %vm685_vm4, %v4785_v34, 0.0 }
 0x949   : > { %4817 = vadd.xlane.f32.xlu0 %v4816_v53  ;;  %v4698_v15 = vpop.xlane.xlu1 %4697 }
 0x94a   : > { %v12805_v12 = vsub.f32 %v12680_v39, %v4744_v16  ;;  %v4745_v6 = vmul.f32 0.03125, %v4698_v15 }
 0x94c   : > { %v12808_v32 = vsub.f32 %v12684_v24, %v4745_v6  ;;  %v4786_v63 = vmul.f32 %v12805_v12, %v12805_v12 }
 0x94e   : > { %v4819_v47 = vsel %vm685_vm4, %v4786_v63, 0.0  ;;  %v4787_v19 = vmul.f32 %v12808_v32, %v12808_v32 }
 0x94f   : > { %v4701_v36 = vpop.xlane.xlu0 %4700  ;;  %4820 = vadd.xlane.f32.xlu1 %v4819_v47 }
 0x950   : > { %v4746_v8 = vmul.f32 0.03125, %v4701_v36  ;;  %v4822_v60 = vsel %vm685_vm4, %v4787_v19, 0.0 }
 0x951   : > { %4823 = vadd.xlane.f32.xlu0 %v4822_v60  ;;  %v4704_v39 = vpop.xlane.xlu1 %4703 }
 0x952   : > { %v12817_v29 = vsub.f32 %v12692_v51, %v4746_v8  ;;  %v4747_v24 = vmul.f32 0.03125, %v4704_v39 }
 0x954   : > { %v12820_v13 = vsub.f32 %v12696_v46, %v4747_v24  ;;  %v4788_v55 = vmul.f32 %v12817_v29, %v12817_v29 }
 0x956   : > { %v4825_v40 = vsel %vm685_vm4, %v4788_v55, 0.0  ;;  %v4789_v28 = vmul.f32 %v12820_v13, %v12820_v13 }
 0x957   : > { %v4707_v18 = vpop.xlane.xlu0 %4706  ;;  %4826 = vadd.xlane.f32.xlu1 %v4825_v40 }
 0x958   : > { %v4748_v27 = vmul.f32 0.03125, %v4707_v18  ;;  %v4828_v23 = vsel %vm685_vm4, %v4789_v28, 0.0 }
 0x959   : > { %4829 = vadd.xlane.f32.xlu0 %v4828_v23  ;;  %v4710_v51 = vpop.xlane.xlu1 %4709 }
 0x95a   : > { %v12829_v2 = vsub.f32 %v12704_v44, %v4748_v27  ;;  %v4749_v46 = vmul.f32 0.03125, %v4710_v51 }
 0x95c   : > { %v12832_v54 = vsub.f32 %v12708_v59, %v4749_v46  ;;  %v4790_v26 = vmul.f32 %v12829_v2, %v12829_v2 }
 0x95e   : > { %v4831_v9 = vsel %vm685_vm4, %v4790_v26, 0.0  ;;  %v4791_v45 = vmul.f32 %v12832_v54, %v12832_v54 }
 0x95f   : > { %v4713_v11 = vpop.xlane.xlu0 %4712  ;;  %4832 = vadd.xlane.f32.xlu1 %v4831_v9 }
 0x960   : > { %v4750_v31 = vmul.f32 0.03125, %v4713_v11  ;;  %v4834_v21 = vsel %vm685_vm4, %v4791_v45, 0.0 }
 0x961   : > { %4835 = vadd.xlane.f32.xlu0 %v4834_v21  ;;  %v4716_v44 = vpop.xlane.xlu1 %4715 }
 0x962   : > { %v12841_v50 = vsub.f32 %v12716_v38, %v4750_v31  ;;  %v4751_v59 = vmul.f32 0.03125, %v4716_v44 }
 0x964   : > { %v12844_v4 = vsub.f32 %v12720_v58, %v4751_v59  ;;  %v4792_v62 = vmul.f32 %v12841_v50, %v12841_v50 }
 0x966   : > { %v4837_v5 = vsel %vm685_vm4, %v4792_v62, 0.0  ;;  %v4793_v35 = vmul.f32 %v12844_v4, %v12844_v4 }
 0x967   : > { %v4719_v17 = vpop.xlane.xlu0 %4718  ;;  %4838 = vadd.xlane.f32.xlu1 %v4837_v5 }
 0x968   : > { %v4752_v22 = vmul.f32 0.03125, %v4719_v17  ;;  %v4840_v30 = vsel %vm685_vm4, %v4793_v35, 0.0 }
 0x969   : > { %4841 = vadd.xlane.f32.xlu0 %v4840_v30  ;;  %v4722_v38 = vpop.xlane.xlu1 %4721 }
 0x96a   : > { %v12853_v43 = vsub.f32 %v12728_v37, %v4752_v22  ;;  %v4753_v58 = vmul.f32 0.03125, %v4722_v38  ;;  %v12894_v22 = vld [vmem:[#allocation2 + $0x1c0] ss:$0 sm:$0xff] }
 0x96c   : > { %v12856_v61 = vsub.f32 %v12732_v48, %v4753_v58  ;;  %v4794_v3 = vmul.f32 %v12853_v43, %v12853_v43 }
 0x96e   : > { %v4843_v33 = vsel %vm685_vm4, %v4794_v3, 0.0  ;;  %v4795_v34 = vmul.f32 %v12856_v61, %v12856_v61 }
 0x96f   : > { %v4725_v57 = vpop.xlane.xlu0 %4724  ;;  %4844 = vadd.xlane.f32.xlu1 %v4843_v33 }
 0x970   : > { %v4754_v16 = vmul.f32 0.03125, %v4725_v57  ;;  %v4846_v53 = vsel %vm685_vm4, %v4795_v34, 0.0  ;;  %v12899_v57 = vld [vmem:[#allocation2 + $0x1c8] ss:$0 sm:$0xff] }
 0x971   : > { %4847 = vadd.xlane.f32.xlu0 %v4846_v53  ;;  %v4728_v37 = vpop.xlane.xlu1 %4727 }
 0x972   : > { %v12865_v15 = vsub.f32 %v12740_v0, %v4754_v16  ;;  %v4755_v48 = vmul.f32 0.03125, %v4728_v37 }
 0x974   : > { %v12868_v6 = vsub.f32 %v12744_v25, %v4755_v48  ;;  %v4796_v63 = vmul.f32 %v12865_v15, %v12865_v15 }
 0x976   : > { %v4849_v47 = vsel %vm685_vm4, %v4796_v63, 0.0  ;;  %v4797_v19 = vmul.f32 %v12868_v6, %v12868_v6 }
 0x977   : > { %v4731_v36 = vpop.xlane.xlu0 %4730  ;;  %4850 = vadd.xlane.f32.xlu1 %v4849_v47 }
 0x978   : > { %v4756_v8 = vmul.f32 0.03125, %v4731_v36  ;;  %v4852_v60 = vsel %vm685_vm4, %v4797_v19, 0.0 }
 0x979   : > { %4853 = vadd.xlane.f32.xlu0 %v4852_v60  ;;  %v4734_v0 = vpop.xlane.xlu1 %4733 }
 0x97a   : > { %v12877_v39 = vsub.f32 %v12752_v20, %v4756_v8  ;;  %v4757_v25 = vmul.f32 0.03125, %v4734_v0 }
 0x97c   : > { %v12880_v24 = vsub.f32 %v12756_v41, %v4757_v25  ;;  %v4798_v55 = vmul.f32 %v12877_v39, %v12877_v39 }
 0x97e   : > { %v4855_v40 = vsel %vm685_vm4, %v4798_v55, 0.0  ;;  %v4799_v28 = vmul.f32 %v12880_v24, %v12880_v24 }
 0x97f   : > { %4856 = vadd.xlane.f32.xlu1 %v4855_v40 }
 0x980   : > { %v4858_v18 = vsel %vm685_vm4, %v4799_v28, 0.0 }
 0x981   : > { %4859 = vadd.xlane.f32.xlu0 %v4858_v18 }
 0x9c4   : > { %v4803_v27 = vpop.xlane.xlu0 %4802 }
 0x9c5   : > { %v4864_v23 = vmul.f32 0.03125, %v4803_v27 }
 0x9c6   : > { %v4806_v20 = vpop.xlane.xlu1 %4805 }
 0x9c7   : > { %v4885_v51 = vadd.f32 1e-05, %v4864_v23  ;;  %v4865_v46 = vmul.f32 0.03125, %v4806_v20 }
 0x9c8   : > { %v4737_v26 = vpop.xlane.xlu0 %4736 }
 0x9c9   : > { %7972 = vrsqrt.f32 %v4885_v51  ;;  %v4886_v41 = vadd.f32 1e-05, %v4865_v46  ;;  %v4758_v9 = vmul.f32 0.03125, %v4737_v26 }
 0x9cb   : > { %7974 = vrsqrt.f32 %v4886_v41  ;;  %v12889_v45 = vsub.f32 %v12772_v7, %v4758_v9 }
 0x9cc   : > { %v4809_v11 = vpop.xlane.xlu1 %4808 }
 0x9cd   : > { %v4866_v31 = vmul.f32 0.03125, %v4809_v11  ;;  %v4800_v21 = vmul.f32 %v12889_v45, %v12889_v45 }
 0x9ce   : > { %v4812_v44 = vpop.xlane.xlu0 %4811 }
 0x9cf   : > { %v4887_v59 = vadd.f32 1e-05, %v4866_v31  ;;  %v4867_v62 = vmul.f32 0.03125, %v4812_v44  ;;  %v4861_v5 = vsel %vm685_vm4, %v4800_v21, 0.0 }
 0x9d0   : > { %4862 = vadd.xlane.f32.xlu1 %v4861_v5 }
 0x9d1   : > { %7976 = vrsqrt.f32 %v4887_v59  ;;  %v4888_v35 = vadd.f32 1e-05, %v4867_v62 }
 0x9d3   : > { %v7973_v17 = vpop.eup %7972  ;;  %7978 = vrsqrt.f32 %v4888_v35 }
 0x9d4   : > { %v4927_v7 = vmul.f32 %v7973_v17, %v12764_v49  ;;  %v4815_v30 = vpop.xlane.xlu1 %4814 }
 0x9d5   : > { %v7975_v38 = vpop.eup %7974  ;;  %v4868_v58 = vmul.f32 0.03125, %v4815_v30 }
 0x9d6   : > { %v4952_v3 = vmul.f32 %v12894_v22, %v4927_v7  ;;  %v4928_v33 = vmul.f32 %v7975_v38, %v12767_v52  ;;  %v4818_v34 = vpop.xlane.xlu0 %4817 }
 0x9d7   : > { %v4889_v16 = vadd.f32 1e-05, %v4868_v58  ;;  %v4869_v53 = vmul.f32 0.03125, %v4818_v34 }
 0x9d8   : > { %v4953_v37 = vmul.f32 %v12894_v22, %v4928_v33  ;;  %v4977_v63 = vadd.f32 %v12899_v57, %v4952_v3 }
 0x9d9   : > { %7980 = vrsqrt.f32 %v4889_v16  ;;  %v4890_v48 = vadd.f32 1e-05, %v4869_v53 }
 0x9da   : > { %v4978_v49 = vadd.f32 %v12899_v57, %v4953_v37 }
 0x9db   : > { %v7977_v47 = vpop.eup %7976  ;;  %7982 = vrsqrt.f32 %v4890_v48 }
 0x9dc   : > { %v4821_v19 = vpop.xlane.xlu1 %4820  ;;  %v4998_v36 = vpack.c.bf16 %v4978_v49, %v4977_v63  ;;  %v4929_v8 = vmul.f32 %v7977_v47, %v12779_v56 }
 0x9dd   : > { %v7979_v52 = vpop.eup %7978  ;;  %v4870_v60 = vmul.f32 0.03125, %v4821_v19 }
 0x9de   : > { %v4824_v0 = vpop.xlane.xlu0 %4823  ;;  %7206 = vmatmul.mubr.msk.bf16.vlgmr.msra.gmra.mrb[212].mxu1 %vm685_vm4, %v4998_v36  ;;  %v4930_v25 = vmul.f32 %v7979_v52, %v12784_v1  ;;  %v4954_v55 = vmul.f32 %v12894_v22, %v4929_v8 }
 0x9df   : > { %v4891_v40 = vadd.f32 1e-05, %v4870_v60  ;;  %v4871_v28 = vmul.f32 0.03125, %v4824_v0  ;;  %7209 = vmatprep.mubr.msk.bf16.mxu1 %vm8216_vm1, %v14808_v14 }
 0x9e0   : > { %v4955_v18 = vmul.f32 %v12894_v22, %v4930_v25  ;;  %v4979_v56 = vadd.f32 %v12899_v57, %v4954_v55 }
 0x9e1   : > { %7984 = vrsqrt.f32 %v4891_v40  ;;  %v4892_v27 = vadd.f32 1e-05, %v4871_v28 }
 0x9e2   : > { %v4980_v23 = vadd.f32 %v12899_v57, %v4955_v18 }
 0x9e3   : > { %v7981_v20 = vpop.eup %7980  ;;  %7986 = vrsqrt.f32 %v4892_v27 }
 0x9e4   : > { %v4827_v51 = vpop.xlane.xlu1 %4826  ;;  %v4999_v46 = vpack.c.bf16 %v4980_v23, %v4979_v56  ;;  %v4931_v1 = vmul.f32 %v7981_v20, %v12793_v10 }
 0x9e5   : > { %v7983_v26 = vpop.eup %7982  ;;  %v4872_v41 = vmul.f32 0.03125, %v4827_v51 }
 0x9e6   : > { %v4830_v9 = vpop.xlane.xlu0 %4829  ;;  %7210 = vmatmul.mubr.msk.bf16.gmra.mrb[216].mxu1 %vm685_vm4, %v4999_v46  ;;  %v4932_v11 = vmul.f32 %v7983_v26, %v12796_v42  ;;  %v4956_v31 = vmul.f32 %v12894_v22, %v4931_v1 }
 0x9e7   : > { %v4893_v21 = vadd.f32 1e-05, %v4872_v41  ;;  %v4873_v44 = vmul.f32 0.03125, %v4830_v9  ;;  %7213 = vmatprep.mubr.msk.bf16.mxu1 %vm8216_vm1, %v14808_v14 }
 0x9e8   : > { %v4957_v59 = vmul.f32 %v12894_v22, %v4932_v11  ;;  %v4981_v10 = vadd.f32 %v12899_v57, %v4956_v31 }
 0x9e9   : > { %7988 = vrsqrt.f32 %v4893_v21  ;;  %v4894_v62 = vadd.f32 1e-05, %v4873_v44 }
 0x9ea   : > { %v4982_v5 = vadd.f32 %v12899_v57, %v4957_v59 }
 0x9eb   : > { %v7985_v35 = vpop.eup %7984  ;;  %7990 = vrsqrt.f32 %v4894_v62 }
 0x9ec   : > { %v4833_v17 = vpop.xlane.xlu1 %4832  ;;  %v5000_v7 = vpack.c.bf16 %v4982_v5, %v4981_v10  ;;  %v4933_v42 = vmul.f32 %v7985_v35, %v12805_v12 }
 0x9ed   : > { %v7987_v30 = vpop.eup %7986  ;;  %v4874_v38 = vmul.f32 0.03125, %v4833_v17 }
 0x9ee   : > { %v4836_v58 = vpop.xlane.xlu0 %4835  ;;  %7214 = vmatmul.mubr.msk.bf16.gmra.mrb[220].mxu1 %vm685_vm4, %v5000_v7  ;;  %v4934_v3 = vmul.f32 %v7987_v30, %v12808_v32  ;;  %v4958_v33 = vmul.f32 %v12894_v22, %v4933_v42 }
 0x9ef   : > { %v4895_v34 = vadd.f32 1e-05, %v4874_v38  ;;  %v4875_v16 = vmul.f32 0.03125, %v4836_v58  ;;  %7217 = vmatprep.mubr.msk.bf16.mxu1 %vm8216_vm1, %v14808_v14 }
 0x9f0   : > { %v4959_v53 = vmul.f32 %v12894_v22, %v4934_v3  ;;  %v4983_v12 = vadd.f32 %v12899_v57, %v4958_v33 }
 0x9f1   : > { %7992 = vrsqrt.f32 %v4895_v34  ;;  %v4896_v37 = vadd.f32 1e-05, %v4875_v16 }
 0x9f2   : > { %v4984_v48 = vadd.f32 %v12899_v57, %v4959_v53 }
 0x9f3   : > { %v7989_v63 = vpop.eup %7988  ;;  %7994 = vrsqrt.f32 %v4896_v37 }
 0x9f4   : > { %v4839_v49 = vpop.xlane.xlu1 %4838  ;;  %v5001_v47 = vpack.c.bf16 %v4984_v48, %v4983_v12  ;;  %v4935_v32 = vmul.f32 %v7989_v63, %v12817_v29 }
 0x9f5   : > { %v7991_v19 = vpop.eup %7990  ;;  %v4876_v36 = vmul.f32 0.03125, %v4839_v49 }
 0x9f6   : > { %v4842_v8 = vpop.xlane.xlu0 %4841  ;;  %7218 = vmatmul.mubr.msk.bf16.gmra.mrb[224].mxu1 %vm685_vm4, %v5001_v47  ;;  %v4936_v52 = vmul.f32 %v7991_v19, %v12820_v13  ;;  %v4960_v60 = vmul.f32 %v12894_v22, %v4935_v32 }
 0x9f7   : > { %v4897_v0 = vadd.f32 1e-05, %v4876_v36  ;;  %v4877_v25 = vmul.f32 0.03125, %v4842_v8  ;;  %7221 = vmatprep.mubr.msk.bf16.mxu1 %vm8216_vm1, %v14808_v14 }
 0x9f8   : > { %v4961_v55 = vmul.f32 %v12894_v22, %v4936_v52  ;;  %v4985_v29 = vadd.f32 %v12899_v57, %v4960_v60 }
 0x9f9   : > { %7996 = vrsqrt.f32 %v4897_v0  ;;  %v4898_v40 = vadd.f32 1e-05, %v4877_v25 }
 0x9fa   : > { %v4986_v28 = vadd.f32 %v12899_v57, %v4961_v55 }
 0x9fb   : > { %v7993_v18 = vpop.eup %7992  ;;  %7998 = vrsqrt.f32 %v4898_v40 }
 0x9fc   : > { %v4845_v27 = vpop.xlane.xlu1 %4844  ;;  %v5002_v56 = vpack.c.bf16 %v4986_v28, %v4985_v29  ;;  %v4937_v13 = vmul.f32 %v7993_v18, %v12829_v2 }
 0x9fd   : > { %v7995_v23 = vpop.eup %7994  ;;  %v4878_v20 = vmul.f32 0.03125, %v4845_v27 }
 0x9fe   : > { %v4848_v51 = vpop.xlane.xlu0 %4847  ;;  %7222 = vmatmul.mubr.msk.bf16.gmra.mrb[228].mxu1 %vm685_vm4, %v5002_v56  ;;  %v4938_v46 = vmul.f32 %v7995_v23, %v12832_v54  ;;  %v4962_v1 = vmul.f32 %v12894_v22, %v4937_v13 }
 0x9ff   : > { %v4899_v26 = vadd.f32 1e-05, %v4878_v20  ;;  %v4879_v41 = vmul.f32 0.03125, %v4848_v51  ;;  %7225 = vmatprep.mubr.msk.bf16.mxu1 %vm8216_vm1, %v14808_v14 }
 0xa00   : > { %v4963_v9 = vmul.f32 %v12894_v22, %v4938_v46  ;;  %v4987_v2 = vadd.f32 %v12899_v57, %v4962_v1 }
 0xa01   : > { %8000 = vrsqrt.f32 %v4899_v26  ;;  %v4900_v11 = vadd.f32 1e-05, %v4879_v41 }
 0xa02   : > { %v4988_v31 = vadd.f32 %v12899_v57, %v4963_v9 }
 0xa03   : > { %v7997_v21 = vpop.eup %7996  ;;  %8002 = vrsqrt.f32 %v4900_v11  ;;  %v12992_v11 = vld [vmem:[#allocation2 + $0x1d0] ss:$0 sm:$0xff] }
 0xa04   : > { %v4851_v44 = vpop.xlane.xlu1 %4850  ;;  %v5003_v59 = vpack.c.bf16 %v4988_v31, %v4987_v2  ;;  %v4939_v54 = vmul.f32 %v7997_v21, %v12841_v50 }
 0xa05   : > { %v7999_v62 = vpop.eup %7998  ;;  %v4880_v10 = vmul.f32 0.03125, %v4851_v44 }
 0xa06   : > { %v4854_v5 = vpop.xlane.xlu0 %4853  ;;  %7226 = vmatmul.mubr.msk.bf16.gmra.mrb[232].mxu1 %vm685_vm4, %v5003_v59  ;;  %v4940_v35 = vmul.f32 %v7999_v62, %v12844_v4  ;;  %v4964_v17 = vmul.f32 %v12894_v22, %v4939_v54 }
 0xa07   : > { %v4901_v7 = vadd.f32 1e-05, %v4880_v10  ;;  %v4881_v42 = vmul.f32 0.03125, %v4854_v5  ;;  %7229 = vmatprep.mubr.msk.bf16.mxu1 %vm8216_vm1, %v14808_v14 }
 0xa08   : > { %v4965_v30 = vmul.f32 %v12894_v22, %v4940_v35  ;;  %v4989_v50 = vadd.f32 %v12899_v57, %v4964_v17 }
 0xa09   : > { %8004 = vrsqrt.f32 %v4901_v7  ;;  %v4902_v38 = vadd.f32 1e-05, %v4881_v42 }
 0xa0a   : > { %v4990_v58 = vadd.f32 %v12899_v57, %v4965_v30 }
 0xa0b   : > { %v8001_v3 = vpop.eup %8000  ;;  %8006 = vrsqrt.f32 %v4902_v38 }
 0xa0c   : > { %v4857_v33 = vpop.xlane.xlu1 %4856  ;;  %v5004_v34 = vpack.c.bf16 %v4990_v58, %v4989_v50  ;;  %v4941_v4 = vmul.f32 %v8001_v3, %v12853_v43 }
 0xa0d   : > { %v8003_v16 = vpop.eup %8002  ;;  %v4882_v53 = vmul.f32 0.03125, %v4857_v33 }
 0xa0e   : > { %v4860_v37 = vpop.xlane.xlu0 %4859  ;;  %7230 = vmatmul.mubr.msk.bf16.gmra.mrb[236].mxu1 %vm685_vm4, %v5004_v34  ;;  %v4942_v12 = vmul.f32 %v8003_v16, %v12856_v61  ;;  %v4966_v48 = vmul.f32 %v12894_v22, %v4941_v4 }
 0xa0f   : > { %v4903_v63 = vadd.f32 1e-05, %v4882_v53  ;;  %v4883_v49 = vmul.f32 0.03125, %v4860_v37  ;;  %7233 = vmatprep.mubr.msk.bf16.mxu1 %vm8216_vm1, %v14808_v14 }
 0xa10   : > { %v4967_v47 = vmul.f32 %v12894_v22, %v4942_v12  ;;  %v4991_v43 = vadd.f32 %v12899_v57, %v4966_v48 }
 0xa11   : > { %8008 = vrsqrt.f32 %v4903_v63  ;;  %v4904_v32 = vadd.f32 1e-05, %v4883_v49 }
 0xa12   : > { %v4992_v19 = vadd.f32 %v12899_v57, %v4967_v47 }
 0xa13   : > { %v8005_v36 = vpop.eup %8004  ;;  %8010 = vrsqrt.f32 %v4904_v32 }
 0xa14   : > { %v5005_v8 = vpack.c.bf16 %v4992_v19, %v4991_v43  ;;  %v4943_v61 = vmul.f32 %v8005_v36, %v12865_v15 }
 0xa15   : > { %v8007_v52 = vpop.eup %8006 }
 0xa16   : > { %v4944_v60 = vmul.f32 %v8007_v52, %v12868_v6  ;;  %7234 = vmatmul.mubr.msk.bf16.gmra.mrb[240].mxu1 %vm685_vm4, %v5005_v8  ;;  %v4968_v0 = vmul.f32 %v12894_v22, %v4943_v61 }
 0xa17   : > { %7237 = vmatprep.mubr.msk.bf16.mxu1 %vm8216_vm1, %v14808_v14 }
 0xa18   : > { %v4969_v25 = vmul.f32 %v12894_v22, %v4944_v60  ;;  %v4993_v55 = vadd.f32 %v12899_v57, %v4968_v0 }
 0xa1a   : > { %v4994_v40 = vadd.f32 %v12899_v57, %v4969_v25 }
 0xa1b   : > { %v8009_v29 = vpop.eup %8008 }
 0xa1c   : > { %v5006_v28 = vpack.c.bf16 %v4994_v40, %v4993_v55  ;;  %v4945_v15 = vmul.f32 %v8009_v29, %v12877_v39 }
 0xa1d   : > { %v8011_v18 = vpop.eup %8010 }
 0xa1e   : > { %v4946_v6 = vmul.f32 %v8011_v18, %v12880_v24  ;;  %7238 = vmatmul.mubr.msk.bf16.gmra.mrb[244].mxu1 %vm685_vm4, %v5006_v28  ;;  %v4970_v27 = vmul.f32 %v12894_v22, %v4945_v15 }
 0xa1f   : > { %7241 = vmatprep.mubr.msk.bf16.mxu1 %vm8216_vm1, %v14808_v14 }
 0xa20   : > { %v4971_v56 = vmul.f32 %v12894_v22, %v4946_v6  ;;  %v4995_v13 = vadd.f32 %v12899_v57, %v4970_v27 }
 0xa22   : > { %v4996_v23 = vadd.f32 %v12899_v57, %v4971_v56 }
 0xa24   : > { %v5007_v20 = vpack.c.bf16 %v4996_v23, %v4995_v13 }
 0xa26   : > { %7242 = vmatmul.mubr.msk.bf16.gmra.mrb[248].mxu1 %vm685_vm4, %v5007_v20 }
 0xa27   : > { %7245 = vmatprep.mubr.msk.bf16.mxu1 %vm8216_vm1, %v14808_v14 }
 0xa5d   : > { %v4863_v39 = vpop.xlane.xlu1 %4862 }
 0xa5e   : > { %v4884_v24 = vmul.f32 0.03125, %v4863_v39 }
 0xa60   : > { %v4905_v51 = vadd.f32 1e-05, %v4884_v24 }
 0xa62   : > { %8012 = vrsqrt.f32 %v4905_v51 }
 0xa6c   : > { %v8013_v46 = vpop.eup %8012 }
 0xa6d   : > { %v4947_v1 = vmul.f32 %v8013_v46, %v12889_v45 }
 0xa6f   : > { %v4972_v26 = vmul.f32 %v12894_v22, %v4947_v1 }
 0xa71   : > { %v4997_v41 = vadd.f32 %v12899_v57, %v4972_v26 }
 0xa73   : > { %v5008_v9 = vpack.c.bf16 %v4997_v41, %v4997_v41 }
 0xa75   : > { %7246 = vmatmul.mubr.msk.bf16.gmra.mrb[252].mxu1 %vm685_vm4, %v5008_v9 }
 0xab1   : > { %v5087_v2 = vpop.f32.mrb[212].mxu1 }
 0xab2   : > { %v12995_v31 = vadd.f32 %v12992_v11, %v5087_v2  ;;  %v7207_v21 = vpop.f32.mrb[213].mxu1 }
 0xab3   : > { %v5090_v44 = vpop.f32.mrb[214].mxu1 }
 0xab4   : > { %v12998_v59 = vadd.f32 %v12992_v11, %v5090_v44  ;;  %v7208_v45 = vpop.f32.mrb[215].mxu1  ;;  %v5176_v22 = vsel %vm5175_vm0, %v12995_v31, 0.0 }
 0xab5   : > { %5177 = vadd.xlane.f32.xlu0 %v5176_v22 }
 0xab6   : > { %v5179_v57 = vsel %vm5175_vm0, %v12998_v59, 0.0 }
 0xab7   : > { %5180 = vadd.xlane.f32.xlu1 %v5179_v57 }
 0xab9   : > { %v5095_v54 = vpop.f32.mrb[216].mxu1 }
 0xaba   : > { %v13005_v62 = vadd.f32 %v12992_v11, %v5095_v54  ;;  %v7211_v10 = vpop.f32.mrb[217].mxu1 }
 0xabb   : > { %v5098_v5 = vpop.f32.mrb[218].mxu1 }
 0xabc   : > { %v13008_v35 = vadd.f32 %v12992_v11, %v5098_v5  ;;  %v7212_v17 = vpop.f32.mrb[219].mxu1  ;;  %v5182_v7 = vsel %vm5175_vm0, %v13005_v62, 0.0 }
 0xabd   : > { %5183 = vadd.xlane.f32.xlu0 %v5182_v7 }
 0xabe   : > { %v5185_v42 = vsel %vm5175_vm0, %v13008_v35, 0.0 }
 0xabf   : > { %5186 = vadd.xlane.f32.xlu1 %v5185_v42 }
 0xac1   : > { %v5103_v30 = vpop.f32.mrb[220].mxu1 }
 0xac2   : > { %v13015_v38 = vadd.f32 %v12992_v11, %v5103_v30  ;;  %v7215_v50 = vpop.f32.mrb[221].mxu1 }
 0xac3   : > { %v5106_v58 = vpop.f32.mrb[222].mxu1 }
 0xac4   : > { %v13018_v3 = vadd.f32 %v12992_v11, %v5106_v58  ;;  %v7216_v33 = vpop.f32.mrb[223].mxu1  ;;  %v5188_v34 = vsel %vm5175_vm0, %v13015_v38, 0.0 }
 0xac5   : > { %5189 = vadd.xlane.f32.xlu0 %v5188_v34 }
 0xac6   : > { %v5191_v4 = vsel %vm5175_vm0, %v13018_v3, 0.0 }
 0xac7   : > { %5192 = vadd.xlane.f32.xlu1 %v5191_v4 }
 0xac9   : > { %v5111_v16 = vpop.f32.mrb[224].mxu1 }
 0xaca   : > { %v13025_v53 = vadd.f32 %v12992_v11, %v5111_v16  ;;  %v7219_v37 = vpop.f32.mrb[225].mxu1 }
 0xacb   : > { %v5114_v12 = vpop.f32.mrb[226].mxu1 }
 0xacc   : > { %v13028_v48 = vadd.f32 %v12992_v11, %v5114_v12  ;;  %v7220_v63 = vpop.f32.mrb[227].mxu1  ;;  %v5194_v49 = vsel %vm5175_vm0, %v13025_v53, 0.0 }
 0xacd   : > { %5195 = vadd.xlane.f32.xlu0 %v5194_v49 }
 0xace   : > { %v5197_v47 = vsel %vm5175_vm0, %v13028_v48, 0.0 }
 0xacf   : > { %5198 = vadd.xlane.f32.xlu1 %v5197_v47 }
 0xad1   : > { %v5119_v32 = vpop.f32.mrb[228].mxu1 }
 0xad2   : > { %v13035_v43 = vadd.f32 %v12992_v11, %v5119_v32  ;;  %v7223_v19 = vpop.f32.mrb[229].mxu1 }
 0xad3   : > { %v5122_v36 = vpop.f32.mrb[230].mxu1 }
 0xad4   : > { %v13038_v8 = vadd.f32 %v12992_v11, %v5122_v36  ;;  %v7224_v61 = vpop.f32.mrb[231].mxu1  ;;  %v5200_v52 = vsel %vm5175_vm0, %v13035_v43, 0.0 }
 0xad5   : > { %5201 = vadd.xlane.f32.xlu0 %v5200_v52 }
 0xad6   : > { %v5203_v60 = vsel %vm5175_vm0, %v13038_v8, 0.0 }
 0xad7   : > { %5204 = vadd.xlane.f32.xlu1 %v5203_v60 }
 0xad9   : > { %v5127_v0 = vpop.f32.mrb[232].mxu1 }
 0xada   : > { %v13045_v25 = vadd.f32 %v12992_v11, %v5127_v0  ;;  %v7227_v55 = vpop.f32.mrb[233].mxu1 }
 0xadb   : > { %v5130_v40 = vpop.f32.mrb[234].mxu1 }
 0xadc   : > { %v13048_v29 = vadd.f32 %v12992_v11, %v5130_v40  ;;  %v7228_v28 = vpop.f32.mrb[235].mxu1  ;;  %v5206_v15 = vsel %vm5175_vm0, %v13045_v25, 0.0 }
 0xadd   : > { %5207 = vadd.xlane.f32.xlu0 %v5206_v15 }
 0xade   : > { %v5209_v18 = vsel %vm5175_vm0, %v13048_v29, 0.0 }
 0xadf   : > { %5210 = vadd.xlane.f32.xlu1 %v5209_v18 }
 0xae1   : > { %v5135_v6 = vpop.f32.mrb[236].mxu1 }
 0xae2   : > { %v13055_v27 = vadd.f32 %v12992_v11, %v5135_v6  ;;  %v7231_v56 = vpop.f32.mrb[237].mxu1 }
 0xae3   : > { %v5138_v13 = vpop.f32.mrb[238].mxu1 }
 0xae4   : > { %v13058_v23 = vadd.f32 %v12992_v11, %v5138_v13  ;;  %v7232_v20 = vpop.f32.mrb[239].mxu1  ;;  %v5212_v39 = vsel %vm5175_vm0, %v13055_v27, 0.0 }
 0xae5   : > { %5213 = vadd.xlane.f32.xlu0 %v5212_v39 }
 0xae6   : > { %v5215_v24 = vsel %vm5175_vm0, %v13058_v23, 0.0 }
 0xae7   : > { %5216 = vadd.xlane.f32.xlu1 %v5215_v24 }
 0xae9   : > { %v5143_v51 = vpop.f32.mrb[240].mxu1 }
 0xaea   : > { %v13065_v46 = vadd.f32 %v12992_v11, %v5143_v51  ;;  %v7235_v1 = vpop.f32.mrb[241].mxu1 }
 0xaeb   : > { %v5146_v26 = vpop.f32.mrb[242].mxu1 }
 0xaec   : > { %v13068_v41 = vadd.f32 %v12992_v11, %v5146_v26  ;;  %v7236_v9 = vpop.f32.mrb[243].mxu1  ;;  %v5218_v2 = vsel %vm5175_vm0, %v13065_v46, 0.0 }
 0xaed   : > { %5219 = vadd.xlane.f32.xlu0 %v5218_v2 }
 0xaee   : > { %v5221_v21 = vsel %vm5175_vm0, %v13068_v41, 0.0 }
 0xaef   : > { %5222 = vadd.xlane.f32.xlu1 %v5221_v21 }
 0xaf1   : > { %v5151_v44 = vpop.f32.mrb[244].mxu1 }
 0xaf2   : > { %v13075_v45 = vadd.f32 %v12992_v11, %v5151_v44  ;;  %v7239_v22 = vpop.f32.mrb[245].mxu1 }
 0xaf3   : > { %v5154_v57 = vpop.f32.mrb[246].mxu1 }
 0xaf4   : > { %v13078_v54 = vadd.f32 %v12992_v11, %v5154_v57  ;;  %v7240_v10 = vpop.f32.mrb[247].mxu1  ;;  %v5224_v5 = vsel %vm5175_vm0, %v13075_v45, 0.0 }
 0xaf5   : > { %5225 = vadd.xlane.f32.xlu0 %v5224_v5 }
 0xaf6   : > { %v5227_v17 = vsel %vm5175_vm0, %v13078_v54, 0.0 }
 0xaf7   : > { %5228 = vadd.xlane.f32.xlu1 %v5227_v17 }
 0xaf9   : > { %v5159_v7 = vpop.f32.mrb[248].mxu1 }
 0xafa   : > { %v13085_v42 = vadd.f32 %v12992_v11, %v5159_v7  ;;  %v7243_v30 = vpop.f32.mrb[249].mxu1 }
 0xafb   : > { %v5162_v50 = vpop.f32.mrb[250].mxu1 }
 0xafc   : > { %v13088_v58 = vadd.f32 %v12992_v11, %v5162_v50  ;;  %v7244_v33 = vpop.f32.mrb[251].mxu1  ;;  %v5230_v34 = vsel %vm5175_vm0, %v13085_v42, 0.0 }
 0xafd   : > { %5231 = vadd.xlane.f32.xlu0 %v5230_v34 }
 0xafe   : > { %v5233_v4 = vsel %vm5175_vm0, %v13088_v58, 0.0 }
 0xaff   : > { %5234 = vadd.xlane.f32.xlu1 %v5233_v4 }
 0xb42   : > { %v5178_v16 = vpop.xlane.xlu0 %5177 }
 0xb43   : > { %v5240_v37 = vmul.f32 0.015625, %v5178_v16 }
 0xb44   : > { %v5181_v12 = vpop.xlane.xlu1 %5180 }
 0xb45   : > { %v13095_v63 = vsub.f32 %v12995_v31, %v5240_v37  ;;  %v5241_v49 = vmul.f32 0.015625, %v5181_v12 }
 0xb47   : > { %v13098_v47 = vsub.f32 %v12998_v59, %v5241_v49  ;;  %v5282_v32 = vmul.f32 %v13095_v63, %v13095_v63 }
 0xb48   : > { %v5167_v19 = vpop.f32.mrb[252].mxu1 }
 0xb49   : > { %v13103_v36 = vadd.f32 %v12992_v11, %v5167_v19  ;;  %v7247_v61 = vpop.f32.mrb[253].mxu1  ;;  %v5303_v52 = vsel %vm5175_vm0, %v5282_v32, 0.0  ;;  %v5283_v60 = vmul.f32 %v13098_v47, %v13098_v47 }
 0xb4a   : > { %v5184_v0 = vpop.xlane.xlu0 %5183  ;;  %5304 = vadd.xlane.f32.xlu0 %v5303_v52  ;;  %v5170_v31 = vpop.f32.mrb[254].mxu1 }
 0xb4b   : > { %v5242_v55 = vmul.f32 0.015625, %v5184_v0  ;;  %v7248_v40 = vpop.f32.mrb[255].mxu1  ;;  %v5306_v59 = vsel %vm5175_vm0, %v5283_v60, 0.0  ;;  %v5236_v18 = vsel %vm5175_vm0, %v13103_v36, 0.0 }
 0xb4c   : > { %5307 = vadd.xlane.f32.xlu1 %v5306_v59  ;;  %v5187_v28 = vpop.xlane.xlu1 %5186 }
 0xb4d   : > { %v13110_v15 = vsub.f32 %v13005_v62, %v5242_v55  ;;  %v5243_v11 = vmul.f32 0.015625, %v5187_v28 }
 0xb4e   : > { %5237 = vadd.xlane.f32.xlu0 %v5236_v18 }
 0xb4f   : > { %v13115_v6 = vsub.f32 %v13008_v35, %v5243_v11  ;;  %v5284_v56 = vmul.f32 %v13110_v15, %v13110_v15 }
 0xb51   : > { %v5309_v13 = vsel %vm5175_vm0, %v5284_v56, 0.0  ;;  %v5285_v20 = vmul.f32 %v13115_v6, %v13115_v6 }
 0xb52   : > { %v5190_v39 = vpop.xlane.xlu0 %5189  ;;  %5310 = vadd.xlane.f32.xlu1 %v5309_v13 }
 0xb53   : > { %v5244_v62 = vmul.f32 0.015625, %v5190_v39  ;;  %v5312_v24 = vsel %vm5175_vm0, %v5285_v20, 0.0  ;;  %v5532_v39 = vld [vmem:[#allocation2 + $0x78] sm:$0xff] }
 0xb54   : > { %5313 = vadd.xlane.f32.xlu0 %v5312_v24  ;;  %v5193_v51 = vpop.xlane.xlu1 %5192 }
 0xb55   : > { %v13124_v1 = vsub.f32 %v13015_v38, %v5244_v62  ;;  %v5245_v35 = vmul.f32 0.015625, %v5193_v51  ;;  %v5533_v62 = vld [vmem:[#allocation2 + $0x80] sm:$0xff] }
 0xb56   : > { %v5540_v51 = vpack.c.bf16 %v5533_v62, %v5532_v39 }
 0xb57   : > { %v13127_v26 = vsub.f32 %v13018_v3, %v5245_v35  ;;  %v5286_v9 = vmul.f32 %v13124_v1, %v13124_v1 }
 0xb58   : > { %7250 = vmatpush3.bf16.msra.mxu0 %v5540_v51 }
 0xb59   : > { %v5315_v2 = vsel %vm5175_vm0, %v5286_v9, 0.0  ;;  %v5287_v21 = vmul.f32 %v13127_v26, %v13127_v26  ;;  %7251 = vmatprep.subr.bf16.mxu0 %v14808_v14 }
 0xb5a   : > { %v5196_v44 = vpop.xlane.xlu0 %5195  ;;  %5316 = vadd.xlane.f32.xlu1 %v5315_v2 }
 0xb5b   : > { %v5246_v22 = vmul.f32 0.015625, %v5196_v44  ;;  %v5318_v57 = vsel %vm5175_vm0, %v5287_v21, 0.0  ;;  %v5534_v21 = vld [vmem:[#allocation2 + $0x88] sm:$0xff]  ;;  %v5535_v44 = vld [vmem:[#allocation2 + $0x90] sm:$0xff] }
 0xb5c   : > { %5319 = vadd.xlane.f32.xlu0 %v5318_v57  ;;  %v5199_v38 = vpop.xlane.xlu1 %5198 }
 0xb5d   : > { %v13136_v10 = vsub.f32 %v13025_v53, %v5246_v22  ;;  %v5247_v3 = vmul.f32 0.015625, %v5199_v38  ;;  %v5541_v22 = vpack.c.bf16 %v5535_v44, %v5534_v21 }
 0xb5f   : > { %v13139_v5 = vsub.f32 %v13028_v48, %v5247_v3  ;;  %v5288_v17 = vmul.f32 %v13136_v10, %v13136_v10  ;;  %7252 = vmatpush3.bf16.msra.mxu0 %v5541_v22 }
 0xb60   : > { %7253 = vmatprep.subr.bf16.mxu0 %v14808_v14 }
 0xb61   : > { %v5321_v7 = vsel %vm5175_vm0, %v5288_v17, 0.0  ;;  %v5289_v30 = vmul.f32 %v13139_v5, %v13139_v5 }
 0xb62   : > { %v5202_v50 = vpop.xlane.xlu0 %5201  ;;  %5322 = vadd.xlane.f32.xlu1 %v5321_v7  ;;  %v5537_v7 = vld [vmem:[#allocation2 + $0xa0] sm:$0xff] }
 0xb63   : > { %v5248_v33 = vmul.f32 0.015625, %v5202_v50  ;;  %v5324_v34 = vsel %vm5175_vm0, %v5289_v30, 0.0 }
 0xb64   : > { %5325 = vadd.xlane.f32.xlu0 %v5324_v34  ;;  %v5205_v53 = vpop.xlane.xlu1 %5204 }
 0xb65   : > { %v13148_v4 = vsub.f32 %v13035_v43, %v5248_v33  ;;  %v5249_v48 = vmul.f32 0.015625, %v5205_v53 }
 0xb67   : > { %v13151_v16 = vsub.f32 %v13038_v8, %v5249_v48  ;;  %v5290_v37 = vmul.f32 %v13148_v4, %v13148_v4 }
 0xb69   : > { %v5327_v12 = vsel %vm5175_vm0, %v5290_v37, 0.0  ;;  %v5291_v49 = vmul.f32 %v13151_v16, %v13151_v16  ;;  %v5538_v37 = vld [vmem:[#allocation2 + $0xa8] sm:$0xff] }
 0xb6a   : > { %v5208_v32 = vpop.xlane.xlu0 %5207  ;;  %5328 = vadd.xlane.f32.xlu1 %v5327_v12  ;;  %v5539_v12 = vld [vmem:[#allocation2 + $0xb0] sm:$0xff] }
 0xb6b   : > { %v5250_v19 = vmul.f32 0.015625, %v5208_v32  ;;  %v5330_v61 = vsel %vm5175_vm0, %v5291_v49, 0.0  ;;  %v5543_v49 = vpack.c.bf16 %v5539_v12, %v5538_v37 }
 0xb6c   : > { %5331 = vadd.xlane.f32.xlu0 %v5330_v61  ;;  %v5211_v43 = vpop.xlane.xlu1 %5210 }
 0xb6d   : > { %v13160_v52 = vsub.f32 %v13045_v25, %v5250_v19  ;;  %v5251_v8 = vmul.f32 0.015625, %v5211_v43 }
 0xb6f   : > { %v13163_v60 = vsub.f32 %v13048_v29, %v5251_v8  ;;  %v5292_v0 = vmul.f32 %v13160_v52, %v13160_v52 }
 0xb71   : > { %v5333_v31 = vsel %vm5175_vm0, %v5292_v0, 0.0  ;;  %v5293_v55 = vmul.f32 %v13163_v60, %v13163_v60 }
 0xb72   : > { %v5214_v40 = vpop.xlane.xlu0 %5213  ;;  %5334 = vadd.xlane.f32.xlu1 %v5333_v31 }
 0xb73   : > { %v5252_v59 = vmul.f32 0.015625, %v5214_v40  ;;  %v5336_v28 = vsel %vm5175_vm0, %v5293_v55, 0.0 }
 0xb74   : > { %5337 = vadd.xlane.f32.xlu0 %v5336_v28  ;;  %v5217_v25 = vpop.xlane.xlu1 %5216 }
 0xb75   : > { %v13172_v11 = vsub.f32 %v13055_v27, %v5252_v59  ;;  %v5253_v29 = vmul.f32 0.015625, %v5217_v25 }
 0xb77   : > { %v13175_v18 = vsub.f32 %v13058_v23, %v5253_v29  ;;  %v5294_v56 = vmul.f32 %v13172_v11, %v13172_v11 }
 0xb79   : > { %v5339_v13 = vsel %vm5175_vm0, %v5294_v56, 0.0  ;;  %v5295_v20 = vmul.f32 %v13175_v18, %v13175_v18 }
 0xb7a   : > { %v5220_v24 = vpop.xlane.xlu0 %5219  ;;  %5340 = vadd.xlane.f32.xlu1 %v5339_v13 }
 0xb7b   : > { %v5254_v35 = vmul.f32 0.015625, %v5220_v24  ;;  %v5342_v27 = vsel %vm5175_vm0, %v5295_v20, 0.0 }
 0xb7c   : > { %5343 = vadd.xlane.f32.xlu0 %v5342_v27  ;;  %v5223_v9 = vpop.xlane.xlu1 %5222 }
 0xb7d   : > { %v13184_v23 = vsub.f32 %v13065_v46, %v5254_v35  ;;  %v5255_v2 = vmul.f32 0.015625, %v5223_v9  ;;  %v5536_v46 = vld [vmem:[#allocation2 + $0x98] sm:$0xff] }
 0xb7e   : > { %v5542_v50 = vpack.c.bf16 %v5537_v7, %v5536_v46 }
 0xb7f   : > { %v13188_v57 = vsub.f32 %v13068_v41, %v5255_v2  ;;  %v5296_v38 = vmul.f32 %v13184_v23, %v13184_v23 }
 0xb80   : > { %7254 = vmatpush3.bf16.msra.mxu0 %v5542_v50 }
 0xb81   : > { %v5345_v3 = vsel %vm5175_vm0, %v5296_v38, 0.0  ;;  %v5297_v17 = vmul.f32 %v13188_v57, %v13188_v57  ;;  %7255 = vmatprep.subr.bf16.mxu0 %v14808_v14 }
 0xb82   : > { %v5226_v30 = vpop.xlane.xlu0 %5225  ;;  %5346 = vadd.xlane.f32.xlu1 %v5345_v3 }
 0xb83   : > { %v5256_v33 = vmul.f32 0.015625, %v5226_v30  ;;  %v5348_v41 = vsel %vm5175_vm0, %v5297_v17, 0.0  ;;  %v13228_v17 = vld [vmem:[#allocation2 + $0x1d8] ss:$0 sm:$0xff]  ;;  %v13231_v30 = vld [vmem:[#allocation2 + $0x1e0] ss:$0 sm:$0xff] }
 0xb84   : > { %5349 = vadd.xlane.f32.xlu0 %v5348_v41  ;;  %v5229_v34 = vpop.xlane.xlu1 %5228  ;;  %7256 = vmatpush3.bf16.msra.mxu0 %v5543_v49 }
 0xb85   : > { %v13198_v53 = vsub.f32 %v13075_v45, %v5256_v33  ;;  %v5257_v48 = vmul.f32 0.015625, %v5229_v34 }
 0xb87   : > { %v13202_v32 = vsub.f32 %v13078_v54, %v5257_v48  ;;  %v5298_v19 = vmul.f32 %v13198_v53, %v13198_v53 }
 0xb89   : > { %v5351_v61 = vsel %vm5175_vm0, %v5298_v19, 0.0  ;;  %v5299_v43 = vmul.f32 %v13202_v32, %v13202_v32 }
 0xb8a   : > { %v5232_v45 = vpop.xlane.xlu0 %5231  ;;  %5352 = vadd.xlane.f32.xlu1 %v5351_v61 }
 0xb8b   : > { %v5258_v8 = vmul.f32 0.015625, %v5232_v45  ;;  %v5354_v0 = vsel %vm5175_vm0, %v5299_v43, 0.0 }
 0xb8c   : > { %5355 = vadd.xlane.f32.xlu0 %v5354_v0  ;;  %v5235_v31 = vpop.xlane.xlu1 %5234 }
 0xb8d   : > { %v13211_v55 = vsub.f32 %v13085_v42, %v5258_v8  ;;  %v5259_v54 = vmul.f32 0.015625, %v5235_v31 }
 0xb8f   : > { %v13214_v40 = vsub.f32 %v13088_v58, %v5259_v54  ;;  %v5300_v59 = vmul.f32 %v13211_v55, %v13211_v55 }
 0xb91   : > { %v5357_v28 = vsel %vm5175_vm0, %v5300_v59, 0.0  ;;  %v5301_v25 = vmul.f32 %v13214_v40, %v13214_v40 }
 0xb92   : > { %5358 = vadd.xlane.f32.xlu1 %v5357_v28 }
 0xb93   : > { %v5360_v29 = vsel %vm5175_vm0, %v5301_v25, 0.0 }
 0xb94   : > { %5361 = vadd.xlane.f32.xlu0 %v5360_v29 }
 0xbd7   : > { %v5305_v56 = vpop.xlane.xlu0 %5304 }
 0xbd8   : > { %v5366_v13 = vmul.f32 0.015625, %v5305_v56 }
 0xbd9   : > { %v5308_v42 = vpop.xlane.xlu1 %5307 }
 0xbda   : > { %v5387_v20 = vadd.f32 1e-05, %v5366_v13  ;;  %v5367_v39 = vmul.f32 0.015625, %v5308_v42 }
 0xbdb   : > { %v5238_v62 = vpop.xlane.xlu0 %5237 }
 0xbdc   : > { %8014 = vrsqrt.f32 %v5387_v20  ;;  %v5388_v58 = vadd.f32 1e-05, %v5367_v39  ;;  %v5260_v24 = vmul.f32 0.015625, %v5238_v62 }
 0xbde   : > { %8016 = vrsqrt.f32 %v5388_v58  ;;  %v13223_v51 = vsub.f32 %v13103_v36, %v5260_v24 }
 0xbdf   : > { %v5311_v35 = vpop.xlane.xlu1 %5310 }
 0xbe0   : > { %v5368_v27 = vmul.f32 0.015625, %v5311_v35  ;;  %v5302_v9 = vmul.f32 %v13223_v51, %v13223_v51 }
 0xbe1   : > { %v5314_v2 = vpop.xlane.xlu0 %5313 }
 0xbe2   : > { %v5389_v21 = vadd.f32 1e-05, %v5368_v27  ;;  %v5369_v44 = vmul.f32 0.015625, %v5314_v2  ;;  %v5363_v22 = vsel %vm5175_vm0, %v5302_v9, 0.0 }
 0xbe3   : > { %5364 = vadd.xlane.f32.xlu1 %v5363_v22 }
 0xbe4   : > { %8018 = vrsqrt.f32 %v5389_v21  ;;  %v5390_v38 = vadd.f32 1e-05, %v5369_v44 }
 0xbe6   : > { %v8015_v3 = vpop.eup %8014  ;;  %8020 = vrsqrt.f32 %v5390_v38 }
 0xbe7   : > { %v5429_v36 = vmul.f32 %v8015_v3, %v13095_v63  ;;  %v5317_v46 = vpop.xlane.xlu1 %5316 }
 0xbe8   : > { %v8017_v7 = vpop.eup %8016  ;;  %v5370_v50 = vmul.f32 0.015625, %v5317_v46 }
 0xbe9   : > { %v5454_v33 = vmul.f32 %v13228_v17, %v5429_v36  ;;  %v5430_v41 = vmul.f32 %v8017_v7, %v13098_v47  ;;  %v5320_v34 = vpop.xlane.xlu0 %5319 }
 0xbea   : > { %v5391_v48 = vadd.f32 1e-05, %v5370_v50  ;;  %v5371_v37 = vmul.f32 0.015625, %v5320_v34 }
 0xbeb   : > { %v5479_v12 = vadd.f32 %v13231_v30, %v5454_v33  ;;  %v5455_v49 = vmul.f32 %v13228_v17, %v5430_v41 }
 0xbec   : > { %8022 = vrsqrt.f32 %v5391_v48  ;;  %v5392_v19 = vadd.f32 1e-05, %v5371_v37 }
 0xbed   : > { %v5480_v63 = vadd.f32 %v13231_v30, %v5455_v49  ;;  %v5500_v43 = vmax.f32 %v5479_v12, 0.0 }
 0xbee   : > { %v8019_v61 = vpop.eup %8018  ;;  %8024 = vrsqrt.f32 %v5392_v19 }
 0xbef   : > { %v5501_v45 = vmax.f32 %v5480_v63, 0.0  ;;  %v5431_v8 = vmul.f32 %v8019_v61, %v13110_v15  ;;  %v5323_v0 = vpop.xlane.xlu1 %5322 }
 0xbf0   : > { %v8021_v31 = vpop.eup %8020  ;;  %v5372_v47 = vmul.f32 0.015625, %v5323_v0 }
 0xbf1   : > { %v5521_v54 = vpack.c.bf16 %v5501_v45, %v5500_v43  ;;  %v5456_v59 = vmul.f32 %v13228_v17, %v5431_v8  ;;  %v5432_v28 = vmul.f32 %v8021_v31, %v13115_v6  ;;  %v5326_v25 = vpop.xlane.xlu0 %5325 }
 0xbf2   : > { %v5393_v29 = vadd.f32 1e-05, %v5372_v47  ;;  %v5373_v56 = vmul.f32 0.015625, %v5326_v25 }
 0xbf3   : > { %v5481_v13 = vadd.f32 %v13231_v30, %v5456_v59  ;;  %v5457_v42 = vmul.f32 %v13228_v17, %v5432_v28  ;;  %7258 = vmatmul.mubr.msk.bf16.vlgmr.msra.gmra.mrb[0].mxu0 %vm5175_vm0, %v5521_v54 }
 0xbf4   : > { %8026 = vrsqrt.f32 %v5393_v29  ;;  %v5394_v20 = vadd.f32 1e-05, %v5373_v56  ;;  %7261 = vmatprep.mubr.msk.bf16.mxu0 %vm8216_vm1, %v14808_v14 }
 0xbf5   : > { %v5482_v15 = vadd.f32 %v13231_v30, %v5457_v42  ;;  %v5502_v62 = vmax.f32 %v5481_v13, 0.0 }
 0xbf6   : > { %v8023_v39 = vpop.eup %8022  ;;  %8028 = vrsqrt.f32 %v5394_v20 }
 0xbf7   : > { %v5503_v6 = vmax.f32 %v5482_v15, 0.0  ;;  %v5433_v58 = vmul.f32 %v8023_v39, %v13124_v1  ;;  %v5329_v24 = vpop.xlane.xlu1 %5328 }
 0xbf8   : > { %v8025_v35 = vpop.eup %8024  ;;  %v5374_v27 = vmul.f32 0.015625, %v5329_v24 }
 0xbf9   : > { %v5522_v9 = vpack.c.bf16 %v5503_v6, %v5502_v62  ;;  %v5458_v2 = vmul.f32 %v13228_v17, %v5433_v58  ;;  %v5434_v21 = vmul.f32 %v8025_v35, %v13127_v26  ;;  %v5332_v44 = vpop.xlane.xlu0 %5331 }
 0xbfa   : > { %v5395_v22 = vadd.f32 1e-05, %v5374_v27  ;;  %v5375_v38 = vmul.f32 0.015625, %v5332_v44 }
 0xbfb   : > { %v5483_v3 = vadd.f32 %v13231_v30, %v5458_v2  ;;  %v5459_v36 = vmul.f32 %v13228_v17, %v5434_v21  ;;  %7262 = vmatmul.mubr.msk.bf16.gmra.mrb[4].mxu0 %vm5175_vm0, %v5522_v9 }
 0xbfc   : > { %8030 = vrsqrt.f32 %v5395_v22  ;;  %v5396_v46 = vadd.f32 1e-05, %v5375_v38  ;;  %7265 = vmatprep.mubr.msk.bf16.mxu0 %vm8216_vm1, %v14808_v14 }
 0xbfd   : > { %v5484_v1 = vadd.f32 %v13231_v30, %v5459_v36  ;;  %v5504_v50 = vmax.f32 %v5483_v3, 0.0 }
 0xbfe   : > { %v8027_v7 = vpop.eup %8026  ;;  %8032 = vrsqrt.f32 %v5396_v46 }
 0xbff   : > { %v5505_v26 = vmax.f32 %v5484_v1, 0.0  ;;  %v5435_v33 = vmul.f32 %v8027_v7, %v13136_v10  ;;  %v5335_v41 = vpop.xlane.xlu1 %5334 }
 0xc00   : > { %v8029_v34 = vpop.eup %8028  ;;  %v5376_v48 = vmul.f32 0.015625, %v5335_v41 }
 0xc01   : > { %v5523_v37 = vpack.c.bf16 %v5505_v26, %v5504_v50  ;;  %v5460_v12 = vmul.f32 %v13228_v17, %v5435_v33  ;;  %v5436_v49 = vmul.f32 %v8029_v34, %v13139_v5  ;;  %v5338_v19 = vpop.xlane.xlu0 %5337 }
 0xc02   : > { %v5397_v63 = vadd.f32 1e-05, %v5376_v48  ;;  %v5377_v61 = vmul.f32 0.015625, %v5338_v19 }
 0xc03   : > { %v5485_v43 = vadd.f32 %v13231_v30, %v5460_v12  ;;  %v5461_v45 = vmul.f32 %v13228_v17, %v5436_v49  ;;  %7266 = vmatmul.mubr.msk.bf16.gmra.mrb[8].mxu0 %vm5175_vm0, %v5523_v37 }
 0xc04   : > { %8034 = vrsqrt.f32 %v5397_v63  ;;  %v5398_v8 = vadd.f32 1e-05, %v5377_v61  ;;  %7269 = vmatprep.mubr.msk.bf16.mxu0 %vm8216_vm1, %v14808_v14 }
 0xc05   : > { %v5486_v10 = vadd.f32 %v13231_v30, %v5461_v45  ;;  %v5506_v31 = vmax.f32 %v5485_v43, 0.0 }
 0xc06   : > { %v8031_v0 = vpop.eup %8030  ;;  %8036 = vrsqrt.f32 %v5398_v8 }
 0xc07   : > { %v5507_v5 = vmax.f32 %v5486_v10, 0.0  ;;  %v5437_v47 = vmul.f32 %v8031_v0, %v13148_v4  ;;  %v5341_v54 = vpop.xlane.xlu1 %5340 }
 0xc08   : > { %v8033_v59 = vpop.eup %8032  ;;  %v5378_v28 = vmul.f32 0.015625, %v5341_v54 }
 0xc09   : > { %v5524_v25 = vpack.c.bf16 %v5507_v5, %v5506_v31  ;;  %v5462_v29 = vmul.f32 %v13228_v17, %v5437_v47  ;;  %v5438_v56 = vmul.f32 %v8033_v59, %v13151_v16  ;;  %v5344_v13 = vpop.xlane.xlu0 %5343 }
 0xc0a   : > { %v5399_v42 = vadd.f32 1e-05, %v5378_v28  ;;  %v5379_v20 = vmul.f32 0.015625, %v5344_v13 }
 0xc0b   : > { %v5487_v15 = vadd.f32 %v13231_v30, %v5462_v29  ;;  %v5463_v39 = vmul.f32 %v13228_v17, %v5438_v56  ;;  %7270 = vmatmul.mubr.msk.bf16.gmra.mrb[12].mxu0 %vm5175_vm0, %v5524_v25 }
 0xc0c   : > { %8038 = vrsqrt.f32 %v5399_v42  ;;  %v5400_v62 = vadd.f32 1e-05, %v5379_v20  ;;  %7273 = vmatprep.mubr.msk.bf16.mxu0 %vm8216_vm1, %v14808_v14 }
 0xc0d   : > { %v5488_v4 = vadd.f32 %v13231_v30, %v5463_v39  ;;  %v5508_v58 = vmax.f32 %v5487_v15, 0.0 }
 0xc0e   : > { %v8035_v6 = vpop.eup %8034  ;;  %8040 = vrsqrt.f32 %v5400_v62 }
 0xc0f   : > { %v5509_v16 = vmax.f32 %v5488_v4, 0.0  ;;  %v5439_v24 = vmul.f32 %v8035_v6, %v13160_v52  ;;  %v5347_v35 = vpop.xlane.xlu1 %5346 }
 0xc10   : > { %v8037_v27 = vpop.eup %8036  ;;  %v5380_v9 = vmul.f32 0.015625, %v5347_v35 }
 0xc11   : > { %v5525_v2 = vpack.c.bf16 %v5509_v16, %v5508_v58  ;;  %v5464_v21 = vmul.f32 %v13228_v17, %v5439_v24  ;;  %v5440_v44 = vmul.f32 %v8037_v27, %v13163_v60  ;;  %v5350_v22 = vpop.xlane.xlu0 %5349 }
 0xc12   : > { %v5401_v38 = vadd.f32 1e-05, %v5380_v9  ;;  %v5381_v3 = vmul.f32 0.015625, %v5350_v22 }
 0xc13   : > { %v5489_v36 = vadd.f32 %v13231_v30, %v5464_v21  ;;  %v5465_v46 = vmul.f32 %v13228_v17, %v5440_v44  ;;  %7274 = vmatmul.mubr.msk.bf16.gmra.mrb[16].mxu0 %vm5175_vm0, %v5525_v2 }
 0xc14   : > { %8042 = vrsqrt.f32 %v5401_v38  ;;  %v5402_v1 = vadd.f32 1e-05, %v5381_v3  ;;  %7277 = vmatprep.mubr.msk.bf16.mxu0 %vm8216_vm1, %v14808_v14 }
 0xc15   : > { %v5490_v52 = vadd.f32 %v13231_v30, %v5465_v46  ;;  %v5510_v50 = vmax.f32 %v5489_v36, 0.0 }
 0xc16   : > { %v8039_v7 = vpop.eup %8038  ;;  %8044 = vrsqrt.f32 %v5402_v1 }
 0xc17   : > { %v5511_v60 = vmax.f32 %v5490_v52, 0.0  ;;  %v5441_v26 = vmul.f32 %v8039_v7, %v13172_v11  ;;  %v5353_v33 = vpop.xlane.xlu1 %5352 }
 0xc18   : > { %v8041_v41 = vpop.eup %8040  ;;  %v5382_v34 = vmul.f32 0.015625, %v5353_v33 }
 0xc19   : > { %v5526_v48 = vpack.c.bf16 %v5511_v60, %v5510_v50  ;;  %v5466_v37 = vmul.f32 %v13228_v17, %v5441_v26  ;;  %v5442_v12 = vmul.f32 %v8041_v41, %v13175_v18  ;;  %v5356_v49 = vpop.xlane.xlu0 %5355 }
 0xc1a   : > { %v5403_v19 = vadd.f32 1e-05, %v5382_v34  ;;  %v5383_v63 = vmul.f32 0.015625, %v5356_v49 }
 0xc1b   : > { %v5491_v61 = vadd.f32 %v13231_v30, %v5466_v37  ;;  %v5467_v43 = vmul.f32 %v13228_v17, %v5442_v12  ;;  %7278 = vmatmul.mubr.msk.bf16.gmra.mrb[20].mxu0 %vm5175_vm0, %v5526_v48  ;;  %v13328_v37 = vld [vmem:[#allocation2 + $0x1e8] ss:$0 sm:$0xff] }
 0xc1c   : > { %8046 = vrsqrt.f32 %v5403_v19  ;;  %v5404_v45 = vadd.f32 1e-05, %v5383_v63  ;;  %7281 = vmatprep.mubr.msk.bf16.mxu0 %vm8216_vm1, %v14808_v14 }
 0xc1d   : > { %v5492_v11 = vadd.f32 %v13231_v30, %v5467_v43  ;;  %v5512_v10 = vmax.f32 %v5491_v61, 0.0 }
 0xc1e   : > { %v8043_v8 = vpop.eup %8042  ;;  %8048 = vrsqrt.f32 %v5404_v45 }
 0xc1f   : > { %v5513_v18 = vmax.f32 %v5492_v11, 0.0  ;;  %v5443_v0 = vmul.f32 %v8043_v8, %v13184_v23  ;;  %v5359_v31 = vpop.xlane.xlu1 %5358 }
 0xc20   : > { %v8045_v5 = vpop.eup %8044  ;;  %v5384_v47 = vmul.f32 0.015625, %v5359_v31 }
 0xc21   : > { %v5527_v54 = vpack.c.bf16 %v5513_v18, %v5512_v10  ;;  %v5468_v59 = vmul.f32 %v13228_v17, %v5443_v0  ;;  %v5444_v28 = vmul.f32 %v8045_v5, %v13188_v57  ;;  %v5362_v25 = vpop.xlane.xlu0 %5361 }
 0xc22   : > { %v5405_v29 = vadd.f32 1e-05, %v5384_v47  ;;  %v5385_v56 = vmul.f32 0.015625, %v5362_v25 }
 0xc23   : > { %v5493_v13 = vadd.f32 %v13231_v30, %v5468_v59  ;;  %v5469_v42 = vmul.f32 %v13228_v17, %v5444_v28  ;;  %7282 = vmatmul.mubr.msk.bf16.gmra.mrb[24].mxu0 %vm5175_vm0, %v5527_v54 }
 0xc24   : > { %8050 = vrsqrt.f32 %v5405_v29  ;;  %v5406_v20 = vadd.f32 1e-05, %v5385_v56  ;;  %7285 = vmatprep.mubr.msk.bf16.mxu0 %vm8216_vm1, %v14808_v14 }
 0xc25   : > { %v5494_v23 = vadd.f32 %v13231_v30, %v5469_v42  ;;  %v5514_v39 = vmax.f32 %v5493_v13, 0.0 }
 0xc26   : > { %v8047_v15 = vpop.eup %8046  ;;  %8052 = vrsqrt.f32 %v5406_v20 }
 0xc27   : > { %v5515_v57 = vmax.f32 %v5494_v23, 0.0  ;;  %v5445_v62 = vmul.f32 %v8047_v15, %v13198_v53 }
 0xc28   : > { %v8049_v4 = vpop.eup %8048 }
 0xc29   : > { %v5528_v6 = vpack.c.bf16 %v5515_v57, %v5514_v39  ;;  %v5470_v58 = vmul.f32 %v13228_v17, %v5445_v62  ;;  %v5446_v16 = vmul.f32 %v8049_v4, %v13202_v32 }
 0xc2b   : > { %v5495_v24 = vadd.f32 %v13231_v30, %v5470_v58  ;;  %v5471_v35 = vmul.f32 %v13228_v17, %v5446_v16  ;;  %7286 = vmatmul.mubr.msk.bf16.gmra.mrb[28].mxu0 %vm5175_vm0, %v5528_v6 }
 0xc2c   : > { %7289 = vmatprep.mubr.msk.bf16.mxu0 %vm8216_vm1, %v14808_v14 }
 0xc2d   : > { %v5496_v27 = vadd.f32 %v13231_v30, %v5471_v35  ;;  %v5516_v2 = vmax.f32 %v5495_v24, 0.0 }
 0xc2e   : > { %v8051_v9 = vpop.eup %8050 }
 0xc2f   : > { %v5517_v53 = vmax.f32 %v5496_v27, 0.0  ;;  %v5447_v21 = vmul.f32 %v8051_v9, %v13211_v55 }
 0xc30   : > { %v8053_v44 = vpop.eup %8052 }
 0xc31   : > { %v5529_v22 = vpack.c.bf16 %v5517_v53, %v5516_v2  ;;  %v5472_v32 = vmul.f32 %v13228_v17, %v5447_v21  ;;  %v5448_v38 = vmul.f32 %v8053_v44, %v13214_v40 }
 0xc33   : > { %v5497_v3 = vadd.f32 %v13231_v30, %v5472_v32  ;;  %v5473_v36 = vmul.f32 %v13228_v17, %v5448_v38  ;;  %7290 = vmatmul.mubr.msk.bf16.gmra.mrb[32].mxu0 %vm5175_vm0, %v5529_v22 }
 0xc34   : > { %7293 = vmatprep.mubr.msk.bf16.mxu0 %vm8216_vm1, %v14808_v14 }
 0xc35   : > { %v5498_v46 = vadd.f32 %v13231_v30, %v5473_v36  ;;  %v5518_v1 = vmax.f32 %v5497_v3, 0.0 }
 0xc37   : > { %v5519_v52 = vmax.f32 %v5498_v46, 0.0 }
 0xc39   : > { %v5530_v55 = vpack.c.bf16 %v5519_v52, %v5518_v1 }
 0xc3b   : > { %7294 = vmatmul.mubr.msk.bf16.gmra.mrb[36].mxu0 %vm5175_vm0, %v5530_v55 }
 0xc3c   : > { %7297 = vmatprep.mubr.msk.bf16.mxu0 %vm8216_vm1, %v14808_v14 }
 0xc70   : > { %v5365_v40 = vpop.xlane.xlu1 %5364 }
 0xc71   : > { %v5386_v7 = vmul.f32 0.015625, %v5365_v40 }
 0xc73   : > { %v5407_v50 = vadd.f32 1e-05, %v5386_v7 }
 0xc75   : > { %8054 = vrsqrt.f32 %v5407_v50 }
 0xc7f   : > { %v8055_v60 = vpop.eup %8054 }
 0xc80   : > { %v5449_v26 = vmul.f32 %v8055_v60, %v13223_v51 }
 0xc82   : > { %v5474_v33 = vmul.f32 %v13228_v17, %v5449_v26 }
 0xc84   : > { %v5499_v41 = vadd.f32 %v13231_v30, %v5474_v33 }
 0xc86   : > { %v5520_v34 = vmax.f32 %v5499_v41, 0.0 }
 0xc88   : > { %v5531_v48 = vpack.c.bf16 %v5520_v34, %v5520_v34 }
 0xc8a   : > { %7298 = vmatmul.mubr.msk.bf16.gmra.mrb[40].mxu0 %vm5175_vm0, %v5531_v48 }
 0xc8b   : > { %7358 = vmatprep.mubr.msk.f32.mxu0 %vm8216_vm1, %v14808_v14 }
 0xcc6   : > { %v5616_v12 = vpop.f32.mrb[0].mxu0 }
 0xcc7   : > { %v13331_v49 = vadd.f32 %v13328_v37, %v5616_v12  ;;  %v7259_v19 = vpop.f32.mrb[1].mxu0 }
 0xcc8   : > { %v5619_v63 = vpop.f32.mrb[2].mxu0 }
 0xcc9   : > { %v13334_v51 = vadd.f32 %v13328_v37, %v5619_v63  ;;  %5704 = vadd.xlane.f32.xlu0 %v13331_v49  ;;  %v7260_v17 = vpop.f32.mrb[3].mxu0 }
 0xccb   : > { %5706 = vadd.xlane.f32.xlu1 %v13334_v51 }
 0xcce   : > { %v5624_v30 = vpop.f32.mrb[4].mxu0 }
 0xccf   : > { %v13339_v61 = vadd.f32 %v13328_v37, %v5624_v30  ;;  %v7263_v43 = vpop.f32.mrb[5].mxu0 }
 0xcd0   : > { %v5627_v45 = vpop.f32.mrb[6].mxu0 }
 0xcd1   : > { %v13342_v11 = vadd.f32 %v13328_v37, %v5627_v45  ;;  %5708 = vadd.xlane.f32.xlu0 %v13339_v61  ;;  %v7264_v8 = vpop.f32.mrb[7].mxu0 }
 0xcd3   : > { %5710 = vadd.xlane.f32.xlu1 %v13342_v11 }
 0xcd6   : > { %v5632_v10 = vpop.f32.mrb[8].mxu0 }
 0xcd7   : > { %v13347_v18 = vadd.f32 %v13328_v37, %v5632_v10  ;;  %v7267_v0 = vpop.f32.mrb[9].mxu0 }
 0xcd8   : > { %v5635_v31 = vpop.f32.mrb[10].mxu0 }
 0xcd9   : > { %v13350_v5 = vadd.f32 %v13328_v37, %v5635_v31  ;;  %5712 = vadd.xlane.f32.xlu0 %v13347_v18  ;;  %v7268_v47 = vpop.f32.mrb[11].mxu0 }
 0xcdb   : > { %5714 = vadd.xlane.f32.xlu1 %v13350_v5 }
 0xcde   : > { %v5640_v54 = vpop.f32.mrb[12].mxu0 }
 0xcdf   : > { %v13355_v59 = vadd.f32 %v13328_v37, %v5640_v54  ;;  %v7271_v28 = vpop.f32.mrb[13].mxu0 }
 0xce0   : > { %v5643_v25 = vpop.f32.mrb[14].mxu0 }
 0xce1   : > { %v13358_v29 = vadd.f32 %v13328_v37, %v5643_v25  ;;  %5716 = vadd.xlane.f32.xlu0 %v13355_v59  ;;  %v7272_v56 = vpop.f32.mrb[15].mxu0 }
 0xce3   : > { %5718 = vadd.xlane.f32.xlu1 %v13358_v29 }
 0xce6   : > { %v5648_v13 = vpop.f32.mrb[16].mxu0 }
 0xce7   : > { %v13363_v42 = vadd.f32 %v13328_v37, %v5648_v13  ;;  %v7275_v20 = vpop.f32.mrb[17].mxu0 }
 0xce8   : > { %v5651_v23 = vpop.f32.mrb[18].mxu0 }
 0xce9   : > { %v13366_v15 = vadd.f32 %v13328_v37, %v5651_v23  ;;  %5720 = vadd.xlane.f32.xlu0 %v13363_v42  ;;  %v7276_v39 = vpop.f32.mrb[19].mxu0 }
 0xceb   : > { %5722 = vadd.xlane.f32.xlu1 %v13366_v15 }
 0xcee   : > { %v5656_v57 = vpop.f32.mrb[20].mxu0 }
 0xcef   : > { %v13371_v62 = vadd.f32 %v13328_v37, %v5656_v57  ;;  %v7279_v4 = vpop.f32.mrb[21].mxu0 }
 0xcf0   : > { %v5659_v6 = vpop.f32.mrb[22].mxu0 }
 0xcf1   : > { %v13374_v58 = vadd.f32 %v13328_v37, %v5659_v6  ;;  %5724 = vadd.xlane.f32.xlu0 %v13371_v62  ;;  %v7280_v16 = vpop.f32.mrb[23].mxu0 }
 0xcf3   : > { %5726 = vadd.xlane.f32.xlu1 %v13374_v58 }
 0xcf6   : > { %v5664_v24 = vpop.f32.mrb[24].mxu0 }
 0xcf7   : > { %v13379_v35 = vadd.f32 %v13328_v37, %v5664_v24  ;;  %v7283_v27 = vpop.f32.mrb[25].mxu0 }
 0xcf8   : > { %v5667_v9 = vpop.f32.mrb[26].mxu0 }
 0xcf9   : > { %v13382_v2 = vadd.f32 %v13328_v37, %v5667_v9  ;;  %5728 = vadd.xlane.f32.xlu0 %v13379_v35  ;;  %v7284_v53 = vpop.f32.mrb[27].mxu0 }
 0xcfb   : > { %5730 = vadd.xlane.f32.xlu1 %v13382_v2 }
 0xcfe   : > { %v5672_v21 = vpop.f32.mrb[28].mxu0 }
 0xcff   : > { %v13387_v44 = vadd.f32 %v13328_v37, %v5672_v21  ;;  %v7287_v22 = vpop.f32.mrb[29].mxu0 }
 0xd00   : > { %v5675_v32 = vpop.f32.mrb[30].mxu0 }
 0xd01   : > { %v13390_v38 = vadd.f32 %v13328_v37, %v5675_v32  ;;  %5732 = vadd.xlane.f32.xlu0 %v13387_v44  ;;  %v7288_v3 = vpop.f32.mrb[31].mxu0 }
 0xd03   : > { %5734 = vadd.xlane.f32.xlu1 %v13390_v38 }
 0xd06   : > { %v5680_v36 = vpop.f32.mrb[32].mxu0 }
 0xd07   : > { %v13395_v46 = vadd.f32 %v13328_v37, %v5680_v36  ;;  %v7291_v1 = vpop.f32.mrb[33].mxu0 }
 0xd08   : > { %v5683_v52 = vpop.f32.mrb[34].mxu0 }
 0xd09   : > { %v13398_v55 = vadd.f32 %v13328_v37, %v5683_v52  ;;  %5736 = vadd.xlane.f32.xlu0 %v13395_v46  ;;  %v7292_v40 = vpop.f32.mrb[35].mxu0 }
 0xd0b   : > { %5738 = vadd.xlane.f32.xlu1 %v13398_v55 }
 0xd0e   : > { %v5688_v7 = vpop.f32.mrb[36].mxu0 }
 0xd0f   : > { %v13403_v50 = vadd.f32 %v13328_v37, %v5688_v7  ;;  %v7295_v60 = vpop.f32.mrb[37].mxu0 }
 0xd10   : > { %v5691_v26 = vpop.f32.mrb[38].mxu0 }
 0xd11   : > { %v13406_v33 = vadd.f32 %v13328_v37, %v5691_v26  ;;  %5740 = vadd.xlane.f32.xlu0 %v13403_v50  ;;  %v7296_v41 = vpop.f32.mrb[39].mxu0 }
 0xd13   : > { %5742 = vadd.xlane.f32.xlu1 %v13406_v33 }
 0xd56   : > { %v5705_v34 = vpop.xlane.xlu0 %5704 }
 0xd57   : > { %v5747_v48 = vmul.f32 0.0078125, %v5705_v34 }
 0xd58   : > { %v5707_v12 = vpop.xlane.xlu1 %5706 }
 0xd59   : > { %v13411_v19 = vsub.f32 %v13331_v49, %v5747_v48  ;;  %v5748_v63 = vmul.f32 0.0078125, %v5707_v12 }
 0xd5b   : > { %v5789_v17 = vmul.f32 %v13411_v19, %v13411_v19  ;;  %v13416_v43 = vsub.f32 %v13334_v51, %v5748_v63 }
 0xd5d   : > { %5810 = vadd.xlane.f32.xlu1 %v5789_v17  ;;  %v5696_v30 = vpop.f32.mrb[40].mxu0  ;;  %v5790_v25 = vmul.f32 %v13416_v43, %v13416_v43 }
 0xd5e   : > { %v13419_v45 = vadd.f32 %v13328_v37, %v5696_v30  ;;  %v5709_v8 = vpop.xlane.xlu0 %5708  ;;  %v7299_v10 = vpop.f32.mrb[41].mxu0 }
 0xd5f   : > { %v5749_v0 = vmul.f32 0.0078125, %v5709_v8  ;;  %v5699_v31 = vpop.f32.mrb[42].mxu0 }
 0xd60   : > { %5744 = vadd.xlane.f32.xlu0 %v13419_v45  ;;  %v7300_v49 = vpop.f32.mrb[43].mxu0  ;;  %v5711_v47 = vpop.xlane.xlu1 %5710 }
 0xd61   : > { %v13423_v54 = vsub.f32 %v13339_v61, %v5749_v0  ;;  %v5750_v28 = vmul.f32 0.0078125, %v5711_v47 }
 0xd63   : > { %v13428_v51 = vsub.f32 %v13342_v11, %v5750_v28  ;;  %v5791_v37 = vmul.f32 %v13423_v54, %v13423_v54 }
 0xd64   : > { %5812 = vadd.xlane.f32.xlu0 %v5790_v25 }
 0xd65   : > { %5814 = vadd.xlane.f32.xlu1 %v5791_v37  ;;  %v5792_v56 = vmul.f32 %v13428_v51, %v13428_v51 }
 0xd66   : > { %v5713_v13 = vpop.xlane.xlu0 %5712 }
 0xd67   : > { %v5751_v20 = vmul.f32 0.0078125, %v5713_v13 }
 0xd68   : > { %5816 = vadd.xlane.f32.xlu0 %v5792_v56  ;;  %v5715_v61 = vpop.xlane.xlu1 %5714 }
 0xd69   : > { %v13435_v23 = vsub.f32 %v13347_v18, %v5751_v20  ;;  %v5752_v39 = vmul.f32 0.0078125, %v5715_v61  ;;  %v8221_v20 = vmov 0.0|0.0  }
 0xd6a   : > { %7384 = vmatprep.subr.bf16.mxu1 %v8221_v20  ;;  %7468 = vmatprep.subr.bf16.mxu0 %v8221_v20 }
 0xd6b   : > { %v13438_v57 = vsub.f32 %v13350_v5, %v5752_v39  ;;  %v5793_v11 = vmul.f32 %v13435_v23, %v13435_v23 }
 0xd6d   : > { %5818 = vadd.xlane.f32.xlu1 %v5793_v11  ;;  %v5794_v4 = vmul.f32 %v13438_v57, %v13438_v57 }
 0xd6e   : > { %v5717_v6 = vpop.xlane.xlu0 %5716 }
 0xd6f   : > { %v5753_v16 = vmul.f32 0.0078125, %v5717_v6  ;;  %5820 = vadd.xlane.f32.xlu0 %v5794_v4 }
 0xd70   : > { %v5719_v24 = vpop.xlane.xlu1 %5718 }
 0xd71   : > { %v13445_v27 = vsub.f32 %v13355_v59, %v5753_v16  ;;  %v5754_v18 = vmul.f32 0.0078125, %v5719_v24 }
 0xd73   : > { %v13448_v9 = vsub.f32 %v13358_v29, %v5754_v18  ;;  %v5795_v5 = vmul.f32 %v13445_v27, %v13445_v27 }
 0xd75   : > { %5822 = vadd.xlane.f32.xlu1 %v5795_v5  ;;  %v5796_v53 = vmul.f32 %v13448_v9, %v13448_v9 }
 0xd76   : > { %v5721_v21 = vpop.xlane.xlu0 %5720 }
 0xd77   : > { %v5755_v22 = vmul.f32 0.0078125, %v5721_v21  ;;  %5824 = vadd.xlane.f32.xlu0 %v5796_v53 }
 0xd78   : > { %v5723_v32 = vpop.xlane.xlu1 %5722 }
 0xd79   : > { %v13455_v3 = vsub.f32 %v13363_v42, %v5755_v22  ;;  %v5756_v59 = vmul.f32 0.0078125, %v5723_v32 }
 0xd7b   : > { %v13458_v36 = vsub.f32 %v13366_v15, %v5756_v59  ;;  %v5797_v29 = vmul.f32 %v13455_v3, %v13455_v3 }
 0xd7d   : > { %5826 = vadd.xlane.f32.xlu1 %v5797_v29  ;;  %v5798_v1 = vmul.f32 %v13458_v36, %v13458_v36 }
 0xd7e   : > { %v5725_v52 = vpop.xlane.xlu0 %5724 }
 0xd7f   : > { %v5757_v40 = vmul.f32 0.0078125, %v5725_v52  ;;  %5828 = vadd.xlane.f32.xlu0 %v5798_v1 }
 0xd80   : > { %v5727_v7 = vpop.xlane.xlu1 %5726 }
 0xd81   : > { %v13465_v60 = vsub.f32 %v13371_v62, %v5757_v40  ;;  %v5758_v42 = vmul.f32 0.0078125, %v5727_v7 }
 0xd83   : > { %v13468_v26 = vsub.f32 %v13374_v58, %v5758_v42  ;;  %v5799_v15 = vmul.f32 %v13465_v60, %v13465_v60 }
 0xd85   : > { %5830 = vadd.xlane.f32.xlu1 %v5799_v15  ;;  %v5800_v41 = vmul.f32 %v13468_v26, %v13468_v26 }
 0xd86   : > { %v5729_v34 = vpop.xlane.xlu0 %5728 }
 0xd87   : > { %v5759_v48 = vmul.f32 0.0078125, %v5729_v34  ;;  %5832 = vadd.xlane.f32.xlu0 %v5800_v41  ;;  %v13521_v34 = vld [vmem:[#allocation2 + $0x1f0] ss:$0 sm:$0xff] }
 0xd88   : > { %v5731_v12 = vpop.xlane.xlu1 %5730 }
 0xd89   : > { %v13475_v63 = vsub.f32 %v13379_v35, %v5759_v48  ;;  %v5760_v62 = vmul.f32 0.0078125, %v5731_v12 }
 0xd8b   : > { %v13478_v17 = vsub.f32 %v13382_v2, %v5760_v62  ;;  %v5801_v58 = vmul.f32 %v13475_v63, %v13475_v63 }
 0xd8d   : > { %5834 = vadd.xlane.f32.xlu1 %v5801_v58  ;;  %v5802_v30 = vmul.f32 %v13478_v17, %v13478_v17 }
 0xd8e   : > { %v5733_v8 = vpop.xlane.xlu0 %5732 }
 0xd8f   : > { %v5761_v10 = vmul.f32 0.0078125, %v5733_v8  ;;  %5836 = vadd.xlane.f32.xlu0 %v5802_v30 }
 0xd90   : > { %v5735_v0 = vpop.xlane.xlu1 %5734 }
 0xd91   : > { %v13485_v31 = vsub.f32 %v13387_v44, %v5761_v10  ;;  %v5762_v35 = vmul.f32 0.0078125, %v5735_v0  ;;  %v13525_v10 = vld [vmem:[#allocation2 + $0x1f8] ss:$0 sm:$0xff] }
 0xd93   : > { %v13488_v49 = vsub.f32 %v13390_v38, %v5762_v35  ;;  %v5803_v2 = vmul.f32 %v13485_v31, %v13485_v31 }
 0xd95   : > { %5838 = vadd.xlane.f32.xlu1 %v5803_v2  ;;  %v5804_v47 = vmul.f32 %v13488_v49, %v13488_v49 }
 0xd96   : > { %v5737_v28 = vpop.xlane.xlu0 %5736 }
 0xd97   : > { %v5763_v25 = vmul.f32 0.0078125, %v5737_v28  ;;  %5840 = vadd.xlane.f32.xlu0 %v5804_v47 }
 0xd98   : > { %v5739_v37 = vpop.xlane.xlu1 %5738 }
 0xd99   : > { %v13495_v56 = vsub.f32 %v13395_v46, %v5763_v25  ;;  %v5764_v44 = vmul.f32 0.0078125, %v5739_v37 }
 0xd9b   : > { %v13498_v13 = vsub.f32 %v13398_v55, %v5764_v44  ;;  %v5805_v38 = vmul.f32 %v13495_v56, %v13495_v56 }
 0xd9d   : > { %5842 = vadd.xlane.f32.xlu1 %v5805_v38  ;;  %v5806_v61 = vmul.f32 %v13498_v13, %v13498_v13 }
 0xd9e   : > { %v5741_v39 = vpop.xlane.xlu0 %5740 }
 0xd9f   : > { %v5765_v11 = vmul.f32 0.0078125, %v5741_v39  ;;  %5844 = vadd.xlane.f32.xlu0 %v5806_v61 }
 0xda0   : > { %v5743_v46 = vpop.xlane.xlu1 %5742 }
 0xda1   : > { %v13507_v4 = vsub.f32 %v13403_v50, %v5765_v11  ;;  %v5766_v55 = vmul.f32 0.0078125, %v5743_v46 }
 0xda3   : > { %v13510_v6 = vsub.f32 %v13406_v33, %v5766_v55  ;;  %v5807_v16 = vmul.f32 %v13507_v4, %v13507_v4 }
 0xda5   : > { %5846 = vadd.xlane.f32.xlu1 %v5807_v16  ;;  %v5808_v24 = vmul.f32 %v13510_v6, %v13510_v6 }
 0xda7   : > { %5848 = vadd.xlane.f32.xlu0 %v5808_v24 }
 0xdea   : > { %v5811_v18 = vpop.xlane.xlu1 %5810 }
 0xdeb   : > { %v5852_v5 = vmul.f32 0.0078125, %v5811_v18 }
 0xded   : > { %v5873_v53 = vadd.f32 1e-05, %v5852_v5  ;;  %v5745_v21 = vpop.xlane.xlu0 %5744 }
 0xdee   : > { %v5767_v22 = vmul.f32 0.0078125, %v5745_v21 }
 0xdef   : > { %8056 = vrsqrt.f32 %v5873_v53  ;;  %v14897_v53 = vld [vmem:[#allocation12_spill] sm:$0xff] }
 0xdf0   : > { %v13517_v50 = vsub.f32 %v13419_v45, %v5767_v22 }
 0xdf1   : > { %v5813_v32 = vpop.xlane.xlu0 %5812 }
 0xdf2   : > { %v5853_v33 = vmul.f32 0.0078125, %v5813_v32  ;;  %v5815_v59 = vpop.xlane.xlu1 %5814  ;;  %v5809_v29 = vmul.f32 %v13517_v50, %v13517_v50  ;;  %v14898_v32 = vld [vmem:[#allocation13_spill] sm:$0xff] }
 0xdf3   : > { %v5854_v1 = vmul.f32 0.0078125, %v5815_v59 }
 0xdf4   : > { %v5874_v52 = vadd.f32 1e-05, %v5853_v33  ;;  %5850 = vadd.xlane.f32.xlu1 %v5809_v29 }
 0xdf5   : > { %v5875_v40 = vadd.f32 1e-05, %v5854_v1  ;;  %v5817_v7 = vpop.xlane.xlu0 %5816 }
 0xdf6   : > { %8058 = vrsqrt.f32 %v5874_v52  ;;  %v5855_v42 = vmul.f32 0.0078125, %v5817_v7 }
 0xdf7   : > { %8060 = vrsqrt.f32 %v5875_v40 }
 0xdf8   : > { %v5876_v15 = vadd.f32 1e-05, %v5855_v42 }
 0xdf9   : > { %v8057_v41 = vpop.eup %8056 }
 0xdfa   : > { %v5915_v45 = vmul.f32 %v8057_v41, %v13411_v19  ;;  %8062 = vrsqrt.f32 %v5876_v15  ;;  %v5819_v48 = vpop.xlane.xlu1 %5818 }
 0xdfb   : > { %v5856_v12 = vmul.f32 0.0078125, %v5819_v48 }
 0xdfc   : > { %v5821_v62 = vpop.xlane.xlu0 %5820  ;;  %v5940_v58 = vmul.f32 %v13521_v34, %v5915_v45 }
 0xdfd   : > { %v5877_v30 = vadd.f32 1e-05, %v5856_v12  ;;  %v5857_v8 = vmul.f32 0.0078125, %v5821_v62  ;;  %v14899_v62 = vld [vmem:[#allocation15_spill] sm:$0xff] }
 0xdfe   : > { %v5965_v2 = vadd.f32 %v13525_v10, %v5940_v58 }
 0xdff   : > { %8064 = vrsqrt.f32 %v5877_v30  ;;  %v5878_v0 = vadd.f32 1e-05, %v5857_v8  ;;  %v14900_v30 = vld [vmem:[#allocation16_spill] sm:$0xff] }
 0xe00   : > { %v8059_v35 = vpop.eup %8058  ;;  %v5986_v39 = vmax.f32 %v5965_v2, 0.0 }
 0xe01   : > { %v8061_v47 = vpop.eup %8060  ;;  %v5916_v28 = vmul.f32 %v8059_v35, %v13416_v43  ;;  %8066 = vrsqrt.f32 %v5878_v0 }
 0xe02   : > { %v5917_v19 = vmul.f32 %v8061_v47, %v13423_v54  ;;  %v5823_v25 = vpop.xlane.xlu1 %5822  ;;  %v6013_v21 = vmul.f32 %v14897_v53, %v5986_v39 }
 0xe03   : > { %v5858_v37 = vmul.f32 0.0078125, %v5823_v25  ;;  %v5941_v44 = vmul.f32 %v13521_v34, %v5916_v28 }
 0xe04   : > { %v8063_v38 = vpop.eup %8062  ;;  %v5825_v61 = vpop.xlane.xlu0 %5824  ;;  %v5942_v11 = vmul.f32 %v13521_v34, %v5917_v19 }
 0xe05   : > { %v5918_v46 = vmul.f32 %v8063_v38, %v13428_v51  ;;  %v5879_v55 = vadd.f32 1e-05, %v5858_v37  ;;  %v5859_v16 = vmul.f32 0.0078125, %v5825_v61  ;;  %v5966_v24 = vadd.f32 %v13525_v10, %v5941_v44 }
 0xe06   : > { %v5967_v43 = vadd.f32 %v13525_v10, %v5942_v11  ;;  %v14901_v11 = vld [vmem:[#allocation20_spill] sm:$0xff] }
 0xe07   : > { %8068 = vrsqrt.f32 %v5879_v55  ;;  %v5880_v18 = vadd.f32 1e-05, %v5859_v16  ;;  %v5987_v54 = vmax.f32 %v5966_v24, 0.0  ;;  %v5943_v5 = vmul.f32 %v13521_v34, %v5918_v46  ;;  %v14902_v55 = vld [vmem:[#allocation21_spill] sm:$0xff] }
 0xe08   : > { %v5988_v51 = vmax.f32 %v5967_v43, 0.0 }
 0xe09   : > { %v8065_v22 = vpop.eup %8064  ;;  %8070 = vrsqrt.f32 %v5880_v18  ;;  %v6014_v33 = vmul.f32 %v14898_v32, %v5987_v54  ;;  %v5968_v59 = vadd.f32 %v13525_v10, %v5943_v5 }
 0xe0a   : > { %v5919_v29 = vmul.f32 %v8065_v22, %v13435_v23  ;;  %v5827_v1 = vpop.xlane.xlu1 %5826  ;;  %v6015_v58 = vmul.f32 %v14899_v62, %v5988_v51 }
 0xe0b   : > { %v8067_v52 = vpop.eup %8066  ;;  %v5860_v40 = vmul.f32 0.0078125, %v5827_v1  ;;  %v7385_v7 = vpack.c.bf16 %v6014_v33, %v6013_v21  ;;  %v5989_v42 = vmax.f32 %v5968_v59, 0.0  ;;  %v13562_v1 = vld [vmem:[%s13782_s3 + $0x8] sm:$0xff] }
 0xe0c   : > { %v5920_v15 = vmul.f32 %v8067_v52, %v13438_v57  ;;  %v5829_v41 = vpop.xlane.xlu0 %5828  ;;  %v5944_v45 = vmul.f32 %v13521_v34, %v5919_v29  ;;  %6912 = vmatprep.mubr.msk.f32.mxu1 %vm2350_vm12, %v13562_v1 }
 0xe0d   : > { %v5881_v48 = vadd.f32 1e-05, %v5860_v40  ;;  %v5861_v12 = vmul.f32 0.0078125, %v5829_v41  ;;  %7386 = vmatpush1.bf16.msra.mxu1 %v7385_v7  ;;  %v6016_v8 = vmul.f32 %v14900_v30, %v5989_v42  ;;  %v14903_v7 = vld [vmem:[#allocation25_spill] sm:$0xff] }
 0xe0e   : > { %7387 = vmatprep.subr.bf16.mxu1 %v8221_v20  ;;  %v5945_v23 = vmul.f32 %v13521_v34, %v5920_v15  ;;  %v5969_v0 = vadd.f32 %v13525_v10, %v5944_v45  ;;  %v14904_v15 = vld [vmem:[#allocation26_spill] sm:$0xff] }
 0xe0f   : > { %8072 = vrsqrt.f32 %v5881_v48  ;;  %v5882_v35 = vadd.f32 1e-05, %v5861_v12  ;;  %v7388_v2 = vpack.c.bf16 %v6016_v8, %v6015_v58 }
 0xe10   : > { %v5970_v57 = vadd.f32 %v13525_v10, %v5945_v23  ;;  %v5990_v47 = vmax.f32 %v5969_v0, 0.0 }
 0xe11   : > { %v8069_v28 = vpop.eup %8068  ;;  %8074 = vrsqrt.f32 %v5882_v35  ;;  %7389 = vmatpush1.bf16.msra.mxu1 %v7388_v2 }
 0xe12   : > { %v5921_v19 = vmul.f32 %v8069_v28, %v13445_v27  ;;  %v5831_v25 = vpop.xlane.xlu1 %5830  ;;  %7390 = vmatprep.subr.bf16.mxu1 %v8221_v20  ;;  %v5991_v37 = vmax.f32 %v5970_v57, 0.0  ;;  %v6017_v46 = vmul.f32 %v14901_v11, %v5990_v47 }
 0xe13   : > { %v8071_v44 = vpop.eup %8070  ;;  %v5862_v38 = vmul.f32 0.0078125, %v5831_v25  ;;  %v14905_v25 = vld [vmem:[#allocation30_spill] sm:$0xff] }
 0xe14   : > { %v5922_v61 = vmul.f32 %v8071_v44, %v13448_v9  ;;  %v5833_v39 = vpop.xlane.xlu0 %5832  ;;  %v6018_v16 = vmul.f32 %v14902_v55, %v5991_v37  ;;  %v5946_v24 = vmul.f32 %v13521_v34, %v5921_v19  ;;  %v14906_v44 = vld [vmem:[#allocation31_spill] sm:$0xff] }
 0xe15   : > { %v5883_v43 = vadd.f32 1e-05, %v5862_v38  ;;  %v5863_v18 = vmul.f32 0.0078125, %v5833_v39 }
 0xe16   : > { %v7391_v54 = vpack.c.bf16 %v6018_v16, %v6017_v46  ;;  %v5947_v27 = vmul.f32 %v13521_v34, %v5922_v61  ;;  %v5971_v5 = vadd.f32 %v13525_v10, %v5946_v24 }
 0xe17   : > { %8076 = vrsqrt.f32 %v5883_v43  ;;  %v5884_v53 = vadd.f32 1e-05, %v5863_v18 }
 0xe18   : > { %7392 = vmatpush1.bf16.msra.mxu1 %v7391_v54  ;;  %v5972_v21 = vadd.f32 %v13525_v10, %v5947_v27  ;;  %v5992_v9 = vmax.f32 %v5971_v5, 0.0 }
 0xe19   : > { %v8073_v22 = vpop.eup %8072  ;;  %8078 = vrsqrt.f32 %v5884_v53  ;;  %7393 = vmatprep.subr.bf16.mxu1 %v8221_v20 }
 0xe1a   : > { %v5923_v32 = vmul.f32 %v8073_v22, %v13455_v3  ;;  %v5835_v33 = vpop.xlane.xlu1 %5834  ;;  %v5993_v59 = vmax.f32 %v5972_v21, 0.0  ;;  %v6019_v42 = vmul.f32 %v14903_v7, %v5992_v9  ;;  %v14907_v22 = vld [vmem:[#allocation35_spill] sm:$0xff] }
 0xe1b   : > { %v8075_v51 = vpop.eup %8074  ;;  %v5864_v29 = vmul.f32 0.0078125, %v5835_v33  ;;  %v14908_v33 = vld [vmem:[#allocation36_spill] sm:$0xff] }
 0xe1c   : > { %v5924_v52 = vmul.f32 %v8075_v51, %v13458_v36  ;;  %v5837_v40 = vpop.xlane.xlu0 %5836  ;;  %v6020_v41 = vmul.f32 %v14904_v15, %v5993_v59  ;;  %v5948_v45 = vmul.f32 %v13521_v34, %v5923_v32 }
 0xe1d   : > { %v5885_v3 = vadd.f32 1e-05, %v5864_v29  ;;  %v5865_v48 = vmul.f32 0.0078125, %v5837_v40 }
 0xe1e   : > { %v7394_v12 = vpack.c.bf16 %v6020_v41, %v6019_v42  ;;  %v5949_v62 = vmul.f32 %v13521_v34, %v5924_v52  ;;  %v5973_v58 = vadd.f32 %v13525_v10, %v5948_v45 }
 0xe1f   : > { %8080 = vrsqrt.f32 %v5885_v3  ;;  %v5886_v30 = vadd.f32 1e-05, %v5865_v48 }
 0xe20   : > { %7395 = vmatpush1.bf16.msra.mxu1 %v7394_v12  ;;  %v5974_v36 = vadd.f32 %v13525_v10, %v5949_v62  ;;  %v5994_v8 = vmax.f32 %v5973_v58, 0.0 }
 0xe21   : > { %v8077_v23 = vpop.eup %8076  ;;  %8082 = vrsqrt.f32 %v5886_v30  ;;  %7396 = vmatprep.subr.bf16.mxu1 %v8221_v20 }
 0xe22   : > { %v5925_v0 = vmul.f32 %v8077_v23, %v13465_v60  ;;  %v5839_v35 = vpop.xlane.xlu1 %5838  ;;  %v5995_v2 = vmax.f32 %v5974_v36, 0.0  ;;  %v6021_v37 = vmul.f32 %v14905_v25, %v5994_v8  ;;  %v14909_v36 = vld [vmem:[#allocation40_spill] sm:$0xff]  ;;  %v14910_v23 = vld [vmem:[#allocation41_spill] sm:$0xff] }
 0xe23   : > { %v8079_v57 = vpop.eup %8078  ;;  %v5866_v47 = vmul.f32 0.0078125, %v5839_v35 }
 0xe24   : > { %v5926_v28 = vmul.f32 %v8079_v57, %v13468_v26  ;;  %v5841_v19 = vpop.xlane.xlu0 %5840  ;;  %v6022_v38 = vmul.f32 %v14906_v44, %v5995_v2  ;;  %v5950_v61 = vmul.f32 %v13521_v34, %v5925_v0 }
 0xe25   : > { %v5887_v39 = vadd.f32 1e-05, %v5866_v47  ;;  %v5867_v11 = vmul.f32 0.0078125, %v5841_v19 }
 0xe26   : > { %v7397_v46 = vpack.c.bf16 %v6022_v38, %v6021_v37  ;;  %v5951_v55 = vmul.f32 %v13521_v34, %v5926_v28  ;;  %v5975_v60 = vadd.f32 %v13525_v10, %v5950_v61 }
 0xe27   : > { %8084 = vrsqrt.f32 %v5887_v39  ;;  %v5888_v16 = vadd.f32 1e-05, %v5867_v11  ;;  %v14911_v11 = vld [vmem:[#allocation45_spill] sm:$0xff] }
 0xe28   : > { %7398 = vmatpush1.bf16.msra.mxu1 %v7397_v46  ;;  %v5976_v24 = vadd.f32 %v13525_v10, %v5951_v55  ;;  %v5996_v26 = vmax.f32 %v5975_v60, 0.0  ;;  %v14912_v55 = vld [vmem:[#allocation46_spill] sm:$0xff] }
 0xe29   : > { %v8081_v43 = vpop.eup %8080  ;;  %8086 = vrsqrt.f32 %v5888_v16  ;;  %7399 = vmatprep.subr.bf16.mxu1 %v8221_v20 }
 0xe2a   : > { %v5927_v18 = vmul.f32 %v8081_v43, %v13475_v63  ;;  %v5843_v54 = vpop.xlane.xlu1 %5842  ;;  %v5997_v27 = vmax.f32 %v5976_v24, 0.0  ;;  %v6023_v32 = vmul.f32 %v14907_v22, %v5996_v26  ;;  %v14914_v22 = vld [vmem:[#allocation51_spill] sm:$0xff] }
 0xe2b   : > { %v8083_v5 = vpop.eup %8082  ;;  %v5868_v53 = vmul.f32 0.0078125, %v5843_v54 }
 0xe2c   : > { %v5928_v21 = vmul.f32 %v8083_v5, %v13478_v17  ;;  %v5845_v9 = vpop.xlane.xlu0 %5844  ;;  %v6024_v59 = vmul.f32 %v14908_v33, %v5997_v27  ;;  %v5952_v51 = vmul.f32 %v13521_v34, %v5927_v18 }
 0xe2d   : > { %v5889_v29 = vadd.f32 1e-05, %v5868_v53  ;;  %v5869_v52 = vmul.f32 0.0078125, %v5845_v9 }
 0xe2e   : > { %v7400_v40 = vpack.c.bf16 %v6024_v59, %v6023_v32  ;;  %v5953_v7 = vmul.f32 %v13521_v34, %v5928_v21  ;;  %v5977_v63 = vadd.f32 %v13525_v10, %v5952_v51  ;;  %v14913_v21 = vld [vmem:[#allocation50_spill] sm:$0xff] }
 0xe2f   : > { %8088 = vrsqrt.f32 %v5889_v29  ;;  %v5890_v42 = vadd.f32 1e-05, %v5869_v52 }
 0xe30   : > { %7401 = vmatpush1.bf16.msra.mxu1 %v7400_v40  ;;  %v5978_v15 = vadd.f32 %v13525_v10, %v5953_v7  ;;  %v5998_v17 = vmax.f32 %v5977_v63, 0.0  ;;  %v14915_v7 = vld [vmem:[#allocation58_spill] sm:$0xff]  ;;  %v14916_v63 = vld [vmem:[#allocation61_spill] sm:$0xff] }
 0xe31   : > { %v8085_v41 = vpop.eup %8084  ;;  %8090 = vrsqrt.f32 %v5890_v42  ;;  %7402 = vmatprep.subr.bf16.mxu1 %v8221_v20 }
 0xe32   : > { %v5929_v45 = vmul.f32 %v8085_v41, %v13485_v31  ;;  %v5847_v3 = vpop.xlane.xlu1 %5846  ;;  %v5999_v48 = vmax.f32 %v5978_v15, 0.0  ;;  %v6025_v8 = vmul.f32 %v14909_v36, %v5998_v17 }
 0xe33   : > { %v8087_v12 = vpop.eup %8086  ;;  %v5870_v62 = vmul.f32 0.0078125, %v5847_v3 }
 0xe34   : > { %v5930_v58 = vmul.f32 %v8087_v12, %v13488_v49  ;;  %v5849_v30 = vpop.xlane.xlu0 %5848  ;;  %v6026_v0 = vmul.f32 %v14910_v23, %v5999_v48  ;;  %v5954_v35 = vmul.f32 %v13521_v34, %v5929_v45  ;;  %v6010_v23 = vld [vmem:[%s13782_s3 + $0x18] sm:$0xff] }
 0xe35   : > { %v5891_v2 = vadd.f32 1e-05, %v5870_v62  ;;  %v5871_v57 = vmul.f32 0.0078125, %v5849_v30  ;;  %v14917_v30 = vld [vmem:[#allocation62_spill] sm:$0xff] }
 0xe36   : > { %v7403_v47 = vpack.c.bf16 %v6026_v0, %v6025_v8  ;;  %v5955_v28 = vmul.f32 %v13521_v34, %v5930_v58  ;;  %v5979_v31 = vadd.f32 %v13525_v10, %v5954_v35  ;;  %v6007_v8 = vld [vmem:[%s13782_s3] sm:$0xff] }
 0xe37   : > { %8092 = vrsqrt.f32 %v5891_v2  ;;  %v5892_v19 = vadd.f32 1e-05, %v5871_v57  ;;  %v6011_v2 = vld [vmem:[%s13782_s3 + $0x20] sm:$0xff] }
 0xe38   : > { %7404 = vmatpush1.bf16.msra.mxu1 %v7403_v47  ;;  %v5980_v25 = vadd.f32 %v13525_v10, %v5955_v28  ;;  %v6000_v49 = vmax.f32 %v5979_v31, 0.0 }
 0xe39   : > { %v8089_v37 = vpop.eup %8088  ;;  %8094 = vrsqrt.f32 %v5892_v19  ;;  %7405 = vmatprep.subr.bf16.mxu1 %v8221_v20 }
 0xe3a   : > { %v5931_v44 = vmul.f32 %v8089_v37, %v13495_v56  ;;  %v6001_v38 = vmax.f32 %v5980_v25, 0.0  ;;  %v6027_v46 = vmul.f32 %v14911_v11, %v6000_v49  ;;  %v6226_v11 = vld [vmem:[#allocation2 + $0xc8] sm:$0xff] }
 0xe3b   : > { %v8091_v61 = vpop.eup %8090 }
 0xe3c   : > { %v5932_v39 = vmul.f32 %v8091_v61, %v13498_v13  ;;  %v6028_v60 = vmul.f32 %v14912_v55, %v6001_v38  ;;  %v5956_v16 = vmul.f32 %v13521_v34, %v5931_v44  ;;  %v8223_v44 = vmov 1.0   ;;  %v6224_v61 = vld [vmem:[#allocation2 + $0xb8] sm:$0xff]  ;;  %v6227_v55 = vld [vmem:[#allocation2 + $0xd0] sm:$0xff] }
 0xe3d   : > { %v6383_v38 = vld [vmem:[#allocation2 + $0x138] sm:$0xff] }
 0xe3e   : > { %v7406_v24 = vpack.c.bf16 %v6028_v60, %v6027_v46  ;;  %v5957_v26 = vmul.f32 %v13521_v34, %v5932_v39  ;;  %v5981_v43 = vadd.f32 %v13525_v10, %v5956_v16  ;;  %v6225_v39 = vld [vmem:[#allocation2 + $0xc0] sm:$0xff]  ;;  %v7448_v60 = vpack.c.bf16 %v6227_v55, %v6226_v11  ;;  %v6228_v16 = vld [vmem:[#allocation2 + $0xd8] sm:$0xff] }
 0xe3f   : > { %v7445_v46 = vpack.c.bf16 %v6225_v39, %v6224_v61  ;;  %v6384_v61 = vld [vmem:[#allocation2 + $0x140] sm:$0xff]  ;;  %v6385_v39 = vld [vmem:[#allocation2 + $0x148] sm:$0xff] }
 0xe40   : > { %7407 = vmatpush1.bf16.msra.mxu1 %v7406_v24  ;;  %v5982_v18 = vadd.f32 %v13525_v10, %v5957_v26  ;;  %v6002_v54 = vmax.f32 %v5981_v43, 0.0  ;;  %v6229_v24 = vld [vmem:[#allocation2 + $0xe0] sm:$0xff]  ;;  %v6230_v43 = vld [vmem:[#allocation2 + $0xe8] sm:$0xff]  ;;  %v7469_v11 = vpack.c.bf16 %v6384_v61, %v6383_v38 }
 0xe41   : > { %v8093_v56 = vpop.eup %8092  ;;  %7408 = vmatprep.subr.bf16.mxu1 %v8221_v20  ;;  %v7451_v26 = vpack.c.bf16 %v6229_v24, %v6228_v16  ;;  %v6388_v16 = vld [vmem:[#allocation2 + $0x160] sm:$0xff] }
 0xe42   : > { %v5933_v13 = vmul.f32 %v8093_v56, %v13507_v4  ;;  %v6003_v27 = vmax.f32 %v5982_v18, 0.0  ;;  %v6029_v9 = vmul.f32 %v14913_v21, %v6002_v54  ;;  %v6231_v18 = vld [vmem:[#allocation2 + $0xf0] sm:$0xff]  ;;  %v6232_v56 = vld [vmem:[#allocation2 + $0xf8] sm:$0xff]  ;;  %7470 = vmatpush3.bf16.msra.mxu0 %v7469_v11 }
 0xe43   : > { %v8095_v5 = vpop.eup %8094  ;;  %v7454_v54 = vpack.c.bf16 %v6231_v18, %v6230_v43  ;;  %7471 = vmatprep.subr.bf16.mxu0 %v8221_v20 }
 0xe44   : > { %v5934_v53 = vmul.f32 %v8095_v5, %v13510_v6  ;;  %v6030_v32 = vmul.f32 %v14914_v22, %v6003_v27  ;;  %v5958_v33 = vmul.f32 %v13521_v34, %v5933_v13  ;;  %v6233_v13 = vld [vmem:[#allocation2 + $0x100] sm:$0xff] }
 0xe45   : > { %v7457_v27 = vpack.c.bf16 %v6233_v13, %v6232_v56 }
 0xe46   : > { %v7409_v59 = vpack.c.bf16 %v6030_v32, %v6029_v9  ;;  %v5959_v51 = vmul.f32 %v13521_v34, %v5934_v53  ;;  %v5983_v29 = vadd.f32 %v13525_v10, %v5958_v33 }
 0xe48   : > { %7410 = vmatpush1.bf16.msra.mxu1 %v7409_v59  ;;  %v5984_v52 = vadd.f32 %v13525_v10, %v5959_v51  ;;  %v6004_v40 = vmax.f32 %v5983_v29, 0.0 }
 0xe49   : > { %7411 = vmatprep.subr.bf16.mxu1 %v8221_v20 }
 0xe4a   : > { %v6005_v4 = vmax.f32 %v5984_v52, 0.0  ;;  %v6031_v6 = vmul.f32 %v14915_v7, %v6004_v40 }
 0xe4c   : > { %v6032_v42 = vmul.f32 %v14916_v63, %v6005_v4  ;;  %v6234_v63 = vld [vmem:[#allocation2 + $0x108] sm:$0xff] }
 0xe4e   : > { %v7412_v15 = vpack.c.bf16 %v6032_v42, %v6031_v6  ;;  %v6235_v42 = vld [vmem:[#allocation2 + $0x110] sm:$0xff] }
 0xe50   : > { %7413 = vmatpush1.bf16.msra.mxu1 %v7412_v15  ;;  %v7460_v15 = vpack.c.bf16 %v6235_v42, %v6234_v63 }
 0xe51   : > { %6083 = vmatprep.subr.mxu1 %v14808_v14 }
 0xe81   : > { %v5851_v17 = vpop.xlane.xlu1 %5850 }
 0xe82   : > { %v5872_v41 = vmul.f32 0.0078125, %v5851_v17  ;;  %v6236_v17 = vld [vmem:[#allocation2 + $0x118] sm:$0xff] }
 0xe84   : > { %v5893_v45 = vadd.f32 1e-05, %v5872_v41  ;;  %v6237_v41 = vld [vmem:[#allocation2 + $0x120] sm:$0xff] }
 0xe86   : > { %8096 = vrsqrt.f32 %v5893_v45  ;;  %v7463_v45 = vpack.c.bf16 %v6237_v41, %v6236_v17 }
 0xe90   : > { %v8097_v3 = vpop.eup %8096 }
 0xe91   : > { %v5935_v48 = vmul.f32 %v8097_v3, %v13517_v50  ;;  %v8222_v50 = vmov 1.0|1.0   ;;  %v6238_v3 = vld [vmem:[#allocation2 + $0x128] sm:$0xff] }
 0xe93   : > { %v5960_v12 = vmul.f32 %v13521_v34, %v5935_v48  ;;  %v6009_v34 = vld [vmem:[%s13782_s3 + $0x10] sm:$0xff]  ;;  %v6239_v48 = vld [vmem:[#allocation2 + $0x130] sm:$0xff] }
 0xe95   : > { %v5985_v62 = vadd.f32 %v13525_v10, %v5960_v12  ;;  %v6012_v10 = vld [vmem:[%s13782_s3 + $0x28] sm:$0xff]  ;;  %v7466_v12 = vpack.c.bf16 %v6239_v48, %v6238_v3  ;;  %v6940_v3 = vld [vmem:[#allocation2 + $0x208] ss:$0 sm:$0xff] }
 0xe97   : > { %v6006_v58 = vmax.f32 %v5985_v62, 0.0 }
 0xe99   : > { %v6033_v36 = vmul.f32 %v14917_v30, %v6006_v58 }
 0xe9b   : > { %6084 = vmatpush1.msra.mxu1 %v6033_v36 }
 0xe9c   : > { %7414 = vmatprep.subr.bf16.mxu1 %v8221_v20  ;;  %6108 = vmatmul.mubr.f32.vlgmr.msra.gmra.mrb[0].mxu1 %v6007_v8 }
 0xe9d   : > { %7416 = vmatpush1.bf16.msk.msra.mxu1 %vm8790_vm7, %v8222_v50  ;;  %6913 = vmatprep.mubr.msk.f32.mxu1 %vm2350_vm12, %v6010_v23  ;;  %vm7442_vm7 = vmpackc.low %vm367_vm5, %vm366_vm3 }
 0xe9e   : > { %7417 = vmatprep.subr.bf16.mxu1 %v8221_v20 }
 0xea0   : > { %6113 = vmatmul.mubr.f32.gmra.mrb[2].mxu1 %v6009_v34 }
 0xea1   : > { %7419 = vmatpush1.bf16.msk.msra.mxu1 %vm8818_vm10, %v8222_v50  ;;  %6914 = vmatprep.mubr.msk.f32.mxu1 %vm2350_vm12, %v6012_v10 }
 0xea2   : > { %7420 = vmatprep.subr.bf16.mxu1 %v8221_v20 }
 0xea4   : > { %6118 = vmatmul.mubr.f32.gmra.mrb[4].mxu1 %v6011_v2 }
 0xea5   : > { %7422 = vmatpush1.bf16.msk.msra.mxu1 %vm8853_vm13, %v8222_v50  ;;  %6936 = vmatprep.mubr.msk.f32.mxu1 %vm2350_vm12, %v13562_v1 }
 0xea6   : > { %7423 = vmatprep.subr.bf16.mxu1 %v8221_v20 }
 0xea9   : > { %7425 = vmatpush1.bf16.msk.msra.mxu1 %vm8888_vm2, %v8222_v50 }
 0xeaa   : > { %7426 = vmatprep.subr.bf16.mxu1 %v8221_v20 }
 0xead   : > { %7428 = vmatpush1.bf16.msk.msra.mxu1 %vm8923_vm6, %v8222_v50 }
 0xeae   : > { %7429 = vmatprep.subr.bf16.mxu1 %v8221_v20 }
 0xeb1   : > { %7431 = vmatpush1.bf16.msk.msra.mxu1 %vm8958_vm11, %v8222_v50 }
 0xeb2   : > { %7432 = vmatprep.subr.bf16.mxu1 %v8221_v20 }
 0xeb5   : > { %7434 = vmatpush1.bf16.msk.msra.mxu1 %vm8993_vm15, %v8222_v50 }
 0xeb6   : > { %7435 = vmatprep.subr.bf16.mxu1 %v8221_v20 }
 0xeb9   : > { %7437 = vmatpush1.bf16.msk.msra.mxu1 %vm9028_vm8, %v8222_v50 }
 0xeba   : > { %7438 = vmatprep.subr.bf16.mxu1 %v8221_v20 }
 0xebd   : > { %7440 = vmatpush1.bf16.msk.msra.mxu1 %vm9063_vm14, %v8222_v50 }
 0xebe   : > { %7441 = vmatprep.subr.bf16.mxu1 %v8221_v20 }
 0xec1   : > { %7443 = vmatpush1.bf16.msk.msra.mxu1 %vm7442_vm7, %v8222_v50 }
 0xec2   : > { %6163 = vmatprep.subr.mxu1 %v14808_v14 }
 0xec5   : > { %6935 = vmatpush1.msk.msra.mxu1 %vm368_vm9, %v8223_v44 }
 0xec6   : > { %6188 = vmatmul.mubr.f32.vlgmr.msra.gmra.mrb[6].mxu1 %v6007_v8  ;;  %7444 = vmatprep.subr.bf16.mxu1 %v8221_v20 }
 0xec7   : > { %6937 = vmatprep.mubr.msk.f32.mxu1 %vm2350_vm12, %v6010_v23  ;;  %7446 = vmatpush3.bf16.msra.mxu1 %v7445_v46  ;;  %v6386_v46 = vld [vmem:[#allocation2 + $0x150] sm:$0xff] }
 0xec8   : > { %7447 = vmatprep.subr.bf16.mxu1 %v8221_v20  ;;  %v7472_v55 = vpack.c.bf16 %v6386_v46, %v6385_v39 }
 0xeca   : > { %6193 = vmatmul.mubr.f32.gmra.mrb[8].mxu1 %v6009_v34  ;;  %7473 = vmatpush3.bf16.msra.mxu0 %v7472_v55 }
 0xecb   : > { %6938 = vmatprep.mubr.msk.f32.mxu1 %vm2350_vm12, %v6012_v10  ;;  %7449 = vmatpush3.bf16.msra.mxu1 %v7448_v60  ;;  %v6939_v10 = vld [vmem:[#allocation2 + $0x200] ss:$0 sm:$0xff]  ;;  %v6387_v60 = vld [vmem:[#allocation2 + $0x158] sm:$0xff] }
 0xecc   : > { %7450 = vmatprep.subr.bf16.mxu1 %v8221_v20  ;;  %v7475_v24 = vpack.c.bf16 %v6388_v16, %v6387_v60  ;;  %7474 = vmatprep.subr.bf16.mxu0 %v8221_v20 }
 0xece   : > { %6198 = vmatmul.mubr.f32.gmra.mrb[10].mxu1 %v6011_v2  ;;  %7476 = vmatpush3.bf16.msra.mxu0 %v7475_v24 }
 0xecf   : > { %7333 = vmatprep.mubr.msk.f32.mxu1 %vm8216_vm1, %v14808_v14  ;;  %7452 = vmatpush3.bf16.msra.mxu1 %v7451_v26 }
 0xed0   : > { %7453 = vmatprep.subr.bf16.mxu1 %v8221_v20  ;;  %7477 = vmatprep.subr.bf16.mxu0 %v8221_v20 }
 0xed3   : > { %7455 = vmatpush3.bf16.msra.mxu1 %v7454_v54 }
 0xed4   : > { %7456 = vmatprep.subr.bf16.mxu1 %v8221_v20 }
 0xed7   : > { %7458 = vmatpush3.bf16.msra.mxu1 %v7457_v27 }
 0xed8   : > { %7459 = vmatprep.subr.bf16.mxu1 %v8221_v20 }
 0xedb   : > { %7461 = vmatpush3.bf16.msra.mxu1 %v7460_v15 }
 0xedc   : > { %7462 = vmatprep.subr.bf16.mxu1 %v8221_v20 }
 0xedf   : > { %7464 = vmatpush3.bf16.msra.mxu1 %v7463_v45 }
 0xee0   : > { %7465 = vmatprep.subr.bf16.mxu1 %v8221_v20 }
 0xee3   : > { %7467 = vmatpush3.bf16.msra.mxu1 %v7466_v12  ;;  %v6941_v12 = vld [vmem:[#allocation2 + $0x210] ss:$0 sm:$0xff] }
 0xee4   : > { %7480 = vmatprep.subr.bf16.mxu1 %v8221_v20 }
 0xf6f   : > { %v6109_v5 = vpop.f32.mrb[0].mxu1 }
 0xf70   : > { %v6111_v53 = vpop.f32.mrb[1].mxu1 }
 0xf73   : > { %v6114_v21 = vpop.f32.mrb[2].mxu1 }
 0xf74   : > { %v6116_v9 = vpop.f32.mrb[3].mxu1 }
 0xf77   : > { %v6119_v22 = vpop.f32.mrb[4].mxu1 }
 0xf78   : > { %v6121_v32 = vpop.f32.mrb[5].mxu1 }
 0xf99   : > { %v6189_v33 = vpop.f32.mrb[6].mxu1 }
 0xf9a   : > { %v6190_v59 = vadd.f32 1e-06, %v6189_v33  ;;  %v6191_v51 = vpop.f32.mrb[7].mxu1 }
 0xf9b   : > { %v6389_v51 = vld [vmem:[#allocation2 + $0x168] sm:$0xff] }
 0xf9c   : > { %6205 = vperm.xlu0 %7550, %v6190_v59  }
 0xf9d   : > { %v6194_v29 = vpop.f32.mrb[8].mxu1 }
 0xf9e   : > { %v6195_v52 = vadd.f32 1e-06, %v6194_v29  ;;  %v6196_v40 = vpop.f32.mrb[9].mxu1  ;;  %v6390_v29 = vld [vmem:[#allocation2 + $0x170] sm:$0xff] }
 0xfa0   : > { %6210 = vperm.xlu1 %7551, %v6195_v52   ;;  %v7478_v52 = vpack.c.bf16 %v6390_v29, %v6389_v51 }
 0xfa1   : > { %v6199_v4 = vpop.f32.mrb[10].mxu1 }
 0xfa2   : > { %v6200_v7 = vadd.f32 1e-06, %v6199_v4  ;;  %v6201_v6 = vpop.f32.mrb[11].mxu1  ;;  %7479 = vmatpush3.bf16.msra.mxu0 %v7478_v52 }
 0xfa4   : > { %6215 = vperm.xlu1 %7551, %v6200_v7  }
0x101b   : > { %v6206_v62 = vpop.permute.xlu0 %6205 }
0x101c   : > { %8098 = vrcp.f32 %v6206_v62 }
0x101f   : > { %v6211_v58 = vpop.permute.xlu1 %6210 }
0x1020   : > { %8100 = vrcp.f32 %v6211_v58 }
0x1023   : > { %v6216_v30 = vpop.permute.xlu1 %6215 }
0x1024   : > { %8102 = vrcp.f32 %v6216_v30 }
0x1026   : > { %v8099_v36 = vpop.eup %8098 }
0x1027   : > { %v6219_v8 = vmul.f32 %v8099_v36, %v6109_v5 }
0x1029   : > { %7334 = vmatmul.mubr.f32.vlgmr.msra.gmra.mrb[12].mxu1 %v6219_v8 }
0x102a   : > { %v8101_v23 = vpop.eup %8100  ;;  %7336 = vmatprep.mubr.msk.f32.mxu1 %vm8216_vm1, %v14808_v14 }
0x102b   : > { %v6221_v50 = vmul.f32 %v8101_v23, %v6114_v21 }
0x102d   : > { %7337 = vmatmul.mubr.f32.gmra.mrb[14].mxu1 %v6221_v50 }
0x102e   : > { %v8103_v0 = vpop.eup %8102  ;;  %7339 = vmatprep.mubr.msk.f32.mxu1 %vm8216_vm1, %v14808_v14 }
0x102f   : > { %v6223_v34 = vmul.f32 %v8103_v0, %v6119_v22 }
0x1031   : > { %7340 = vmatmul.mubr.f32.gmra.mrb[16].mxu1 %v6223_v34 }
0x1032   : > { %7375 = vmatprep.mubr.msk.f32.mxu1 %vm8216_vm1, %v14808_v14 }
0x10fc   : > { %v6311_v35 = vpop.f32.mrb[12].mxu1 }
0x10fd   : > { %v6312_v2 = vadd.f32 %v6939_v10, %v6311_v35  ;;  %v7335_v57 = vpop.f32.mrb[13].mxu1 }
0x10ff   : > { %v6327_v47 = vsel %vm5175_vm0, %v6312_v2, 0.0 }
0x1100   : > { %6328 = vadd.xlane.f32.xlu1 %v6327_v47  ;;  %v6316_v28 = vpop.f32.mrb[14].mxu1  ;;  %v6942_v47 = vld [vmem:[#allocation2 + $0x218] ss:$0 sm:$0xff] }
0x1101   : > { %v6317_v31 = vadd.f32 %v6939_v10, %v6316_v28  ;;  %v7338_v19 = vpop.f32.mrb[15].mxu1 }
0x1103   : > { %v6330_v1 = vsel %vm5175_vm0, %v6317_v31, 0.0 }
0x1104   : > { %6331 = vadd.xlane.f32.xlu0 %v6330_v1  ;;  %v6321_v25 = vpop.f32.mrb[16].mxu1 }
0x1105   : > { %v6322_v49 = vadd.f32 %v6939_v10, %v6321_v25  ;;  %v7341_v37 = vpop.f32.mrb[17].mxu1 }
0x1107   : > { %v6333_v44 = vsel %vm5175_vm0, %v6322_v49, 0.0 }
0x1108   : > { %6334 = vadd.xlane.f32.xlu1 %v6333_v44 }
0x118d   : > { %v6329_v26 = vpop.xlane.xlu1 %6328 }
0x118e   : > { %v6336_v43 = vmul.f32 0.015625, %v6329_v26 }
0x1190   : > { %v6339_v18 = vsub.f32 %v6312_v2, %v6336_v43 }
0x1191   : > { %v6332_v54 = vpop.xlane.xlu0 %6331 }
0x1192   : > { %v6337_v56 = vmul.f32 0.015625, %v6332_v54  ;;  %v6342_v13 = vmul.f32 %v6339_v18, %v6339_v18 }
0x1194   : > { %v6340_v27 = vsub.f32 %v6317_v31, %v6337_v56  ;;  %v6345_v5 = vsel %vm5175_vm0, %v6342_v13, 0.0 }
0x1195   : > { %6346 = vadd.xlane.f32.xlu1 %v6345_v5  ;;  %v6335_v53 = vpop.xlane.xlu1 %6334 }
0x1196   : > { %v6338_v21 = vmul.f32 0.015625, %v6335_v53  ;;  %v6343_v9 = vmul.f32 %v6340_v27, %v6340_v27 }
0x1198   : > { %v6341_v22 = vsub.f32 %v6322_v49, %v6338_v21  ;;  %v6348_v32 = vsel %vm5175_vm0, %v6343_v9, 0.0  ;;  %v6543_v9 = vld [vmem:[#allocation2 + $0x178] sm:$0xff] }
0x1199   : > { %6349 = vadd.xlane.f32.xlu1 %v6348_v32  ;;  %v6545_v32 = vld [vmem:[#allocation2 + $0x188] sm:$0xff] }
0x119a   : > { %v6344_v33 = vmul.f32 %v6341_v22, %v6341_v22 }
0x119c   : > { %v6351_v59 = vsel %vm5175_vm0, %v6344_v33, 0.0 }
0x119d   : > { %6352 = vadd.xlane.f32.xlu1 %v6351_v59  ;;  %v6546_v59 = vld [vmem:[#allocation2 + $0x190] sm:$0xff] }
0x119e   : > { %v7484_v51 = vpack.c.bf16 %v6546_v59, %v6545_v32 }
0x1222   : > { %v6347_v40 = vpop.xlane.xlu1 %6346 }
0x1223   : > { %v6354_v4 = vmul.f32 0.015625, %v6347_v40 }
0x1225   : > { %v6357_v7 = vadd.f32 1e-05, %v6354_v4 }
0x1226   : > { %v6350_v6 = vpop.xlane.xlu1 %6349 }
0x1227   : > { %8104 = vrsqrt.f32 %v6357_v7  ;;  %v6355_v63 = vmul.f32 0.015625, %v6350_v6 }
0x1229   : > { %v6358_v42 = vadd.f32 1e-05, %v6355_v63 }
0x122a   : > { %v6353_v15 = vpop.xlane.xlu1 %6352 }
0x122b   : > { %8106 = vrsqrt.f32 %v6358_v42  ;;  %v6356_v17 = vmul.f32 0.015625, %v6353_v15 }
0x122d   : > { %v6359_v41 = vadd.f32 1e-05, %v6356_v17 }
0x122f   : > { %8108 = vrsqrt.f32 %v6359_v41  ;;  %v6946_v41 = vld [vmem:[#allocation2 + $0x220] ss:$0 sm:$0xff] }
0x1231   : > { %v8105_v45 = vpop.eup %8104 }
0x1232   : > { %v6363_v48 = vmul.f32 %v8105_v45, %v6339_v18 }
0x1234   : > { %v6370_v62 = vmul.f32 %v6940_v3, %v6363_v48 }
0x1235   : > { %v8107_v58 = vpop.eup %8106 }
0x1236   : > { %v6377_v30 = vadd.f32 %v6941_v12, %v6370_v62  ;;  %v6364_v36 = vmul.f32 %v8107_v58, %v6340_v27 }
0x1238   : > { %v6380_v8 = vmax.f32 %v6377_v30, 0.0  ;;  %v6371_v23 = vmul.f32 %v6940_v3, %v6364_v36 }
0x1239   : > { %v8109_v50 = vpop.eup %8108 }
0x123a   : > { %v6378_v0 = vadd.f32 %v6941_v12, %v6371_v23  ;;  %v6365_v34 = vmul.f32 %v8109_v50, %v6341_v22  ;;  %7359 = vmatmul.mubr.msk.f32.vlgmr.msra.gmra.mrb[44].mxu0 %vm5175_vm0, %v6380_v8  ;;  %v6544_v22 = vld [vmem:[#allocation2 + $0x180] sm:$0xff] }
0x123b   : > { %7361 = vmatprep.mubr.msk.f32.mxu0 %vm8216_vm1, %v14808_v14  ;;  %v7481_v33 = vpack.c.bf16 %v6544_v22, %v6543_v9 }
0x123c   : > { %v6381_v10 = vmax.f32 %v6378_v0, 0.0  ;;  %v6372_v35 = vmul.f32 %v6940_v3, %v6365_v34  ;;  %v6947_v3 = vld [vmem:[#allocation2 + $0x228] ss:$0 sm:$0xff] }
0x123d   : > { %7482 = vmatpush3.bf16.msra.mxu1 %v7481_v33 }
0x123e   : > { %v6379_v2 = vadd.f32 %v6941_v12, %v6372_v35  ;;  %7362 = vmatmul.mubr.msk.f32.gmra.mrb[46].mxu0 %vm5175_vm0, %v6381_v10  ;;  %7483 = vmatprep.subr.bf16.mxu1 %v8221_v20  ;;  %v6948_v35 = vld [vmem:[#allocation2 + $0x230] ss:$0 sm:$0xff] }
0x123f   : > { %7364 = vmatprep.mubr.msk.f32.mxu0 %vm8216_vm1, %v14808_v14 }
0x1240   : > { %v6382_v57 = vmax.f32 %v6379_v2, 0.0 }
0x1241   : > { %7485 = vmatpush3.bf16.msra.mxu1 %v7484_v51 }
0x1242   : > { %7365 = vmatmul.mubr.msk.f32.gmra.mrb[48].mxu0 %vm5175_vm0, %v6382_v57 }
0x130d   : > { %v6471_v28 = vpop.f32.mrb[44].mxu0 }
0x130e   : > { %v6472_v31 = vadd.f32 %v6942_v47, %v6471_v28  ;;  %v7360_v19 = vpop.f32.mrb[45].mxu0 }
0x1310   : > { %v6487_v1 = vsel %vm685_vm4, %v6472_v31, 0.0 }
0x1311   : > { %6488 = vadd.xlane.f32.xlu1 %v6487_v1  ;;  %v6476_v25 = vpop.f32.mrb[46].mxu0 }
0x1312   : > { %v6477_v49 = vadd.f32 %v6942_v47, %v6476_v25  ;;  %v7363_v37 = vpop.f32.mrb[47].mxu0 }
0x1314   : > { %v6490_v44 = vsel %vm685_vm4, %v6477_v49, 0.0 }
0x1315   : > { %6491 = vadd.xlane.f32.xlu0 %v6490_v44  ;;  %v6481_v38 = vpop.f32.mrb[48].mxu0 }
0x1316   : > { %v6482_v61 = vadd.f32 %v6942_v47, %v6481_v38  ;;  %v7366_v39 = vpop.f32.mrb[49].mxu0 }
0x1318   : > { %v6493_v11 = vsel %vm685_vm4, %v6482_v61, 0.0 }
0x1319   : > { %6494 = vadd.xlane.f32.xlu1 %v6493_v11 }
0x139e   : > { %v6489_v46 = vpop.xlane.xlu1 %6488 }
0x139f   : > { %v6496_v55 = vmul.f32 0.03125, %v6489_v46 }
0x13a1   : > { %v6499_v60 = vsub.f32 %v6472_v31, %v6496_v55 }
0x13a2   : > { %v6492_v16 = vpop.xlane.xlu0 %6491 }
0x13a3   : > { %v6497_v24 = vmul.f32 0.03125, %v6492_v16  ;;  %v6502_v26 = vmul.f32 %v6499_v60, %v6499_v60 }
0x13a5   : > { %v6500_v43 = vsub.f32 %v6477_v49, %v6497_v24  ;;  %v6505_v18 = vsel %vm685_vm4, %v6502_v26, 0.0 }
0x13a6   : > { %6506 = vadd.xlane.f32.xlu0 %v6505_v18  ;;  %v6495_v54 = vpop.xlane.xlu1 %6494 }
0x13a7   : > { %v6498_v56 = vmul.f32 0.03125, %v6495_v54  ;;  %v6503_v13 = vmul.f32 %v6500_v43, %v6500_v43 }
0x13a9   : > { %v6501_v27 = vsub.f32 %v6482_v61, %v6498_v56  ;;  %v6508_v5 = vsel %vm685_vm4, %v6503_v13, 0.0 }
0x13aa   : > { %6509 = vadd.xlane.f32.xlu1 %v6508_v5 }
0x13ab   : > { %v6504_v53 = vmul.f32 %v6501_v27, %v6501_v27 }
0x13ad   : > { %v6511_v21 = vsel %vm685_vm4, %v6504_v53, 0.0 }
0x13ae   : > { %6512 = vadd.xlane.f32.xlu0 %v6511_v21 }
0x1433   : > { %v6507_v29 = vpop.xlane.xlu0 %6506 }
0x1434   : > { %v6514_v52 = vmul.f32 0.03125, %v6507_v29 }
0x1436   : > { %v6517_v40 = vadd.f32 1e-05, %v6514_v52 }
0x1437   : > { %v6510_v4 = vpop.xlane.xlu1 %6509 }
0x1438   : > { %8110 = vrsqrt.f32 %v6517_v40  ;;  %v6515_v7 = vmul.f32 0.03125, %v6510_v4 }
0x143a   : > { %v6518_v6 = vadd.f32 1e-05, %v6515_v7 }
0x143b   : > { %v6513_v63 = vpop.xlane.xlu0 %6512 }
0x143c   : > { %8112 = vrsqrt.f32 %v6518_v6  ;;  %v6516_v42 = vmul.f32 0.03125, %v6513_v63 }
0x143e   : > { %v6519_v15 = vadd.f32 1e-05, %v6516_v42 }
0x1440   : > { %8114 = vrsqrt.f32 %v6519_v15 }
0x1442   : > { %v8111_v17 = vpop.eup %8110 }
0x1443   : > { %v6523_v45 = vmul.f32 %v8111_v17, %v6499_v60 }
0x1445   : > { %v6530_v48 = vmul.f32 %v6946_v41, %v6523_v45 }
0x1446   : > { %v8113_v12 = vpop.eup %8112 }
0x1447   : > { %v6537_v20 = vadd.f32 %v6947_v3, %v6530_v48  ;;  %v6524_v62 = vmul.f32 %v8113_v12, %v6500_v43 }
0x1449   : > { %v6540_v58 = vmax.f32 %v6537_v20, 0.0  ;;  %v6531_v30 = vmul.f32 %v6946_v41, %v6524_v62 }
0x144a   : > { %v8115_v36 = vpop.eup %8114 }
0x144b   : > { %v6538_v8 = vadd.f32 %v6947_v3, %v6531_v30  ;;  %v6525_v23 = vmul.f32 %v8115_v36, %v6501_v27  ;;  %7376 = vmatmul.mubr.msk.f32.vlgmr.msra.gmra.mrb[18].mxu1 %vm685_vm4, %v6540_v58 }
0x144c   : > { %7378 = vmatprep.mubr.msk.f32.mxu1 %vm8216_vm1, %v14808_v14 }
0x144d   : > { %v6541_v50 = vmax.f32 %v6538_v8, 0.0  ;;  %v6532_v0 = vmul.f32 %v6946_v41, %v6525_v23 }
0x144f   : > { %v6539_v34 = vadd.f32 %v6947_v3, %v6532_v0  ;;  %7379 = vmatmul.mubr.msk.f32.gmra.mrb[20].mxu1 %vm685_vm4, %v6541_v50 }
0x1450   : > { %7381 = vmatprep.mubr.msk.f32.mxu1 %vm8216_vm1, %v14808_v14 }
0x1451   : > { %v6542_v10 = vmax.f32 %v6539_v34, 0.0 }
0x1453   : > { %7382 = vmatmul.mubr.msk.f32.gmra.mrb[22].mxu1 %vm685_vm4, %v6542_v10 }
0x151e   : > { %v6627_v2 = vpop.f32.mrb[18].mxu1 }
0x151f   : > { %v6628_v57 = vadd.f32 %v6948_v35, %v6627_v2  ;;  %v7377_v47 = vpop.f32.mrb[19].mxu1 }
0x1521   : > { %6641 = vst [vmem:[%s233_s17] sm:$0xff] %v6628_v57 }
0x1522   : > { %v6632_v28 = vpop.f32.mrb[20].mxu1 }
0x1523   : > { %v6633_v31 = vadd.f32 %v6948_v35, %v6632_v28  ;;  %v7380_v19 = vpop.f32.mrb[21].mxu1 }
0x1525   : > { %6642 = vst [vmem:[%s233_s17 + $0x8] sm:$0xff] %v6633_v31 }
0x1526   : > { %v6637_v14 = vpop.f32.mrb[22].mxu1 }
0x1527   : > { %v6638_v1 = vadd.f32 %v6948_v35, %v6637_v14  ;;  %v7383_v25 = vpop.f32.mrb[23].mxu1 }
0x1529   : > { %6643 = vst [vmem:[%s233_s17 + $0x10] sm:$0xff] %v6638_v1 }
0x152a   : > { %8157 = shalt.err (!%p8154_p7)
}
0x152b   : > { %s8158_s11 = scalar_lea.hbm %s13736_s30, 384  ;;  %s8162_s15 = scalar_lea.hbm %s13784_s5, 768 }
0x152c   : > { %p8159_p8 = scmp.ne.s32.totalorder %s13736_s30, %s8158_s11  ;;  %p8163_p1 = scmp.lt.u32.totalorder %s13736_s30, %s13784_s5 }
0x152d   : > { %p8164_p0 = scmp.lt.u32.totalorder %s8162_s15, %s8158_s11  ;;  %p8166_p6 = scmp.lt.u32.totalorder %s8158_s11, %s13736_s30 }
0x152e   : > { %p8160_p11 = pnand %p8159_p8, %p14930_p9 }
0x152f   : > { %p8165_p5 = por %p8164_p0, %p8163_p1 }
0x1530   : > { %p8161_p13 = pneg %p8160_p11 }
0x1531   : > { %p8167_p10 = por %p8166_p6, %p8165_p5 }
0x1533   : > { %p8168_p12 = pnand %p8167_p10, %p8161_p13 }
0x1535   : > { %8171 = shalt.err (!%p8168_p12)
}
0x1536   : > { %s8225_s17 = smov 128   ;;  %s8226_s25 = smov 8  }
0x1537   : > { %7491 = dma.vmem_to_hbm [thread:$0]  (%p14930_p9), %s13731_s23, 384, %s13736_s30, %s13738_s7, %s8225_s17, %s8225_s17, %s8226_s25  }
0x1538 PF: > { %p7503_p2 = scmp.ge.s32.totalorder %s8210_s21, 2  ;;  %s6673_s26 = sand.u32 1, %s8198_s18  }
0x1539   : > { %p14931_p3 = scmp.ne.s32.totalorder %s14124_s29, 0  ;;  %s6674_s6 = scalar_lea.sflag [#allocation4], %s6673_s26 }
0x153b   : > { %p7498_p4 = pnand %p7503_p2, %p14931_p3 }
0x153d   : > { %8193 = dma.done.wait (!%p7498_p4), %s6674_s6, 384  }
0x153e   : > { %8195 = vsyncadd (!%p7498_p4), %s6674_s6, 4294966912  ;;  %p16_p7 = scmp.ge.s32.totalorder %s8282_s24, 4   ;;  %s14932_s18 = smov %s8202_s19 }
0x153f   : > { %s14933_s19 = smov %s8206_s20  ;;  %s14934_s20 = smov %s8293_s27 }
0x1540   : > { %s14935_s21 = smov %s8282_s24  ;;  %18 = sbr.rel (!%p16_p7) target bundleno = 4 (0x4), region = 80 }
0x1547   :  { %6679 = vsyncpa [#allocation3], 1 }
0x1548   :  { %6681 = vsyncpa [#allocation3 + $0x1], 1 }
0x1549   :  { %6682 = vsyncpa [#allocation4], 1 }
0x154a   :  { %6684 = vsyncpa [#allocation4 + $0x1], 1 }

</bundles_post_ra>
